<compile_context>
chip_gen: v7x
topology: tpu7x:2x2x1
jax: 0.10.0
libtpu: 0.0.40
codegen_flags: <defaults>
</compile_context>

<pallas_src>
import jax
import jax.numpy as jnp
from jax.experimental import pallas as pl
from jax.experimental.pallas import tpu as pltpu

BN_EPS = 1e-5


def _gate_kernel(y_ref, cb_ref, cr_ref,
                 py_ref, ey_ref, pc_ref, ec_ref,
                 w1_ref, b1_ref, w2d_ref, b2d_ref,
                 y_out_ref, cb_out_ref, cr_out_ref, gate_out_ref):
    # Feature maps in flat NCHW layout, lane-dense last dim (multiple of 128).
    y = y_ref[...]       # (BT, Cy*HWy)
    cb = cb_ref[...]     # (BT, Cc*HWc)
    cr = cr_ref[...]     # (BT, Cc*HWc)

    # AdaptiveAvgPool2d(1): per-channel mean over the contiguous HW block of
    # the flat layout, expressed as a matmul with a constant (C*HW, C) matrix
    # holding 1/HW -> runs on the MXU, no reshapes needed.
    py = jnp.dot(y, py_ref[...], preferred_element_type=jnp.float32)    # (BT, 64)
    pcb = jnp.dot(cb, pc_ref[...], preferred_element_type=jnp.float32)  # (BT, 64)
    pcr = jnp.dot(cr, pc_ref[...], preferred_element_type=jnp.float32)  # (BT, 64)

    # Dense 1x1 conv over the concatenated 192 channels (BatchNorm folded into
    # w1/b1), done as three partial matmuls to avoid a lane concatenate, +ReLU6.
    h = (jnp.dot(py, w1_ref[0:64, :], preferred_element_type=jnp.float32)
         + jnp.dot(pcb, w1_ref[64:128, :], preferred_element_type=jnp.float32)
         + jnp.dot(pcr, w1_ref[128:192, :], preferred_element_type=jnp.float32)
         + b1_ref[...])                                                  # (BT, 192)
    h = jnp.clip(h, 0.0, 6.0)

    # Grouped 1x1 conv (2 logits per channel) folded to a logit difference.
    # GumbleSoftmax(force_hard=True) forward value == hard argmax over the
    # 2-way axis -> gate = (logit_on - logit_off > 0).
    gate = ((h * w2d_ref[...] + b2d_ref[...]) > 0.0).astype(jnp.float32)  # (BT,192)
    gate_out_ref[...] = gate

    # Expand the per-channel gate to the flat NCHW layout with a constant 0/1
    # expansion matrix (MXU) and apply the gate in place (lane-dense stores).
    # (The 64-lane slices below were flagged as an optional micro-opt only;
    #  XLU has slack here since all compute hides behind the HBM stream.)
    y_out_ref[...] = y * jnp.dot(gate[:, 0:64], ey_ref[...],
                                 preferred_element_type=jnp.float32)
    cb_out_ref[...] = cb * jnp.dot(gate[:, 64:128], ec_ref[...],
                                   preferred_element_type=jnp.float32)
    cr_out_ref[...] = cr * jnp.dot(gate[:, 128:192], ec_ref[...],
                                   preferred_element_type=jnp.float32)


def _pool_expand_mats(C, HW, dtype=jnp.float32):
    """P[(c*HW+s), c] = 1/HW (pooling); E[c, (c*HW+s)] = 1 (gate expansion)."""
    ch = jnp.repeat(jnp.arange(C), HW)                               # (C*HW,)
    onehot = (ch[:, None] == jnp.arange(C)[None, :]).astype(dtype)   # (C*HW, C)
    return onehot / HW, onehot.T


def _pick_bt(batch, row_bytes, feature_budget_bytes):
    """Batch-tile size (rows per grid step).

    Perf-review goals:
      * the grid must have >= 2-4 steps whenever the batch allows it, so the
        software pipeline can overlap prefetch / compute / writeback and both
        v7x TensorCores get work under dimension_semantics=("parallel",);
      * within that, BT as large as possible (amortize ~0.35us/step), up to
        128 rows, inside the VMEM budget left after the constants.
    """
    # Per-step feature VMEM: (in + out) blocks, each double-buffered.
    cap = (feature_budget_bytes // (4 * row_bytes)) // 8 * 8
    cap = max(8, min(cap, 128))
    if batch <= 8:
        return batch                   # too small to split into 8-row tiles
    target_steps = 4                   # >= 2 steps per TensorCore on v7x
    bt = max(8, (batch // target_steps) // 8 * 8)
    return min(bt, cap)


def _build_call(B, BT, FY, FC, Cy, Cc, in_ch, vmem_limit_bytes, const_mode):
    grid = (pl.cdiv(B, BT),)

    def batch_spec(n):
        return pl.BlockSpec((BT, n), lambda b: (b, 0))

    def const_spec(r, c):
        if const_mode is None:
            return pl.BlockSpec((r, c), lambda b: (0, 0))
        # Constant index_map -> fetched once; single-buffer to save VMEM.
        return pl.BlockSpec((r, c), lambda b: (0, 0), pipeline_mode=const_mode)

    in_specs = [
        batch_spec(FY), batch_spec(FC), batch_spec(FC),
        const_spec(FY, Cy), const_spec(Cy, FY),
        const_spec(FC, Cc), const_spec(Cc, FC),
        const_spec(in_ch, in_ch),
        const_spec(1, in_ch), const_spec(1, in_ch), const_spec(1, in_ch),
    ]
    out_specs = [
        batch_spec(FY), batch_spec(FC), batch_spec(FC), batch_spec(in_ch),
    ]
    out_shape = [
        jax.ShapeDtypeStruct((B, FY), jnp.float32),
        jax.ShapeDtypeStruct((B, FC), jnp.float32),
        jax.ShapeDtypeStruct((B, FC), jnp.float32),
        jax.ShapeDtypeStruct((B, in_ch), jnp.float32),
    ]
    return pl.pallas_call(
        _gate_kernel,
        grid=grid,
        in_specs=in_specs,
        out_specs=out_specs,
        out_shape=out_shape,
        # The gating is an in-place scale of the feature maps.
        input_output_aliases={0: 0, 1: 1, 2: 2},
        compiler_params=pltpu.CompilerParams(
            dimension_semantics=("parallel",),
            vmem_limit_bytes=vmem_limit_bytes),
    )


def gate_module_forward(y, cb, cr, params, temperature=1.0):
    """y: NCHW float32 with 64 channels; cb/cr: NCHW float32 with 64 channels
    each (in_ch = 192). Eval path: the hard-gate forward value is
    temperature-invariant because no Gumbel noise is injected."""
    del temperature
    B, Cy, Hy, Wy = y.shape
    _, Cc, Hc, Wc = cb.shape
    assert cb.shape == cr.shape, "cb and cr must share shape (chroma planes)"
    assert (Cy, Cc) == (64, 64), "module hardcodes 64/128 channel splits"
    in_ch = Cy + 2 * Cc  # 192
    FY = Cy * Hy * Wy
    FC = Cc * Hc * Wc
    assert FY % 128 == 0 and FC % 128 == 0, "flat C*H*W must be lane-dense"

    # Flat NCHW views: pure reshapes of contiguous dims -> no transpose traffic.
    y2 = y.reshape(B, FY)
    cb2 = cb.reshape(B, FC)
    cr2 = cr.reshape(B, FC)

    # Constant pooling / expansion matrices (fetched once; constant index_map).
    Py, Ey = _pool_expand_mats(Cy, Hy * Wy)
    Pc, Ec = _pool_expand_mats(Cc, Hc * Wc)

    # Fold BatchNorm (running stats) into the dense 1x1 conv.
    bn_scale = params["bn_gamma"] / jnp.sqrt(params["bn_var"] + BN_EPS)
    bn_shift = params["bn_beta"] - params["bn_mean"] * bn_scale
    w1f = jnp.transpose(params["w1"]) * bn_scale[None, :]        # (in, out)
    b1f = (params["b1"] * bn_scale + bn_shift).reshape(1, in_ch)
    # Fold the grouped 2-way conv into a logit difference.
    w2 = params["w2"].reshape(in_ch, 2)
    b2 = params["b2"].reshape(in_ch, 2)
    w2d = (w2[:, 1] - w2[:, 0]).reshape(1, in_ch)
    b2d = (b2[:, 1] - b2[:, 0]).reshape(1, in_ch)

    # --- VMEM accounting (review item): constants are budgeted as 2x-buffered
    # (covers the fallback path); the remainder funds the feature-map tiles.
    row_bytes = 4 * (FY + 2 * FC)
    const_bytes = 4 * (FY * Cy + Cy * FY + FC * Cc + Cc * FC
                       + in_ch * in_ch + 3 * in_ch)
    feature_budget = max(4 << 20, (24 << 20) - 2 * const_bytes)
    BT = _pick_bt(B, row_bytes, feature_budget)

    footprint = (4 * BT * row_bytes        # in + out feature blocks, 2x buffers
                 + 2 * const_bytes         # constants (worst case 2x buffered)
                 + 2 * BT * in_ch * 4)     # gate output block, 2x buffered
    vmem_limit = int(min(48 << 20, max(16 << 20, footprint + (4 << 20))))

    args = (y2, cb2, cr2, Py, Ey, Pc, Ec, w1f, b1f, w2d, b2d)
    try:
        const_mode = pl.Buffered(1)   # single-buffer constants
        y_o, cb_o, cr_o, gate = _build_call(
            B, BT, FY, FC, Cy, Cc, in_ch, vmem_limit, const_mode)(*args)
    except Exception:
        # TODO(synk): drop this fallback once pipeline_mode=pl.Buffered(1) on
        # the top-level pallas_call pipeline is guaranteed by the jax build;
        # default (double-buffered) constants are correct, just VMEM-hungrier.
        args = (y.reshape(B, FY), cb.reshape(B, FC), cr.reshape(B, FC),
                Py, Ey, Pc, Ec, w1f, b1f, w2d, b2d)
        y_o, cb_o, cr_o, gate = _build_call(
            B, BT, FY, FC, Cy, Cc, in_ch, vmem_limit, None)(*args)

    # Free reshapes back to NCHW; gate matches hatten_d2[:, :, 1] -> (B,192,1).
    return (y_o.reshape(B, Cy, Hy, Wy),
            cb_o.reshape(B, Cc, Hc, Wc),
            cr_o.reshape(B, Cc, Hc, Wc),
            gate[:, :, None])


def _ref_forward(y, cb, cr, params):
    """Pure-JAX reference of the PyTorch forward (eval path), NCHW."""
    in_ch = params["b1"].shape[0]
    pooled = jnp.concatenate(
        [y.mean(axis=(2, 3)), cb.mean(axis=(2, 3)), cr.mean(axis=(2, 3))], axis=1)
    h = pooled @ params["w1"].T + params["b1"]
    h = ((h - params["bn_mean"]) / jnp.sqrt(params["bn_var"] + BN_EPS)
         * params["bn_gamma"] + params["bn_beta"])
    h = jnp.clip(h, 0.0, 6.0)
    w2 = params["w2"].reshape(in_ch, 2)
    b2 = params["b2"].reshape(in_ch, 2)
    logits = h[:, :, None] * w2[None] + b2[None]
    gate = (logits[..., 1] > logits[..., 0]).astype(jnp.float32)
    y_o = y * gate[:, :64, None, None]
    cb_o = cb * gate[:, 64:128, None, None]
    cr_o = cr * gate[:, 128:, None, None]
    return y_o, cb_o, cr_o, gate[:, :, None]


if __name__ == "__main__":
    root = jax.random.PRNGKey(0)
    k_params, k_data = jax.random.split(root)
    kp = jax.random.split(k_params, 8)
    in_ch = 192

    params = {
        # inp_gate: Conv2d(192, 192, 1, bias=True) + BatchNorm2d(192) + ReLU6
        "w1": 0.1 * jax.random.normal(kp[0], (in_ch, in_ch), jnp.float32),
        "b1": 0.1 * jax.random.normal(kp[1], (in_ch,), jnp.float32),
        "bn_gamma": 1.0 + 0.1 * jax.random.normal(kp[2], (in_ch,), jnp.float32),
        "bn_beta": 0.1 * jax.random.normal(kp[3], (in_ch,), jnp.float32),
        "bn_mean": 0.1 * jax.random.normal(kp[4], (in_ch,), jnp.float32),
        "bn_var": 0.5 + jax.random.uniform(kp[5], (in_ch,), jnp.float32),
        # inp_gate_l: Conv2d(192, 384, 1, groups=192, bias=True)
        "w2": 0.5 * jax.random.normal(kp[6], (2 * in_ch, 1, 1, 1), jnp.float32),
        "b2": 0.5 * jax.random.normal(kp[7], (2 * in_ch,), jnp.float32),
    }

    def run_case(batch, key):
        kd = jax.random.split(key, 3)
        # shapes consistent with the module: y 64ch @ 8x8, cb/cr 64ch @ 4x4
        y = jax.random.normal(kd[0], (batch, 64, 8, 8), jnp.float32)
        cb = jax.random.normal(kd[1], (batch, 64, 4, 4), jnp.float32)
        cr = jax.random.normal(kd[2], (batch, 64, 4, 4), jnp.float32)
        # Reference first (inputs are never mutated; this keeps the check
        # independent of the in-place aliasing inside the kernel call).
        refs = jax.block_until_ready(_ref_forward(y, cb, cr, params))
        outs = jax.block_until_ready(
            gate_module_forward(y, cb, cr, params, temperature=1.0))
        for got, want in zip(outs, refs):
            assert got.shape == want.shape, (batch, got.shape, want.shape)
            assert jnp.allclose(got, want, atol=1e-5, rtol=1e-5), batch

    kd2, kd20 = jax.random.split(k_data)
    run_case(2, kd2)     # tiny batch: single grid step
    run_case(20, kd20)   # BT=8 -> 3 pipelined grid steps, partial last block
    print("KERNEL_OK")
</pallas_src>

<mosaic_0001>
module attributes {stable_mosaic.version = 11 : i64} {
  func.func @_gate_kernel(%arg0: i32, %arg1: memref<2x4096xf32, #tpu.memory_space<vmem>>, %arg2: memref<2x1024xf32, #tpu.memory_space<vmem>>, %arg3: memref<2x1024xf32, #tpu.memory_space<vmem>>, %arg4: memref<4096x64xf32, #tpu.memory_space<vmem>>, %arg5: memref<64x4096xf32, #tpu.memory_space<vmem>>, %arg6: memref<1024x64xf32, #tpu.memory_space<vmem>>, %arg7: memref<64x1024xf32, #tpu.memory_space<vmem>>, %arg8: memref<192x192xf32, #tpu.memory_space<vmem>>, %arg9: memref<1x192xf32, #tpu.memory_space<vmem>>, %arg10: memref<1x192xf32, #tpu.memory_space<vmem>>, %arg11: memref<1x192xf32, #tpu.memory_space<vmem>>, %arg12: memref<2x4096xf32, #tpu.memory_space<vmem>>, %arg13: memref<2x1024xf32, #tpu.memory_space<vmem>>, %arg14: memref<2x1024xf32, #tpu.memory_space<vmem>>, %arg15: memref<2x192xf32, #tpu.memory_space<vmem>>) attributes {dimension_semantics = [#tpu.dimension_semantics<parallel>], iteration_bounds = array<i64: 1>, scalar_prefetch = 0 : i64, scratch_operands = 0 : i64, tpu.core_type = #tpu.core_type<tc>, window_params = [{transform_indices = @transform_0, window_bounds = array<i64: 2, 4096>}, {transform_indices = @transform_1, window_bounds = array<i64: 2, 1024>}, {transform_indices = @transform_2, window_bounds = array<i64: 2, 1024>}, {pipeline_mode = #tpu.pipeline_mode<synchronous>, transform_indices = @transform_3, window_bounds = array<i64: 4096, 64>}, {pipeline_mode = #tpu.pipeline_mode<synchronous>, transform_indices = @transform_4, window_bounds = array<i64: 64, 4096>}, {pipeline_mode = #tpu.pipeline_mode<synchronous>, transform_indices = @transform_5, window_bounds = array<i64: 1024, 64>}, {pipeline_mode = #tpu.pipeline_mode<synchronous>, transform_indices = @transform_6, window_bounds = array<i64: 64, 1024>}, {pipeline_mode = #tpu.pipeline_mode<synchronous>, transform_indices = @transform_7, window_bounds = array<i64: 192, 192>}, {pipeline_mode = #tpu.pipeline_mode<synchronous>, transform_indices = @transform_8, window_bounds = array<i64: 1, 192>}, {pipeline_mode = #tpu.pipeline_mode<synchronous>, transform_indices = @transform_9, window_bounds = array<i64: 1, 192>}, {pipeline_mode = #tpu.pipeline_mode<synchronous>, transform_indices = @transform_10, window_bounds = array<i64: 1, 192>}, {transform_indices = @transform_11, window_bounds = array<i64: 2, 4096>}, {transform_indices = @transform_12, window_bounds = array<i64: 2, 1024>}, {transform_indices = @transform_13, window_bounds = array<i64: 2, 1024>}, {transform_indices = @transform_14, window_bounds = array<i64: 2, 192>}]} {
    %c0 = arith.constant 0 : index
    %c0_0 = arith.constant 0 : index
    %0 = vector.load %arg1[%c0, %c0_0] : memref<2x4096xf32, #tpu.memory_space<vmem>>, vector<2x4096xf32>
    %c0_1 = arith.constant 0 : index
    %c0_2 = arith.constant 0 : index
    %1 = vector.load %arg2[%c0_1, %c0_2] : memref<2x1024xf32, #tpu.memory_space<vmem>>, vector<2x1024xf32>
    %c0_3 = arith.constant 0 : index
    %c0_4 = arith.constant 0 : index
    %2 = vector.load %arg3[%c0_3, %c0_4] : memref<2x1024xf32, #tpu.memory_space<vmem>>, vector<2x1024xf32>
    %c0_5 = arith.constant 0 : index
    %c0_6 = arith.constant 0 : index
    %3 = vector.load %arg4[%c0_5, %c0_6] : memref<4096x64xf32, #tpu.memory_space<vmem>>, vector<4096x64xf32>
    %cst = arith.constant dense<0.000000e+00> : vector<2x64xf32>
    %4 = tpu.matmul %0, %3, %cst {dimension_numbers = #tpu.dot_dimension_numbers<[1], [0], [0], [1], [0, 0, 1, 1], [], []>} : vector<2x4096xf32>, vector<4096x64xf32>, vector<2x64xf32> -> vector<2x64xf32>
    %c0_7 = arith.constant 0 : index
    %c0_8 = arith.constant 0 : index
    %5 = vector.load %arg6[%c0_7, %c0_8] : memref<1024x64xf32, #tpu.memory_space<vmem>>, vector<1024x64xf32>
    %cst_9 = arith.constant dense<0.000000e+00> : vector<2x64xf32>
    %6 = tpu.matmul %1, %5, %cst_9 {dimension_numbers = #tpu.dot_dimension_numbers<[1], [0], [0], [1], [0, 0, 1, 1], [], []>} : vector<2x1024xf32>, vector<1024x64xf32>, vector<2x64xf32> -> vector<2x64xf32>
    %c0_10 = arith.constant 0 : index
    %c0_11 = arith.constant 0 : index
    %7 = vector.load %arg6[%c0_10, %c0_11] : memref<1024x64xf32, #tpu.memory_space<vmem>>, vector<1024x64xf32>
    %cst_12 = arith.constant dense<0.000000e+00> : vector<2x64xf32>
    %8 = tpu.matmul %2, %7, %cst_12 {dimension_numbers = #tpu.dot_dimension_numbers<[1], [0], [0], [1], [0, 0, 1, 1], [], []>} : vector<2x1024xf32>, vector<1024x64xf32>, vector<2x64xf32> -> vector<2x64xf32>
    %c0_13 = arith.constant 0 : index
    %c0_14 = arith.constant 0 : index
    %9 = vector.load %arg8[%c0_13, %c0_14] : memref<192x192xf32, #tpu.memory_space<vmem>>, vector<64x192xf32>
    %cst_15 = arith.constant dense<0.000000e+00> : vector<2x192xf32>
    %10 = tpu.matmul %4, %9, %cst_15 {dimension_numbers = #tpu.dot_dimension_numbers<[1], [0], [0], [1], [0, 0, 1, 1], [], []>} : vector<2x64xf32>, vector<64x192xf32>, vector<2x192xf32> -> vector<2x192xf32>
    %c64 = arith.constant 64 : index
    %c0_16 = arith.constant 0 : index
    %11 = vector.load %arg8[%c64, %c0_16] : memref<192x192xf32, #tpu.memory_space<vmem>>, vector<64x192xf32>
    %cst_17 = arith.constant dense<0.000000e+00> : vector<2x192xf32>
    %12 = tpu.matmul %6, %11, %cst_17 {dimension_numbers = #tpu.dot_dimension_numbers<[1], [0], [0], [1], [0, 0, 1, 1], [], []>} : vector<2x64xf32>, vector<64x192xf32>, vector<2x192xf32> -> vector<2x192xf32>
    %13 = arith.addf %10, %12 : vector<2x192xf32>
    %c128 = arith.constant 128 : index
    %c0_18 = arith.constant 0 : index
    %14 = vector.load %arg8[%c128, %c0_18] : memref<192x192xf32, #tpu.memory_space<vmem>>, vector<64x192xf32>
    %cst_19 = arith.constant dense<0.000000e+00> : vector<2x192xf32>
    %15 = tpu.matmul %8, %14, %cst_19 {dimension_numbers = #tpu.dot_dimension_numbers<[1], [0], [0], [1], [0, 0, 1, 1], [], []>} : vector<2x64xf32>, vector<64x192xf32>, vector<2x192xf32> -> vector<2x192xf32>
    %16 = arith.addf %13, %15 : vector<2x192xf32>
    %c0_20 = arith.constant 0 : index
    %c0_21 = arith.constant 0 : index
    %17 = vector.load %arg9[%c0_20, %c0_21] : memref<1x192xf32, #tpu.memory_space<vmem>>, vector<1x192xf32>
    %18 = vector.broadcast %17 : vector<1x192xf32> to vector<2x192xf32>
    %19 = arith.addf %16, %18 : vector<2x192xf32>
    %cst_22 = arith.constant 0.000000e+00 : f32
    %cst_23 = arith.constant 6.000000e+00 : f32
    %20 = vector.broadcast %cst_22 : f32 to vector<2x192xf32>
    %21 = arith.maximumf %20, %19 : vector<2x192xf32>
    %22 = vector.broadcast %cst_23 : f32 to vector<2x192xf32>
    %23 = arith.minimumf %22, %21 : vector<2x192xf32>
    %c0_24 = arith.constant 0 : index
    %c0_25 = arith.constant 0 : index
    %24 = vector.load %arg10[%c0_24, %c0_25] : memref<1x192xf32, #tpu.memory_space<vmem>>, vector<1x192xf32>
    %25 = vector.broadcast %24 : vector<1x192xf32> to vector<2x192xf32>
    %26 = arith.mulf %23, %25 : vector<2x192xf32>
    %c0_26 = arith.constant 0 : index
    %c0_27 = arith.constant 0 : index
    %27 = vector.load %arg11[%c0_26, %c0_27] : memref<1x192xf32, #tpu.memory_space<vmem>>, vector<1x192xf32>
    %28 = vector.broadcast %27 : vector<1x192xf32> to vector<2x192xf32>
    %29 = arith.addf %26, %28 : vector<2x192xf32>
    %cst_28 = arith.constant 0.000000e+00 : f32
    %30 = vector.broadcast %cst_28 : f32 to vector<2x192xf32>
    %31 = arith.cmpf ogt, %29, %30 : vector<2x192xf32>
    %32 = arith.extui %31 : vector<2x192xi1> to vector<2x192xi32>
    %33 = arith.sitofp %32 : vector<2x192xi32> to vector<2x192xf32>
    %c0_29 = arith.constant 0 : index
    %c0_30 = arith.constant 0 : index
    %34 = vector.load %arg15[%c0_29, %c0_30] : memref<2x192xf32, #tpu.memory_space<vmem>>, vector<2x192xf32>
    tpu.vector_store %arg15[%c0_29, %c0_30], %33 {strides = array<i32>} : memref<2x192xf32, #tpu.memory_space<vmem>>, vector<2x192xf32>,
    %35 = vector.extract_strided_slice %33 {offsets = [0, 0], sizes = [2, 64], strides = [1, 1]} : vector<2x192xf32> to vector<2x64xf32>
    %c0_31 = arith.constant 0 : index
    %c0_32 = arith.constant 0 : index
    %36 = vector.load %arg5[%c0_31, %c0_32] : memref<64x4096xf32, #tpu.memory_space<vmem>>, vector<64x4096xf32>
    %cst_33 = arith.constant dense<0.000000e+00> : vector<2x4096xf32>
    %37 = tpu.matmul %35, %36, %cst_33 {dimension_numbers = #tpu.dot_dimension_numbers<[1], [0], [0], [1], [0, 0, 1, 1], [], []>} : vector<2x64xf32>, vector<64x4096xf32>, vector<2x4096xf32> -> vector<2x4096xf32>
    %38 = arith.mulf %0, %37 : vector<2x4096xf32>
    %c0_34 = arith.constant 0 : index
    %c0_35 = arith.constant 0 : index
    %39 = vector.load %arg12[%c0_34, %c0_35] : memref<2x4096xf32, #tpu.memory_space<vmem>>, vector<2x4096xf32>
    tpu.vector_store %arg12[%c0_34, %c0_35], %38 {strides = array<i32>} : memref<2x4096xf32, #tpu.memory_space<vmem>>, vector<2x4096xf32>,
    %40 = vector.extract_strided_slice %33 {offsets = [0, 64], sizes = [2, 64], strides = [1, 1]} : vector<2x192xf32> to vector<2x64xf32>
    %c0_36 = arith.constant 0 : index
    %c0_37 = arith.constant 0 : index
    %41 = vector.load %arg7[%c0_36, %c0_37] : memref<64x1024xf32, #tpu.memory_space<vmem>>, vector<64x1024xf32>
    %cst_38 = arith.constant dense<0.000000e+00> : vector<2x1024xf32>
    %42 = tpu.matmul %40, %41, %cst_38 {dimension_numbers = #tpu.dot_dimension_numbers<[1], [0], [0], [1], [0, 0, 1, 1], [], []>} : vector<2x64xf32>, vector<64x1024xf32>, vector<2x1024xf32> -> vector<2x1024xf32>
    %43 = arith.mulf %1, %42 : vector<2x1024xf32>
    %c0_39 = arith.constant 0 : index
    %c0_40 = arith.constant 0 : index
    %44 = vector.load %arg13[%c0_39, %c0_40] : memref<2x1024xf32, #tpu.memory_space<vmem>>, vector<2x1024xf32>
    tpu.vector_store %arg13[%c0_39, %c0_40], %43 {strides = array<i32>} : memref<2x1024xf32, #tpu.memory_space<vmem>>, vector<2x1024xf32>,
    %45 = vector.extract_strided_slice %33 {offsets = [0, 128], sizes = [2, 64], strides = [1, 1]} : vector<2x192xf32> to vector<2x64xf32>
    %c0_41 = arith.constant 0 : index
    %c0_42 = arith.constant 0 : index
    %46 = vector.load %arg7[%c0_41, %c0_42] : memref<64x1024xf32, #tpu.memory_space<vmem>>, vector<64x1024xf32>
    %cst_43 = arith.constant dense<0.000000e+00> : vector<2x1024xf32>
    %47 = tpu.matmul %45, %46, %cst_43 {dimension_numbers = #tpu.dot_dimension_numbers<[1], [0], [0], [1], [0, 0, 1, 1], [], []>} : vector<2x64xf32>, vector<64x1024xf32>, vector<2x1024xf32> -> vector<2x1024xf32>
    %48 = arith.mulf %2, %47 : vector<2x1024xf32>
    %c0_44 = arith.constant 0 : index
    %c0_45 = arith.constant 0 : index
    %49 = vector.load %arg14[%c0_44, %c0_45] : memref<2x1024xf32, #tpu.memory_space<vmem>>, vector<2x1024xf32>
    tpu.vector_store %arg14[%c0_44, %c0_45], %48 {strides = array<i32>} : memref<2x1024xf32, #tpu.memory_space<vmem>>, vector<2x1024xf32>,
    return
  }
  func.func @transform_0(%arg0: i32) -> (i32, i32) {
    %c0_i32 = arith.constant 0 : i32
    %c0_i32_0 = arith.constant 0 : i32
    return %arg0, %c0_i32 : i32, i32
  }
  func.func @transform_1(%arg0: i32) -> (i32, i32) {
    %c0_i32 = arith.constant 0 : i32
    %c0_i32_0 = arith.constant 0 : i32
    return %arg0, %c0_i32 : i32, i32
  }
  func.func @transform_2(%arg0: i32) -> (i32, i32) {
    %c0_i32 = arith.constant 0 : i32
    %c0_i32_0 = arith.constant 0 : i32
    return %arg0, %c0_i32 : i32, i32
  }
  func.func @transform_3(%arg0: i32) -> (i32, i32) {
    %c0_i32 = arith.constant 0 : i32
    %c0_i32_0 = arith.constant 0 : i32
    %c0_i32_1 = arith.constant 0 : i32
    return %c0_i32, %c0_i32_0 : i32, i32
  }
  func.func @transform_4(%arg0: i32) -> (i32, i32) {
    %c0_i32 = arith.constant 0 : i32
    %c0_i32_0 = arith.constant 0 : i32
    %c0_i32_1 = arith.constant 0 : i32
    return %c0_i32, %c0_i32_0 : i32, i32
  }
  func.func @transform_5(%arg0: i32) -> (i32, i32) {
    %c0_i32 = arith.constant 0 : i32
    %c0_i32_0 = arith.constant 0 : i32
    %c0_i32_1 = arith.constant 0 : i32
    return %c0_i32, %c0_i32_0 : i32, i32
  }
  func.func @transform_6(%arg0: i32) -> (i32, i32) {
    %c0_i32 = arith.constant 0 : i32
    %c0_i32_0 = arith.constant 0 : i32
    %c0_i32_1 = arith.constant 0 : i32
    return %c0_i32, %c0_i32_0 : i32, i32
  }
  func.func @transform_7(%arg0: i32) -> (i32, i32) {
    %c0_i32 = arith.constant 0 : i32
    %c0_i32_0 = arith.constant 0 : i32
    %c0_i32_1 = arith.constant 0 : i32
    return %c0_i32, %c0_i32_0 : i32, i32
  }
  func.func @transform_8(%arg0: i32) -> (i32, i32) {
    %c0_i32 = arith.constant 0 : i32
    %c0_i32_0 = arith.constant 0 : i32
    %c0_i32_1 = arith.constant 0 : i32
    return %c0_i32, %c0_i32_0 : i32, i32
  }
  func.func @transform_9(%arg0: i32) -> (i32, i32) {
    %c0_i32 = arith.constant 0 : i32
    %c0_i32_0 = arith.constant 0 : i32
    %c0_i32_1 = arith.constant 0 : i32
    return %c0_i32, %c0_i32_0 : i32, i32
  }
  func.func @transform_10(%arg0: i32) -> (i32, i32) {
    %c0_i32 = arith.constant 0 : i32
    %c0_i32_0 = arith.constant 0 : i32
    %c0_i32_1 = arith.constant 0 : i32
    return %c0_i32, %c0_i32_0 : i32, i32
  }
  func.func @transform_11(%arg0: i32) -> (i32, i32) {
    %c0_i32 = arith.constant 0 : i32
    %c0_i32_0 = arith.constant 0 : i32
    return %arg0, %c0_i32 : i32, i32
  }
  func.func @transform_12(%arg0: i32) -> (i32, i32) {
    %c0_i32 = arith.constant 0 : i32
    %c0_i32_0 = arith.constant 0 : i32
    return %arg0, %c0_i32 : i32, i32
  }
  func.func @transform_13(%arg0: i32) -> (i32, i32) {
    %c0_i32 = arith.constant 0 : i32
    %c0_i32_0 = arith.constant 0 : i32
    return %arg0, %c0_i32 : i32, i32
  }
  func.func @transform_14(%arg0: i32) -> (i32, i32) {
    %c0_i32 = arith.constant 0 : i32
    %c0_i32_0 = arith.constant 0 : i32
    return %arg0, %c0_i32 : i32, i32
  }
}

module attributes {stable_mosaic.version = 11 : i64} {
  func.func @_gate_kernel(%arg0: i32, %arg1: memref<2x4096xf32, #tpu.memory_space<vmem>>, %arg2: memref<2x1024xf32, #tpu.memory_space<vmem>>, %arg3: memref<2x1024xf32, #tpu.memory_space<vmem>>, %arg4: memref<4096x64xf32, #tpu.memory_space<vmem>>, %arg5: memref<64x4096xf32, #tpu.memory_space<vmem>>, %arg6: memref<1024x64xf32, #tpu.memory_space<vmem>>, %arg7: memref<64x1024xf32, #tpu.memory_space<vmem>>, %arg8: memref<192x192xf32, #tpu.memory_space<vmem>>, %arg9: memref<1x192xf32, #tpu.memory_space<vmem>>, %arg10: memref<1x192xf32, #tpu.memory_space<vmem>>, %arg11: memref<1x192xf32, #tpu.memory_space<vmem>>, %arg12: memref<2x4096xf32, #tpu.memory_space<vmem>>, %arg13: memref<2x1024xf32, #tpu.memory_space<vmem>>, %arg14: memref<2x1024xf32, #tpu.memory_space<vmem>>, %arg15: memref<2x192xf32, #tpu.memory_space<vmem>>) attributes {dimension_semantics = [#tpu.dimension_semantics<parallel>], iteration_bounds = array<i64: 1>, scalar_prefetch = 0 : i64, scratch_operands = 0 : i64, tpu.core_type = #tpu.core_type<tc>, window_params = [{transform_indices = @transform_0, window_bounds = array<i64: 2, 4096>}, {transform_indices = @transform_1, window_bounds = array<i64: 2, 1024>}, {transform_indices = @transform_2, window_bounds = array<i64: 2, 1024>}, {pipeline_mode = #tpu.pipeline_mode<synchronous>, transform_indices = @transform_3, window_bounds = array<i64: 4096, 64>}, {pipeline_mode = #tpu.pipeline_mode<synchronous>, transform_indices = @transform_4, window_bounds = array<i64: 64, 4096>}, {pipeline_mode = #tpu.pipeline_mode<synchronous>, transform_indices = @transform_5, window_bounds = array<i64: 1024, 64>}, {pipeline_mode = #tpu.pipeline_mode<synchronous>, transform_indices = @transform_6, window_bounds = array<i64: 64, 1024>}, {pipeline_mode = #tpu.pipeline_mode<synchronous>, transform_indices = @transform_7, window_bounds = array<i64: 192, 192>}, {pipeline_mode = #tpu.pipeline_mode<synchronous>, transform_indices = @transform_8, window_bounds = array<i64: 1, 192>}, {pipeline_mode = #tpu.pipeline_mode<synchronous>, transform_indices = @transform_9, window_bounds = array<i64: 1, 192>}, {pipeline_mode = #tpu.pipeline_mode<synchronous>, transform_indices = @transform_10, window_bounds = array<i64: 1, 192>}, {transform_indices = @transform_11, window_bounds = array<i64: 2, 4096>}, {transform_indices = @transform_12, window_bounds = array<i64: 2, 1024>}, {transform_indices = @transform_13, window_bounds = array<i64: 2, 1024>}, {transform_indices = @transform_14, window_bounds = array<i64: 2, 192>}]} {
    %c0 = arith.constant 0 : index
    %c0_0 = arith.constant 0 : index
    %0 = vector.load %arg1[%c0, %c0_0] : memref<2x4096xf32, #tpu.memory_space<vmem>>, vector<2x4096xf32>
    %c0_1 = arith.constant 0 : index
    %c0_2 = arith.constant 0 : index
    %1 = vector.load %arg2[%c0_1, %c0_2] : memref<2x1024xf32, #tpu.memory_space<vmem>>, vector<2x1024xf32>
    %c0_3 = arith.constant 0 : index
    %c0_4 = arith.constant 0 : index
    %2 = vector.load %arg3[%c0_3, %c0_4] : memref<2x1024xf32, #tpu.memory_space<vmem>>, vector<2x1024xf32>
    %c0_5 = arith.constant 0 : index
    %c0_6 = arith.constant 0 : index
    %3 = vector.load %arg4[%c0_5, %c0_6] : memref<4096x64xf32, #tpu.memory_space<vmem>>, vector<4096x64xf32>
    %cst = arith.constant dense<0.000000e+00> : vector<2x64xf32>
    %4 = tpu.matmul %0, %3, %cst {dimension_numbers = #tpu.dot_dimension_numbers<[1], [0], [0], [1], [0, 0, 1, 1], [], []>} : vector<2x4096xf32>, vector<4096x64xf32>, vector<2x64xf32> -> vector<2x64xf32>
    %c0_7 = arith.constant 0 : index
    %c0_8 = arith.constant 0 : index
    %5 = vector.load %arg6[%c0_7, %c0_8] : memref<1024x64xf32, #tpu.memory_space<vmem>>, vector<1024x64xf32>
    %cst_9 = arith.constant dense<0.000000e+00> : vector<2x64xf32>
    %6 = tpu.matmul %1, %5, %cst_9 {dimension_numbers = #tpu.dot_dimension_numbers<[1], [0], [0], [1], [0, 0, 1, 1], [], []>} : vector<2x1024xf32>, vector<1024x64xf32>, vector<2x64xf32> -> vector<2x64xf32>
    %c0_10 = arith.constant 0 : index
    %c0_11 = arith.constant 0 : index
    %7 = vector.load %arg6[%c0_10, %c0_11] : memref<1024x64xf32, #tpu.memory_space<vmem>>, vector<1024x64xf32>
    %cst_12 = arith.constant dense<0.000000e+00> : vector<2x64xf32>
    %8 = tpu.matmul %2, %7, %cst_12 {dimension_numbers = #tpu.dot_dimension_numbers<[1], [0], [0], [1], [0, 0, 1, 1], [], []>} : vector<2x1024xf32>, vector<1024x64xf32>, vector<2x64xf32> -> vector<2x64xf32>
    %c0_13 = arith.constant 0 : index
    %c0_14 = arith.constant 0 : index
    %9 = vector.load %arg8[%c0_13, %c0_14] : memref<192x192xf32, #tpu.memory_space<vmem>>, vector<64x192xf32>
    %cst_15 = arith.constant dense<0.000000e+00> : vector<2x192xf32>
    %10 = tpu.matmul %4, %9, %cst_15 {dimension_numbers = #tpu.dot_dimension_numbers<[1], [0], [0], [1], [0, 0, 1, 1], [], []>} : vector<2x64xf32>, vector<64x192xf32>, vector<2x192xf32> -> vector<2x192xf32>
    %c64 = arith.constant 64 : index
    %c0_16 = arith.constant 0 : index
    %11 = vector.load %arg8[%c64, %c0_16] : memref<192x192xf32, #tpu.memory_space<vmem>>, vector<64x192xf32>
    %cst_17 = arith.constant dense<0.000000e+00> : vector<2x192xf32>
    %12 = tpu.matmul %6, %11, %cst_17 {dimension_numbers = #tpu.dot_dimension_numbers<[1], [0], [0], [1], [0, 0, 1, 1], [], []>} : vector<2x64xf32>, vector<64x192xf32>, vector<2x192xf32> -> vector<2x192xf32>
    %13 = arith.addf %10, %12 : vector<2x192xf32>
    %c128 = arith.constant 128 : index
    %c0_18 = arith.constant 0 : index
    %14 = vector.load %arg8[%c128, %c0_18] : memref<192x192xf32, #tpu.memory_space<vmem>>, vector<64x192xf32>
    %cst_19 = arith.constant dense<0.000000e+00> : vector<2x192xf32>
    %15 = tpu.matmul %8, %14, %cst_19 {dimension_numbers = #tpu.dot_dimension_numbers<[1], [0], [0], [1], [0, 0, 1, 1], [], []>} : vector<2x64xf32>, vector<64x192xf32>, vector<2x192xf32> -> vector<2x192xf32>
    %16 = arith.addf %13, %15 : vector<2x192xf32>
    %c0_20 = arith.constant 0 : index
    %c0_21 = arith.constant 0 : index
    %17 = vector.load %arg9[%c0_20, %c0_21] : memref<1x192xf32, #tpu.memory_space<vmem>>, vector<1x192xf32>
    %18 = vector.broadcast %17 : vector<1x192xf32> to vector<2x192xf32>
    %19 = arith.addf %16, %18 : vector<2x192xf32>
    %cst_22 = arith.constant 0.000000e+00 : f32
    %cst_23 = arith.constant 6.000000e+00 : f32
    %20 = vector.broadcast %cst_22 : f32 to vector<2x192xf32>
    %21 = arith.maximumf %20, %19 : vector<2x192xf32>
    %22 = vector.broadcast %cst_23 : f32 to vector<2x192xf32>
    %23 = arith.minimumf %22, %21 : vector<2x192xf32>
    %c0_24 = arith.constant 0 : index
    %c0_25 = arith.constant 0 : index
    %24 = vector.load %arg10[%c0_24, %c0_25] : memref<1x192xf32, #tpu.memory_space<vmem>>, vector<1x192xf32>
    %25 = vector.broadcast %24 : vector<1x192xf32> to vector<2x192xf32>
    %26 = arith.mulf %23, %25 : vector<2x192xf32>
    %c0_26 = arith.constant 0 : index
    %c0_27 = arith.constant 0 : index
    %27 = vector.load %arg11[%c0_26, %c0_27] : memref<1x192xf32, #tpu.memory_space<vmem>>, vector<1x192xf32>
    %28 = vector.broadcast %27 : vector<1x192xf32> to vector<2x192xf32>
    %29 = arith.addf %26, %28 : vector<2x192xf32>
    %cst_28 = arith.constant 0.000000e+00 : f32
    %30 = vector.broadcast %cst_28 : f32 to vector<2x192xf32>
    %31 = arith.cmpf ogt, %29, %30 : vector<2x192xf32>
    %32 = arith.extui %31 : vector<2x192xi1> to vector<2x192xi32>
    %33 = arith.sitofp %32 : vector<2x192xi32> to vector<2x192xf32>
    %c0_29 = arith.constant 0 : index
    %c0_30 = arith.constant 0 : index
    %34 = vector.load %arg15[%c0_29, %c0_30] : memref<2x192xf32, #tpu.memory_space<vmem>>, vector<2x192xf32>
    tpu.vector_store %arg15[%c0_29, %c0_30], %33 {strides = array<i32>} : memref<2x192xf32, #tpu.memory_space<vmem>>, vector<2x192xf32>,
    %35 = vector.extract_strided_slice %33 {offsets = [0, 0], sizes = [2, 64], strides = [1, 1]} : vector<2x192xf32> to vector<2x64xf32>
    %c0_31 = arith.constant 0 : index
    %c0_32 = arith.constant 0 : index
    %36 = vector.load %arg5[%c0_31, %c0_32] : memref<64x4096xf32, #tpu.memory_space<vmem>>, vector<64x4096xf32>
    %cst_33 = arith.constant dense<0.000000e+00> : vector<2x4096xf32>
    %37 = tpu.matmul %35, %36, %cst_33 {dimension_numbers = #tpu.dot_dimension_numbers<[1], [0], [0], [1], [0, 0, 1, 1], [], []>} : vector<2x64xf32>, vector<64x4096xf32>, vector<2x4096xf32> -> vector<2x4096xf32>
    %38 = arith.mulf %0, %37 : vector<2x4096xf32>
    %c0_34 = arith.constant 0 : index
    %c0_35 = arith.constant 0 : index
    %39 = vector.load %arg12[%c0_34, %c0_35] : memref<2x4096xf32, #tpu.memory_space<vmem>>, vector<2x4096xf32>
    tpu.vector_store %arg12[%c0_34, %c0_35], %38 {strides = array<i32>} : memref<2x4096xf32, #tpu.memory_space<vmem>>, vector<2x4096xf32>,
    %40 = vector.extract_strided_slice %33 {offsets = [0, 64], sizes = [2, 64], strides = [1, 1]} : vector<2x192xf32> to vector<2x64xf32>
    %c0_36 = arith.constant 0 : index
    %c0_37 = arith.constant 0 : index
    %41 = vector.load %arg7[%c0_36, %c0_37] : memref<64x1024xf32, #tpu.memory_space<vmem>>, vector<64x1024xf32>
    %cst_38 = arith.constant dense<0.000000e+00> : vector<2x1024xf32>
    %42 = tpu.matmul %40, %41, %cst_38 {dimension_numbers = #tpu.dot_dimension_numbers<[1], [0], [0], [1], [0, 0, 1, 1], [], []>} : vector<2x64xf32>, vector<64x1024xf32>, vector<2x1024xf32> -> vector<2x1024xf32>
    %43 = arith.mulf %1, %42 : vector<2x1024xf32>
    %c0_39 = arith.constant 0 : index
    %c0_40 = arith.constant 0 : index
    %44 = vector.load %arg13[%c0_39, %c0_40] : memref<2x1024xf32, #tpu.memory_space<vmem>>, vector<2x1024xf32>
    tpu.vector_store %arg13[%c0_39, %c0_40], %43 {strides = array<i32>} : memref<2x1024xf32, #tpu.memory_space<vmem>>, vector<2x1024xf32>,
    %45 = vector.extract_strided_slice %33 {offsets = [0, 128], sizes = [2, 64], strides = [1, 1]} : vector<2x192xf32> to vector<2x64xf32>
    %c0_41 = arith.constant 0 : index
    %c0_42 = arith.constant 0 : index
    %46 = vector.load %arg7[%c0_41, %c0_42] : memref<64x1024xf32, #tpu.memory_space<vmem>>, vector<64x1024xf32>
    %cst_43 = arith.constant dense<0.000000e+00> : vector<2x1024xf32>
    %47 = tpu.matmul %45, %46, %cst_43 {dimension_numbers = #tpu.dot_dimension_numbers<[1], [0], [0], [1], [0, 0, 1, 1], [], []>} : vector<2x64xf32>, vector<64x1024xf32>, vector<2x1024xf32> -> vector<2x1024xf32>
    %48 = arith.mulf %2, %47 : vector<2x1024xf32>
    %c0_44 = arith.constant 0 : index
    %c0_45 = arith.constant 0 : index
    %49 = vector.load %arg14[%c0_44, %c0_45] : memref<2x1024xf32, #tpu.memory_space<vmem>>, vector<2x1024xf32>
    tpu.vector_store %arg14[%c0_44, %c0_45], %48 {strides = array<i32>} : memref<2x1024xf32, #tpu.memory_space<vmem>>, vector<2x1024xf32>,
    return
  }
  func.func @transform_0(%arg0: i32) -> (i32, i32) {
    %c0_i32 = arith.constant 0 : i32
    %c0_i32_0 = arith.constant 0 : i32
    return %arg0, %c0_i32 : i32, i32
  }
  func.func @transform_1(%arg0: i32) -> (i32, i32) {
    %c0_i32 = arith.constant 0 : i32
    %c0_i32_0 = arith.constant 0 : i32
    return %arg0, %c0_i32 : i32, i32
  }
  func.func @transform_2(%arg0: i32) -> (i32, i32) {
    %c0_i32 = arith.constant 0 : i32
    %c0_i32_0 = arith.constant 0 : i32
    return %arg0, %c0_i32 : i32, i32
  }
  func.func @transform_3(%arg0: i32) -> (i32, i32) {
    %c0_i32 = arith.constant 0 : i32
    %c0_i32_0 = arith.constant 0 : i32
    %c0_i32_1 = arith.constant 0 : i32
    return %c0_i32, %c0_i32_0 : i32, i32
  }
  func.func @transform_4(%arg0: i32) -> (i32, i32) {
    %c0_i32 = arith.constant 0 : i32
    %c0_i32_0 = arith.constant 0 : i32
    %c0_i32_1 = arith.constant 0 : i32
    return %c0_i32, %c0_i32_0 : i32, i32
  }
  func.func @transform_5(%arg0: i32) -> (i32, i32) {
    %c0_i32 = arith.constant 0 : i32
    %c0_i32_0 = arith.constant 0 : i32
    %c0_i32_1 = arith.constant 0 : i32
    return %c0_i32, %c0_i32_0 : i32, i32
  }
  func.func @transform_6(%arg0: i32) -> (i32, i32) {
    %c0_i32 = arith.constant 0 : i32
    %c0_i32_0 = arith.constant 0 : i32
    %c0_i32_1 = arith.constant 0 : i32
    return %c0_i32, %c0_i32_0 : i32, i32
  }
  func.func @transform_7(%arg0: i32) -> (i32, i32) {
    %c0_i32 = arith.constant 0 : i32
    %c0_i32_0 = arith.constant 0 : i32
    %c0_i32_1 = arith.constant 0 : i32
    return %c0_i32, %c0_i32_0 : i32, i32
  }
  func.func @transform_8(%arg0: i32) -> (i32, i32) {
    %c0_i32 = arith.constant 0 : i32
    %c0_i32_0 = arith.constant 0 : i32
    %c0_i32_1 = arith.constant 0 : i32
    return %c0_i32, %c0_i32_0 : i32, i32
  }
  func.func @transform_9(%arg0: i32) -> (i32, i32) {
    %c0_i32 = arith.constant 0 : i32
    %c0_i32_0 = arith.constant 0 : i32
    %c0_i32_1 = arith.constant 0 : i32
    return %c0_i32, %c0_i32_0 : i32, i32
  }
  func.func @transform_10(%arg0: i32) -> (i32, i32) {
    %c0_i32 = arith.constant 0 : i32
    %c0_i32_0 = arith.constant 0 : i32
    %c0_i32_1 = arith.constant 0 : i32
    return %c0_i32, %c0_i32_0 : i32, i32
  }
  func.func @transform_11(%arg0: i32) -> (i32, i32) {
    %c0_i32 = arith.constant 0 : i32
    %c0_i32_0 = arith.constant 0 : i32
    return %arg0, %c0_i32 : i32, i32
  }
  func.func @transform_12(%arg0: i32) -> (i32, i32) {
    %c0_i32 = arith.constant 0 : i32
    %c0_i32_0 = arith.constant 0 : i32
    return %arg0, %c0_i32 : i32, i32
  }
  func.func @transform_13(%arg0: i32) -> (i32, i32) {
    %c0_i32 = arith.constant 0 : i32
    %c0_i32_0 = arith.constant 0 : i32
    return %arg0, %c0_i32 : i32, i32
  }
  func.func @transform_14(%arg0: i32) -> (i32, i32) {
    %c0_i32 = arith.constant 0 : i32
    %c0_i32_0 = arith.constant 0 : i32
    return %arg0, %c0_i32 : i32, i32
  }
}

</mosaic_0001>

<bundles_post_ra>
// kernel: tpu_custom_call.1
= control target key start
LH: loop header
LB: loop body
LE: loop exit
PB: predicated region body
PF: predicated region fallthrough
CT: control target
= control target key end

     0   :  { %20 = vsyncpa [#allocation3], 0  ;;  %s11534_s0 = inlined_call_operand.hbm [shape: f32[2,4096], index: 0, kind: input, shape index: {}, may-alias: {0,11}]   ;;  %s11535_s1 = inlined_call_operand.hbm [shape: f32[2,1024], index: 1, kind: input, shape index: {}, may-alias: {1,12}]   ;;  %s11536_s2 = inlined_call_operand.hbm [shape: f32[2,1024], index: 2, kind: input, shape index: {}, may-alias: {2,13}]   ;;  %s11537_s3 = inlined_call_operand.vmem [shape: f32[4096,64], index: 3, kind: input, shape index: {}]   ;;  %s11538_s4 = inlined_call_operand.vmem [shape: f32[64,4096], index: 4, kind: input, shape index: {}]   ;;  %s11539_s5 = inlined_call_operand.vmem [shape: f32[1024,64], index: 5, kind: input, shape index: {}]   ;;  %s11540_s6 = inlined_call_operand.vmem [shape: f32[64,1024], index: 6, kind: input, shape index: {}]   ;;  %s11541_s7 = inlined_call_operand.vmem [shape: f32[192,192], index: 7, kind: input, shape index: {}]   ;;  %s11542_s8 = inlined_call_operand.vmem [shape: f32[1,192], index: 8, kind: input, shape index: {}]   ;;  %s11543_s9 = inlined_call_operand.vmem [shape: f32[1,192], index: 9, kind: input, shape index: {}]   ;;  %s11544_s10 = inlined_call_operand.vmem [shape: f32[1,192], index: 10, kind: input, shape index: {}]   ;;  %s11545_s11 = inlined_call_operand.hbm [shape: f32[2,4096], index: 11, kind: output, shape index: {0}, may-alias: {0,11}]   ;;  %s11546_s12 = inlined_call_operand.hbm [shape: f32[2,1024], index: 12, kind: output, shape index: {1}, may-alias: {1,12}]   ;;  %s11547_s13 = inlined_call_operand.hbm [shape: f32[2,1024], index: 13, kind: output, shape index: {2}, may-alias: {2,13}]   ;;  %s11548_s14 = inlined_call_operand.hbm [shape: f32[2,192], index: 14, kind: output, shape index: {3}]  }
   0x1   :  { %21 = vsyncpa [#allocation6], 0 }
   0x2   :  { %22 = vsyncpa [#allocation4], 0 }
   0x3   :  { %23 = vsyncpa [#allocation10], 0 }
   0x4   :  { %24 = vsyncpa [#allocation13], 0  ;;  %s7728_s29 = smov [#allocation5]   ;;  %s7729_s15 = smov [#allocation2]  }
   0x5   :  { %s41_s30 = sshll.u32 %s7728_s29, 4  ;;  %s31_s16 = sshll.u32 %s7729_s15, 4  ;;  %s42_s30 = int_to_ptr.vmem [resolvable:$true] %s41_s30  ;;  %s32_s16 = int_to_ptr.vmem [resolvable:$true] %s31_s16 }
   0x6   :  { %s7564_s19 = scalar_lea.hbm %s11535_s1, 256 }
   0x7   :  { %p7565_p0 = scmp.ne.s32.totalorder %s11535_s1, %s7564_s19  ;;  %p7568_p1 = scmp.lt.u32.totalorder %s7564_s19, %s11535_s1 }
   0x9   :  { %p7570_p2 = pnand %p7568_p1, %p7565_p0 }
   0xb   :  { %7573 = shalt.err (!%p7570_p2)
}
   0xc   :  { %s7574_s24 = scalar_lea.vmem %s42_s30, 256  ;;  %p7579_p4 = scmp.lt.s32.totalorder %s42_s30, %s42_s30 }
   0xd   :  { %p7575_p3 = scmp.ne.s32.totalorder %s42_s30, %s7574_s24  ;;  %p7580_p5 = scmp.lt.s32.totalorder %s7574_s24, %s7574_s24 }
   0xf   :  { %p7581_p6 = por %p7580_p5, %p7579_p4 }
  0x11   :  { %p7582_p7 = pnand %p7581_p6, %p7575_p3 }
  0x13   :  { %7585 = shalt.err (!%p7582_p7)
}
  0x14   :  { %44 = dma.hbm_to_vmem [thread:$0]  %s11535_s1, 256, %s42_s30, [#allocation6]  }
  0x15   :  { %s7586_s29 = scalar_lea.hbm %s11534_s0, 1024 }
  0x16   :  { %p7587_p8 = scmp.ne.s32.totalorder %s11534_s0, %s7586_s29  ;;  %p7590_p9 = scmp.lt.u32.totalorder %s7586_s29, %s11534_s0 }
  0x18   :  { %p7592_p10 = pnand %p7590_p9, %p7587_p8 }
  0x1a   :  { %7595 = shalt.err (!%p7592_p10)
}
  0x1b   :  { %s7596_s20 = scalar_lea.vmem %s32_s16, 1024  ;;  %p7601_p12 = scmp.lt.s32.totalorder %s32_s16, %s32_s16 }
  0x1c   :  { %p7597_p11 = scmp.ne.s32.totalorder %s32_s16, %s7596_s20  ;;  %p7602_p13 = scmp.lt.s32.totalorder %s7596_s20, %s7596_s20 }
  0x1e   :  { %p7603_p0 = por %p7602_p13, %p7601_p12 }
  0x20   :  { %p7604_p1 = pnand %p7603_p0, %p7597_p11 }
  0x22   :  { %7607 = shalt.err (!%p7604_p1)
}
  0x23   :  { %34 = dma.hbm_to_vmem [thread:$0]  %s11534_s0, 1024, %s32_s16, [#allocation3]  }
  0x24   :  { %s7730_s21 = smov [#allocation7]   ;;  %s7608_s25 = scalar_lea.hbm %s11536_s2, 256 }
  0x25   :  { %s51_s22 = sshll.u32 %s7730_s21, 4  ;;  %p7609_p2 = scmp.ne.s32.totalorder %s11536_s2, %s7608_s25  ;;  %s52_s22 = int_to_ptr.vmem [resolvable:$true] %s51_s22 }
  0x26   :  { %p7612_p3 = scmp.lt.u32.totalorder %s7608_s25, %s11536_s2 }
  0x28   :  { %p7614_p4 = pnand %p7612_p3, %p7609_p2 }
  0x2a   :  { %7617 = shalt.err (!%p7614_p4)
}
  0x2b   :  { %s7618_s15 = scalar_lea.vmem %s52_s22, 256  ;;  %p7623_p6 = scmp.lt.s32.totalorder %s52_s22, %s52_s22 }
  0x2c   :  { %p7619_p5 = scmp.ne.s32.totalorder %s52_s22, %s7618_s15  ;;  %p7624_p7 = scmp.lt.s32.totalorder %s7618_s15, %s7618_s15 }
  0x2e   :  { %p7625_p8 = por %p7624_p7, %p7623_p6 }
  0x30   :  { %p7626_p9 = pnand %p7625_p8, %p7619_p5 }
  0x32   :  { %7629 = shalt.err (!%p7626_p9)
}
  0x33   :  { %54 = dma.hbm_to_vmem [thread:$0]  %s11536_s2, 256, %s52_s22, [#allocation6]  }
  0x34   :  { %7718 = dma.done.wait [#allocation3], 1024  }
  0x35   :  { %7719 = vsyncadd [#allocation3], 4294966272 }
  0x36   :  { %7720 = dma.done.wait [#allocation6], 512  }
  0x37   :  { %7721 = vsyncadd [#allocation6], 4294966784  ;;  %v108_v0 = vld [vmem:[%s11537_s3 + $0x80] sm:$0xff]  ;;  %v109_v1 = vld [vmem:[%s11537_s3 + $0x88] sm:$0xff]  ;;  %v7731_v47 = vmov 1983009808   ;;  %v616_v49 = vlaneseq }
  0x38   :  { %v140_v2 = vld [vmem:[%s11537_s3 + $0x180] sm:$0xff]  ;;  %v6326_v3 = vpack.c.bf16 %v109_v1, %v108_v0  ;;  %v141_v4 = vld [vmem:[%s11537_s3 + $0x188] sm:$0xff]  ;;  %v110_v11 = vld [vmem:[%s11537_s3 + $0x90] sm:$0xff]  ;;  %v614_v48 = vunpack.c.l.s4 %v7731_v47  ;;  %vm2708_vm0 = vcmask 523264   ;;  %vm3012_vm3 = vcmask 1041408   ;;  %s7733_s30 = smov 64  }
  0x39   :  { %v92_v5 = vld [vmem:[%s11537_s3] sm:$0xff]  ;;  %v93_v6 = vld [vmem:[%s11537_s3 + $0x8] sm:$0xff]  ;;  %v6358_v7 = vpack.c.bf16 %v141_v4, %v140_v2  ;;  %v111_v13 = vld [vmem:[%s11537_s3 + $0x98] sm:$0xff]  ;;  %v7975_v0 = vshrl.u32 %v616_v49, 7  ;;  %vm3013_vm4 = vcmask 519170  }
  0x3a   :  { %v6328_v8 = vpack.c.bf16 %v93_v6, %v92_v5  ;;  %v124_v9 = vld [vmem:[%s11537_s3 + $0x100] sm:$0xff]  ;;  %v125_v10 = vld [vmem:[%s11537_s3 + $0x108] sm:$0xff]  ;;  %6327 = vmatprep.subr.bf16.mxu0 %v6326_v3  ;;  %v142_v14 = vld [vmem:[%s11537_s3 + $0x190] sm:$0xff]  ;;  %v6330_v16 = vpack.c.bf16 %v111_v13, %v110_v11  ;;  %v615_v63 = vunpack.c.0.s8 %v614_v48 }
  0x3b   :  { %v6360_v12 = vpack.c.bf16 %v125_v10, %v124_v9  ;;  %v143_v15 = vld [vmem:[%s11537_s3 + $0x198] sm:$0xff]  ;;  %6359 = vmatprep.subr.bf16.mxu1 %v6358_v7  ;;  %v94_v18 = vld [vmem:[%s11537_s3 + $0x10] sm:$0xff]  ;;  %v112_v23 = vld [vmem:[%s11537_s3 + $0xa0] sm:$0xff]  ;;  %11568 = vst [vmem:[#allocation19_spill] sm:$0xff] %v7975_v0 }
  0x3c   :  { %6329 = vmatpush3.bf16.msra.mxu0 %v6328_v8  ;;  %v6362_v17 = vpack.c.bf16 %v143_v15, %v142_v14  ;;  %v95_v19 = vld [vmem:[%s11537_s3 + $0x18] sm:$0xff]  ;;  %v126_v20 = vld [vmem:[%s11537_s3 + $0x110] sm:$0xff]  ;;  %v113_v24 = vld [vmem:[%s11537_s3 + $0xa8] sm:$0xff]  ;;  %v8002_v13 = vsub.s32 %v615_v63, %v7975_v0 }
  0x3d   :  { %6361 = vmatpush3.bf16.msra.mxu1 %v6360_v12  ;;  %v6332_v21 = vpack.c.bf16 %v95_v19, %v94_v18  ;;  %v127_v22 = vld [vmem:[%s11537_s3 + $0x118] sm:$0xff]  ;;  %6331 = vmatprep.subr.bf16.mxu0 %v6330_v16  ;;  %v6334_v26 = vpack.c.bf16 %v113_v24, %v112_v23  ;;  %v144_v27 = vld [vmem:[%s11537_s3 + $0x1a0] sm:$0xff]  ;;  %v145_v28 = vld [vmem:[%s11537_s3 + $0x1a8] sm:$0xff] }
  0x3e   :  { %6363 = vmatprep.subr.bf16.mxu1 %v6362_v17  ;;  %v6364_v25 = vpack.c.bf16 %v127_v22, %v126_v20  ;;  %v96_v29 = vld [vmem:[%s11537_s3 + $0x20] sm:$0xff]  ;;  %v6366_v30 = vpack.c.bf16 %v145_v28, %v144_v27  ;;  %v97_v31 = vld [vmem:[%s11537_s3 + $0x28] sm:$0xff]  ;;  %v114_v35 = vld [vmem:[%s11537_s3 + $0xb0] sm:$0xff] }
  0x3f   :  { %v128_v32 = vld [vmem:[%s11537_s3 + $0x120] sm:$0xff]  ;;  %v129_v33 = vld [vmem:[%s11537_s3 + $0x128] sm:$0xff]  ;;  %v6336_v34 = vpack.c.bf16 %v97_v31, %v96_v29  ;;  %v115_v36 = vld [vmem:[%s11537_s3 + $0xb8] sm:$0xff] }
  0x40   :  { %6333 = vmatpush3.bf16.msra.mxu0 %v6332_v21  ;;  %v146_v37 = vld [vmem:[%s11537_s3 + $0x1b0] sm:$0xff]  ;;  %v6368_v38 = vpack.c.bf16 %v129_v33, %v128_v32  ;;  %v6338_v39 = vpack.c.bf16 %v115_v36, %v114_v35  ;;  %v147_v40 = vld [vmem:[%s11537_s3 + $0x1b8] sm:$0xff]  ;;  %v116_v46 = vld [vmem:[%s11537_s3 + $0xc0] sm:$0xff] }
  0x41   :  { %6365 = vmatpush3.bf16.msra.mxu1 %v6364_v25  ;;  %6335 = vmatprep.subr.bf16.mxu0 %v6334_v26  ;;  %v98_v41 = vld [vmem:[%s11537_s3 + $0x30] sm:$0xff]  ;;  %v99_v42 = vld [vmem:[%s11537_s3 + $0x38] sm:$0xff]  ;;  %v6370_v43 = vpack.c.bf16 %v147_v40, %v146_v37  ;;  %v117_v50 = vld [vmem:[%s11537_s3 + $0xc8] sm:$0xff] }
  0x42   :  { %6367 = vmatprep.subr.bf16.mxu1 %v6366_v30  ;;  %v130_v44 = vld [vmem:[%s11537_s3 + $0x130] sm:$0xff]  ;;  %v131_v45 = vld [vmem:[%s11537_s3 + $0x138] sm:$0xff]  ;;  %v148_v51 = vld [vmem:[%s11537_s3 + $0x1c0] sm:$0xff]  ;;  %v6340_v53 = vpack.c.bf16 %v99_v42, %v98_v41  ;;  %v6342_v55 = vpack.c.bf16 %v117_v50, %v116_v46 }
  0x43   :  { %v149_v52 = vld [vmem:[%s11537_s3 + $0x1c8] sm:$0xff]  ;;  %v6372_v54 = vpack.c.bf16 %v131_v45, %v130_v44  ;;  %v100_v56 = vld [vmem:[%s11537_s3 + $0x40] sm:$0xff]  ;;  %v118_v61 = vld [vmem:[%s11537_s3 + $0xd0] sm:$0xff] }
  0x44   :  { %6337 = vmatpush3.bf16.msra.mxu0 %v6336_v34  ;;  %v101_v57 = vld [vmem:[%s11537_s3 + $0x48] sm:$0xff]  ;;  %v132_v58 = vld [vmem:[%s11537_s3 + $0x140] sm:$0xff]  ;;  %v6374_v59 = vpack.c.bf16 %v149_v52, %v148_v51  ;;  %v119_v62 = vld [vmem:[%s11537_s3 + $0xd8] sm:$0xff] }
  0x45   :  { %6369 = vmatpush3.bf16.msra.mxu1 %v6368_v38  ;;  %6339 = vmatprep.subr.bf16.mxu0 %v6338_v39  ;;  %v133_v60 = vld [vmem:[%s11537_s3 + $0x148] sm:$0xff]  ;;  %v150_v1 = vld [vmem:[%s11537_s3 + $0x1d0] sm:$0xff]  ;;  %v151_v2 = vld [vmem:[%s11537_s3 + $0x1d8] sm:$0xff]  ;;  %v6344_v3 = vpack.c.bf16 %v101_v57, %v100_v56  ;;  %v6346_v5 = vpack.c.bf16 %v119_v62, %v118_v61 }
  0x46   :  { %6371 = vmatprep.subr.bf16.mxu1 %v6370_v43  ;;  %v6376_v4 = vpack.c.bf16 %v133_v60, %v132_v58  ;;  %v102_v6 = vld [vmem:[%s11537_s3 + $0x50] sm:$0xff]  ;;  %v103_v7 = vld [vmem:[%s11537_s3 + $0x58] sm:$0xff]  ;;  %v6378_v9 = vpack.c.bf16 %v151_v2, %v150_v1  ;;  %v120_v11 = vld [vmem:[%s11537_s3 + $0xe0] sm:$0xff] }
  0x47   :  { %v134_v8 = vld [vmem:[%s11537_s3 + $0x150] sm:$0xff]  ;;  %v135_v10 = vld [vmem:[%s11537_s3 + $0x158] sm:$0xff]  ;;  %v121_v12 = vld [vmem:[%s11537_s3 + $0xe8] sm:$0xff]  ;;  %v6348_v16 = vpack.c.bf16 %v103_v7, %v102_v6 }
  0x48   :  { %6341 = vmatpush3.bf16.msra.mxu0 %v6340_v53  ;;  %v152_v14 = vld [vmem:[%s11537_s3 + $0x1e0] sm:$0xff]  ;;  %v153_v15 = vld [vmem:[%s11537_s3 + $0x1e8] sm:$0xff]  ;;  %v6380_v18 = vpack.c.bf16 %v135_v10, %v134_v8  ;;  %v6350_v19 = vpack.c.bf16 %v121_v12, %v120_v11  ;;  %v122_v25 = vld [vmem:[%s11537_s3 + $0xf0] sm:$0xff] }
  0x49   :  { %6373 = vmatpush3.bf16.msra.mxu1 %v6372_v54  ;;  %6343 = vmatprep.subr.bf16.mxu0 %v6342_v55  ;;  %v104_v17 = vld [vmem:[%s11537_s3 + $0x60] sm:$0xff]  ;;  %v105_v20 = vld [vmem:[%s11537_s3 + $0x68] sm:$0xff]  ;;  %v6382_v23 = vpack.c.bf16 %v153_v15, %v152_v14  ;;  %v123_v26 = vld [vmem:[%s11537_s3 + $0xf8] sm:$0xff] }
  0x4a   :  { %6375 = vmatprep.subr.bf16.mxu1 %v6374_v59  ;;  %v136_v21 = vld [vmem:[%s11537_s3 + $0x160] sm:$0xff]  ;;  %v137_v24 = vld [vmem:[%s11537_s3 + $0x168] sm:$0xff]  ;;  %v154_v29 = vld [vmem:[%s11537_s3 + $0x1f0] sm:$0xff]  ;;  %v6352_v31 = vpack.c.bf16 %v105_v20, %v104_v17  ;;  %v6354_v35 = vpack.c.bf16 %v123_v26, %v122_v25 }
  0x4b   :  { %v80_v22 = vld [vmem:[#allocation2] sm:$0xff]  ;;  %v155_v30 = vld [vmem:[%s11537_s3 + $0x1f8] sm:$0xff]  ;;  %v6384_v34 = vpack.c.bf16 %v137_v24, %v136_v21  ;;  %v106_v36 = vld [vmem:[%s11537_s3 + $0x70] sm:$0xff] }
  0x4c   :  { %6345 = vmatpush3.bf16.msra.mxu0 %v6344_v3  ;;  %v619_v27 = vrot.slane %v80_v22, %v8002_v13  ;;  %v612_v28 = vcombine.high %v80_v22, %v80_v22  ;;  %v107_v37 = vld [vmem:[%s11537_s3 + $0x78] sm:$0xff]  ;;  %v138_v38 = vld [vmem:[%s11537_s3 + $0x170] sm:$0xff]  ;;  %v6386_v39 = vpack.c.bf16 %v155_v30, %v154_v29  ;;  %v172_v42 = vld [vmem:[%s11537_s3 + $0x280] sm:$0xff] }
  0x4d   :  { %6377 = vmatpush3.bf16.msra.mxu1 %v6376_v4  ;;  %6347 = vmatprep.subr.bf16.mxu0 %v6346_v5  ;;  %v139_v40 = vld [vmem:[%s11537_s3 + $0x178] sm:$0xff]  ;;  %v173_v43 = vld [vmem:[%s11537_s3 + $0x288] sm:$0xff]  ;;  %v204_v44 = vld [vmem:[%s11537_s3 + $0x380] sm:$0xff]  ;;  %v6356_v46 = vpack.c.bf16 %v107_v37, %v106_v36 }
  0x4e   :  { %6379 = vmatprep.subr.bf16.mxu1 %v6378_v9  ;;  %v627_v32 = vcombine.high %v619_v27, %v619_v27  ;;  %v626_v33 = vrot.slane %v612_v28, %v8002_v13  ;;  %v205_v45 = vld [vmem:[%s11537_s3 + $0x388] sm:$0xff]  ;;  %v6388_v47 = vpack.c.bf16 %v139_v40, %v138_v38  ;;  %v6390_v48 = vpack.c.bf16 %v173_v43, %v172_v42  ;;  %v156_v49 = vld [vmem:[%s11537_s3 + $0x200] sm:$0xff]  ;;  %v174_v54 = vld [vmem:[%s11537_s3 + $0x290] sm:$0xff] }
  0x4f   :  { %v157_v50 = vld [vmem:[%s11537_s3 + $0x208] sm:$0xff]  ;;  %v188_v51 = vld [vmem:[%s11537_s3 + $0x300] sm:$0xff]  ;;  %v6422_v52 = vpack.c.bf16 %v205_v45, %v204_v44  ;;  %v175_v55 = vld [vmem:[%s11537_s3 + $0x298] sm:$0xff] }
  0x50   :  { %6349 = vmatpush3.bf16.msra.mxu0 %v6348_v16  ;;  %844 = vmatprep.mubr.f32.mxu0 %v627_v32  ;;  %v628_v41 = vcombine.high %v626_v33, %v626_v33  ;;  %v189_v53 = vld [vmem:[%s11537_s3 + $0x308] sm:$0xff]  ;;  %v206_v56 = vld [vmem:[%s11537_s3 + $0x390] sm:$0xff]  ;;  %v207_v57 = vld [vmem:[%s11537_s3 + $0x398] sm:$0xff]  ;;  %v6392_v58 = vpack.c.bf16 %v157_v50, %v156_v49  ;;  %v6394_v60 = vpack.c.bf16 %v175_v55, %v174_v54 }
  0x51   :  { %6381 = vmatpush3.bf16.msra.mxu1 %v6380_v18  ;;  %6351 = vmatprep.subr.bf16.mxu0 %v6350_v19  ;;  %v6424_v59 = vpack.c.bf16 %v189_v53, %v188_v51  ;;  %v158_v61 = vld [vmem:[%s11537_s3 + $0x210] sm:$0xff]  ;;  %v159_v62 = vld [vmem:[%s11537_s3 + $0x218] sm:$0xff]  ;;  %v6426_v1 = vpack.c.bf16 %v207_v57, %v206_v56  ;;  %v176_v3 = vld [vmem:[%s11537_s3 + $0x2a0] sm:$0xff] }
  0x52   :  { %6383 = vmatprep.subr.bf16.mxu1 %v6382_v23  ;;  %914 = vmatprep.mubr.f32.mxu1 %v628_v41  ;;  %v190_v63 = vld [vmem:[%s11537_s3 + $0x310] sm:$0xff]  ;;  %v191_v2 = vld [vmem:[%s11537_s3 + $0x318] sm:$0xff]  ;;  %v177_v4 = vld [vmem:[%s11537_s3 + $0x2a8] sm:$0xff]  ;;  %v6396_v7 = vpack.c.bf16 %v159_v62, %v158_v61 }
  0x53   :  { %v208_v5 = vld [vmem:[%s11537_s3 + $0x3a0] sm:$0xff]  ;;  %v209_v6 = vld [vmem:[%s11537_s3 + $0x3a8] sm:$0xff]  ;;  %v6428_v8 = vpack.c.bf16 %v191_v2, %v190_v63  ;;  %v6398_v9 = vpack.c.bf16 %v177_v4, %v176_v3  ;;  %v178_v16 = vld [vmem:[%s11537_s3 + $0x2b0] sm:$0xff] }
  0x54   :  { %6353 = vmatpush3.bf16.msra.mxu0 %v6352_v31  ;;  %v160_v10 = vld [vmem:[%s11537_s3 + $0x220] sm:$0xff]  ;;  %v161_v11 = vld [vmem:[%s11537_s3 + $0x228] sm:$0xff]  ;;  %v6430_v14 = vpack.c.bf16 %v209_v6, %v208_v5  ;;  %v179_v17 = vld [vmem:[%s11537_s3 + $0x2b8] sm:$0xff] }
  0x55   :  { %6385 = vmatpush3.bf16.msra.mxu1 %v6384_v34  ;;  %6355 = vmatprep.subr.bf16.mxu0 %v6354_v35  ;;  %v192_v12 = vld [vmem:[%s11537_s3 + $0x320] sm:$0xff]  ;;  %v193_v15 = vld [vmem:[%s11537_s3 + $0x328] sm:$0xff]  ;;  %v210_v18 = vld [vmem:[%s11537_s3 + $0x3b0] sm:$0xff]  ;;  %v6400_v20 = vpack.c.bf16 %v161_v11, %v160_v10  ;;  %v6402_v22 = vpack.c.bf16 %v179_v17, %v178_v16 }
  0x56   :  { %6387 = vmatprep.subr.bf16.mxu1 %v6386_v39  ;;  %v211_v19 = vld [vmem:[%s11537_s3 + $0x3b8] sm:$0xff]  ;;  %v6432_v21 = vpack.c.bf16 %v193_v15, %v192_v12  ;;  %v162_v23 = vld [vmem:[%s11537_s3 + $0x230] sm:$0xff]  ;;  %v180_v28 = vld [vmem:[%s11537_s3 + $0x2c0] sm:$0xff] }
  0x57   :  { %v163_v24 = vld [vmem:[%s11537_s3 + $0x238] sm:$0xff]  ;;  %v194_v25 = vld [vmem:[%s11537_s3 + $0x330] sm:$0xff]  ;;  %v6434_v26 = vpack.c.bf16 %v211_v19, %v210_v18  ;;  %v181_v29 = vld [vmem:[%s11537_s3 + $0x2c8] sm:$0xff] }
  0x58   :  { %6357 = vmatpush3.bf16.msra.mxu0 %v6356_v46  ;;  %v212_v30 = vld [vmem:[%s11537_s3 + $0x3c0] sm:$0xff]  ;;  %v213_v31 = vld [vmem:[%s11537_s3 + $0x3c8] sm:$0xff]  ;;  %v6406_v37 = vpack.c.bf16 %v181_v29, %v180_v28  ;;  %v182_v43 = vld [vmem:[%s11537_s3 + $0x2d0] sm:$0xff] }
  0x59   :  { %6389 = vmatpush3.bf16.msra.mxu1 %v6388_v47  ;;  %6391 = vmatprep.subr.bf16.mxu0 %v6390_v48  ;;  %v81_v32 = vld [vmem:[#allocation2 + $0x8] sm:$0xff]  ;;  %v164_v38 = vld [vmem:[%s11537_s3 + $0x240] sm:$0xff]  ;;  %v6438_v41 = vpack.c.bf16 %v213_v31, %v212_v30  ;;  %v183_v44 = vld [vmem:[%s11537_s3 + $0x2d8] sm:$0xff] }
  0x5a   :  { %6423 = vmatprep.subr.bf16.mxu1 %v6422_v52  ;;  %v8157_v34 = vrot.slane %v81_v32, %v8002_v13  ;;  %v629_v35 = vcombine.high %v81_v32, %v81_v32  ;;  %v165_v39 = vld [vmem:[%s11537_s3 + $0x248] sm:$0xff]  ;;  %v196_v40 = vld [vmem:[%s11537_s3 + $0x340] sm:$0xff]  ;;  %v214_v47 = vld [vmem:[%s11537_s3 + $0x3d0] sm:$0xff]  ;;  %v6410_v52 = vpack.c.bf16 %v183_v44, %v182_v43 }
  0x5b   :  { %845 = vmatmul.mubr.f32.vlgmr.msra.gmra.mrb[0].mxu0 %v619_v27  ;;  %v195_v27 = vld [vmem:[%s11537_s3 + $0x338] sm:$0xff]  ;;  %v197_v42 = vld [vmem:[%s11537_s3 + $0x348] sm:$0xff]  ;;  %v6408_v49 = vpack.c.bf16 %v165_v39, %v164_v38  ;;  %v166_v53 = vld [vmem:[%s11537_s3 + $0x250] sm:$0xff] }
  0x5c   :  { %915 = vmatmul.mubr.f32.vlgmr.msra.gmra.mrb[0].mxu1 %v626_v33  ;;  %6393 = vmatpush3.bf16.msra.mxu0 %v6392_v58  ;;  %v6404_v33 = vpack.c.bf16 %v163_v24, %v162_v23  ;;  %v6436_v36 = vpack.c.bf16 %v195_v27, %v194_v25  ;;  %v644_v45 = vcombine.high %v8157_v34, %v8157_v34  ;;  %v215_v48 = vld [vmem:[%s11537_s3 + $0x3d8] sm:$0xff]  ;;  %v198_v55 = vld [vmem:[%s11537_s3 + $0x350] sm:$0xff]  ;;  %v184_v58 = vld [vmem:[%s11537_s3 + $0x2e0] sm:$0xff] }
  0x5d   :  { %6425 = vmatpush3.bf16.msra.mxu1 %v6424_v59  ;;  %6395 = vmatprep.subr.bf16.mxu0 %v6394_v60  ;;  %v8180_v46 = vrot.slane %v629_v35, %v8002_v13  ;;  %v6440_v51 = vpack.c.bf16 %v197_v42, %v196_v40  ;;  %v167_v54 = vld [vmem:[%s11537_s3 + $0x258] sm:$0xff]  ;;  %v6442_v56 = vpack.c.bf16 %v215_v48, %v214_v47  ;;  %v185_v59 = vld [vmem:[%s11537_s3 + $0x2e8] sm:$0xff]  ;;  %v216_v60 = vld [vmem:[%s11537_s3 + $0x3e0] sm:$0xff] }
  0x5e   :  { %6427 = vmatprep.subr.bf16.mxu1 %v6426_v1  ;;  %984 = vmatprep.mubr.f32.mxu0 %v644_v45  ;;  %v199_v57 = vld [vmem:[%s11537_s3 + $0x358] sm:$0xff]  ;;  %v217_v61 = vld [vmem:[%s11537_s3 + $0x3e8] sm:$0xff]  ;;  %v6412_v62 = vpack.c.bf16 %v167_v54, %v166_v53  ;;  %v6414_v1 = vpack.c.bf16 %v185_v59, %v184_v58  ;;  %v168_v2 = vld [vmem:[%s11537_s3 + $0x260] sm:$0xff] }
  0x5f   :  { %v645_v50 = vcombine.high %v8180_v46, %v8180_v46  ;;  %v6444_v63 = vpack.c.bf16 %v199_v57, %v198_v55  ;;  %v169_v3 = vld [vmem:[%s11537_s3 + $0x268] sm:$0xff]  ;;  %v200_v4 = vld [vmem:[%s11537_s3 + $0x360] sm:$0xff]  ;;  %v6446_v5 = vpack.c.bf16 %v217_v61, %v216_v60  ;;  %v219_v10 = vld [vmem:[%s11537_s3 + $0x3f8] sm:$0xff] }
  0x60   :  { %6397 = vmatpush3.bf16.msra.mxu0 %v6396_v7  ;;  %v201_v6 = vld [vmem:[%s11537_s3 + $0x368] sm:$0xff]  ;;  %v186_v7 = vld [vmem:[%s11537_s3 + $0x2f0] sm:$0xff]  ;;  %v6416_v11 = vpack.c.bf16 %v169_v3, %v168_v2  ;;  %v171_v16 = vld [vmem:[%s11537_s3 + $0x278] sm:$0xff] }
  0x61   :  { %6429 = vmatpush3.bf16.msra.mxu1 %v6428_v8  ;;  %6399 = vmatprep.subr.bf16.mxu0 %v6398_v9  ;;  %v187_v8 = vld [vmem:[%s11537_s3 + $0x2f8] sm:$0xff]  ;;  %v218_v9 = vld [vmem:[%s11537_s3 + $0x3f0] sm:$0xff]  ;;  %v6448_v12 = vpack.c.bf16 %v201_v6, %v200_v4  ;;  %v269_v23 = vld [vmem:[%s11537_s3 + $0x588] sm:$0xff] }
  0x62   :  { %6431 = vmatprep.subr.bf16.mxu1 %v6430_v14  ;;  %1054 = vmatprep.mubr.f32.mxu1 %v645_v50  ;;  %v6418_v14 = vpack.c.bf16 %v187_v8, %v186_v7  ;;  %v170_v15 = vld [vmem:[%s11537_s3 + $0x270] sm:$0xff]  ;;  %v6450_v18 = vpack.c.bf16 %v219_v10, %v218_v9  ;;  %v203_v19 = vld [vmem:[%s11537_s3 + $0x378] sm:$0xff]  ;;  %v220_v25 = vld [vmem:[%s11537_s3 + $0x400] sm:$0xff] }
  0x63   :  { %v202_v17 = vld [vmem:[%s11537_s3 + $0x370] sm:$0xff]  ;;  %v6420_v24 = vpack.c.bf16 %v171_v16, %v170_v15  ;;  %v221_v28 = vld [vmem:[%s11537_s3 + $0x408] sm:$0xff]  ;;  %v252_v29 = vld [vmem:[%s11537_s3 + $0x500] sm:$0xff] }
  0x64   :  { %6401 = vmatpush3.bf16.msra.mxu0 %v6400_v20  ;;  %v236_v20 = vld [vmem:[%s11537_s3 + $0x480] sm:$0xff]  ;;  %v253_v30 = vld [vmem:[%s11537_s3 + $0x508] sm:$0xff]  ;;  %v238_v32 = vld [vmem:[%s11537_s3 + $0x490] sm:$0xff] }
  0x65   :  { %6433 = vmatpush3.bf16.msra.mxu1 %v6432_v21  ;;  %6403 = vmatprep.subr.bf16.mxu0 %v6402_v22  ;;  %v237_v21 = vld [vmem:[%s11537_s3 + $0x488] sm:$0xff]  ;;  %v268_v22 = vld [vmem:[%s11537_s3 + $0x580] sm:$0xff]  ;;  %v270_v35 = vld [vmem:[%s11537_s3 + $0x590] sm:$0xff]  ;;  %v6488_v38 = vpack.c.bf16 %v253_v30, %v252_v29 }
  0x66   :  { %6435 = vmatprep.subr.bf16.mxu1 %v6434_v26  ;;  %v6452_v26 = vpack.c.bf16 %v203_v19, %v202_v17  ;;  %v6454_v27 = vpack.c.bf16 %v237_v21, %v236_v20  ;;  %v6486_v31 = vpack.c.bf16 %v269_v23, %v268_v22  ;;  %v82_v39 = vld [vmem:[#allocation2 + $0x10] sm:$0xff]  ;;  %v223_v42 = vld [vmem:[%s11537_s3 + $0x418] sm:$0xff]  ;;  %v241_v50 = vld [vmem:[%s11537_s3 + $0x4a8] sm:$0xff] }
  0x67   :  { %v254_v43 = vld [vmem:[%s11537_s3 + $0x510] sm:$0xff]  ;;  %v8296_v44 = vrot.slane %v82_v39, %v8002_v13  ;;  %v646_v45 = vcombine.high %v82_v39, %v82_v39  ;;  %v255_v48 = vld [vmem:[%s11537_s3 + $0x518] sm:$0xff]  ;;  %v224_v57 = vld [vmem:[%s11537_s3 + $0x420] sm:$0xff] }
  0x68   :  { %6405 = vmatpush3.bf16.msra.mxu0 %v6404_v33  ;;  %v239_v33 = vld [vmem:[%s11537_s3 + $0x498] sm:$0xff]  ;;  %v225_v58 = vld [vmem:[%s11537_s3 + $0x428] sm:$0xff]  ;;  %v256_v59 = vld [vmem:[%s11537_s3 + $0x520] sm:$0xff] }
  0x69   :  { %6437 = vmatpush3.bf16.msra.mxu1 %v6436_v36  ;;  %6407 = vmatprep.subr.bf16.mxu0 %v6406_v37  ;;  %v271_v36 = vld [vmem:[%s11537_s3 + $0x598] sm:$0xff]  ;;  %v6456_v37 = vpack.c.bf16 %v221_v28, %v220_v25  ;;  %v6458_v40 = vpack.c.bf16 %v239_v33, %v238_v32  ;;  %v661_v53 = vcombine.high %v8296_v44, %v8296_v44  ;;  %v257_v61 = vld [vmem:[%s11537_s3 + $0x528] sm:$0xff]  ;;  %v226_v6 = vld [vmem:[%s11537_s3 + $0x430] sm:$0xff] }
  0x6a   :  { %6439 = vmatprep.subr.bf16.mxu1 %v6438_v41  ;;  %v222_v41 = vld [vmem:[%s11537_s3 + $0x410] sm:$0xff]  ;;  %v6490_v47 = vpack.c.bf16 %v271_v36, %v270_v35  ;;  %v8317_v54 = vrot.slane %v646_v45, %v8002_v13  ;;  %v275_v2 = vld [vmem:[%s11537_s3 + $0x5b8] sm:$0xff]  ;;  %v6464_v3 = vpack.c.bf16 %v225_v58, %v224_v57  ;;  %v6496_v4 = vpack.c.bf16 %v257_v61, %v256_v59  ;;  %v277_v15 = vld [vmem:[%s11537_s3 + $0x5c8] sm:$0xff] }
  0x6b   :  { %v6460_v55 = vpack.c.bf16 %v223_v42, %v222_v41  ;;  %v227_v7 = vld [vmem:[%s11537_s3 + $0x438] sm:$0xff]  ;;  %v258_v8 = vld [vmem:[%s11537_s3 + $0x530] sm:$0xff]  ;;  %v228_v19 = vld [vmem:[%s11537_s3 + $0x440] sm:$0xff] }
  0x6c   :  { %6409 = vmatpush3.bf16.msra.mxu0 %v6408_v49  ;;  %v240_v49 = vld [vmem:[%s11537_s3 + $0x4a0] sm:$0xff]  ;;  %v259_v10 = vld [vmem:[%s11537_s3 + $0x538] sm:$0xff]  ;;  %v6468_v16 = vpack.c.bf16 %v227_v7, %v226_v6  ;;  %v229_v20 = vld [vmem:[%s11537_s3 + $0x448] sm:$0xff] }
  0x6d   :  { %6441 = vmatpush3.bf16.msra.mxu1 %v6440_v51  ;;  %6411 = vmatprep.subr.bf16.mxu0 %v6410_v52  ;;  %v272_v51 = vld [vmem:[%s11537_s3 + $0x5a0] sm:$0xff]  ;;  %v273_v52 = vld [vmem:[%s11537_s3 + $0x5a8] sm:$0xff]  ;;  %v6500_v17 = vpack.c.bf16 %v259_v10, %v258_v8  ;;  %v247_v25 = vld [vmem:[%s11537_s3 + $0x4d8] sm:$0xff]  ;;  %v6472_v28 = vpack.c.bf16 %v229_v20, %v228_v19 }
  0x6e   :  { %6443 = vmatprep.subr.bf16.mxu1 %v6442_v56  ;;  %v6462_v56 = vpack.c.bf16 %v241_v50, %v240_v49  ;;  %v6494_v60 = vpack.c.bf16 %v273_v52, %v272_v51  ;;  %v260_v21 = vld [vmem:[%s11537_s3 + $0x540] sm:$0xff]  ;;  %v261_v23 = vld [vmem:[%s11537_s3 + $0x548] sm:$0xff]  ;;  %v231_v32 = vld [vmem:[%s11537_s3 + $0x458] sm:$0xff] }
  0x6f   :  { %v6504_v29 = vpack.c.bf16 %v261_v23, %v260_v21  ;;  %v262_v33 = vld [vmem:[%s11537_s3 + $0x550] sm:$0xff]  ;;  %v263_v36 = vld [vmem:[%s11537_s3 + $0x558] sm:$0xff]  ;;  %v280_v39 = vld [vmem:[%s11537_s3 + $0x5e0] sm:$0xff] }
  0x70   :  { %6413 = vmatpush3.bf16.msra.mxu0 %v6412_v62  ;;  %v242_v62 = vld [vmem:[%s11537_s3 + $0x4b0] sm:$0xff]  ;;  %v6508_v42 = vpack.c.bf16 %v263_v36, %v262_v33  ;;  %v232_v45 = vld [vmem:[%s11537_s3 + $0x460] sm:$0xff]  ;;  %v265_v50 = vld [vmem:[%s11537_s3 + $0x568] sm:$0xff] }
  0x71   :  { %6445 = vmatpush3.bf16.msra.mxu1 %v6444_v63  ;;  %6415 = vmatprep.subr.bf16.mxu0 %v6414_v1  ;;  %v243_v63 = vld [vmem:[%s11537_s3 + $0x4b8] sm:$0xff]  ;;  %v274_v1 = vld [vmem:[%s11537_s3 + $0x5b0] sm:$0xff]  ;;  %v284_v8 = vld [vmem:[%s11537_s3 + $0x600] sm:$0xff] }
  0x72   :  { %6447 = vmatprep.subr.bf16.mxu1 %v6446_v5  ;;  %v6466_v5 = vpack.c.bf16 %v243_v63, %v242_v62  ;;  %v6498_v9 = vpack.c.bf16 %v275_v2, %v274_v1  ;;  %v250_v51 = vld [vmem:[%s11537_s3 + $0x4f0] sm:$0xff]  ;;  %v251_v52 = vld [vmem:[%s11537_s3 + $0x4f8] sm:$0xff]  ;;  %v300_v63 = vld [vmem:[%s11537_s3 + $0x680] sm:$0xff] }
  0x73   :  { %v6482_v58 = vpack.c.bf16 %v251_v52, %v250_v51  ;;  %v234_v59 = vld [vmem:[%s11537_s3 + $0x470] sm:$0xff]  ;;  %v267_v62 = vld [vmem:[%s11537_s3 + $0x578] sm:$0xff]  ;;  %v301_v1 = vld [vmem:[%s11537_s3 + $0x688] sm:$0xff] }
  0x74   :  { %6417 = vmatpush3.bf16.msra.mxu0 %v6416_v11  ;;  %v244_v11 = vld [vmem:[%s11537_s3 + $0x4c0] sm:$0xff]  ;;  %v6518_v7 = vpack.c.bf16 %v301_v1, %v300_v63  ;;  %v286_v23 = vld [vmem:[%s11537_s3 + $0x610] sm:$0xff]  ;;  %v291_v51 = vld [vmem:[%s11537_s3 + $0x638] sm:$0xff] }
  0x75   :  { %6449 = vmatpush3.bf16.msra.mxu1 %v6448_v12  ;;  %6419 = vmatprep.subr.bf16.mxu0 %v6418_v14  ;;  %v245_v12 = vld [vmem:[%s11537_s3 + $0x4c8] sm:$0xff]  ;;  %v276_v14 = vld [vmem:[%s11537_s3 + $0x5c0] sm:$0xff]  ;;  %v322_v52 = vld [vmem:[%s11537_s3 + $0x730] sm:$0xff] }
  0x76   :  { %6451 = vmatprep.subr.bf16.mxu1 %v6450_v18  ;;  %v6470_v18 = vpack.c.bf16 %v245_v12, %v244_v11  ;;  %v6502_v22 = vpack.c.bf16 %v277_v15, %v276_v14  ;;  %v332_v2 = vld [vmem:[%s11537_s3 + $0x780] sm:$0xff]  ;;  %v317_v12 = vld [vmem:[%s11537_s3 + $0x708] sm:$0xff]  ;;  %v302_v14 = vld [vmem:[%s11537_s3 + $0x690] sm:$0xff] }
  0x77   :  { %v316_v10 = vld [vmem:[%s11537_s3 + $0x700] sm:$0xff]  ;;  %v303_v15 = vld [vmem:[%s11537_s3 + $0x698] sm:$0xff]  ;;  %vm3014_vm5 = vmor %vm3013_vm4, %vm3012_vm3 }
  0x78   :  { %6421 = vmatpush3.bf16.msra.mxu0 %v6420_v24  ;;  %v246_v24 = vld [vmem:[%s11537_s3 + $0x4d0] sm:$0xff]  ;;  %v6552_v21 = vpack.c.bf16 %v317_v12, %v316_v10  ;;  %v324_v63 = vld [vmem:[%s11537_s3 + $0x740] sm:$0xff] }
  0x79   :  { %6453 = vmatpush3.bf16.msra.mxu1 %v6452_v26  ;;  %6455 = vmatprep.subr.bf16.mxu0 %v6454_v27  ;;  %v278_v26 = vld [vmem:[%s11537_s3 + $0x5d0] sm:$0xff]  ;;  %v279_v27 = vld [vmem:[%s11537_s3 + $0x5d8] sm:$0xff]  ;;  %v6474_v30 = vpack.c.bf16 %v247_v25, %v246_v24 }
  0x7a   :  { %6487 = vmatprep.subr.bf16.mxu1 %v6486_v31  ;;  %v230_v31 = vld [vmem:[%s11537_s3 + $0x450] sm:$0xff]  ;;  %v6506_v35 = vpack.c.bf16 %v279_v27, %v278_v26  ;;  %v287_v24 = vld [vmem:[%s11537_s3 + $0x618] sm:$0xff] }
  0x7b   :  { %985 = vmatmul.mubr.f32.vlgmr.msra.gmra.mrb[2].mxu0 %v8157_v34  ;;  %v6492_v34 = vpack.c.bf16 %v255_v48, %v254_v43  ;;  %v6476_v41 = vpack.c.bf16 %v231_v32, %v230_v31  ;;  %v264_v48 = vld [vmem:[%s11537_s3 + $0x560] sm:$0xff]  ;;  %v318_v25 = vld [vmem:[%s11537_s3 + $0x710] sm:$0xff]  ;;  %v319_v27 = vld [vmem:[%s11537_s3 + $0x718] sm:$0xff] }
  0x7c   :  { %1055 = vmatmul.mubr.f32.vlgmr.msra.gmra.mrb[2].mxu1 %v8180_v46  ;;  %6457 = vmatpush3.bf16.msra.mxu0 %v6456_v37  ;;  %v662_v46 = vcombine.high %v8317_v54, %v8317_v54  ;;  %v248_v37 = vld [vmem:[%s11537_s3 + $0x4e0] sm:$0xff]  ;;  %v6512_v57 = vpack.c.bf16 %v265_v50, %v264_v48  ;;  %v337_v32 = vld [vmem:[%s11537_s3 + $0x7a8] sm:$0xff]  ;;  %v6556_v36 = vpack.c.bf16 %v319_v27, %v318_v25  ;;  %v290_v50 = vld [vmem:[%s11537_s3 + $0x630] sm:$0xff] }
  0x7d   :  { %6489 = vmatpush3.bf16.msra.mxu1 %v6488_v38  ;;  %6459 = vmatprep.subr.bf16.mxu0 %v6458_v40  ;;  %v249_v38 = vld [vmem:[%s11537_s3 + $0x4e8] sm:$0xff]  ;;  %v336_v31 = vld [vmem:[%s11537_s3 + $0x7a0] sm:$0xff]  ;;  %v294_v10 = vld [vmem:[%s11537_s3 + $0x650] sm:$0xff] }
  0x7e   :  { %6491 = vmatprep.subr.bf16.mxu1 %v6490_v47  ;;  %1124 = vmatprep.mubr.f32.mxu0 %v661_v53  ;;  %v281_v40 = vld [vmem:[%s11537_s3 + $0x5e8] sm:$0xff]  ;;  %v6478_v43 = vpack.c.bf16 %v249_v38, %v248_v37  ;;  %v282_v53 = vld [vmem:[%s11537_s3 + $0x5f0] sm:$0xff]  ;;  %v296_v25 = vld [vmem:[%s11537_s3 + $0x660] sm:$0xff] }
  0x7f   :  { %1194 = vmatprep.mubr.f32.mxu1 %v662_v46  ;;  %v233_v47 = vld [vmem:[%s11537_s3 + $0x468] sm:$0xff]  ;;  %v6510_v49 = vpack.c.bf16 %v281_v40, %v280_v39  ;;  %v235_v46 = vld [vmem:[%s11537_s3 + $0x478] sm:$0xff]  ;;  %v320_v39 = vld [vmem:[%s11537_s3 + $0x720] sm:$0xff] }
  0x80   :  { %6461 = vmatpush3.bf16.msra.mxu0 %v6460_v55  ;;  %v283_v55 = vld [vmem:[%s11537_s3 + $0x5f8] sm:$0xff]  ;;  %v289_v38 = vld [vmem:[%s11537_s3 + $0x628] sm:$0xff]  ;;  %v326_v12 = vld [vmem:[%s11537_s3 + $0x750] sm:$0xff] }
  0x81   :  { %6493 = vmatpush3.bf16.msra.mxu1 %v6492_v34  ;;  %6463 = vmatprep.subr.bf16.mxu0 %v6462_v56  ;;  %v6480_v34 = vpack.c.bf16 %v233_v47, %v232_v45  ;;  %v83_v56 = vld [vmem:[#allocation2 + $0x18] sm:$0xff]  ;;  %v6514_v61 = vpack.c.bf16 %v283_v55, %v282_v53  ;;  %v321_v40 = vld [vmem:[%s11537_s3 + $0x728] sm:$0xff]  ;;  %v328_v27 = vld [vmem:[%s11537_s3 + $0x760] sm:$0xff] }
  0x82   :  { %6495 = vmatprep.subr.bf16.mxu1 %v6494_v60  ;;  %v266_v60 = vld [vmem:[%s11537_s3 + $0x570] sm:$0xff]  ;;  %v339_v45 = vld [vmem:[%s11537_s3 + $0x7b8] sm:$0xff]  ;;  %v6560_v48 = vpack.c.bf16 %v321_v40, %v320_v39 }
  0x83   :  { %v6516_v6 = vpack.c.bf16 %v267_v62, %v266_v60  ;;  %v323_v55 = vld [vmem:[%s11537_s3 + $0x738] sm:$0xff]  ;;  %v293_v62 = vld [vmem:[%s11537_s3 + $0x648] sm:$0xff] }
  0x84   :  { %6465 = vmatpush3.bf16.msra.mxu0 %v6464_v3  ;;  %v333_v3 = vld [vmem:[%s11537_s3 + $0x788] sm:$0xff]  ;;  %v299_v39 = vld [vmem:[%s11537_s3 + $0x678] sm:$0xff] }
  0x85   :  { %6497 = vmatpush3.bf16.msra.mxu1 %v6496_v4  ;;  %6467 = vmatprep.subr.bf16.mxu0 %v6466_v5  ;;  %v663_v4 = vcombine.high %v83_v56, %v83_v56  ;;  %v6484_v5 = vpack.c.bf16 %v235_v46, %v234_v59  ;;  %v6550_v11 = vpack.c.bf16 %v333_v3, %v332_v2  ;;  %v325_v2 = vld [vmem:[%s11537_s3 + $0x748] sm:$0xff]  ;;  %v310_v3 = vld [vmem:[%s11537_s3 + $0x6d0] sm:$0xff] }
  0x86   :  { %6499 = vmatprep.subr.bf16.mxu1 %v6498_v9  ;;  %v285_v9 = vld [vmem:[%s11537_s3 + $0x608] sm:$0xff]  ;;  %v6532_v59 = vpack.c.bf16 %v291_v51, %v290_v50  ;;  %v6564_v46 = vpack.c.bf16 %v323_v55, %v322_v52  ;;  %v348_v52 = vld [vmem:[%s11537_s3 + $0x800] sm:$0xff] }
  0x87   :  { %v8494_v19 = vrot.slane %v663_v4, %v8002_v13  ;;  %v6520_v20 = vpack.c.bf16 %v285_v9, %v284_v8  ;;  %v311_v4 = vld [vmem:[%s11537_s3 + $0x6d8] sm:$0xff]  ;;  %v6568_v8 = vpack.c.bf16 %v325_v2, %v324_v63  ;;  %v380_v55 = vld [vmem:[%s11537_s3 + $0x900] sm:$0xff]  ;;  %v350_v2 = vld [vmem:[%s11537_s3 + $0x810] sm:$0xff] }
  0x88   :  { %6469 = vmatpush3.bf16.msra.mxu0 %v6468_v16  ;;  %v8485_v16 = vrot.slane %v83_v56, %v8002_v13  ;;  %v309_v56 = vld [vmem:[%s11537_s3 + $0x6c8] sm:$0xff]  ;;  %v6538_v9 = vpack.c.bf16 %v311_v4, %v310_v3  ;;  %v351_v3 = vld [vmem:[%s11537_s3 + $0x818] sm:$0xff]  ;;  %v382_v4 = vld [vmem:[%s11537_s3 + $0x910] sm:$0xff] }
  0x89   :  { %6501 = vmatpush3.bf16.msra.mxu1 %v6500_v17  ;;  %6471 = vmatprep.subr.bf16.mxu0 %v6470_v18  ;;  %v334_v17 = vld [vmem:[%s11537_s3 + $0x790] sm:$0xff]  ;;  %v335_v18 = vld [vmem:[%s11537_s3 + $0x798] sm:$0xff]  ;;  %v679_v33 = vcombine.high %v8494_v19, %v8494_v19 }
  0x8a   :  { %6503 = vmatprep.subr.bf16.mxu1 %v6502_v22  ;;  %v6522_v22 = vpack.c.bf16 %v303_v15, %v302_v14  ;;  %v6554_v26 = vpack.c.bf16 %v335_v18, %v334_v17  ;;  %v327_v15 = vld [vmem:[%s11537_s3 + $0x758] sm:$0xff]  ;;  %v312_v17 = vld [vmem:[%s11537_s3 + $0x6e0] sm:$0xff]  ;;  %v313_v18 = vld [vmem:[%s11537_s3 + $0x6e8] sm:$0xff] }
  0x8c   :  { %6473 = vmatpush3.bf16.msra.mxu0 %v6472_v28  ;;  %v304_v28 = vld [vmem:[%s11537_s3 + $0x6a0] sm:$0xff] }
  0x8d   :  { %6505 = vmatpush3.bf16.msra.mxu1 %v6504_v29  ;;  %6475 = vmatprep.subr.bf16.mxu0 %v6474_v30  ;;  %v305_v29 = vld [vmem:[%s11537_s3 + $0x6a8] sm:$0xff]  ;;  %v678_v30 = vcombine.high %v8485_v16, %v8485_v16 }
  0x8e   :  { %6507 = vmatprep.subr.bf16.mxu1 %v6506_v35  ;;  %v6524_v35 = vpack.c.bf16 %v287_v24, %v286_v23  ;;  %v6526_v37 = vpack.c.bf16 %v305_v29, %v304_v28  ;;  %v6572_v23 = vpack.c.bf16 %v327_v15, %v326_v12  ;;  %v6542_v24 = vpack.c.bf16 %v313_v18, %v312_v17  ;;  %v329_v29 = vld [vmem:[%s11537_s3 + $0x768] sm:$0xff] }
  0x8f   :  { %v353_v18 = vld [vmem:[%s11537_s3 + $0x828] sm:$0xff] }
  0x90   :  { %6477 = vmatpush3.bf16.msra.mxu0 %v6476_v41  ;;  %v306_v41 = vld [vmem:[%s11537_s3 + $0x6b0] sm:$0xff] }
  0x91   :  { %6509 = vmatpush3.bf16.msra.mxu1 %v6508_v42  ;;  %6479 = vmatprep.subr.bf16.mxu0 %v6478_v43  ;;  %v307_v42 = vld [vmem:[%s11537_s3 + $0x6b8] sm:$0xff]  ;;  %v338_v43 = vld [vmem:[%s11537_s3 + $0x7b0] sm:$0xff] }
  0x92   :  { %6511 = vmatprep.subr.bf16.mxu1 %v6510_v49  ;;  %v6530_v49 = vpack.c.bf16 %v307_v42, %v306_v41  ;;  %v6562_v53 = vpack.c.bf16 %v339_v45, %v338_v43  ;;  %v331_v41 = vld [vmem:[%s11537_s3 + $0x778] sm:$0xff]  ;;  %v364_v42 = vld [vmem:[%s11537_s3 + $0x880] sm:$0xff]  ;;  %v365_v43 = vld [vmem:[%s11537_s3 + $0x888] sm:$0xff] }
  0x93   :  { %v396_v45 = vld [vmem:[%s11537_s3 + $0x980] sm:$0xff]  ;;  %v6582_v51 = vpack.c.bf16 %v365_v43, %v364_v42 }
  0x94   :  { %6481 = vmatpush3.bf16.msra.mxu0 %v6480_v34  ;;  %v308_v34 = vld [vmem:[%s11537_s3 + $0x6c0] sm:$0xff] }
  0x95   :  { %6513 = vmatpush3.bf16.msra.mxu1 %v6512_v57  ;;  %6483 = vmatprep.subr.bf16.mxu0 %v6482_v58  ;;  %v340_v57 = vld [vmem:[%s11537_s3 + $0x7c0] sm:$0xff]  ;;  %v341_v58 = vld [vmem:[%s11537_s3 + $0x7c8] sm:$0xff]  ;;  %v6534_v60 = vpack.c.bf16 %v309_v56, %v308_v34 }
  0x96   :  { %6515 = vmatprep.subr.bf16.mxu1 %v6514_v61  ;;  %v292_v61 = vld [vmem:[%s11537_s3 + $0x640] sm:$0xff]  ;;  %v6566_v1 = vpack.c.bf16 %v341_v58, %v340_v57  ;;  %v381_v56 = vld [vmem:[%s11537_s3 + $0x908] sm:$0xff]  ;;  %v366_v57 = vld [vmem:[%s11537_s3 + $0x890] sm:$0xff] }
  0x97   :  { %v367_v58 = vld [vmem:[%s11537_s3 + $0x898] sm:$0xff]  ;;  %v6616_v63 = vpack.c.bf16 %v381_v56, %v380_v55  ;;  %v388_v42 = vld [vmem:[%s11537_s3 + $0x940] sm:$0xff]  ;;  %v358_v55 = vld [vmem:[%s11537_s3 + $0x850] sm:$0xff] }
  0x98   :  { %6485 = vmatpush3.bf16.msra.mxu0 %v6484_v5  ;;  %v342_v5 = vld [vmem:[%s11537_s3 + $0x7d0] sm:$0xff] }
  0x99   :  { %6517 = vmatpush3.bf16.msra.mxu1 %v6516_v6  ;;  %6519 = vmatprep.subr.bf16.mxu0 %v6518_v7  ;;  %v343_v6 = vld [vmem:[%s11537_s3 + $0x7d8] sm:$0xff]  ;;  %v6536_v7 = vpack.c.bf16 %v293_v62, %v292_v61  ;;  %v390_v56 = vld [vmem:[%s11537_s3 + $0x950] sm:$0xff] }
  0x9a   :  { %6551 = vmatprep.subr.bf16.mxu1 %v6550_v11  ;;  %v295_v11 = vld [vmem:[%s11537_s3 + $0x658] sm:$0xff]  ;;  %v6570_v14 = vpack.c.bf16 %v343_v6, %v342_v5 }
  0x9b   :  { %1125 = vmatmul.mubr.f32.vlgmr.msra.gmra.mrb[4].mxu0 %v8296_v44  ;;  %v288_v44 = vld [vmem:[%s11537_s3 + $0x620] sm:$0xff]  ;;  %v383_v6 = vld [vmem:[%s11537_s3 + $0x918] sm:$0xff] }
  0x9c   :  { %1195 = vmatmul.mubr.f32.vlgmr.msra.gmra.mrb[4].mxu1 %v8317_v54  ;;  %6521 = vmatpush3.bf16.msra.mxu0 %v6520_v20  ;;  %v6558_v54 = vpack.c.bf16 %v337_v32, %v336_v31  ;;  %v6528_v47 = vpack.c.bf16 %v289_v38, %v288_v44  ;;  %v344_v20 = vld [vmem:[%s11537_s3 + $0x7e0] sm:$0xff]  ;;  %v315_v31 = vld [vmem:[%s11537_s3 + $0x6f8] sm:$0xff]  ;;  %v346_v32 = vld [vmem:[%s11537_s3 + $0x7f0] sm:$0xff]  ;;  %v6620_v15 = vpack.c.bf16 %v383_v6, %v382_v4 }
  0x9d   :  { %6553 = vmatpush3.bf16.msra.mxu1 %v6552_v21  ;;  %6523 = vmatprep.subr.bf16.mxu0 %v6522_v22  ;;  %v345_v21 = vld [vmem:[%s11537_s3 + $0x7e8] sm:$0xff]  ;;  %v6540_v22 = vpack.c.bf16 %v295_v11, %v294_v10  ;;  %v298_v38 = vld [vmem:[%s11537_s3 + $0x670] sm:$0xff]  ;;  %v400_v10 = vld [vmem:[%s11537_s3 + $0x9a0] sm:$0xff] }
  0x9e   :  { %6555 = vmatprep.subr.bf16.mxu1 %v6554_v26  ;;  %1264 = vmatprep.mubr.f32.mxu0 %v678_v30  ;;  %v297_v26 = vld [vmem:[%s11537_s3 + $0x668] sm:$0xff]  ;;  %v6574_v28 = vpack.c.bf16 %v345_v21, %v344_v20  ;;  %v314_v30 = vld [vmem:[%s11537_s3 + $0x6f0] sm:$0xff]  ;;  %v384_v20 = vld [vmem:[%s11537_s3 + $0x920] sm:$0xff] }
  0x9f   :  { %1334 = vmatprep.mubr.f32.mxu1 %v679_v33  ;;  %v347_v33 = vld [vmem:[%s11537_s3 + $0x7f8] sm:$0xff]  ;;  %v6546_v44 = vpack.c.bf16 %v315_v31, %v314_v30  ;;  %v401_v11 = vld [vmem:[%s11537_s3 + $0x9a8] sm:$0xff]  ;;  %v386_v31 = vld [vmem:[%s11537_s3 + $0x930] sm:$0xff] }
  0xa0   :  { %6525 = vmatpush3.bf16.msra.mxu0 %v6524_v35  ;;  %v6544_v35 = vpack.c.bf16 %v297_v26, %v296_v25  ;;  %v6578_v40 = vpack.c.bf16 %v347_v33, %v346_v32  ;;  %v385_v21 = vld [vmem:[%s11537_s3 + $0x928] sm:$0xff]  ;;  %v403_v25 = vld [vmem:[%s11537_s3 + $0x9b8] sm:$0xff]  ;;  %v360_v4 = vld [vmem:[%s11537_s3 + $0x860] sm:$0xff] }
  0xa1   :  { %6557 = vmatpush3.bf16.msra.mxu1 %v6556_v36  ;;  %6527 = vmatprep.subr.bf16.mxu0 %v6526_v37  ;;  %v84_v36 = vld [vmem:[#allocation2 + $0x20] sm:$0xff]  ;;  %v6576_v37 = vpack.c.bf16 %v329_v29, %v328_v27  ;;  %v6624_v27 = vpack.c.bf16 %v385_v21, %v384_v20  ;;  %v354_v29 = vld [vmem:[%s11537_s3 + $0x830] sm:$0xff]  ;;  %v355_v30 = vld [vmem:[%s11537_s3 + $0x838] sm:$0xff] }
  0xa2   :  { %6559 = vmatprep.subr.bf16.mxu1 %v6558_v54  ;;  %v330_v54 = vld [vmem:[%s11537_s3 + $0x770] sm:$0xff]  ;;  %v387_v33 = vld [vmem:[%s11537_s3 + $0x938] sm:$0xff]  ;;  %v392_v6 = vld [vmem:[%s11537_s3 + $0x960] sm:$0xff] }
  0xa3   :  { %v6580_v50 = vpack.c.bf16 %v331_v41, %v330_v54  ;;  %v357_v41 = vld [vmem:[%s11537_s3 + $0x848] sm:$0xff]  ;;  %v363_v20 = vld [vmem:[%s11537_s3 + $0x878] sm:$0xff] }
  0xa4   :  { %6529 = vmatpush3.bf16.msra.mxu0 %v6528_v47  ;;  %v397_v47 = vld [vmem:[%s11537_s3 + $0x988] sm:$0xff] }
  0xa5   :  { %6561 = vmatpush3.bf16.msra.mxu1 %v6560_v48  ;;  %6531 = vmatprep.subr.bf16.mxu0 %v6530_v49  ;;  %v680_v48 = vcombine.high %v84_v36, %v84_v36  ;;  %v6548_v49 = vpack.c.bf16 %v299_v39, %v298_v38  ;;  %v6614_v34 = vpack.c.bf16 %v397_v47, %v396_v45  ;;  %v389_v45 = vld [vmem:[%s11537_s3 + $0x948] sm:$0xff]  ;;  %v374_v47 = vld [vmem:[%s11537_s3 + $0x8d0] sm:$0xff] }
  0xa6   :  { %6563 = vmatprep.subr.bf16.mxu1 %v6562_v53  ;;  %v349_v53 = vld [vmem:[%s11537_s3 + $0x808] sm:$0xff]  ;;  %v6596_v38 = vpack.c.bf16 %v355_v30, %v354_v29  ;;  %v6628_v39 = vpack.c.bf16 %v387_v33, %v386_v31  ;;  %v412_v31 = vld [vmem:[%s11537_s3 + $0xa00] sm:$0xff] }
  0xa7   :  { %v8698_v61 = vrot.slane %v680_v48, %v8002_v13  ;;  %v6584_v62 = vpack.c.bf16 %v349_v53, %v348_v52  ;;  %v375_v48 = vld [vmem:[%s11537_s3 + $0x8d8] sm:$0xff]  ;;  %v6632_v52 = vpack.c.bf16 %v389_v45, %v388_v42  ;;  %v444_v33 = vld [vmem:[%s11537_s3 + $0xb00] sm:$0xff]  ;;  %v414_v45 = vld [vmem:[%s11537_s3 + $0xa10] sm:$0xff] }
  0xa8   :  { %6533 = vmatpush3.bf16.msra.mxu0 %v6532_v59  ;;  %v8689_v59 = vrot.slane %v84_v36, %v8002_v13  ;;  %v373_v36 = vld [vmem:[%s11537_s3 + $0x8c8] sm:$0xff]  ;;  %v6602_v53 = vpack.c.bf16 %v375_v48, %v374_v47  ;;  %v415_v47 = vld [vmem:[%s11537_s3 + $0xa18] sm:$0xff]  ;;  %v446_v48 = vld [vmem:[%s11537_s3 + $0xb10] sm:$0xff] }
  0xa9   :  { %6565 = vmatpush3.bf16.msra.mxu1 %v6564_v46  ;;  %6535 = vmatprep.subr.bf16.mxu0 %v6534_v60  ;;  %v398_v46 = vld [vmem:[%s11537_s3 + $0x990] sm:$0xff]  ;;  %v399_v60 = vld [vmem:[%s11537_s3 + $0x998] sm:$0xff]  ;;  %v696_v12 = vcombine.high %v8698_v61, %v8698_v61 }
  0xaa   :  { %6567 = vmatprep.subr.bf16.mxu1 %v6566_v1  ;;  %v6586_v1 = vpack.c.bf16 %v367_v58, %v366_v57  ;;  %v6618_v5 = vpack.c.bf16 %v399_v60, %v398_v46  ;;  %v391_v58 = vld [vmem:[%s11537_s3 + $0x958] sm:$0xff]  ;;  %v376_v46 = vld [vmem:[%s11537_s3 + $0x8e0] sm:$0xff]  ;;  %v377_v60 = vld [vmem:[%s11537_s3 + $0x8e8] sm:$0xff] }
  0xac   :  { %6537 = vmatpush3.bf16.msra.mxu0 %v6536_v7  ;;  %v368_v7 = vld [vmem:[%s11537_s3 + $0x8a0] sm:$0xff] }
  0xad   :  { %6569 = vmatpush3.bf16.msra.mxu1 %v6568_v8  ;;  %6539 = vmatprep.subr.bf16.mxu0 %v6538_v9  ;;  %v369_v8 = vld [vmem:[%s11537_s3 + $0x8a8] sm:$0xff]  ;;  %v695_v9 = vcombine.high %v8689_v59, %v8689_v59 }
  0xae   :  { %6571 = vmatprep.subr.bf16.mxu1 %v6570_v14  ;;  %v6588_v14 = vpack.c.bf16 %v351_v3, %v350_v2  ;;  %v6590_v17 = vpack.c.bf16 %v369_v8, %v368_v7  ;;  %v6636_v2 = vpack.c.bf16 %v391_v58, %v390_v56  ;;  %v6606_v3 = vpack.c.bf16 %v377_v60, %v376_v46  ;;  %v393_v8 = vld [vmem:[%s11537_s3 + $0x968] sm:$0xff] }
  0xaf   :  { %v417_v60 = vld [vmem:[%s11537_s3 + $0xa28] sm:$0xff] }
  0xb0   :  { %6541 = vmatpush3.bf16.msra.mxu0 %v6540_v22  ;;  %v370_v22 = vld [vmem:[%s11537_s3 + $0x8b0] sm:$0xff] }
  0xb1   :  { %6573 = vmatpush3.bf16.msra.mxu1 %v6572_v23  ;;  %6543 = vmatprep.subr.bf16.mxu0 %v6542_v24  ;;  %v371_v23 = vld [vmem:[%s11537_s3 + $0x8b8] sm:$0xff]  ;;  %v402_v24 = vld [vmem:[%s11537_s3 + $0x9b0] sm:$0xff] }
  0xb2   :  { %6575 = vmatprep.subr.bf16.mxu1 %v6574_v28  ;;  %v6594_v28 = vpack.c.bf16 %v371_v23, %v370_v22  ;;  %v6626_v32 = vpack.c.bf16 %v403_v25, %v402_v24  ;;  %v395_v22 = vld [vmem:[%s11537_s3 + $0x978] sm:$0xff]  ;;  %v428_v23 = vld [vmem:[%s11537_s3 + $0xa80] sm:$0xff]  ;;  %v429_v24 = vld [vmem:[%s11537_s3 + $0xa88] sm:$0xff] }
  0xb3   :  { %v460_v25 = vld [vmem:[%s11537_s3 + $0xb80] sm:$0xff]  ;;  %v6646_v30 = vpack.c.bf16 %v429_v24, %v428_v23 }
  0xb4   :  { %6545 = vmatpush3.bf16.msra.mxu0 %v6544_v35  ;;  %v372_v35 = vld [vmem:[%s11537_s3 + $0x8c0] sm:$0xff] }
  0xb5   :  { %6577 = vmatpush3.bf16.msra.mxu1 %v6576_v37  ;;  %6547 = vmatprep.subr.bf16.mxu0 %v6546_v44  ;;  %v404_v37 = vld [vmem:[%s11537_s3 + $0x9c0] sm:$0xff]  ;;  %v405_v44 = vld [vmem:[%s11537_s3 + $0x9c8] sm:$0xff]  ;;  %v6598_v54 = vpack.c.bf16 %v373_v36, %v372_v35 }
  0xb6   :  { %6579 = vmatprep.subr.bf16.mxu1 %v6578_v40  ;;  %v356_v40 = vld [vmem:[%s11537_s3 + $0x840] sm:$0xff]  ;;  %v6630_v43 = vpack.c.bf16 %v405_v44, %v404_v37  ;;  %v445_v36 = vld [vmem:[%s11537_s3 + $0xb08] sm:$0xff]  ;;  %v430_v37 = vld [vmem:[%s11537_s3 + $0xa90] sm:$0xff] }
  0xb7   :  { %v431_v44 = vld [vmem:[%s11537_s3 + $0xa98] sm:$0xff]  ;;  %v6680_v42 = vpack.c.bf16 %v445_v36, %v444_v33  ;;  %v452_v23 = vld [vmem:[%s11537_s3 + $0xb40] sm:$0xff]  ;;  %v422_v33 = vld [vmem:[%s11537_s3 + $0xa50] sm:$0xff] }
  0xb8   :  { %6549 = vmatpush3.bf16.msra.mxu0 %v6548_v49  ;;  %v406_v49 = vld [vmem:[%s11537_s3 + $0x9d0] sm:$0xff] }
  0xb9   :  { %6581 = vmatpush3.bf16.msra.mxu1 %v6580_v50  ;;  %6583 = vmatprep.subr.bf16.mxu0 %v6582_v51  ;;  %v407_v50 = vld [vmem:[%s11537_s3 + $0x9d8] sm:$0xff]  ;;  %v6600_v51 = vpack.c.bf16 %v357_v41, %v356_v40  ;;  %v454_v36 = vld [vmem:[%s11537_s3 + $0xb50] sm:$0xff] }
  0xba   :  { %6615 = vmatprep.subr.bf16.mxu1 %v6614_v34  ;;  %v359_v34 = vld [vmem:[%s11537_s3 + $0x858] sm:$0xff]  ;;  %v6634_v57 = vpack.c.bf16 %v407_v50, %v406_v49 }
  0xbb   :  { %1265 = vmatmul.mubr.f32.vlgmr.msra.gmra.mrb[6].mxu0 %v8485_v16  ;;  %v352_v16 = vld [vmem:[%s11537_s3 + $0x820] sm:$0xff]  ;;  %v447_v50 = vld [vmem:[%s11537_s3 + $0xb18] sm:$0xff] }
  0xbc   :  { %1335 = vmatmul.mubr.f32.vlgmr.msra.gmra.mrb[6].mxu1 %v8494_v19  ;;  %6585 = vmatpush3.bf16.msra.mxu0 %v6584_v62  ;;  %v6622_v19 = vpack.c.bf16 %v401_v11, %v400_v10  ;;  %v6592_v26 = vpack.c.bf16 %v353_v18, %v352_v16  ;;  %v408_v62 = vld [vmem:[%s11537_s3 + $0x9e0] sm:$0xff]  ;;  %v379_v10 = vld [vmem:[%s11537_s3 + $0x8f8] sm:$0xff]  ;;  %v410_v11 = vld [vmem:[%s11537_s3 + $0x9f0] sm:$0xff]  ;;  %v6684_v58 = vpack.c.bf16 %v447_v50, %v446_v48 }
  0xbd   :  { %6617 = vmatpush3.bf16.msra.mxu1 %v6616_v63  ;;  %6587 = vmatprep.subr.bf16.mxu0 %v6586_v1  ;;  %v409_v63 = vld [vmem:[%s11537_s3 + $0x9e8] sm:$0xff]  ;;  %v6604_v1 = vpack.c.bf16 %v359_v34, %v358_v55  ;;  %v362_v18 = vld [vmem:[%s11537_s3 + $0x870] sm:$0xff]  ;;  %v464_v55 = vld [vmem:[%s11537_s3 + $0xba0] sm:$0xff] }
  0xbe   :  { %6619 = vmatprep.subr.bf16.mxu1 %v6618_v5  ;;  %1404 = vmatprep.mubr.f32.mxu0 %v695_v9  ;;  %v361_v5 = vld [vmem:[%s11537_s3 + $0x868] sm:$0xff]  ;;  %v6638_v7 = vpack.c.bf16 %v409_v63, %v408_v62  ;;  %v378_v9 = vld [vmem:[%s11537_s3 + $0x8f0] sm:$0xff]  ;;  %v448_v62 = vld [vmem:[%s11537_s3 + $0xb20] sm:$0xff] }
  0xbf   :  { %1474 = vmatprep.mubr.f32.mxu1 %v696_v12  ;;  %v411_v12 = vld [vmem:[%s11537_s3 + $0x9f8] sm:$0xff]  ;;  %v6610_v16 = vpack.c.bf16 %v379_v10, %v378_v9  ;;  %v465_v34 = vld [vmem:[%s11537_s3 + $0xba8] sm:$0xff]  ;;  %v450_v10 = vld [vmem:[%s11537_s3 + $0xb30] sm:$0xff] }
  0xc0   :  { %6589 = vmatpush3.bf16.msra.mxu0 %v6588_v14  ;;  %v6608_v14 = vpack.c.bf16 %v361_v5, %v360_v4  ;;  %v6642_v21 = vpack.c.bf16 %v411_v12, %v410_v11  ;;  %v449_v63 = vld [vmem:[%s11537_s3 + $0xb28] sm:$0xff]  ;;  %v467_v4 = vld [vmem:[%s11537_s3 + $0xbb8] sm:$0xff]  ;;  %v424_v48 = vld [vmem:[%s11537_s3 + $0xa60] sm:$0xff] }
  0xc1   :  { %6621 = vmatpush3.bf16.msra.mxu1 %v6620_v15  ;;  %6591 = vmatprep.subr.bf16.mxu0 %v6590_v17  ;;  %v85_v15 = vld [vmem:[#allocation2 + $0x28] sm:$0xff]  ;;  %v6640_v17 = vpack.c.bf16 %v393_v8, %v392_v6  ;;  %v6688_v6 = vpack.c.bf16 %v449_v63, %v448_v62  ;;  %v418_v8 = vld [vmem:[%s11537_s3 + $0xa30] sm:$0xff]  ;;  %v419_v9 = vld [vmem:[%s11537_s3 + $0xa38] sm:$0xff] }
  0xc2   :  { %6623 = vmatprep.subr.bf16.mxu1 %v6622_v19  ;;  %v394_v19 = vld [vmem:[%s11537_s3 + $0x970] sm:$0xff]  ;;  %v451_v12 = vld [vmem:[%s11537_s3 + $0xb38] sm:$0xff]  ;;  %v456_v50 = vld [vmem:[%s11537_s3 + $0xb60] sm:$0xff] }
  0xc3   :  { %v6644_v29 = vpack.c.bf16 %v395_v22, %v394_v19  ;;  %v421_v22 = vld [vmem:[%s11537_s3 + $0xa48] sm:$0xff]  ;;  %v427_v62 = vld [vmem:[%s11537_s3 + $0xa78] sm:$0xff] }
  0xc4   :  { %6593 = vmatpush3.bf16.msra.mxu0 %v6592_v26  ;;  %v461_v26 = vld [vmem:[%s11537_s3 + $0xb88] sm:$0xff] }
  0xc5   :  { %6625 = vmatpush3.bf16.msra.mxu1 %v6624_v27  ;;  %6595 = vmatprep.subr.bf16.mxu0 %v6594_v28  ;;  %v697_v27 = vcombine.high %v85_v15, %v85_v15  ;;  %v6612_v28 = vpack.c.bf16 %v363_v20, %v362_v18  ;;  %v6678_v35 = vpack.c.bf16 %v461_v26, %v460_v25  ;;  %v453_v25 = vld [vmem:[%s11537_s3 + $0xb48] sm:$0xff]  ;;  %v438_v26 = vld [vmem:[%s11537_s3 + $0xad0] sm:$0xff] }
  0xc6   :  { %6627 = vmatprep.subr.bf16.mxu1 %v6626_v32  ;;  %v413_v32 = vld [vmem:[%s11537_s3 + $0xa08] sm:$0xff]  ;;  %v6660_v18 = vpack.c.bf16 %v419_v9, %v418_v8  ;;  %v6692_v20 = vpack.c.bf16 %v451_v12, %v450_v10  ;;  %v476_v10 = vld [vmem:[%s11537_s3 + $0xc00] sm:$0xff] }
  0xc7   :  { %v8902_v40 = vrot.slane %v697_v27, %v8002_v13  ;;  %v6648_v41 = vpack.c.bf16 %v413_v32, %v412_v31  ;;  %v439_v27 = vld [vmem:[%s11537_s3 + $0xad8] sm:$0xff]  ;;  %v6696_v31 = vpack.c.bf16 %v453_v25, %v452_v23  ;;  %v508_v12 = vld [vmem:[%s11537_s3 + $0xd00] sm:$0xff]  ;;  %v478_v25 = vld [vmem:[%s11537_s3 + $0xc10] sm:$0xff] }
  0xc8   :  { %6597 = vmatpush3.bf16.msra.mxu0 %v6596_v38  ;;  %v8893_v38 = vrot.slane %v85_v15, %v8002_v13  ;;  %v437_v15 = vld [vmem:[%s11537_s3 + $0xac8] sm:$0xff]  ;;  %v6666_v32 = vpack.c.bf16 %v439_v27, %v438_v26  ;;  %v479_v26 = vld [vmem:[%s11537_s3 + $0xc18] sm:$0xff]  ;;  %v510_v27 = vld [vmem:[%s11537_s3 + $0xd10] sm:$0xff] }
  0xc9   :  { %6629 = vmatpush3.bf16.msra.mxu1 %v6628_v39  ;;  %6599 = vmatprep.subr.bf16.mxu0 %v6598_v54  ;;  %v462_v39 = vld [vmem:[%s11537_s3 + $0xb90] sm:$0xff]  ;;  %v463_v54 = vld [vmem:[%s11537_s3 + $0xb98] sm:$0xff]  ;;  %v713_v56 = vcombine.high %v8902_v40, %v8902_v40 }
  0xca   :  { %6631 = vmatprep.subr.bf16.mxu1 %v6630_v43  ;;  %v6650_v43 = vpack.c.bf16 %v431_v44, %v430_v37  ;;  %v6682_v49 = vpack.c.bf16 %v463_v54, %v462_v39  ;;  %v455_v44 = vld [vmem:[%s11537_s3 + $0xb58] sm:$0xff]  ;;  %v440_v39 = vld [vmem:[%s11537_s3 + $0xae0] sm:$0xff]  ;;  %v441_v54 = vld [vmem:[%s11537_s3 + $0xae8] sm:$0xff] }
  0xcc   :  { %6601 = vmatpush3.bf16.msra.mxu0 %v6600_v51  ;;  %v432_v51 = vld [vmem:[%s11537_s3 + $0xaa0] sm:$0xff] }
  0xcd   :  { %6633 = vmatpush3.bf16.msra.mxu1 %v6632_v52  ;;  %6603 = vmatprep.subr.bf16.mxu0 %v6602_v53  ;;  %v433_v52 = vld [vmem:[%s11537_s3 + $0xaa8] sm:$0xff]  ;;  %v712_v53 = vcombine.high %v8893_v38, %v8893_v38 }
  0xce   :  { %6635 = vmatprep.subr.bf16.mxu1 %v6634_v57  ;;  %v6652_v57 = vpack.c.bf16 %v415_v47, %v414_v45  ;;  %v6654_v46 = vpack.c.bf16 %v433_v52, %v432_v51  ;;  %v6700_v45 = vpack.c.bf16 %v455_v44, %v454_v36  ;;  %v6670_v47 = vpack.c.bf16 %v441_v54, %v440_v39  ;;  %v457_v52 = vld [vmem:[%s11537_s3 + $0xb68] sm:$0xff] }
  0xcf   :  { %v481_v54 = vld [vmem:[%s11537_s3 + $0xc28] sm:$0xff] }
  0xd0   :  { %6605 = vmatpush3.bf16.msra.mxu0 %v6604_v1  ;;  %v434_v1 = vld [vmem:[%s11537_s3 + $0xab0] sm:$0xff] }
  0xd1   :  { %6637 = vmatpush3.bf16.msra.mxu1 %v6636_v2  ;;  %6607 = vmatprep.subr.bf16.mxu0 %v6606_v3  ;;  %v435_v2 = vld [vmem:[%s11537_s3 + $0xab8] sm:$0xff]  ;;  %v466_v3 = vld [vmem:[%s11537_s3 + $0xbb0] sm:$0xff] }
  0xd2   :  { %6639 = vmatprep.subr.bf16.mxu1 %v6638_v7  ;;  %v6658_v7 = vpack.c.bf16 %v435_v2, %v434_v1  ;;  %v6690_v11 = vpack.c.bf16 %v467_v4, %v466_v3  ;;  %v459_v1 = vld [vmem:[%s11537_s3 + $0xb78] sm:$0xff]  ;;  %v492_v2 = vld [vmem:[%s11537_s3 + $0xc80] sm:$0xff]  ;;  %v493_v3 = vld [vmem:[%s11537_s3 + $0xc88] sm:$0xff] }
  0xd3   :  { %v524_v4 = vld [vmem:[%s11537_s3 + $0xd80] sm:$0xff]  ;;  %v6710_v9 = vpack.c.bf16 %v493_v3, %v492_v2 }
  0xd4   :  { %6609 = vmatpush3.bf16.msra.mxu0 %v6608_v14  ;;  %v436_v14 = vld [vmem:[%s11537_s3 + $0xac0] sm:$0xff] }
  0xd5   :  { %6641 = vmatpush3.bf16.msra.mxu1 %v6640_v17  ;;  %6611 = vmatprep.subr.bf16.mxu0 %v6610_v16  ;;  %v468_v17 = vld [vmem:[%s11537_s3 + $0xbc0] sm:$0xff]  ;;  %v469_v16 = vld [vmem:[%s11537_s3 + $0xbc8] sm:$0xff]  ;;  %v6662_v19 = vpack.c.bf16 %v437_v15, %v436_v14 }
  0xd6   :  { %6643 = vmatprep.subr.bf16.mxu1 %v6642_v21  ;;  %v420_v21 = vld [vmem:[%s11537_s3 + $0xa40] sm:$0xff]  ;;  %v6694_v24 = vpack.c.bf16 %v469_v16, %v468_v17  ;;  %v509_v15 = vld [vmem:[%s11537_s3 + $0xd08] sm:$0xff]  ;;  %v494_v17 = vld [vmem:[%s11537_s3 + $0xc90] sm:$0xff] }
  0xd7   :  { %v495_v16 = vld [vmem:[%s11537_s3 + $0xc98] sm:$0xff]  ;;  %v6744_v23 = vpack.c.bf16 %v509_v15, %v508_v12  ;;  %v516_v2 = vld [vmem:[%s11537_s3 + $0xd40] sm:$0xff]  ;;  %v486_v12 = vld [vmem:[%s11537_s3 + $0xc50] sm:$0xff] }
  0xd8   :  { %6613 = vmatpush3.bf16.msra.mxu0 %v6612_v28  ;;  %v470_v28 = vld [vmem:[%s11537_s3 + $0xbd0] sm:$0xff] }
  0xd9   :  { %6645 = vmatpush3.bf16.msra.mxu1 %v6644_v29  ;;  %6647 = vmatprep.subr.bf16.mxu0 %v6646_v30  ;;  %v471_v29 = vld [vmem:[%s11537_s3 + $0xbd8] sm:$0xff]  ;;  %v6664_v30 = vpack.c.bf16 %v421_v22, %v420_v21  ;;  %v518_v15 = vld [vmem:[%s11537_s3 + $0xd50] sm:$0xff] }
  0xda   :  { %6679 = vmatprep.subr.bf16.mxu1 %v6678_v35  ;;  %v423_v35 = vld [vmem:[%s11537_s3 + $0xa58] sm:$0xff]  ;;  %v6698_v37 = vpack.c.bf16 %v471_v29, %v470_v28 }
  0xdb   :  { %1405 = vmatmul.mubr.f32.vlgmr.msra.gmra.mrb[8].mxu0 %v8689_v59  ;;  %v416_v59 = vld [vmem:[%s11537_s3 + $0xa20] sm:$0xff]  ;;  %v511_v29 = vld [vmem:[%s11537_s3 + $0xd18] sm:$0xff] }
  0xdc   :  { %1475 = vmatmul.mubr.f32.vlgmr.msra.gmra.mrb[8].mxu1 %v8698_v61  ;;  %6649 = vmatpush3.bf16.msra.mxu0 %v6648_v41  ;;  %v6686_v61 = vpack.c.bf16 %v465_v34, %v464_v55  ;;  %v6656_v5 = vpack.c.bf16 %v417_v60, %v416_v59  ;;  %v472_v41 = vld [vmem:[%s11537_s3 + $0xbe0] sm:$0xff]  ;;  %v443_v55 = vld [vmem:[%s11537_s3 + $0xaf8] sm:$0xff]  ;;  %v474_v34 = vld [vmem:[%s11537_s3 + $0xbf0] sm:$0xff]  ;;  %v6748_v44 = vpack.c.bf16 %v511_v29, %v510_v27 }
  0xdd   :  { %6681 = vmatpush3.bf16.msra.mxu1 %v6680_v42  ;;  %6651 = vmatprep.subr.bf16.mxu0 %v6650_v43  ;;  %v473_v42 = vld [vmem:[%s11537_s3 + $0xbe8] sm:$0xff]  ;;  %v6668_v43 = vpack.c.bf16 %v423_v35, %v422_v33  ;;  %v426_v60 = vld [vmem:[%s11537_s3 + $0xa70] sm:$0xff]  ;;  %v528_v33 = vld [vmem:[%s11537_s3 + $0xda0] sm:$0xff] }
  0xde   :  { %6683 = vmatprep.subr.bf16.mxu1 %v6682_v49  ;;  %1544 = vmatprep.mubr.f32.mxu0 %v712_v53  ;;  %v425_v49 = vld [vmem:[%s11537_s3 + $0xa68] sm:$0xff]  ;;  %v6702_v51 = vpack.c.bf16 %v473_v42, %v472_v41  ;;  %v442_v53 = vld [vmem:[%s11537_s3 + $0xaf0] sm:$0xff]  ;;  %v512_v41 = vld [vmem:[%s11537_s3 + $0xd20] sm:$0xff] }
  0xdf   :  { %1614 = vmatprep.mubr.f32.mxu1 %v713_v56  ;;  %v475_v56 = vld [vmem:[%s11537_s3 + $0xbf8] sm:$0xff]  ;;  %v6674_v59 = vpack.c.bf16 %v443_v55, %v442_v53  ;;  %v529_v35 = vld [vmem:[%s11537_s3 + $0xda8] sm:$0xff]  ;;  %v514_v55 = vld [vmem:[%s11537_s3 + $0xd30] sm:$0xff] }
  0xe0   :  { %6653 = vmatpush3.bf16.msra.mxu0 %v6652_v57  ;;  %v6672_v57 = vpack.c.bf16 %v425_v49, %v424_v48  ;;  %v6706_v63 = vpack.c.bf16 %v475_v56, %v474_v34  ;;  %v513_v42 = vld [vmem:[%s11537_s3 + $0xd28] sm:$0xff]  ;;  %v531_v48 = vld [vmem:[%s11537_s3 + $0xdb8] sm:$0xff]  ;;  %v488_v27 = vld [vmem:[%s11537_s3 + $0xc60] sm:$0xff] }
  0xe1   :  { %6685 = vmatpush3.bf16.msra.mxu1 %v6684_v58  ;;  %6655 = vmatprep.subr.bf16.mxu0 %v6654_v46  ;;  %v86_v58 = vld [vmem:[#allocation2 + $0x30] sm:$0xff]  ;;  %v6704_v46 = vpack.c.bf16 %v457_v52, %v456_v50  ;;  %v6752_v50 = vpack.c.bf16 %v513_v42, %v512_v41  ;;  %v483_v53 = vld [vmem:[%s11537_s3 + $0xc38] sm:$0xff]  ;;  %v520_v29 = vld [vmem:[%s11537_s3 + $0xd60] sm:$0xff] }
  0xe2   :  { %6687 = vmatprep.subr.bf16.mxu1 %v6686_v61  ;;  %v458_v61 = vld [vmem:[%s11537_s3 + $0xb70] sm:$0xff]  ;;  %v515_v56 = vld [vmem:[%s11537_s3 + $0xd38] sm:$0xff] }
  0xe3   :  { %v6708_v8 = vpack.c.bf16 %v459_v1, %v458_v61  ;;  %v482_v52 = vld [vmem:[%s11537_s3 + $0xc30] sm:$0xff]  ;;  %v485_v1 = vld [vmem:[%s11537_s3 + $0xc48] sm:$0xff]  ;;  %v491_v41 = vld [vmem:[%s11537_s3 + $0xc78] sm:$0xff] }
  0xe4   :  { %6657 = vmatpush3.bf16.msra.mxu0 %v6656_v5  ;;  %v525_v5 = vld [vmem:[%s11537_s3 + $0xd88] sm:$0xff] }
  0xe5   :  { %6689 = vmatpush3.bf16.msra.mxu1 %v6688_v6  ;;  %6659 = vmatprep.subr.bf16.mxu0 %v6658_v7  ;;  %v714_v6 = vcombine.high %v86_v58, %v86_v58  ;;  %v6676_v7 = vpack.c.bf16 %v427_v62, %v426_v60  ;;  %v6742_v14 = vpack.c.bf16 %v525_v5, %v524_v4  ;;  %v517_v4 = vld [vmem:[%s11537_s3 + $0xd48] sm:$0xff]  ;;  %v502_v5 = vld [vmem:[%s11537_s3 + $0xcd0] sm:$0xff] }
  0xe6   :  { %6691 = vmatprep.subr.bf16.mxu1 %v6690_v11  ;;  %v477_v11 = vld [vmem:[%s11537_s3 + $0xc08] sm:$0xff]  ;;  %v6724_v60 = vpack.c.bf16 %v483_v53, %v482_v52  ;;  %v6756_v62 = vpack.c.bf16 %v515_v56, %v514_v55  ;;  %v540_v55 = vld [vmem:[%s11537_s3 + $0xe00] sm:$0xff] }
  0xe7   :  { %v9106_v21 = vrot.slane %v714_v6, %v8002_v13  ;;  %v6712_v22 = vpack.c.bf16 %v477_v11, %v476_v10  ;;  %v503_v6 = vld [vmem:[%s11537_s3 + $0xcd8] sm:$0xff]  ;;  %v6760_v10 = vpack.c.bf16 %v517_v4, %v516_v2  ;;  %v572_v56 = vld [vmem:[%s11537_s3 + $0xf00] sm:$0xff]  ;;  %v542_v4 = vld [vmem:[%s11537_s3 + $0xe10] sm:$0xff] }
  0xe8   :  { %6661 = vmatpush3.bf16.msra.mxu0 %v6660_v18  ;;  %v9097_v18 = vrot.slane %v86_v58, %v8002_v13  ;;  %v501_v58 = vld [vmem:[%s11537_s3 + $0xcc8] sm:$0xff]  ;;  %v6730_v11 = vpack.c.bf16 %v503_v6, %v502_v5  ;;  %v543_v5 = vld [vmem:[%s11537_s3 + $0xe18] sm:$0xff]  ;;  %v574_v6 = vld [vmem:[%s11537_s3 + $0xf10] sm:$0xff] }
  0xe9   :  { %6693 = vmatpush3.bf16.msra.mxu1 %v6692_v20  ;;  %6663 = vmatprep.subr.bf16.mxu0 %v6662_v19  ;;  %v526_v20 = vld [vmem:[%s11537_s3 + $0xd90] sm:$0xff]  ;;  %v527_v19 = vld [vmem:[%s11537_s3 + $0xd98] sm:$0xff]  ;;  %v730_v36 = vcombine.high %v9106_v21, %v9106_v21 }
  0xea   :  { %6695 = vmatprep.subr.bf16.mxu1 %v6694_v24  ;;  %v6714_v24 = vpack.c.bf16 %v495_v16, %v494_v17  ;;  %v6746_v28 = vpack.c.bf16 %v527_v19, %v526_v20  ;;  %v519_v16 = vld [vmem:[%s11537_s3 + $0xd58] sm:$0xff]  ;;  %v504_v20 = vld [vmem:[%s11537_s3 + $0xce0] sm:$0xff]  ;;  %v505_v19 = vld [vmem:[%s11537_s3 + $0xce8] sm:$0xff] }
  0xec   :  { %6665 = vmatpush3.bf16.msra.mxu0 %v6664_v30  ;;  %v496_v30 = vld [vmem:[%s11537_s3 + $0xca0] sm:$0xff] }
  0xed   :  { %6697 = vmatpush3.bf16.msra.mxu1 %v6696_v31  ;;  %6667 = vmatprep.subr.bf16.mxu0 %v6666_v32  ;;  %v497_v31 = vld [vmem:[%s11537_s3 + $0xca8] sm:$0xff]  ;;  %v729_v32 = vcombine.high %v9097_v18, %v9097_v18 }
  0xee   :  { %6699 = vmatprep.subr.bf16.mxu1 %v6698_v37  ;;  %v6716_v37 = vpack.c.bf16 %v479_v26, %v478_v25  ;;  %v6718_v39 = vpack.c.bf16 %v497_v31, %v496_v30  ;;  %v6764_v25 = vpack.c.bf16 %v519_v16, %v518_v15  ;;  %v6734_v26 = vpack.c.bf16 %v505_v19, %v504_v20  ;;  %v521_v31 = vld [vmem:[%s11537_s3 + $0xd68] sm:$0xff] }
  0xef   :  { %v545_v19 = vld [vmem:[%s11537_s3 + $0xe28] sm:$0xff] }
  0xf0   :  { %6669 = vmatpush3.bf16.msra.mxu0 %v6668_v43  ;;  %v498_v43 = vld [vmem:[%s11537_s3 + $0xcb0] sm:$0xff] }
  0xf1   :  { %6701 = vmatpush3.bf16.msra.mxu1 %v6700_v45  ;;  %6671 = vmatprep.subr.bf16.mxu0 %v6670_v47  ;;  %v499_v45 = vld [vmem:[%s11537_s3 + $0xcb8] sm:$0xff]  ;;  %v530_v47 = vld [vmem:[%s11537_s3 + $0xdb0] sm:$0xff] }
  0xf2   :  { %6703 = vmatprep.subr.bf16.mxu1 %v6702_v51  ;;  %v6722_v51 = vpack.c.bf16 %v499_v45, %v498_v43  ;;  %v6754_v34 = vpack.c.bf16 %v531_v48, %v530_v47  ;;  %v523_v43 = vld [vmem:[%s11537_s3 + $0xd78] sm:$0xff]  ;;  %v556_v45 = vld [vmem:[%s11537_s3 + $0xe80] sm:$0xff]  ;;  %v557_v47 = vld [vmem:[%s11537_s3 + $0xe88] sm:$0xff] }
  0xf3   :  { %v588_v48 = vld [vmem:[%s11537_s3 + $0xf80] sm:$0xff]  ;;  %v6774_v53 = vpack.c.bf16 %v557_v47, %v556_v45 }
  0xf4   :  { %6673 = vmatpush3.bf16.msra.mxu0 %v6672_v57  ;;  %v500_v57 = vld [vmem:[%s11537_s3 + $0xcc0] sm:$0xff] }
  0xf5   :  { %6705 = vmatpush3.bf16.msra.mxu1 %v6704_v46  ;;  %6675 = vmatprep.subr.bf16.mxu0 %v6674_v59  ;;  %v532_v46 = vld [vmem:[%s11537_s3 + $0xdc0] sm:$0xff]  ;;  %v533_v59 = vld [vmem:[%s11537_s3 + $0xdc8] sm:$0xff]  ;;  %v6726_v61 = vpack.c.bf16 %v501_v58, %v500_v57 }
  0xf6   :  { %6707 = vmatprep.subr.bf16.mxu1 %v6706_v63  ;;  %v484_v63 = vld [vmem:[%s11537_s3 + $0xc40] sm:$0xff]  ;;  %v6758_v3 = vpack.c.bf16 %v533_v59, %v532_v46  ;;  %v573_v58 = vld [vmem:[%s11537_s3 + $0xf08] sm:$0xff]  ;;  %v558_v46 = vld [vmem:[%s11537_s3 + $0xe90] sm:$0xff] }
  0xf7   :  { %v559_v59 = vld [vmem:[%s11537_s3 + $0xe98] sm:$0xff]  ;;  %v6808_v2 = vpack.c.bf16 %v573_v58, %v572_v56  ;;  %v580_v45 = vld [vmem:[%s11537_s3 + $0xf40] sm:$0xff]  ;;  %v550_v56 = vld [vmem:[%s11537_s3 + $0xe50] sm:$0xff] }
  0xf8   :  { %6677 = vmatpush3.bf16.msra.mxu0 %v6676_v7  ;;  %v534_v7 = vld [vmem:[%s11537_s3 + $0xdd0] sm:$0xff] }
  0xf9   :  { %6709 = vmatpush3.bf16.msra.mxu1 %v6708_v8  ;;  %6711 = vmatprep.subr.bf16.mxu0 %v6710_v9  ;;  %v535_v8 = vld [vmem:[%s11537_s3 + $0xdd8] sm:$0xff]  ;;  %v6728_v9 = vpack.c.bf16 %v485_v1, %v484_v63  ;;  %v582_v58 = vld [vmem:[%s11537_s3 + $0xf50] sm:$0xff] }
  0xfa   :  { %6743 = vmatprep.subr.bf16.mxu1 %v6742_v14  ;;  %v487_v14 = vld [vmem:[%s11537_s3 + $0xc58] sm:$0xff]  ;;  %v6762_v17 = vpack.c.bf16 %v535_v8, %v534_v7 }
  0xfb   :  { %1545 = vmatmul.mubr.f32.vlgmr.msra.gmra.mrb[10].mxu0 %v8893_v38  ;;  %v480_v38 = vld [vmem:[%s11537_s3 + $0xc20] sm:$0xff]  ;;  %v575_v8 = vld [vmem:[%s11537_s3 + $0xf18] sm:$0xff] }
  0xfc   :  { %1615 = vmatmul.mubr.f32.vlgmr.msra.gmra.mrb[10].mxu1 %v8902_v40  ;;  %6713 = vmatpush3.bf16.msra.mxu0 %v6712_v22  ;;  %v6750_v40 = vpack.c.bf16 %v529_v35, %v528_v33  ;;  %v6720_v49 = vpack.c.bf16 %v481_v54, %v480_v38  ;;  %v536_v22 = vld [vmem:[%s11537_s3 + $0xde0] sm:$0xff]  ;;  %v507_v33 = vld [vmem:[%s11537_s3 + $0xcf8] sm:$0xff]  ;;  %v538_v35 = vld [vmem:[%s11537_s3 + $0xdf0] sm:$0xff]  ;;  %v6812_v16 = vpack.c.bf16 %v575_v8, %v574_v6 }
  0xfd   :  { %6745 = vmatpush3.bf16.msra.mxu1 %v6744_v23  ;;  %6715 = vmatprep.subr.bf16.mxu0 %v6714_v24  ;;  %v537_v23 = vld [vmem:[%s11537_s3 + $0xde8] sm:$0xff]  ;;  %v6732_v24 = vpack.c.bf16 %v487_v14, %v486_v12  ;;  %v490_v54 = vld [vmem:[%s11537_s3 + $0xc70] sm:$0xff]  ;;  %v592_v12 = vld [vmem:[%s11537_s3 + $0xfa0] sm:$0xff] }
  0xfe   :  { %6747 = vmatprep.subr.bf16.mxu1 %v6746_v28  ;;  %1684 = vmatprep.mubr.f32.mxu0 %v729_v32  ;;  %v489_v28 = vld [vmem:[%s11537_s3 + $0xc68] sm:$0xff]  ;;  %v6766_v30 = vpack.c.bf16 %v537_v23, %v536_v22  ;;  %v506_v32 = vld [vmem:[%s11537_s3 + $0xcf0] sm:$0xff]  ;;  %v576_v22 = vld [vmem:[%s11537_s3 + $0xf20] sm:$0xff] }
  0xff   :  { %1754 = vmatprep.mubr.f32.mxu1 %v730_v36  ;;  %v539_v36 = vld [vmem:[%s11537_s3 + $0xdf8] sm:$0xff]  ;;  %v6738_v38 = vpack.c.bf16 %v507_v33, %v506_v32  ;;  %v593_v14 = vld [vmem:[%s11537_s3 + $0xfa8] sm:$0xff]  ;;  %v578_v33 = vld [vmem:[%s11537_s3 + $0xf30] sm:$0xff] }
 0x100   :  { %6717 = vmatpush3.bf16.msra.mxu0 %v6716_v37  ;;  %v6736_v37 = vpack.c.bf16 %v489_v28, %v488_v27  ;;  %v6770_v42 = vpack.c.bf16 %v539_v36, %v538_v35  ;;  %v577_v23 = vld [vmem:[%s11537_s3 + $0xf28] sm:$0xff]  ;;  %v595_v27 = vld [vmem:[%s11537_s3 + $0xfb8] sm:$0xff]  ;;  %v552_v6 = vld [vmem:[%s11537_s3 + $0xe60] sm:$0xff] }
 0x101   :  { %6749 = vmatpush3.bf16.msra.mxu1 %v6748_v44  ;;  %6719 = vmatprep.subr.bf16.mxu0 %v6718_v39  ;;  %v87_v44 = vld [vmem:[#allocation2 + $0x38] sm:$0xff]  ;;  %v6768_v39 = vpack.c.bf16 %v521_v31, %v520_v29  ;;  %v6816_v29 = vpack.c.bf16 %v577_v23, %v576_v22  ;;  %v546_v31 = vld [vmem:[%s11537_s3 + $0xe30] sm:$0xff]  ;;  %v584_v8 = vld [vmem:[%s11537_s3 + $0xf60] sm:$0xff] }
 0x102   :  { %6751 = vmatprep.subr.bf16.mxu1 %v6750_v40  ;;  %v522_v40 = vld [vmem:[%s11537_s3 + $0xd70] sm:$0xff]  ;;  %v547_v32 = vld [vmem:[%s11537_s3 + $0xe38] sm:$0xff] }
 0x103   :  { %v6772_v52 = vpack.c.bf16 %v523_v43, %v522_v40  ;;  %v579_v36 = vld [vmem:[%s11537_s3 + $0xf38] sm:$0xff]  ;;  %v549_v43 = vld [vmem:[%s11537_s3 + $0xe48] sm:$0xff] }
 0x104   :  { %6721 = vmatpush3.bf16.msra.mxu0 %v6720_v49  ;;  %v589_v49 = vld [vmem:[%s11537_s3 + $0xf88] sm:$0xff] }
 0x105   :  { %6753 = vmatpush3.bf16.msra.mxu1 %v6752_v50  ;;  %6723 = vmatprep.subr.bf16.mxu0 %v6722_v51  ;;  %v731_v50 = vcombine.high %v87_v44, %v87_v44  ;;  %v6740_v51 = vpack.c.bf16 %v491_v41, %v490_v54  ;;  %v6806_v57 = vpack.c.bf16 %v589_v49, %v588_v48  ;;  %v581_v48 = vld [vmem:[%s11537_s3 + $0xf48] sm:$0xff]  ;;  %v566_v49 = vld [vmem:[%s11537_s3 + $0xed0] sm:$0xff] }
 0x106   :  { %6755 = vmatprep.subr.bf16.mxu1 %v6754_v34  ;;  %v541_v34 = vld [vmem:[%s11537_s3 + $0xe08] sm:$0xff]  ;;  %v6788_v54 = vpack.c.bf16 %v547_v32, %v546_v31  ;;  %v6820_v41 = vpack.c.bf16 %v579_v36, %v578_v33  ;;  %v1916_v31 = vld [vmem:[%s11539_s5 + $0x80] sm:$0xff] }
 0x107   :  { %v9310_v63 = vrot.slane %v731_v50, %v8002_v13  ;;  %v6776_v1 = vpack.c.bf16 %v541_v34, %v540_v55  ;;  %v567_v50 = vld [vmem:[%s11537_s3 + $0xed8] sm:$0xff]  ;;  %v6824_v55 = vpack.c.bf16 %v581_v48, %v580_v45  ;;  %v1917_v32 = vld [vmem:[%s11539_s5 + $0x88] sm:$0xff]  ;;  %v1918_v45 = vld [vmem:[%s11539_s5 + $0x90] sm:$0xff] }
 0x108   :  { %6725 = vmatpush3.bf16.msra.mxu0 %v6724_v60  ;;  %v9301_v60 = vrot.slane %v87_v44, %v8002_v13  ;;  %v565_v44 = vld [vmem:[%s11537_s3 + $0xec8] sm:$0xff]  ;;  %v6794_v34 = vpack.c.bf16 %v567_v50, %v566_v49  ;;  %v1950_v49 = vld [vmem:[%s11539_s5 + $0x190] sm:$0xff]  ;;  %v1951_v50 = vld [vmem:[%s11539_s5 + $0x198] sm:$0xff] }
 0x109   :  { %6757 = vmatpush3.bf16.msra.mxu1 %v6756_v62  ;;  %6727 = vmatprep.subr.bf16.mxu0 %v6726_v61  ;;  %v590_v62 = vld [vmem:[%s11537_s3 + $0xf90] sm:$0xff]  ;;  %v591_v61 = vld [vmem:[%s11537_s3 + $0xf98] sm:$0xff]  ;;  %v747_v15 = vcombine.high %v9310_v63, %v9310_v63  ;;  %v1949_v36 = vld [vmem:[%s11539_s5 + $0x188] sm:$0xff] }
 0x10a   :  { %6759 = vmatprep.subr.bf16.mxu1 %v6758_v3  ;;  %v6778_v3 = vpack.c.bf16 %v559_v59, %v558_v46  ;;  %v6810_v7 = vpack.c.bf16 %v591_v61, %v590_v62  ;;  %v583_v59 = vld [vmem:[%s11537_s3 + $0xf58] sm:$0xff]  ;;  %v568_v62 = vld [vmem:[%s11537_s3 + $0xee0] sm:$0xff]  ;;  %v569_v61 = vld [vmem:[%s11537_s3 + $0xee8] sm:$0xff] }
 0x10c   :  { %6729 = vmatpush3.bf16.msra.mxu0 %v6728_v9  ;;  %v560_v9 = vld [vmem:[%s11537_s3 + $0xea0] sm:$0xff] }
 0x10d   :  { %6761 = vmatpush3.bf16.msra.mxu1 %v6760_v10  ;;  %6731 = vmatprep.subr.bf16.mxu0 %v6730_v11  ;;  %v561_v10 = vld [vmem:[%s11537_s3 + $0xea8] sm:$0xff]  ;;  %v746_v11 = vcombine.high %v9301_v60, %v9301_v60 }
 0x10e   :  { %6763 = vmatprep.subr.bf16.mxu1 %v6762_v17  ;;  %v6780_v17 = vpack.c.bf16 %v543_v5, %v542_v4  ;;  %v6782_v20 = vpack.c.bf16 %v561_v10, %v560_v9  ;;  %v6828_v4 = vpack.c.bf16 %v583_v59, %v582_v58  ;;  %v6798_v5 = vpack.c.bf16 %v569_v61, %v568_v62  ;;  %v1920_v59 = vld [vmem:[%s11539_s5 + $0xa0] sm:$0xff]  ;;  %v1921_v62 = vld [vmem:[%s11539_s5 + $0xa8] sm:$0xff] }
 0x10f   :  { %v9539_v58 = vpack.c.bf16 %v1951_v50, %v1950_v49  ;;  %v1942_v49 = vld [vmem:[%s11539_s5 + $0x150] sm:$0xff] }
 0x110   :  { %6733 = vmatpush3.bf16.msra.mxu0 %v6732_v24  ;;  %v562_v24 = vld [vmem:[%s11537_s3 + $0xeb0] sm:$0xff] }
 0x111   :  { %6765 = vmatpush3.bf16.msra.mxu1 %v6764_v25  ;;  %6735 = vmatprep.subr.bf16.mxu0 %v6734_v26  ;;  %v563_v25 = vld [vmem:[%s11537_s3 + $0xeb8] sm:$0xff]  ;;  %v594_v26 = vld [vmem:[%s11537_s3 + $0xfb0] sm:$0xff] }
 0x112   :  { %6767 = vmatprep.subr.bf16.mxu1 %v6766_v30  ;;  %v6786_v30 = vpack.c.bf16 %v563_v25, %v562_v24  ;;  %v6818_v35 = vpack.c.bf16 %v595_v27, %v594_v26  ;;  %v554_v26 = vld [vmem:[%s11537_s3 + $0xe70] sm:$0xff]  ;;  %v555_v27 = vld [vmem:[%s11537_s3 + $0xe78] sm:$0xff] }
 0x114   :  { %6737 = vmatpush3.bf16.msra.mxu0 %v6736_v37  ;;  %v564_v37 = vld [vmem:[%s11537_s3 + $0xec0] sm:$0xff] }
 0x115   :  { %6769 = vmatpush3.bf16.msra.mxu1 %v6768_v39  ;;  %6739 = vmatprep.subr.bf16.mxu0 %v6738_v38  ;;  %v596_v39 = vld [vmem:[%s11537_s3 + $0xfc0] sm:$0xff]  ;;  %v597_v38 = vld [vmem:[%s11537_s3 + $0xfc8] sm:$0xff]  ;;  %v6790_v40 = vpack.c.bf16 %v565_v44, %v564_v37  ;;  %v6804_v44 = vpack.c.bf16 %v555_v27, %v554_v26 }
 0x116   :  { %6771 = vmatprep.subr.bf16.mxu1 %v6770_v42  ;;  %v548_v42 = vld [vmem:[%s11537_s3 + $0xe40] sm:$0xff]  ;;  %v6822_v47 = vpack.c.bf16 %v597_v38, %v596_v39  ;;  %v9488_v38 = vpack.c.bf16 %v1917_v32, %v1916_v31  ;;  %v1957_v26 = vld [vmem:[%s11539_s5 + $0x1c8] sm:$0xff] }
 0x117   :  { %v1909_v31 = vld [vmem:[%s11539_s5 + $0x48] sm:$0xff]  ;;  %v1940_v32 = vld [vmem:[%s11539_s5 + $0x140] sm:$0xff] }
 0x118   :  { %6741 = vmatpush3.bf16.msra.mxu0 %v6740_v51  ;;  %v598_v51 = vld [vmem:[%s11537_s3 + $0xfd0] sm:$0xff] }
 0x119   :  { %6773 = vmatpush3.bf16.msra.mxu1 %v6772_v52  ;;  %6775 = vmatprep.subr.bf16.mxu0 %v6774_v53  ;;  %v599_v52 = vld [vmem:[%s11537_s3 + $0xfd8] sm:$0xff]  ;;  %v6792_v53 = vpack.c.bf16 %v549_v43, %v548_v42  ;;  %v1933_v43 = vld [vmem:[%s11539_s5 + $0x108] sm:$0xff] }
 0x11a   :  { %6807 = vmatprep.subr.bf16.mxu1 %v6806_v57  ;;  %v551_v57 = vld [vmem:[%s11537_s3 + $0xe58] sm:$0xff]  ;;  %v6826_v46 = vpack.c.bf16 %v599_v52, %v598_v51 }
 0x11b   :  { %1685 = vmatmul.mubr.f32.vlgmr.msra.gmra.mrb[12].mxu0 %v9097_v18  ;;  %v544_v18 = vld [vmem:[%s11537_s3 + $0xe20] sm:$0xff] }
 0x11c   :  { %1755 = vmatmul.mubr.f32.vlgmr.msra.gmra.mrb[12].mxu1 %v9106_v21  ;;  %6777 = vmatpush3.bf16.msra.mxu0 %v6776_v1  ;;  %v6814_v21 = vpack.c.bf16 %v593_v14, %v592_v12  ;;  %v6784_v28 = vpack.c.bf16 %v545_v19, %v544_v18  ;;  %v600_v1 = vld [vmem:[%s11537_s3 + $0xfe0] sm:$0xff]  ;;  %v570_v12 = vld [vmem:[%s11537_s3 + $0xef0] sm:$0xff]  ;;  %v571_v14 = vld [vmem:[%s11537_s3 + $0xef8] sm:$0xff] }
 0x11d   :  { %6809 = vmatpush3.bf16.msra.mxu1 %v6808_v2  ;;  %6779 = vmatprep.subr.bf16.mxu0 %v6778_v3  ;;  %v601_v2 = vld [vmem:[%s11537_s3 + $0xfe8] sm:$0xff]  ;;  %v6796_v3 = vpack.c.bf16 %v551_v57, %v550_v56  ;;  %v6802_v25 = vpack.c.bf16 %v571_v14, %v570_v12  ;;  %v1903_v56 = vld [vmem:[%s11539_s5 + $0x18] sm:$0xff]  ;;  %v1934_v57 = vld [vmem:[%s11539_s5 + $0x110] sm:$0xff] }
 0x11e   :  { %6811 = vmatprep.subr.bf16.mxu1 %v6810_v7  ;;  %1824 = vmatprep.mubr.f32.mxu0 %v746_v11  ;;  %v553_v7 = vld [vmem:[%s11537_s3 + $0xe68] sm:$0xff]  ;;  %v6830_v10 = vpack.c.bf16 %v601_v2, %v600_v1  ;;  %v1952_v1 = vld [vmem:[%s11539_s5 + $0x1a0] sm:$0xff]  ;;  %v1954_v12 = vld [vmem:[%s11539_s5 + $0x1b0] sm:$0xff] }
 0x11f   :  { %1894 = vmatprep.mubr.f32.mxu1 %v747_v15  ;;  %v585_v11 = vld [vmem:[%s11537_s3 + $0xf68] sm:$0xff]  ;;  %v6800_v22 = vpack.c.bf16 %v553_v7, %v552_v6  ;;  %v1904_v6 = vld [vmem:[%s11539_s5 + $0x20] sm:$0xff]  ;;  %v1955_v14 = vld [vmem:[%s11539_s5 + $0x1b8] sm:$0xff] }
 0x120   :  { %6781 = vmatpush3.bf16.msra.mxu0 %v6780_v17  ;;  %v6832_v24 = vpack.c.bf16 %v585_v11, %v584_v8  ;;  %v1953_v2 = vld [vmem:[%s11539_s5 + $0x1a8] sm:$0xff]  ;;  %v1936_v7 = vld [vmem:[%s11539_s5 + $0x120] sm:$0xff]  ;;  %v1923_v11 = vld [vmem:[%s11539_s5 + $0xb8] sm:$0xff] }
 0x121   :  { %6813 = vmatpush3.bf16.msra.mxu1 %v6812_v16  ;;  %6783 = vmatprep.subr.bf16.mxu0 %v6782_v20  ;;  %v602_v16 = vld [vmem:[%s11537_s3 + $0xff0] sm:$0xff]  ;;  %v603_v20 = vld [vmem:[%s11537_s3 + $0xff8] sm:$0xff]  ;;  %v9581_v8 = vpack.c.bf16 %v1953_v2, %v1952_v1  ;;  %v1912_v2 = vld [vmem:[%s11539_s5 + $0x60] sm:$0xff] }
 0x122   :  { %6815 = vmatprep.subr.bf16.mxu1 %v6814_v21  ;;  %v88_v21 = vld [vmem:[#allocation5] sm:$0xff] }
 0x123   :  { %v2030_v37 = vcombine.high %v88_v21, %v88_v21  ;;  %v9511_v48 = vrot.slane %v88_v21, %v8002_v13  ;;  %v1939_v21 = vld [vmem:[%s11539_s5 + $0x138] sm:$0xff] }
 0x124   :  { %6785 = vmatpush3.bf16.msra.mxu0 %v6784_v28  ;;  %v586_v28 = vld [vmem:[%s11537_s3 + $0xf70] sm:$0xff] }
 0x125   :  { %6817 = vmatpush3.bf16.msra.mxu1 %v6816_v29  ;;  %6787 = vmatprep.subr.bf16.mxu0 %v6786_v30  ;;  %v6834_v29 = vpack.c.bf16 %v603_v20, %v602_v16  ;;  %v587_v30 = vld [vmem:[%s11537_s3 + $0xf78] sm:$0xff]  ;;  %v9520_v51 = vrot.slane %v2030_v37, %v8002_v13  ;;  %v2045_v61 = vcombine.high %v9511_v48, %v9511_v48  ;;  %v1906_v20 = vld [vmem:[%s11539_s5 + $0x30] sm:$0xff] }
 0x126   :  { %6819 = vmatprep.subr.bf16.mxu1 %v6818_v35  ;;  %v1948_v35 = vld [vmem:[%s11539_s5 + $0x180] sm:$0xff]  ;;  %v6836_v39 = vpack.c.bf16 %v587_v30, %v586_v28  ;;  %v1926_v37 = vld [vmem:[%s11539_s5 + $0xd0] sm:$0xff] }
 0x127   :  { %v9499_v42 = vpack.c.bf16 %v1949_v36, %v1948_v35  ;;  %v1908_v30 = vld [vmem:[%s11539_s5 + $0x40] sm:$0xff]  ;;  %v1941_v36 = vld [vmem:[%s11539_s5 + $0x148] sm:$0xff] }
 0x128   :  { %6789 = vmatpush3.bf16.msra.mxu0 %v6788_v54  ;;  %v1900_v54 = vld [vmem:[%s11539_s5] sm:$0xff] }
 0x129   :  { %6821 = vmatpush3.bf16.msra.mxu1 %v6820_v41  ;;  %6791 = vmatprep.subr.bf16.mxu0 %v6790_v40  ;;  %v1901_v41 = vld [vmem:[%s11539_s5 + $0x8] sm:$0xff]  ;;  %v1932_v40 = vld [vmem:[%s11539_s5 + $0x100] sm:$0xff] }
 0x12a   :  { %6823 = vmatprep.subr.bf16.mxu1 %v6822_v47  ;;  %v1919_v47 = vld [vmem:[%s11539_s5 + $0x98] sm:$0xff]  ;;  %v9522_v52 = vpack.c.bf16 %v1901_v41, %v1900_v54  ;;  %v9671_v41 = vpack.c.bf16 %v1909_v31, %v1908_v30  ;;  %v1914_v31 = vld [vmem:[%s11539_s5 + $0x70] sm:$0xff] }
 0x12b   :  { %v1959_v54 = vld [vmem:[%s11539_s5 + $0x1d8] sm:$0xff] }
 0x12c   :  { %6793 = vmatpush3.bf16.msra.mxu0 %v6792_v53  ;;  %v9525_v53 = vpack.c.bf16 %v1933_v43, %v1932_v40  ;;  %v9675_v40 = vpack.c.bf16 %v1941_v36, %v1940_v32  ;;  %v1915_v32 = vld [vmem:[%s11539_s5 + $0x78] sm:$0xff]  ;;  %v1946_v36 = vld [vmem:[%s11539_s5 + $0x170] sm:$0xff] }
 0x12d   :  { %6825 = vmatpush3.bf16.msra.mxu1 %v6824_v55  ;;  %6795 = vmatprep.subr.bf16.mxu0 %v6794_v34  ;;  %v9527_v55 = vpack.c.bf16 %v1919_v47, %v1918_v45  ;;  %v1902_v34 = vld [vmem:[%s11539_s5 + $0x10] sm:$0xff]  ;;  %v1911_v47 = vld [vmem:[%s11539_s5 + $0x58] sm:$0xff] }
 0x12e   :  { %v5518_v9 = vpop.f32.mrb[0].mxu0  ;;  %6827 = vmatprep.subr.bf16.mxu1 %v6826_v46  ;;  %v1935_v46 = vld [vmem:[%s11539_s5 + $0x118] sm:$0xff]  ;;  %v1910_v45 = vld [vmem:[%s11539_s5 + $0x50] sm:$0xff] }
 0x12f   :  { %v5553_v15 = vpop.f32.mrb[0].mxu1  ;;  %v5519_v17 = vpop.f32.mrb[1].mxu0 }
 0x130   :  { %v5520_v18 = vadd.f32 %v5519_v17, %v5518_v9  ;;  %v5554_v19 = vpop.f32.mrb[1].mxu1  ;;  %6797 = vmatpush3.bf16.msra.mxu0 %v6796_v3  ;;  %v2046_v3 = vcombine.high %v9520_v51, %v9520_v51  ;;  %v1937_v9 = vld [vmem:[%s11539_s5 + $0x128] sm:$0xff] }
 0x131   :  { %v5555_v23 = vadd.f32 %v5554_v19, %v5553_v15  ;;  %6829 = vmatpush3.bf16.msra.mxu1 %v6828_v4  ;;  %6799 = vmatprep.subr.bf16.mxu0 %v6798_v5  ;;  %v9563_v4 = vpack.c.bf16 %v1903_v56, %v1902_v34  ;;  %v9569_v5 = vpack.c.bf16 %v1921_v62, %v1920_v59  ;;  %v1938_v19 = vld [vmem:[%s11539_s5 + $0x130] sm:$0xff]  ;;  %v1943_v34 = vld [vmem:[%s11539_s5 + $0x158] sm:$0xff]  ;;  %v1928_v56 = vld [vmem:[%s11539_s5 + $0xe0] sm:$0xff] }
 0x132   :  { %6831 = vmatprep.subr.bf16.mxu1 %v6830_v10  ;;  %v1922_v10 = vld [vmem:[%s11539_s5 + $0xb0] sm:$0xff]  ;;  %v9603_v17 = vpack.c.bf16 %v1937_v9, %v1936_v7  ;;  %v9639_v28 = vpack.c.bf16 %v1939_v21, %v1938_v19  ;;  %v1961_v59 = vld [vmem:[%s11539_s5 + $0x1e8] sm:$0xff]  ;;  %v9707_v62 = vpack.c.bf16 %v1911_v47, %v1910_v45 }
 0x133   :  { %v9480_v33 = vadd.f32 %v5555_v23, %v5520_v18  ;;  %v9605_v16 = vpack.c.bf16 %v1923_v11, %v1922_v10  ;;  %v1907_v18 = vld [vmem:[%s11539_s5 + $0x38] sm:$0xff]  ;;  %v1924_v23 = vld [vmem:[%s11539_s5 + $0xc0] sm:$0xff]  ;;  %v1945_v9 = vld [vmem:[%s11539_s5 + $0x168] sm:$0xff] }
 0x134   :  { %6801 = vmatpush3.bf16.msra.mxu0 %v6800_v22  ;;  %v9617_v22 = vpack.c.bf16 %v1955_v14, %v1954_v12  ;;  %v9635_v27 = vpack.c.bf16 %v1907_v18, %v1906_v20  ;;  %v1930_v10 = vld [vmem:[%s11539_s5 + $0xf0] sm:$0xff]  ;;  %v1931_v11 = vld [vmem:[%s11539_s5 + $0xf8] sm:$0xff]  ;;  %v1981_v45 = vld [vmem:[%s11539_s5 + $0x288] sm:$0xff] }
 0x135   :  { %6833 = vmatpush3.bf16.msra.mxu1 %v6832_v24  ;;  %6803 = vmatprep.subr.bf16.mxu0 %v6802_v25  ;;  %v1925_v24 = vld [vmem:[%s11539_s5 + $0xc8] sm:$0xff]  ;;  %v1956_v25 = vld [vmem:[%s11539_s5 + $0x1c0] sm:$0xff]  ;;  %v1962_v20 = vld [vmem:[%s11539_s5 + $0x1f0] sm:$0xff]  ;;  %v9749_v30 = vpack.c.bf16 %v1931_v11, %v1930_v10 }
 0x136   :  { %6835 = vmatprep.subr.bf16.mxu1 %v6834_v29  ;;  %v9641_v29 = vpack.c.bf16 %v1925_v24, %v1924_v23  ;;  %v9653_v35 = vpack.c.bf16 %v1957_v26, %v1956_v25  ;;  %v1963_v18 = vld [vmem:[%s11539_s5 + $0x1f8] sm:$0xff]  ;;  %v89_v24 = vld [vmem:[#allocation5 + $0x8] sm:$0xff] }
 0x137   :  { %v2013_v47 = vld [vmem:[%s11539_s5 + $0x388] sm:$0xff]  ;;  %v1983_v10 = vld [vmem:[%s11539_s5 + $0x298] sm:$0xff]  ;;  %v9812_v11 = vrot.slane %v89_v24, %v8002_v13 }
 0x138   :  { %6805 = vmatpush3.bf16.msra.mxu0 %v6804_v44  ;;  %v1927_v44 = vld [vmem:[%s11539_s5 + $0xd8] sm:$0xff] }
 0x139   :  { %6837 = vmatpush3.bf16.msra.mxu1 %v6836_v39  ;;  %6839 = vmatprep.subr.bf16.mxu0 %v9488_v38  ;;  %v1958_v39 = vld [vmem:[%s11539_s5 + $0x1d0] sm:$0xff]  ;;  %v9677_v43 = vpack.c.bf16 %v1927_v44, %v1926_v37  ;;  %v9762_v44 = vpack.c.bf16 %v1963_v18, %v1962_v20 }
 0x13a   :  { %6871 = vmatprep.subr.bf16.mxu1 %v9499_v42  ;;  %v9689_v50 = vpack.c.bf16 %v1959_v54, %v1958_v39  ;;  %v1947_v39 = vld [vmem:[%s11539_s5 + $0x178] sm:$0xff]  ;;  %v1980_v54 = vld [vmem:[%s11539_s5 + $0x280] sm:$0xff] }
 0x13b   :  { %1825 = vmatmul.mubr.f32.vlgmr.msra.gmra.mrb[14].mxu0 %v9301_v60  ;;  %v9567_v60 = vpack.c.bf16 %v1935_v46, %v1934_v57  ;;  %v1929_v57 = vld [vmem:[%s11539_s5 + $0xe8] sm:$0xff]  ;;  %v1960_v46 = vld [vmem:[%s11539_s5 + $0x1e0] sm:$0xff] }
 0x13c   :  { %1895 = vmatmul.mubr.f32.vlgmr.msra.gmra.mrb[14].mxu1 %v9310_v63  ;;  %6841 = vmatpush3.bf16.msra.mxu0 %v9522_v52  ;;  %v1905_v63 = vld [vmem:[%s11539_s5 + $0x28] sm:$0xff]  ;;  %v9713_v1 = vpack.c.bf16 %v1929_v57, %v1928_v56  ;;  %v9725_v7 = vpack.c.bf16 %v1961_v59, %v1960_v46  ;;  %v9782_v56 = vpack.c.bf16 %v1915_v32, %v1914_v31  ;;  %v1964_v59 = vld [vmem:[%s11539_s5 + $0x200] sm:$0xff]  ;;  %v1998_v31 = vld [vmem:[%s11539_s5 + $0x310] sm:$0xff] }
 0x13d   :  { %6873 = vmatpush3.bf16.msra.mxu1 %v9525_v53  ;;  %6843 = vmatprep.subr.bf16.mxu0 %v9527_v55  ;;  %v9599_v15 = vpack.c.bf16 %v1905_v63, %v1904_v6  ;;  %v1944_v6 = vld [vmem:[%s11539_s5 + $0x160] sm:$0xff]  ;;  %v9786_v57 = vpack.c.bf16 %v1947_v39, %v1946_v36  ;;  %v9788_v46 = vpack.c.bf16 %v1981_v45, %v1980_v54  ;;  %v1999_v36 = vld [vmem:[%s11539_s5 + $0x318] sm:$0xff]  ;;  %v1985_v39 = vld [vmem:[%s11539_s5 + $0x2a8] sm:$0xff] }
 0x13e   :  { %6875 = vmatprep.subr.bf16.mxu1 %v9539_v58  ;;  %2136 = vmatprep.mubr.f32.mxu0 %v2045_v61  ;;  %v9711_v61 = vpack.c.bf16 %v1943_v34, %v1942_v49  ;;  %v9747_v26 = vpack.c.bf16 %v1945_v9, %v1944_v6  ;;  %v2047_v49 = vcombine.high %v89_v24, %v89_v24  ;;  %v1982_v9 = vld [vmem:[%s11539_s5 + $0x290] sm:$0xff]  ;;  %v2016_v45 = vld [vmem:[%s11539_s5 + $0x3a0] sm:$0xff] }
 0x13f   :  { %2206 = vmatprep.mubr.f32.mxu1 %v2046_v3  ;;  %v1913_v3 = vld [vmem:[%s11539_s5 + $0x68] sm:$0xff]  ;;  %v1966_v24 = vld [vmem:[%s11539_s5 + $0x210] sm:$0xff]  ;;  %v2062_v54 = vcombine.high %v9812_v11, %v9812_v11 }
 0x140   :  { %6845 = vmatpush3.bf16.msra.mxu0 %v9563_v4  ;;  %v9743_v23 = vpack.c.bf16 %v1913_v3, %v1912_v2  ;;  %v1965_v2 = vld [vmem:[%s11539_s5 + $0x208] sm:$0xff]  ;;  %v1996_v3 = vld [vmem:[%s11539_s5 + $0x300] sm:$0xff]  ;;  %v9821_v20 = vrot.slane %v2047_v49, %v8002_v13 }
 0x141   :  { %6877 = vmatpush3.bf16.msra.mxu1 %v9567_v60  ;;  %6847 = vmatprep.subr.bf16.mxu0 %v9569_v5  ;;  %v9824_v18 = vpack.c.bf16 %v1965_v2, %v1964_v59  ;;  %v1968_v2 = vld [vmem:[%s11539_s5 + $0x220] sm:$0xff] }
 0x142   :  { %6879 = vmatprep.subr.bf16.mxu1 %v9581_v8 }
 0x144   :  { %6849 = vmatpush3.bf16.msra.mxu0 %v9599_v15 }
 0x145   :  { %6881 = vmatpush3.bf16.msra.mxu1 %v9603_v17  ;;  %6851 = vmatprep.subr.bf16.mxu0 %v9605_v16 }
 0x146   :  { %6883 = vmatprep.subr.bf16.mxu1 %v9617_v22 }
 0x148   :  { %6853 = vmatpush3.bf16.msra.mxu0 %v9635_v27 }
 0x149   :  { %6885 = vmatpush3.bf16.msra.mxu1 %v9639_v28  ;;  %6855 = vmatprep.subr.bf16.mxu0 %v9641_v29 }
 0x14a   :  { %6887 = vmatprep.subr.bf16.mxu1 %v9653_v35 }
 0x14c   :  { %6857 = vmatpush3.bf16.msra.mxu0 %v9671_v41 }
 0x14d   :  { %6889 = vmatpush3.bf16.msra.mxu1 %v9675_v40  ;;  %6859 = vmatprep.subr.bf16.mxu0 %v9677_v43 }
 0x14e   :  { %v5588_v63 = vpop.f32.mrb[2].mxu0  ;;  %6891 = vmatprep.subr.bf16.mxu1 %v9689_v50 }
 0x14f   :  { %v5589_v12 = vpop.f32.mrb[3].mxu0  ;;  %v5623_v14 = vpop.f32.mrb[2].mxu1 }
 0x150   :  { %v5590_v19 = vadd.f32 %v5589_v12, %v5588_v63  ;;  %6861 = vmatpush3.bf16.msra.mxu0 %v9707_v62  ;;  %v5624_v21 = vpop.f32.mrb[3].mxu1  ;;  %v1997_v63 = vld [vmem:[%s11539_s5 + $0x308] sm:$0xff]  ;;  %v2014_v12 = vld [vmem:[%s11539_s5 + $0x390] sm:$0xff] }
 0x151   :  { %6893 = vmatpush3.bf16.msra.mxu1 %v9711_v61  ;;  %v5625_v25 = vadd.f32 %v5624_v21, %v5623_v14  ;;  %6863 = vmatprep.subr.bf16.mxu0 %v9713_v1  ;;  %v2015_v14 = vld [vmem:[%s11539_s5 + $0x398] sm:$0xff]  ;;  %v9830_v21 = vpack.c.bf16 %v1983_v10, %v1982_v9  ;;  %v2001_v9 = vld [vmem:[%s11539_s5 + $0x328] sm:$0xff]  ;;  %v1986_v10 = vld [vmem:[%s11539_s5 + $0x2b0] sm:$0xff] }
 0x152   :  { %v987_v37 = vadd.f32 %v5590_v19, %v9480_v33  ;;  %6895 = vmatprep.subr.bf16.mxu1 %v9725_v7  ;;  %v2012_v33 = vld [vmem:[%s11539_s5 + $0x380] sm:$0xff]  ;;  %v9828_v19 = vpack.c.bf16 %v1997_v63, %v1996_v3  ;;  %v9842_v32 = vpack.c.bf16 %v2015_v14, %v2014_v12  ;;  %v1987_v12 = vld [vmem:[%s11539_s5 + $0x2b8] sm:$0xff]  ;;  %v2018_v14 = vld [vmem:[%s11539_s5 + $0x3b0] sm:$0xff] }
 0x153   :  { %v9800_v6 = vpack.c.bf16 %v2013_v47, %v2012_v33  ;;  %v2017_v33 = vld [vmem:[%s11539_s5 + $0x3a8] sm:$0xff]  ;;  %v2063_v47 = vcombine.high %v9821_v20, %v9821_v20  ;;  %v2000_v3 = vld [vmem:[%s11539_s5 + $0x320] sm:$0xff] }
 0x154   :  { %v9779_v34 = vadd.f32 %v5625_v25, %v987_v37  ;;  %6865 = vmatpush3.bf16.msra.mxu0 %v9743_v23  ;;  %v1967_v25 = vld [vmem:[%s11539_s5 + $0x218] sm:$0xff]  ;;  %11569 = vst [vmem:[#allocation20_spill] sm:$0xff] %v9842_v32  ;;  %v1984_v37 = vld [vmem:[%s11539_s5 + $0x2a0] sm:$0xff]  ;;  %v9884_v63 = vpack.c.bf16 %v2017_v33, %v2016_v45 }
 0x155   :  { %6897 = vmatpush3.bf16.msra.mxu1 %v9747_v26  ;;  %6867 = vmatprep.subr.bf16.mxu0 %v9749_v30  ;;  %v9866_v49 = vpack.c.bf16 %v1967_v25, %v1966_v24  ;;  %v9872_v59 = vpack.c.bf16 %v1985_v39, %v1984_v37  ;;  %v2019_v24 = vld [vmem:[%s11539_s5 + $0x3b8] sm:$0xff]  ;;  %v1970_v37 = vld [vmem:[%s11539_s5 + $0x230] sm:$0xff] }
 0x156   :  { %6899 = vmatprep.subr.bf16.mxu1 %v9762_v44  ;;  %11573 = vst [vmem:[#allocation24_spill] sm:$0xff] %v9884_v63  ;;  %v1971_v39 = vld [vmem:[%s11539_s5 + $0x238] sm:$0xff]  ;;  %v9920_v45 = vpack.c.bf16 %v2019_v24, %v2018_v14  ;;  %v1972_v14 = vld [vmem:[%s11539_s5 + $0x240] sm:$0xff]  ;;  %v1973_v24 = vld [vmem:[%s11539_s5 + $0x248] sm:$0xff] }
 0x157   :  { %11570 = vst [vmem:[#allocation21_spill] sm:$0xff] %v9866_v49  ;;  %11572 = vst [vmem:[#allocation23_spill] sm:$0xff] %v9872_v59  ;;  %v2003_v33 = vld [vmem:[%s11539_s5 + $0x338] sm:$0xff] }
 0x158   :  { %6869 = vmatpush3.bf16.msra.mxu0 %v9782_v56  ;;  %11577 = vst [vmem:[#allocation28_spill] sm:$0xff] %v9920_v45 }
 0x159   :  { %6901 = vmatpush3.bf16.msra.mxu1 %v9786_v57  ;;  %6903 = vmatprep.subr.bf16.mxu0 %v9788_v46 }
 0x15a   :  { %6935 = vmatprep.subr.bf16.mxu1 %v9800_v6 }
 0x15b   :  { %2137 = vmatmul.mubr.f32.vlgmr.msra.gmra.mrb[16].mxu0 %v9511_v48  ;;  %v9870_v48 = vpack.c.bf16 %v1999_v36, %v1998_v31  ;;  %v9906_v31 = vpack.c.bf16 %v2001_v9, %v2000_v3  ;;  %v9908_v36 = vpack.c.bf16 %v1987_v12, %v1986_v10  ;;  %v2021_v3 = vld [vmem:[%s11539_s5 + $0x3c8] sm:$0xff]  ;;  %v9938_v9 = vpack.c.bf16 %v1971_v39, %v1970_v37  ;;  %v2004_v37 = vld [vmem:[%s11539_s5 + $0x340] sm:$0xff] }
 0x15c   :  { %2207 = vmatmul.mubr.f32.vlgmr.msra.gmra.mrb[16].mxu1 %v9520_v51  ;;  %6905 = vmatpush3.bf16.msra.mxu0 %v9824_v18  ;;  %v1969_v51 = vld [vmem:[%s11539_s5 + $0x228] sm:$0xff] }
 0x15d   :  { %6937 = vmatpush3.bf16.msra.mxu1 %v9828_v19  ;;  %6907 = vmatprep.subr.bf16.mxu0 %v9830_v21  ;;  %11571 = vst [vmem:[#allocation22_spill] sm:$0xff] %v9870_v48  ;;  %v9902_v25 = vpack.c.bf16 %v1969_v51, %v1968_v2  ;;  %11575 = vst [vmem:[#allocation26_spill] sm:$0xff] %v9906_v31  ;;  %v1989_v2 = vld [vmem:[%s11539_s5 + $0x2c8] sm:$0xff]  ;;  %v2020_v51 = vld [vmem:[%s11539_s5 + $0x3c0] sm:$0xff] }
 0x15e   :  { %6939 = vmatprep.subr.bf16.mxu1 %v9842_v32  ;;  %2276 = vmatprep.mubr.f32.mxu0 %v2062_v54  ;;  %11576 = vst [vmem:[#allocation27_spill] sm:$0xff] %v9908_v36  ;;  %v2002_v54 = vld [vmem:[%s11539_s5 + $0x330] sm:$0xff]  ;;  %11578 = vst [vmem:[#allocation29_spill] sm:$0xff] %v9938_v9  ;;  %v9956_v39 = vpack.c.bf16 %v2021_v3, %v2020_v51  ;;  %v2023_v51 = vld [vmem:[%s11539_s5 + $0x3d8] sm:$0xff]  ;;  %v9974_v3 = vpack.c.bf16 %v1973_v24, %v1972_v14 }
 0x15f   :  { %2346 = vmatprep.mubr.f32.mxu1 %v2063_v47  ;;  %11574 = vst [vmem:[#allocation25_spill] sm:$0xff] %v9902_v25  ;;  %v1988_v47 = vld [vmem:[%s11539_s5 + $0x2c0] sm:$0xff]  ;;  %v9942_v10 = vpack.c.bf16 %v2003_v33, %v2002_v54  ;;  %v2005_v54 = vld [vmem:[%s11539_s5 + $0x348] sm:$0xff]  ;;  %v1990_v33 = vld [vmem:[%s11539_s5 + $0x2d0] sm:$0xff] }
 0x160   :  { %6909 = vmatpush3.bf16.msra.mxu0 %v9866_v49  ;;  %v9944_v12 = vpack.c.bf16 %v1989_v2, %v1988_v47  ;;  %11581 = vst [vmem:[#allocation32_spill] sm:$0xff] %v9956_v39  ;;  %v1991_v47 = vld [vmem:[%s11539_s5 + $0x2d8] sm:$0xff]  ;;  %v2022_v2 = vld [vmem:[%s11539_s5 + $0x3d0] sm:$0xff]  ;;  %11582 = vst [vmem:[#allocation33_spill] sm:$0xff] %v9974_v3  ;;  %v9978_v0 = vpack.c.bf16 %v2005_v54, %v2004_v37 }
 0x161   :  { %6941 = vmatpush3.bf16.msra.mxu1 %v9870_v48  ;;  %6911 = vmatprep.subr.bf16.mxu0 %v9872_v59  ;;  %11579 = vst [vmem:[#allocation30_spill] sm:$0xff] %v9942_v10  ;;  %v2006_v14 = vld [vmem:[%s11539_s5 + $0x350] sm:$0xff]  ;;  %v9992_v24 = vpack.c.bf16 %v2023_v51, %v2022_v2  ;;  %v2007_v37 = vld [vmem:[%s11539_s5 + $0x358] sm:$0xff]  ;;  %v1992_v54 = vld [vmem:[%s11539_s5 + $0x2e0] sm:$0xff] }
 0x162   :  { %6943 = vmatprep.subr.bf16.mxu1 %v9884_v63  ;;  %11580 = vst [vmem:[#allocation31_spill] sm:$0xff] %v9944_v12  ;;  %11583 = vst [vmem:[#allocation34_spill] sm:$0xff] %v9978_v0  ;;  %v2025_v2 = vld [vmem:[%s11539_s5 + $0x3e8] sm:$0xff]  ;;  %v90_v63 = vld [vmem:[#allocation7] sm:$0xff] }
 0x163   :  { %11585 = vst [vmem:[#allocation36_spill] sm:$0xff] %v9992_v24  ;;  %v1978_v32 = vld [vmem:[%s11539_s5 + $0x270] sm:$0xff] }
 0x164   :  { %6913 = vmatpush3.bf16.msra.mxu0 %v9902_v25 }
 0x165   :  { %6945 = vmatpush3.bf16.msra.mxu1 %v9906_v31  ;;  %6915 = vmatprep.subr.bf16.mxu0 %v9908_v36  ;;  %v1974_v36 = vld [vmem:[%s11539_s5 + $0x250] sm:$0xff]  ;;  %v1975_v31 = vld [vmem:[%s11539_s5 + $0x258] sm:$0xff] }
 0x166   :  { %6947 = vmatprep.subr.bf16.mxu1 %v9920_v45  ;;  %v9980_v45 = vpack.c.bf16 %v1991_v47, %v1990_v33  ;;  %v1993_v33 = vld [vmem:[%s11539_s5 + $0x2e8] sm:$0xff]  ;;  %v2024_v47 = vld [vmem:[%s11539_s5 + $0x3e0] sm:$0xff]  ;;  %v10010_v51 = vpack.c.bf16 %v1975_v31, %v1974_v36 }
 0x167   :  { %v2008_v31 = vld [vmem:[%s11539_s5 + $0x360] sm:$0xff] }
 0x168   :  { %6917 = vmatpush3.bf16.msra.mxu0 %v9938_v9  ;;  %11584 = vst [vmem:[#allocation35_spill] sm:$0xff] %v9980_v45  ;;  %v1977_v9 = vld [vmem:[%s11539_s5 + $0x268] sm:$0xff] }
 0x169   :  { %6949 = vmatpush3.bf16.msra.mxu1 %v9942_v10  ;;  %6919 = vmatprep.subr.bf16.mxu0 %v9944_v12  ;;  %v10016_v12 = vpack.c.bf16 %v1993_v33, %v1992_v54  ;;  %v1976_v10 = vld [vmem:[%s11539_s5 + $0x260] sm:$0xff]  ;;  %v1995_v54 = vld [vmem:[%s11539_s5 + $0x2f8] sm:$0xff] }
 0x16a   :  { %6951 = vmatprep.subr.bf16.mxu1 %v9956_v39  ;;  %v10014_v39 = vpack.c.bf16 %v2007_v37, %v2006_v14  ;;  %v2009_v14 = vld [vmem:[%s11539_s5 + $0x368] sm:$0xff]  ;;  %v1994_v37 = vld [vmem:[%s11539_s5 + $0x2f0] sm:$0xff]  ;;  %v10046_v25 = vpack.c.bf16 %v1977_v9, %v1976_v10 }
 0x16b   :  { %v10050_v48 = vpack.c.bf16 %v2009_v14, %v2008_v31  ;;  %v10052_v49 = vpack.c.bf16 %v1995_v54, %v1994_v37  ;;  %v2354_v31 = vcombine.high %v90_v63, %v90_v63 }
 0x16c   :  { %6921 = vmatpush3.bf16.msra.mxu0 %v9974_v3 }
 0x16d   :  { %6953 = vmatpush3.bf16.msra.mxu1 %v9978_v0  ;;  %6923 = vmatprep.subr.bf16.mxu0 %v9980_v45  ;;  %v10028_v45 = vpack.c.bf16 %v2025_v2, %v2024_v47  ;;  %v2027_v47 = vld [vmem:[%s11539_s5 + $0x3f8] sm:$0xff]  ;;  %v2368_v54 = vrot.slane %v2354_v31, %v8002_v13  ;;  %v2702_v31 = vld [vmem:[%s11541_s7 + $0xd0] sm:$0xff] }
 0x16e   :  { %v5658_v36 = vpop.f32.mrb[4].mxu0  ;;  %6955 = vmatprep.subr.bf16.mxu1 %v9992_v24  ;;  %v2026_v24 = vld [vmem:[%s11539_s5 + $0x3f0] sm:$0xff] }
 0x16f   :  { %v5659_v33 = vpop.f32.mrb[5].mxu0  ;;  %v5693_v0 = vpop.f32.mrb[4].mxu1  ;;  %v10062_v10 = vpack.c.bf16 %v2027_v47, %v2026_v24  ;;  %v2361_v24 = vrot.slane %v90_v63, %v8002_v13  ;;  %v2695_v63 = vld [vmem:[%s11541_s7 + $0x98] sm:$0xff]  ;;  %v2696_v47 = vld [vmem:[%s11541_s7 + $0xa0] sm:$0xff] }
 0x170   :  { %v5660_v2 = vadd.f32 %v5659_v33, %v5658_v36  ;;  %6925 = vmatpush3.bf16.msra.mxu0 %v10010_v51  ;;  %v5694_v3 = vpop.f32.mrb[5].mxu1  ;;  %v1979_v36 = vld [vmem:[%s11539_s5 + $0x278] sm:$0xff] }
 0x171   :  { %6957 = vmatpush3.bf16.msra.mxu1 %v10014_v39  ;;  %v5695_v59 = vadd.f32 %v5694_v3, %v5693_v0  ;;  %6927 = vmatprep.subr.bf16.mxu0 %v10016_v12  ;;  %v2010_v0 = vld [vmem:[%s11539_s5 + $0x370] sm:$0xff]  ;;  %v2011_v3 = vld [vmem:[%s11539_s5 + $0x378] sm:$0xff]  ;;  %v10071_v37 = vpack.c.bf16 %v1979_v36, %v1978_v32  ;;  %v2369_v32 = vcombine.high %v2361_v24, %v2361_v24  ;;  %v2701_v36 = vld [vmem:[%s11541_s7 + $0xc8] sm:$0xff] }
 0x172   :  { %v1127_v9 = vadd.f32 %v5660_v2, %v9779_v34  ;;  %6959 = vmatprep.subr.bf16.mxu1 %v10028_v45  ;;  %v10075_v34 = vpack.c.bf16 %v2011_v3, %v2010_v0  ;;  %v2698_v2 = vld [vmem:[%s11541_s7 + $0xb0] sm:$0xff]  ;;  %v2700_v3 = vld [vmem:[%s11541_s7 + $0xc0] sm:$0xff] }
 0x174   :  { %v1197_v14 = vadd.f32 %v5695_v59, %v1127_v9  ;;  %6929 = vmatpush3.bf16.msra.mxu0 %v10046_v25  ;;  %v2370_v59 = vcombine.high %v2368_v54, %v2368_v54  ;;  %v2703_v9 = vld [vmem:[%s11541_s7 + $0xd8] sm:$0xff] }
 0x175   :  { %6961 = vmatpush3.bf16.msra.mxu1 %v10050_v48  ;;  %6931 = vmatprep.subr.bf16.mxu0 %v10052_v49  ;;  %v7102_v0 = vpack.c.bf16 %v2703_v9, %v2701_v36  ;;  %v2683_v36 = vld [vmem:[%s11541_s7 + $0x38] sm:$0xff] }
 0x176   :  { %6963 = vmatprep.subr.bf16.mxu1 %v10062_v10 }
 0x178   :  { %6933 = vmatpush3.bf16.msra.mxu0 %v10071_v37 }
 0x179   :  { %6965 = vmatpush3.bf16.msra.mxu1 %v10075_v34  ;;  %6967 = vmatprep.subr.bf16.mxu0 %v9488_v38 }
 0x17a   :  { %6999 = vmatprep.subr.bf16.mxu1 %v9499_v42 }
 0x17b   :  { %2277 = vmatmul.mubr.f32.vlgmr.msra.gmra.mrb[18].mxu0 %v9812_v11 }
 0x17c   :  { %2347 = vmatmul.mubr.f32.vlgmr.msra.gmra.mrb[18].mxu1 %v9821_v20  ;;  %6969 = vmatpush3.bf16.msra.mxu0 %v9522_v52 }
 0x17d   :  { %7001 = vmatpush3.bf16.msra.mxu1 %v9525_v53  ;;  %6971 = vmatprep.subr.bf16.mxu0 %v9527_v55 }
 0x17e   :  { %7003 = vmatprep.subr.bf16.mxu1 %v9539_v58  ;;  %2460 = vmatprep.mubr.f32.mxu0 %v2369_v32  ;;  %v91_v58 = vld [vmem:[#allocation7 + $0x8] sm:$0xff] }
 0x17f   :  { %2530 = vmatprep.mubr.f32.mxu1 %v2370_v59  ;;  %v2707_v32 = vld [vmem:[%s11541_s7 + $0xf8] sm:$0xff] }
 0x180   :  { %6973 = vmatpush3.bf16.msra.mxu0 %v9563_v4 }
 0x181   :  { %7005 = vmatpush3.bf16.msra.mxu1 %v9567_v60  ;;  %6975 = vmatprep.subr.bf16.mxu0 %v9569_v5  ;;  %v2371_v5 = vcombine.high %v91_v58, %v91_v58 }
 0x182   :  { %7007 = vmatprep.subr.bf16.mxu1 %v9581_v8 }
 0x184   :  { %6977 = vmatpush3.bf16.msra.mxu0 %v9599_v15  ;;  %v10115_v15 = vrot.slane %v91_v58, %v8002_v13 }
 0x185   :  { %7009 = vmatpush3.bf16.msra.mxu1 %v9603_v17  ;;  %6979 = vmatprep.subr.bf16.mxu0 %v9605_v16  ;;  %v10118_v17 = vrot.slane %v2371_v5, %v8002_v13  ;;  %v2679_v5 = vld [vmem:[%s11541_s7 + $0x18] sm:$0xff] }
 0x186   :  { %7011 = vmatprep.subr.bf16.mxu1 %v9617_v22  ;;  %v2386_v16 = vcombine.high %v10115_v15, %v10115_v15 }
 0x187   :  { %v2387_v22 = vcombine.high %v10118_v17, %v10118_v17 }
 0x188   :  { %6981 = vmatpush3.bf16.msra.mxu0 %v9635_v27  ;;  %v11586_v27 = vld [vmem:[#allocation20_spill] sm:$0xff] }
 0x189   :  { %7013 = vmatpush3.bf16.msra.mxu1 %v9639_v28  ;;  %6983 = vmatprep.subr.bf16.mxu0 %v9641_v29  ;;  %v11587_v28 = vld [vmem:[#allocation21_spill] sm:$0xff]  ;;  %v11588_v29 = vld [vmem:[#allocation22_spill] sm:$0xff] }
 0x18a   :  { %7015 = vmatprep.subr.bf16.mxu1 %v9653_v35  ;;  %v11589_v35 = vld [vmem:[#allocation23_spill] sm:$0xff] }
 0x18c   :  { %6985 = vmatpush3.bf16.msra.mxu0 %v9671_v41  ;;  %v11590_v41 = vld [vmem:[#allocation24_spill] sm:$0xff] }
 0x18d   :  { %7017 = vmatpush3.bf16.msra.mxu1 %v9675_v40  ;;  %6987 = vmatprep.subr.bf16.mxu0 %v9677_v43  ;;  %v11591_v40 = vld [vmem:[#allocation25_spill] sm:$0xff]  ;;  %v11592_v43 = vld [vmem:[#allocation26_spill] sm:$0xff] }
 0x18e   :  { %v5728_v38 = vpop.f32.mrb[6].mxu0  ;;  %7019 = vmatprep.subr.bf16.mxu1 %v9689_v50  ;;  %v11593_v50 = vld [vmem:[#allocation27_spill] sm:$0xff] }
 0x18f   :  { %v5729_v42 = vpop.f32.mrb[7].mxu0  ;;  %v5763_v52 = vpop.f32.mrb[6].mxu1 }
 0x190   :  { %v5730_v53 = vadd.f32 %v5729_v42, %v5728_v38  ;;  %6989 = vmatpush3.bf16.msra.mxu0 %v9707_v62  ;;  %v5764_v55 = vpop.f32.mrb[7].mxu1  ;;  %v11594_v62 = vld [vmem:[#allocation28_spill] sm:$0xff] }
 0x191   :  { %7021 = vmatpush3.bf16.msra.mxu1 %v9711_v61  ;;  %v5765_v4 = vadd.f32 %v5764_v55, %v5763_v52  ;;  %6991 = vmatprep.subr.bf16.mxu0 %v9713_v1  ;;  %v11595_v61 = vld [vmem:[#allocation29_spill] sm:$0xff]  ;;  %v11596_v1 = vld [vmem:[#allocation30_spill] sm:$0xff] }
 0x192   :  { %v1267_v60 = vadd.f32 %v5730_v53, %v1197_v14  ;;  %7023 = vmatprep.subr.bf16.mxu1 %v9725_v7  ;;  %v11597_v7 = vld [vmem:[#allocation31_spill] sm:$0xff]  ;;  %v7104_v14 = vpack.c.bf16 %v2702_v31, %v2700_v3  ;;  %v2706_v53 = vld [vmem:[%s11541_s7 + $0xf0] sm:$0xff] }
 0x193   :  { %v2704_v52 = vld [vmem:[%s11541_s7 + $0xe0] sm:$0xff] }
 0x194   :  { %v1337_v8 = vadd.f32 %v5765_v4, %v1267_v60  ;;  %6993 = vmatpush3.bf16.msra.mxu0 %v9743_v23  ;;  %v11598_v23 = vld [vmem:[#allocation32_spill] sm:$0xff]  ;;  %v7108_v58 = vpack.c.bf16 %v2706_v53, %v2704_v52  ;;  %v2680_v31 = vld [vmem:[%s11541_s7 + $0x20] sm:$0xff] }
 0x195   :  { %7025 = vmatpush3.bf16.msra.mxu1 %v9747_v26  ;;  %6995 = vmatprep.subr.bf16.mxu0 %v9749_v30  ;;  %v11599_v26 = vld [vmem:[#allocation33_spill] sm:$0xff]  ;;  %v11600_v30 = vld [vmem:[#allocation34_spill] sm:$0xff]  ;;  %v2677_v60 = vld [vmem:[%s11541_s7 + $0x8] sm:$0xff] }
 0x196   :  { %7027 = vmatprep.subr.bf16.mxu1 %v9762_v44  ;;  %v11601_v44 = vld [vmem:[#allocation35_spill] sm:$0xff] }
 0x198   :  { %6997 = vmatpush3.bf16.msra.mxu0 %v9782_v56 }
 0x199   :  { %7029 = vmatpush3.bf16.msra.mxu1 %v9786_v57  ;;  %7031 = vmatprep.subr.bf16.mxu0 %v9788_v46  ;;  %v11602_v57 = vld [vmem:[#allocation36_spill] sm:$0xff] }
 0x19a   :  { %7063 = vmatprep.subr.bf16.mxu1 %v9800_v6 }
 0x19b   :  { %2461 = vmatmul.mubr.f32.vlgmr.msra.gmra.mrb[20].mxu0 %v2361_v24 }
 0x19c   :  { %2531 = vmatmul.mubr.f32.vlgmr.msra.gmra.mrb[20].mxu1 %v2368_v54  ;;  %7033 = vmatpush3.bf16.msra.mxu0 %v9824_v18  ;;  %v2705_v54 = vld [vmem:[%s11541_s7 + $0xe8] sm:$0xff] }
 0x19d   :  { %7065 = vmatpush3.bf16.msra.mxu1 %v9828_v19  ;;  %7035 = vmatprep.subr.bf16.mxu0 %v9830_v21  ;;  %v2693_v21 = vld [vmem:[%s11541_s7 + $0x88] sm:$0xff]  ;;  %v7106_v42 = vpack.c.bf16 %v2707_v32, %v2705_v54  ;;  %v2684_v32 = vld [vmem:[%s11541_s7 + $0x40] sm:$0xff] }
 0x19e   :  { %7067 = vmatprep.subr.bf16.mxu1 %v11586_v27  ;;  %2600 = vmatprep.mubr.f32.mxu0 %v2386_v16 }
 0x19f   :  { %2670 = vmatprep.mubr.f32.mxu1 %v2387_v22 }
 0x1a0   :  { %7037 = vmatpush3.bf16.msra.mxu0 %v11587_v28 }
 0x1a1   :  { %7069 = vmatpush3.bf16.msra.mxu1 %v11588_v29  ;;  %7039 = vmatprep.subr.bf16.mxu0 %v11589_v35 }
 0x1a2   :  { %7071 = vmatprep.subr.bf16.mxu1 %v11590_v41 }
 0x1a4   :  { %7041 = vmatpush3.bf16.msra.mxu0 %v11591_v40 }
 0x1a5   :  { %7073 = vmatpush3.bf16.msra.mxu1 %v11592_v43  ;;  %7043 = vmatprep.subr.bf16.mxu0 %v11593_v50 }
 0x1a6   :  { %7075 = vmatprep.subr.bf16.mxu1 %v11594_v62 }
 0x1a8   :  { %7045 = vmatpush3.bf16.msra.mxu0 %v11595_v61 }
 0x1a9   :  { %7077 = vmatpush3.bf16.msra.mxu1 %v11596_v1  ;;  %7047 = vmatprep.subr.bf16.mxu0 %v11597_v7 }
 0x1aa   :  { %7079 = vmatprep.subr.bf16.mxu1 %v11598_v23 }
 0x1ac   :  { %7049 = vmatpush3.bf16.msra.mxu0 %v11599_v26 }
 0x1ad   :  { %7081 = vmatpush3.bf16.msra.mxu1 %v11600_v30  ;;  %7051 = vmatprep.subr.bf16.mxu0 %v11601_v44  ;;  %v3017_v30 = vld [vmem:[%s11538_s4 + $0x8] sm:$0xff] }
 0x1ae   :  { %v5798_v56 = vpop.f32.mrb[8].mxu0  ;;  %7083 = vmatprep.subr.bf16.mxu1 %v11602_v57  ;;  %v3049_v44 = vld [vmem:[%s11538_s4 + $0x108] sm:$0xff]  ;;  %v3016_v57 = vld [vmem:[%s11538_s4] sm:$0xff] }
 0x1af   :  { %v5799_v46 = vpop.f32.mrb[9].mxu0  ;;  %v5833_v6 = vpop.f32.mrb[8].mxu1 }
 0x1b0   :  { %v5800_v11 = vadd.f32 %v5799_v46, %v5798_v56  ;;  %7053 = vmatpush3.bf16.msra.mxu0 %v10010_v51  ;;  %v5834_v20 = vpop.f32.mrb[9].mxu1  ;;  %v2697_v51 = vld [vmem:[%s11541_s7 + $0xa8] sm:$0xff]  ;;  %v7142_v56 = vpack.c.bf16 %v3049_v44, %v3017_v30  ;;  %v3048_v46 = vld [vmem:[%s11538_s4 + $0x100] sm:$0xff] }
 0x1b1   :  { %v5835_v18 = vadd.f32 %v5834_v20, %v5833_v6  ;;  %7085 = vmatpush3.bf16.msra.mxu1 %v10014_v39  ;;  %7055 = vmatprep.subr.bf16.mxu0 %v10016_v12  ;;  %v7094_v39 = vpack.c.bf16 %v2695_v63, %v2693_v21  ;;  %v2694_v12 = vld [vmem:[%s11541_s7 + $0x90] sm:$0xff]  ;;  %v7144_v6 = vpack.c.bf16 %v3048_v46, %v3016_v57  ;;  %v2869_v44 = vld [vmem:[%s11541_s7 + $0x160] sm:$0xff]  ;;  %v3023_v57 = vld [vmem:[%s11538_s4 + $0x38] sm:$0xff] }
 0x1b2   :  { %v1407_v19 = vadd.f32 %v5800_v11, %v1337_v8  ;;  %7087 = vmatprep.subr.bf16.mxu1 %v10028_v45  ;;  %v2692_v45 = vld [vmem:[%s11541_s7 + $0x80] sm:$0xff]  ;;  %v3055_v46 = vld [vmem:[%s11538_s4 + $0x138] sm:$0xff] }
 0x1b4   :  { %v1477_v33 = vadd.f32 %v5835_v18, %v1407_v19  ;;  %7057 = vmatpush3.bf16.msra.mxu0 %v10046_v25 }
 0x1b5   :  { %7089 = vmatpush3.bf16.msra.mxu1 %v10050_v48  ;;  %7059 = vmatprep.subr.bf16.mxu0 %v10052_v49  ;;  %v2699_v48 = vld [vmem:[%s11541_s7 + $0xb8] sm:$0xff]  ;;  %v7096_v49 = vpack.c.bf16 %v2694_v12, %v2692_v45 }
 0x1b6   :  { %7091 = vmatprep.subr.bf16.mxu1 %v10062_v10  ;;  %v7098_v25 = vpack.c.bf16 %v2699_v48, %v2697_v51  ;;  %v7100_v10 = vpack.c.bf16 %v2698_v2, %v2696_v47  ;;  %v2681_v2 = vld [vmem:[%s11541_s7 + $0x28] sm:$0xff] }
 0x1b7   :  { %v7114_v3 = vpack.c.bf16 %v2683_v36, %v2681_v2 }
 0x1b8   :  { %7061 = vmatpush3.bf16.msra.mxu0 %v10071_v37 }
 0x1b9   :  { %7093 = vmatpush3.bf16.msra.mxu1 %v10075_v34  ;;  %7095 = vmatprep.subr.bf16.mxu0 %v7094_v39 }
 0x1ba   :  { %7143 = vmatprep.subr.bf16.mxu1 %v7142_v56  ;;  %v2871_v56 = vld [vmem:[%s11541_s7 + $0x170] sm:$0xff] }
 0x1bb   :  { %2601 = vmatmul.mubr.f32.vlgmr.msra.gmra.mrb[22].mxu0 %v10115_v15  ;;  %v7110_v15 = vpack.c.bf16 %v2679_v5, %v2677_v60  ;;  %v2860_v60 = vld [vmem:[%s11541_s7 + $0x118] sm:$0xff] }
 0x1bc   :  { %2671 = vmatmul.mubr.f32.vlgmr.msra.gmra.mrb[22].mxu1 %v10118_v17  ;;  %7097 = vmatpush1.bf16.msra.mxu0 %v7096_v49  ;;  %v7732_v17 = vmov 0.0   ;;  %v2676_v49 = vld [vmem:[%s11541_s7] sm:$0xff] }
 0x1bd   :  { %7099 = vmatprep.subr.bf16.mxu0 %v7098_v25  ;;  %2776 = vmatprep.mubr.f32.mxu0 %v7732_v17  ;;  %v2678_v25 = vld [vmem:[%s11541_s7 + $0x10] sm:$0xff] }
 0x1be   :  { %3338 = vmatprep.mubr.f32.mxu1 %v7732_v17  ;;  %7145 = vmatpush1.bf16.msra.mxu1 %v7144_v6 }
 0x1c0   :  { %7101 = vmatpush1.bf16.msra.mxu0 %v7100_v10  ;;  %v7112_v10 = vpack.c.bf16 %v2678_v25, %v2676_v49  ;;  %v3022_v25 = vld [vmem:[%s11538_s4 + $0x30] sm:$0xff] }
 0x1c1   :  { %7103 = vmatprep.subr.bf16.mxu0 %v7102_v0 }
 0x1c4   :  { %7105 = vmatpush1.bf16.msra.mxu0 %v7104_v14  ;;  %v2682_v14 = vld [vmem:[%s11541_s7 + $0x30] sm:$0xff] }
 0x1c5   :  { %7107 = vmatprep.subr.bf16.mxu0 %v7106_v42  ;;  %v2691_v42 = vld [vmem:[%s11541_s7 + $0x78] sm:$0xff] }
 0x1c8   :  { %7109 = vmatpush1.bf16.msra.mxu0 %v7108_v58  ;;  %v2690_v58 = vld [vmem:[%s11541_s7 + $0x70] sm:$0xff] }
 0x1c9   :  { %7111 = vmatprep.subr.bf16.mxu0 %v7110_v15  ;;  %v2857_v15 = vld [vmem:[%s11541_s7 + $0x100] sm:$0xff] }
 0x1ce   :  { %v5868_v37 = vpop.f32.mrb[10].mxu0 }
 0x1cf   :  { %v5869_v34 = vpop.f32.mrb[11].mxu0  ;;  %v5903_v24 = vpop.f32.mrb[10].mxu1 }
 0x1d0   :  { %v5870_v59 = vadd.f32 %v5869_v34, %v5868_v37  ;;  %v5904_v38 = vpop.f32.mrb[11].mxu1  ;;  %v2685_v37 = vld [vmem:[%s11541_s7 + $0x48] sm:$0xff]  ;;  %v2687_v34 = vld [vmem:[%s11541_s7 + $0x58] sm:$0xff] }
 0x1d1   :  { %v5905_v55 = vadd.f32 %v5904_v38, %v5903_v24  ;;  %v7116_v24 = vpack.c.bf16 %v2682_v14, %v2680_v31  ;;  %v7118_v54 = vpack.c.bf16 %v2687_v34, %v2685_v37  ;;  %v2689_v38 = vld [vmem:[%s11541_s7 + $0x68] sm:$0xff]  ;;  %v3087_v31 = vld [vmem:[%s11538_s4 + $0x238] sm:$0xff]  ;;  %v3080_v34 = vld [vmem:[%s11538_s4 + $0x200] sm:$0xff] }
 0x1d2   :  { %v1547_v4 = vadd.f32 %v5870_v59, %v1477_v33  ;;  %v2686_v59 = vld [vmem:[%s11541_s7 + $0x50] sm:$0xff]  ;;  %v7122_v53 = vpack.c.bf16 %v2691_v42, %v2689_v38  ;;  %v3119_v37 = vld [vmem:[%s11538_s4 + $0x338] sm:$0xff] }
 0x1d3   :  { %v7120_v52 = vpack.c.bf16 %v2686_v59, %v2684_v32  ;;  %v3086_v32 = vld [vmem:[%s11538_s4 + $0x230] sm:$0xff] }
 0x1d4   :  { %v1617_v8 = vadd.f32 %v5905_v55, %v1547_v4  ;;  %v2688_v55 = vld [vmem:[%s11541_s7 + $0x60] sm:$0xff]  ;;  %v2858_v4 = vld [vmem:[%s11541_s7 + $0x108] sm:$0xff]  ;;  %v3118_v59 = vld [vmem:[%s11538_s4 + $0x330] sm:$0xff] }
 0x1d5   :  { %v7124_v5 = vpack.c.bf16 %v2690_v58, %v2688_v55  ;;  %v7196_v42 = vpack.c.bf16 %v3118_v59, %v3086_v32  ;;  %v3151_v55 = vld [vmem:[%s11538_s4 + $0x438] sm:$0xff] }
 0x1d6   :  { %v3091_v32 = vld [vmem:[%s11538_s4 + $0x258] sm:$0xff] }
 0x1d7   :  { %v3123_v59 = vld [vmem:[%s11538_s4 + $0x358] sm:$0xff] }
 0x1ee   :  { %v5938_v16 = vpop.f32.mrb[12].mxu0 }
 0x1ef   :  { %v5939_v22 = vpop.f32.mrb[13].mxu0  ;;  %v5973_v27 = vpop.f32.mrb[12].mxu1 }
 0x1f0   :  { %v5940_v28 = vadd.f32 %v5939_v22, %v5938_v16  ;;  %v5974_v29 = vpop.f32.mrb[13].mxu1  ;;  %v2859_v16 = vld [vmem:[%s11541_s7 + $0x110] sm:$0xff]  ;;  %v2862_v22 = vld [vmem:[%s11541_s7 + $0x128] sm:$0xff] }
 0x1f1   :  { %v5975_v35 = vadd.f32 %v5974_v29, %v5973_v27  ;;  %v2864_v27 = vld [vmem:[%s11541_s7 + $0x138] sm:$0xff] }
 0x1f2   :  { %v1687_v41 = vadd.f32 %v5940_v28, %v1617_v8  ;;  %v7126_v8 = vpack.c.bf16 %v2860_v60, %v2858_v4  ;;  %v7128_v28 = vpack.c.bf16 %v2859_v16, %v2857_v15  ;;  %v7130_v29 = vpack.c.bf16 %v2864_v27, %v2862_v22  ;;  %v3183_v4 = vld [vmem:[%s11538_s4 + $0x538] sm:$0xff]  ;;  %v3144_v60 = vld [vmem:[%s11538_s4 + $0x400] sm:$0xff]  ;;  %v3150_v16 = vld [vmem:[%s11538_s4 + $0x430] sm:$0xff] }
 0x1f3   :  { %v3182_v22 = vld [vmem:[%s11538_s4 + $0x530] sm:$0xff] }
 0x1f4   :  { %v1757_v40 = vadd.f32 %v5975_v35, %v1687_v41  ;;  %v2861_v35 = vld [vmem:[%s11541_s7 + $0x120] sm:$0xff]  ;;  %v2863_v41 = vld [vmem:[%s11541_s7 + $0x130] sm:$0xff]  ;;  %v7200_v27 = vpack.c.bf16 %v3182_v22, %v3150_v16  ;;  %v3179_v16 = vld [vmem:[%s11538_s4 + $0x518] sm:$0xff] }
 0x20e   :  { %v6008_v43 = vpop.f32.mrb[14].mxu0 }
 0x20f   :  { %v6009_v50 = vpop.f32.mrb[15].mxu0  ;;  %v6043_v62 = vpop.f32.mrb[14].mxu1 }
 0x210   :  { %v6010_v61 = vadd.f32 %v6009_v50, %v6008_v43  ;;  %v6044_v1 = vpop.f32.mrb[15].mxu1  ;;  %v2868_v43 = vld [vmem:[%s11541_s7 + $0x158] sm:$0xff]  ;;  %v7132_v50 = vpack.c.bf16 %v2863_v41, %v2861_v35 }
 0x211   :  { %v6045_v7 = vadd.f32 %v6044_v1, %v6043_v62  ;;  %v2867_v1 = vld [vmem:[%s11541_s7 + $0x150] sm:$0xff]  ;;  %v3215_v35 = vld [vmem:[%s11538_s4 + $0x638] sm:$0xff] }
 0x212   :  { %v1827_v23 = vadd.f32 %v6010_v61, %v1757_v40  ;;  %v2866_v40 = vld [vmem:[%s11541_s7 + $0x148] sm:$0xff]  ;;  %v2865_v61 = vld [vmem:[%s11541_s7 + $0x140] sm:$0xff] }
 0x213   :  { %v7134_v62 = vpack.c.bf16 %v2868_v43, %v2866_v40  ;;  %v3247_v40 = vld [vmem:[%s11538_s4 + $0x738] sm:$0xff]  ;;  %v3208_v43 = vld [vmem:[%s11538_s4 + $0x600] sm:$0xff] }
 0x214   :  { %v10216_v26 = vadd.f32 %v6045_v7, %v1827_v23  ;;  %v2870_v7 = vld [vmem:[%s11541_s7 + $0x168] sm:$0xff]  ;;  %v2872_v23 = vld [vmem:[%s11541_s7 + $0x178] sm:$0xff] }
 0x215   :  { %v7138_v30 = vpack.c.bf16 %v2872_v23, %v2870_v7 }
 0x22e   :  { %v6078_v11 = vpop.f32.mrb[16].mxu0 }
 0x22f   :  { %v6113_v20 = vpop.f32.mrb[16].mxu1  ;;  %v6079_v18 = vpop.f32.mrb[17].mxu0 }
 0x230   :  { %v6080_v19 = vadd.f32 %v6079_v18, %v6078_v11  ;;  %v6114_v21 = vpop.f32.mrb[17].mxu1  ;;  %v7140_v18 = vpack.c.bf16 %v2871_v56, %v2869_v44  ;;  %v3027_v44 = vld [vmem:[%s11538_s4 + $0x58] sm:$0xff] }
 0x231   :  { %v6115_v63 = vadd.f32 %v6114_v21, %v6113_v20 }
 0x233   :  { %v2209_v33 = vadd.f32 %v6115_v63, %v6080_v19  ;;  %v7190_v63 = vpack.c.bf16 %v3055_v46, %v3023_v57  ;;  %v3059_v57 = vld [vmem:[%s11538_s4 + $0x158] sm:$0xff] }
 0x234   :  { %v7222_v46 = vpack.c.bf16 %v3059_v57, %v3027_v44  ;;  %v3251_v44 = vld [vmem:[%s11538_s4 + $0x758] sm:$0xff] }
 0x24e   :  { %v6148_v39 = vpop.f32.mrb[18].mxu0 }
 0x24f   :  { %v6149_v45 = vpop.f32.mrb[19].mxu0  ;;  %v6183_v12 = vpop.f32.mrb[18].mxu1 }
 0x250   :  { %v6150_v51 = vadd.f32 %v6149_v45, %v6148_v39  ;;  %v6184_v48 = vpop.f32.mrb[19].mxu1 }
 0x251   :  { %v6185_v47 = vadd.f32 %v6184_v48, %v6183_v12 }
 0x252   :  { %v2279_v9 = vadd.f32 %v6150_v51, %v2209_v33 }
 0x254   :  { %v2349_v0 = vadd.f32 %v6185_v47, %v2279_v9  ;;  %v3054_v47 = vld [vmem:[%s11538_s4 + $0x130] sm:$0xff] }
 0x255   :  { %v7192_v9 = vpack.c.bf16 %v3054_v47, %v3022_v25 }
 0x256   :  { %5457 = vmatmul.mubr.msk.f32.vlgmr.msra.gmra.mrb[24].mxu0 %vm2708_vm0, %v2349_v0  ;;  %v3081_v0 = vld [vmem:[%s11538_s4 + $0x208] sm:$0xff] }
 0x257   :  { %7113 = vmatpush1.bf16.msra.mxu0 %v7112_v10  ;;  %2850 = vmatprep.mubr.f32.mxu0 %v7732_v17 }
 0x258   :  { %7115 = vmatprep.subr.bf16.mxu0 %v7114_v3  ;;  %v3113_v3 = vld [vmem:[%s11538_s4 + $0x308] sm:$0xff] }
 0x259   :  { %v7146_v14 = vpack.c.bf16 %v3113_v3, %v3081_v0  ;;  %v3018_v0 = vld [vmem:[%s11538_s4 + $0x10] sm:$0xff] }
 0x25a   :  { %v3050_v3 = vld [vmem:[%s11538_s4 + $0x110] sm:$0xff] }
 0x25b   :  { %7117 = vmatpush1.bf16.msra.mxu0 %v7116_v24  ;;  %v7194_v24 = vpack.c.bf16 %v3119_v37, %v3087_v31  ;;  %7147 = vmatprep.subr.bf16.mxu1 %v7146_v14  ;;  %v3026_v14 = vld [vmem:[%s11538_s4 + $0x50] sm:$0xff] }
 0x25c   :  { %7119 = vmatprep.subr.bf16.mxu0 %v7118_v54  ;;  %v3112_v54 = vld [vmem:[%s11538_s4 + $0x300] sm:$0xff]  ;;  %v3058_v37 = vld [vmem:[%s11538_s4 + $0x150] sm:$0xff] }
 0x25d   :  { %v7148_v38 = vpack.c.bf16 %v3112_v54, %v3080_v34  ;;  %v3083_v34 = vld [vmem:[%s11538_s4 + $0x218] sm:$0xff] }
 0x25e   :  { %v3115_v54 = vld [vmem:[%s11538_s4 + $0x318] sm:$0xff] }
 0x25f   :  { %7121 = vmatpush1.bf16.msra.mxu0 %v7120_v52  ;;  %v3145_v52 = vld [vmem:[%s11538_s4 + $0x408] sm:$0xff]  ;;  %7149 = vmatpush1.bf16.msra.mxu1 %v7148_v38 }
 0x260   :  { %7123 = vmatprep.subr.bf16.mxu0 %v7122_v53  ;;  %v3177_v53 = vld [vmem:[%s11538_s4 + $0x508] sm:$0xff] }
 0x261   :  { %v7150_v58 = vpack.c.bf16 %v3177_v53, %v3145_v52  ;;  %v7160_v52 = vpack.c.bf16 %v3050_v3, %v3018_v0  ;;  %v7224_v53 = vpack.c.bf16 %v3058_v37, %v3026_v14  ;;  %v3095_v0 = vld [vmem:[%s11538_s4 + $0x278] sm:$0xff]  ;;  %v3084_v37 = vld [vmem:[%s11538_s4 + $0x220] sm:$0xff] }
 0x262   :  { %v3127_v3 = vld [vmem:[%s11538_s4 + $0x378] sm:$0xff] }
 0x263   :  { %7125 = vmatpush1.bf16.msra.mxu0 %v7124_v5  ;;  %v3176_v5 = vld [vmem:[%s11538_s4 + $0x500] sm:$0xff]  ;;  %7151 = vmatprep.subr.bf16.mxu1 %v7150_v58  ;;  %v3114_v58 = vld [vmem:[%s11538_s4 + $0x310] sm:$0xff] }
 0x264   :  { %7127 = vmatprep.subr.bf16.mxu0 %v7126_v8  ;;  %v7198_v8 = vpack.c.bf16 %v3183_v4, %v3151_v55  ;;  %v7152_v15 = vpack.c.bf16 %v3176_v5, %v3144_v60  ;;  %v3082_v55 = vld [vmem:[%s11538_s4 + $0x210] sm:$0xff]  ;;  %v7162_v60 = vpack.c.bf16 %v3115_v54, %v3083_v34  ;;  %v7226_v5 = vpack.c.bf16 %v3123_v59, %v3091_v32  ;;  %v3116_v34 = vld [vmem:[%s11538_s4 + $0x320] sm:$0xff] }
 0x265   :  { %v3090_v4 = vld [vmem:[%s11538_s4 + $0x250] sm:$0xff]  ;;  %v7258_v54 = vpack.c.bf16 %v3127_v3, %v3095_v0  ;;  %v3163_v0 = vld [vmem:[%s11538_s4 + $0x498] sm:$0xff] }
 0x266   :  { %5458 = vmatmul.mubr.msk.f32.vlgmr.msra.gmra.mrb[24].mxu0 %vm2708_vm0, %v10216_v26  ;;  %v7136_v26 = vpack.c.bf16 %v2867_v1, %v2865_v61  ;;  %7153 = vmatpush1.bf16.msra.mxu1 %v7152_v15  ;;  %v3214_v61 = vld [vmem:[%s11538_s4 + $0x630] sm:$0xff]  ;;  %v3147_v15 = vld [vmem:[%s11538_s4 + $0x418] sm:$0xff] }
 0x267   :  { %7129 = vmatpush1.bf16.msra.mxu0 %v7128_v28  ;;  %2940 = vmatprep.mubr.f32.mxu0 %v7732_v17  ;;  %v3209_v28 = vld [vmem:[%s11538_s4 + $0x608] sm:$0xff]  ;;  %v3246_v1 = vld [vmem:[%s11538_s4 + $0x730] sm:$0xff]  ;;  %v3195_v3 = vld [vmem:[%s11538_s4 + $0x598] sm:$0xff] }
 0x268   :  { %7131 = vmatprep.subr.bf16.mxu0 %v7130_v29  ;;  %v3241_v29 = vld [vmem:[%s11538_s4 + $0x708] sm:$0xff]  ;;  %v7204_v23 = vpack.c.bf16 %v3246_v1, %v3214_v61  ;;  %v7166_v61 = vpack.c.bf16 %v3179_v16, %v3147_v15  ;;  %v3094_v32 = vld [vmem:[%s11538_s4 + $0x270] sm:$0xff] }
 0x269   :  { %v7154_v41 = vpack.c.bf16 %v3241_v29, %v3209_v28  ;;  %v3187_v28 = vld [vmem:[%s11538_s4 + $0x558] sm:$0xff]  ;;  %v3126_v59 = vld [vmem:[%s11538_s4 + $0x370] sm:$0xff] }
 0x26a   :  { %v3158_v15 = vld [vmem:[%s11538_s4 + $0x470] sm:$0xff] }
 0x26b   :  { %7133 = vmatpush1.bf16.msra.mxu0 %v7132_v50  ;;  %v7202_v50 = vpack.c.bf16 %v3247_v40, %v3215_v35  ;;  %7155 = vmatprep.subr.bf16.mxu1 %v7154_v41  ;;  %v7164_v35 = vpack.c.bf16 %v3114_v58, %v3082_v55  ;;  %v3146_v40 = vld [vmem:[%s11538_s4 + $0x410] sm:$0xff]  ;;  %v7180_v55 = vpack.c.bf16 %v3116_v34, %v3084_v37  ;;  %v3152_v37 = vld [vmem:[%s11538_s4 + $0x440] sm:$0xff] }
 0x26c   :  { %7135 = vmatprep.subr.bf16.mxu0 %v7134_v62  ;;  %v3240_v62 = vld [vmem:[%s11538_s4 + $0x700] sm:$0xff]  ;;  %v7260_v58 = vpack.c.bf16 %v3126_v59, %v3094_v32  ;;  %v3190_v16 = vld [vmem:[%s11538_s4 + $0x570] sm:$0xff] }
 0x26d   :  { %v7156_v7 = vpack.c.bf16 %v3240_v62, %v3208_v43  ;;  %v3178_v43 = vld [vmem:[%s11538_s4 + $0x510] sm:$0xff]  ;;  %v3184_v34 = vld [vmem:[%s11538_s4 + $0x540] sm:$0xff] }
 0x26e   :  { %v6218_v6 = vpop.f32.mrb[20].mxu0  ;;  %v7168_v57 = vpack.c.bf16 %v3178_v43, %v3146_v40  ;;  %v7264_v43 = vpack.c.bf16 %v3190_v16, %v3158_v15  ;;  %v3162_v32 = vld [vmem:[%s11538_s4 + $0x490] sm:$0xff] }
 0x26f   :  { %v6253_v11 = vpop.f32.mrb[20].mxu1  ;;  %v6219_v20 = vpop.f32.mrb[21].mxu0  ;;  %7137 = vmatpush1.bf16.msra.mxu0 %v7136_v26  ;;  %v3019_v26 = vld [vmem:[%s11538_s4 + $0x18] sm:$0xff]  ;;  %7157 = vmatpush1.bf16.msra.mxu1 %v7156_v7  ;;  %v3186_v7 = vld [vmem:[%s11538_s4 + $0x550] sm:$0xff] }
 0x270   :  { %v6220_v19 = vadd.f32 %v6219_v20, %v6218_v6  ;;  %v6254_v21 = vpop.f32.mrb[21].mxu1  ;;  %7139 = vmatprep.subr.bf16.mxu0 %v7138_v30  ;;  %v3051_v30 = vld [vmem:[%s11538_s4 + $0x118] sm:$0xff]  ;;  %v11603_v6 = vld [vmem:[#allocation19_spill] sm:$0xff]  ;;  %v2949_v20 = vld [vmem:[%s11542_s8] sm:$0x3] }
 0x271   :  { %v6255_v33 = vadd.f32 %v6254_v21, %v6253_v11  ;;  %v7158_v56 = vpack.c.bf16 %v3051_v30, %v3019_v26  ;;  %v2953_v11 = vsub.s32 0, %v11603_v6  ;;  %v3243_v26 = vld [vmem:[%s11538_s4 + $0x718] sm:$0xff]  ;;  %v3194_v59 = vld [vmem:[%s11538_s4 + $0x590] sm:$0xff] }
 0x272   :  { %v3219_v30 = vld [vmem:[%s11538_s4 + $0x658] sm:$0xff]  ;;  %v3226_v15 = vld [vmem:[%s11538_s4 + $0x690] sm:$0xff] }
 0x273   :  { %v2533_v39 = vadd.f32 %v6255_v33, %v6220_v19  ;;  %7141 = vmatpush1.bf16.msra.mxu0 %v7140_v18  ;;  %7159 = vmatprep.subr.bf16.mxu1 %v7158_v56  ;;  %v2957_v18 = vsub.s32 1, %v11603_v6  ;;  %v2954_v19 = vrot.slane %v2949_v20, %v2953_v11  ;;  %v2967_v33 = vld [vmem:[%s11543_s9] sm:$0x3]  ;;  %v3210_v6 = vld [vmem:[%s11538_s4 + $0x610] sm:$0xff] }
 0x274   :  { %7191 = vmatprep.subr.bf16.mxu0 %v7190_v63  ;;  %v3258_v16 = vld [vmem:[%s11538_s4 + $0x790] sm:$0xff] }
 0x275   :  { %v2958_v21 = vrot.slane %v2949_v20, %v2957_v18  ;;  %v2976_v47 = vrot.slane %v2967_v33, %v2957_v18 }
 0x28e   :  { %v6288_v45 = vpop.f32.mrb[22].mxu0 }
 0x28f   :  { %v6289_v12 = vpop.f32.mrb[23].mxu0  ;;  %v6323_v51 = vpop.f32.mrb[22].mxu1 }
 0x290   :  { %v6290_v48 = vadd.f32 %v6289_v12, %v6288_v45  ;;  %v6324_v49 = vpop.f32.mrb[23].mxu1  ;;  %v2981_v12 = vld [vmem:[%s11544_s10] sm:$0x3] }
 0x291   :  { %v6325_v2 = vadd.f32 %v6324_v49, %v6323_v51  ;;  %v2972_v49 = vrot.slane %v2967_v33, %v2953_v11  ;;  %v3053_v33 = vld [vmem:[%s11538_s4 + $0x128] sm:$0xff] }
 0x292   :  { %v2603_v36 = vadd.f32 %v6290_v48, %v2533_v39 }
 0x294   :  { %v2673_v10 = vadd.f32 %v6325_v2, %v2603_v36  ;;  %v2986_v36 = vrot.slane %v2981_v12, %v2953_v11  ;;  %v3242_v11 = vld [vmem:[%s11538_s4 + $0x710] sm:$0xff] }
 0x296   :  { %5459 = vmatmul.mubr.msk.f32.vlgmr.msra.gmra.mrb[24].mxu0 %vm2708_vm0, %v2673_v10  ;;  %v2990_v10 = vrot.slane %v2981_v12, %v2957_v18  ;;  %v7234_v18 = vpack.c.bf16 %v3251_v44, %v3219_v30  ;;  %v7172_v12 = vpack.c.bf16 %v3242_v11, %v3210_v6  ;;  %v3057_v30 = vld [vmem:[%s11538_s4 + $0x148] sm:$0xff]  ;;  %v3035_v44 = vld [vmem:[%s11538_s4 + $0x98] sm:$0xff]  ;;  %v3024_v6 = vld [vmem:[%s11538_s4 + $0x40] sm:$0xff] }
 0x297   :  { %7193 = vmatpush1.bf16.msra.mxu0 %v7192_v9  ;;  %3551 = vmatprep.mubr.f32.mxu0 %v7732_v17  ;;  %v3056_v11 = vld [vmem:[%s11538_s4 + $0x140] sm:$0xff] }
 0x298   :  { %7195 = vmatprep.subr.bf16.mxu0 %v7194_v24 }
 0x29b   :  { %7197 = vmatpush1.bf16.msra.mxu0 %v7196_v42 }
 0x29c   :  { %7199 = vmatprep.subr.bf16.mxu0 %v7198_v8  ;;  %v3122_v8 = vld [vmem:[%s11538_s4 + $0x350] sm:$0xff] }
 0x29d   :  { %v7228_v41 = vpack.c.bf16 %v3122_v8, %v3090_v4  ;;  %v3148_v4 = vld [vmem:[%s11538_s4 + $0x420] sm:$0xff] }
 0x29f   :  { %7201 = vmatpush1.bf16.msra.mxu0 %v7200_v27  ;;  %v3155_v27 = vld [vmem:[%s11538_s4 + $0x458] sm:$0xff] }
 0x2a0   :  { %7203 = vmatprep.subr.bf16.mxu0 %v7202_v50  ;;  %v3154_v50 = vld [vmem:[%s11538_s4 + $0x450] sm:$0xff]  ;;  %v7230_v1 = vpack.c.bf16 %v3187_v28, %v3155_v27  ;;  %v3213_v27 = vld [vmem:[%s11538_s4 + $0x628] sm:$0xff] }
 0x2a1   :  { %v3245_v28 = vld [vmem:[%s11538_s4 + $0x728] sm:$0xff] }
 0x2a3   :  { %7205 = vmatpush1.bf16.msra.mxu0 %v7204_v23  ;;  %v3211_v23 = vld [vmem:[%s11538_s4 + $0x618] sm:$0xff] }
 0x2a4   :  { %7223 = vmatprep.subr.bf16.mxu0 %v7222_v46  ;;  %v7232_v46 = vpack.c.bf16 %v3186_v7, %v3154_v50  ;;  %v7170_v20 = vpack.c.bf16 %v3243_v26, %v3211_v23  ;;  %v3212_v50 = vld [vmem:[%s11538_s4 + $0x620] sm:$0xff]  ;;  %v3222_v7 = vld [vmem:[%s11538_s4 + $0x670] sm:$0xff]  ;;  %v3025_v26 = vld [vmem:[%s11538_s4 + $0x48] sm:$0xff] }
 0x2a5   :  { %v3254_v23 = vld [vmem:[%s11538_s4 + $0x770] sm:$0xff] }
 0x369   :  { %v2942_v63 = vpop.f32.mrb[24].mxu0 }
 0x36a   :  { %v2961_v39 = vadd.f32 %v2954_v19, %v2942_v63  ;;  %v2944_v45 = vpop.f32.mrb[25].mxu0  ;;  %v3218_v19 = vld [vmem:[%s11538_s4 + $0x650] sm:$0xff]  ;;  %v3021_v63 = vld [vmem:[%s11538_s4 + $0x28] sm:$0xff] }
 0x36b   :  { %v2962_v51 = vadd.f32 %v2958_v21, %v2944_v45  ;;  %v3250_v21 = vld [vmem:[%s11538_s4 + $0x750] sm:$0xff]  ;;  %v3063_v45 = vld [vmem:[%s11538_s4 + $0x178] sm:$0xff] }
 0x36c   :  { %v2963_v48 = vmax.f32 %v2961_v39, 0.0  ;;  %v3031_v39 = vld [vmem:[%s11538_s4 + $0x78] sm:$0xff] }
 0x36d   :  { %v2964_v25 = vmax.f32 %v2962_v51, 0.0  ;;  %v7236_v51 = vpack.c.bf16 %v3250_v21, %v3218_v19  ;;  %v3034_v19 = vld [vmem:[%s11538_s4 + $0x90] sm:$0xff] }
 0x36e   :  { %v2965_v2 = vmin.f32 %v2963_v48, 6.0  ;;  %v3020_v48 = vld [vmem:[%s11538_s4 + $0x20] sm:$0xff]  ;;  %v3066_v21 = vld [vmem:[%s11538_s4 + $0x190] sm:$0xff] }
 0x36f   :  { %v2966_v9 = vmin.f32 %v2964_v25, 6.0  ;;  %v7174_v25 = vpack.c.bf16 %v3053_v33, %v3021_v63  ;;  %v3089_v63 = vld [vmem:[%s11538_s4 + $0x248] sm:$0xff] }
 0x370   :  { %v2979_v31 = vmul.f32 %v2972_v49, %v2965_v2  ;;  %v3052_v49 = vld [vmem:[%s11538_s4 + $0x120] sm:$0xff]  ;;  %v3030_v2 = vld [vmem:[%s11538_s4 + $0x70] sm:$0xff]  ;;  %v3121_v33 = vld [vmem:[%s11538_s4 + $0x348] sm:$0xff] }
 0x371   :  { %v2980_v24 = vmul.f32 %v2976_v47, %v2966_v9  ;;  %v7254_v47 = vpack.c.bf16 %v3063_v45, %v3031_v39  ;;  %v3085_v9 = vld [vmem:[%s11538_s4 + $0x228] sm:$0xff]  ;;  %v3099_v39 = vld [vmem:[%s11538_s4 + $0x298] sm:$0xff] }
 0x372   :  { %v2993_v38 = vadd.f32 %v2986_v36, %v2979_v31  ;;  %v3062_v36 = vld [vmem:[%s11538_s4 + $0x170] sm:$0xff]  ;;  %v7176_v31 = vpack.c.bf16 %v3052_v49, %v3020_v48  ;;  %v3131_v45 = vld [vmem:[%s11538_s4 + $0x398] sm:$0xff]  ;;  %v3088_v48 = vld [vmem:[%s11538_s4 + $0x240] sm:$0xff] }
 0x373   :  { %v2994_v42 = vadd.f32 %v2990_v10, %v2980_v24  ;;  %v3117_v10 = vld [vmem:[%s11538_s4 + $0x328] sm:$0xff]  ;;  %v7256_v14 = vpack.c.bf16 %v3062_v36, %v3030_v2  ;;  %v3120_v49 = vld [vmem:[%s11538_s4 + $0x340] sm:$0xff]  ;;  %v3098_v2 = vld [vmem:[%s11538_s4 + $0x290] sm:$0xff] }
 0x374   :  { %vm2995_vm1 = vcmp.gt.f32.partialorder %v2993_v38, 0.0  ;;  %v7178_v24 = vpack.c.bf16 %v3117_v10, %v3085_v9  ;;  %v3149_v38 = vld [vmem:[%s11538_s4 + $0x428] sm:$0xff]  ;;  %v3130_v36 = vld [vmem:[%s11538_s4 + $0x390] sm:$0xff] }
 0x375   :  { %v10477_v22 = vsel %vm2995_vm1, 1.0, %v7732_v17  ;;  %vm2996_vm2 = vcmp.gt.f32.partialorder %v2994_v42, 0.0  ;;  %v3181_v42 = vld [vmem:[%s11538_s4 + $0x528] sm:$0xff] }
 0x376   :  { %5462 = vmatmul.mubr.msk.f32.vlgmr.msra.gmra.mrb[24].mxu1 %vm2708_vm0, %v10477_v22  ;;  %5465 = vmatmul.mubr.msk.f32.vlgmr.msra.gmra.mrb[26].mxu0 %vm2708_vm0, %v10477_v22  ;;  %v10490_v29 = vsel %vm2996_vm2, 1.0, %v7732_v17  ;;  %v3153_v9 = vld [vmem:[%s11538_s4 + $0x448] sm:$0xff] }
 0x377   :  { %7161 = vmatpush1.bf16.msra.mxu1 %v7160_v52  ;;  %7225 = vmatpush1.bf16.msra.mxu0 %v7224_v53  ;;  %v3003_v62 = vcombine.low %v10477_v22, %v10490_v29  ;;  %v3159_v52 = vld [vmem:[%s11538_s4 + $0x478] sm:$0xff]  ;;  %v3185_v10 = vld [vmem:[%s11538_s4 + $0x548] sm:$0xff] }
 0x378   :  { %4666 = vrot.lane.b32.xlu0 %v10477_v22, %s7733_s30  ;;  %7163 = vmatprep.subr.bf16.mxu1 %v7162_v60  ;;  %v3191_v53 = vld [vmem:[%s11538_s4 + $0x578] sm:$0xff]  ;;  %v3180_v60 = vld [vmem:[%s11538_s4 + $0x520] sm:$0xff] }
 0x379   :  { %7227 = vmatprep.subr.bf16.mxu0 %v7226_v5  ;;  %3409 = vmatprep.mubr.f32.mxu1 %v7732_v17  ;;  %v3010_v56 = vrot.slane %v3003_v62, %v8002_v13  ;;  %v7182_v5 = vpack.c.bf16 %v3181_v42, %v3149_v38  ;;  %v7262_v8 = vpack.c.bf16 %v3191_v53, %v3159_v52  ;;  %v3244_v62 = vld [vmem:[%s11538_s4 + $0x720] sm:$0xff]  ;;  %v3217_v38 = vld [vmem:[%s11538_s4 + $0x648] sm:$0xff]  ;;  %v3227_v52 = vld [vmem:[%s11538_s4 + $0x698] sm:$0xff] }
 0x37a   :  { %3693 = vmatprep.mubr.f32.mxu0 %v7732_v17  ;;  %v7184_v40 = vpack.c.bf16 %v3180_v60, %v3148_v4  ;;  %v3249_v42 = vld [vmem:[%s11538_s4 + $0x748] sm:$0xff]  ;;  %v3259_v53 = vld [vmem:[%s11538_s4 + $0x798] sm:$0xff]  ;;  %v3216_v4 = vld [vmem:[%s11538_s4 + $0x640] sm:$0xff] }
 0x37b   :  { %7165 = vmatpush1.bf16.msra.mxu1 %v7164_v35  ;;  %7229 = vmatpush1.bf16.msra.mxu0 %v7228_v41  ;;  %3015 = vst.msk [vmem:[#allocation12] sm:$0xf] %vm3014_vm5, %v3010_v56  ;;  %v3223_v35 = vld [vmem:[%s11538_s4 + $0x678] sm:$0xff]  ;;  %v3248_v60 = vld [vmem:[%s11538_s4 + $0x740] sm:$0xff] }
 0x37c   :  { %7167 = vmatprep.subr.bf16.mxu1 %v7166_v61  ;;  %7231 = vmatprep.subr.bf16.mxu0 %v7230_v1  ;;  %v3255_v41 = vld [vmem:[%s11538_s4 + $0x778] sm:$0xff]  ;;  %v7186_v61 = vpack.c.bf16 %v3245_v28, %v3213_v27  ;;  %v3029_v27 = vld [vmem:[%s11538_s4 + $0x68] sm:$0xff] }
 0x37d   :  { %v7266_v1 = vpack.c.bf16 %v3255_v41, %v3223_v35  ;;  %v3067_v56 = vld [vmem:[%s11538_s4 + $0x198] sm:$0xff]  ;;  %v3061_v28 = vld [vmem:[%s11538_s4 + $0x168] sm:$0xff] }
 0x37e   :  { %v3039_v35 = vld [vmem:[%s11538_s4 + $0xb8] sm:$0xff] }
 0x37f   :  { %7169 = vmatpush1.bf16.msra.mxu1 %v7168_v57  ;;  %7233 = vmatpush1.bf16.msra.mxu0 %v7232_v46  ;;  %v7188_v57 = vpack.c.bf16 %v3244_v62, %v3212_v50  ;;  %v7268_v46 = vpack.c.bf16 %v3254_v23, %v3222_v7  ;;  %v3071_v41 = vld [vmem:[%s11538_s4 + $0x1b8] sm:$0xff]  ;;  %v3028_v50 = vld [vmem:[%s11538_s4 + $0x60] sm:$0xff]  ;;  %v3038_v7 = vld [vmem:[%s11538_s4 + $0xb0] sm:$0xff] }
 0x380   :  { %7171 = vmatprep.subr.bf16.mxu1 %v7170_v20  ;;  %7235 = vmatprep.subr.bf16.mxu0 %v7234_v18  ;;  %v7206_v20 = vpack.c.bf16 %v3057_v30, %v3025_v26  ;;  %v7286_v18 = vpack.c.bf16 %v3067_v56, %v3035_v44  ;;  %v3060_v62 = vld [vmem:[%s11538_s4 + $0x160] sm:$0xff]  ;;  %v3070_v23 = vld [vmem:[%s11538_s4 + $0x1b0] sm:$0xff]  ;;  %v3093_v26 = vld [vmem:[%s11538_s4 + $0x268] sm:$0xff] }
 0x381   :  { %v3125_v30 = vld [vmem:[%s11538_s4 + $0x368] sm:$0xff]  ;;  %v3103_v44 = vld [vmem:[%s11538_s4 + $0x2b8] sm:$0xff] }
 0x382   :  { %v3135_v56 = vld [vmem:[%s11538_s4 + $0x3b8] sm:$0xff] }
 0x383   :  { %7173 = vmatpush1.bf16.msra.mxu1 %v7172_v12  ;;  %7237 = vmatpush1.bf16.msra.mxu0 %v7236_v51  ;;  %v7208_v12 = vpack.c.bf16 %v3056_v11, %v3024_v6  ;;  %v7288_v51 = vpack.c.bf16 %v3066_v21, %v3034_v19  ;;  %v3092_v6 = vld [vmem:[%s11538_s4 + $0x260] sm:$0xff]  ;;  %v3102_v19 = vld [vmem:[%s11538_s4 + $0x2b0] sm:$0xff] }
 0x384   :  { %7175 = vmatprep.subr.bf16.mxu1 %v7174_v25  ;;  %7255 = vmatprep.subr.bf16.mxu0 %v7254_v47  ;;  %v7210_v25 = vpack.c.bf16 %v3121_v33, %v3089_v63  ;;  %v7290_v47 = vpack.c.bf16 %v3131_v45, %v3099_v39  ;;  %v3124_v11 = vld [vmem:[%s11538_s4 + $0x360] sm:$0xff]  ;;  %v3134_v21 = vld [vmem:[%s11538_s4 + $0x3b0] sm:$0xff]  ;;  %v3157_v63 = vld [vmem:[%s11538_s4 + $0x468] sm:$0xff] }
 0x385   :  { %v3189_v33 = vld [vmem:[%s11538_s4 + $0x568] sm:$0xff]  ;;  %v3167_v39 = vld [vmem:[%s11538_s4 + $0x4b8] sm:$0xff] }
 0x386   :  { %5463 = vmatmul.mubr.msk.f32.vlgmr.msra.gmra.mrb[26].mxu1 %vm2708_vm0, %v10477_v22  ;;  %5467 = vmatmul.mubr.msk.f32.vlgmr.msra.gmra.mrb[28].mxu0 %vm2708_vm0, %v10477_v22  ;;  %v3199_v45 = vld [vmem:[%s11538_s4 + $0x5b8] sm:$0xff] }
 0x387   :  { %7177 = vmatpush1.bf16.msra.mxu1 %v7176_v31  ;;  %7257 = vmatpush1.bf16.msra.mxu0 %v7256_v14  ;;  %v7212_v31 = vpack.c.bf16 %v3120_v49, %v3088_v48  ;;  %v7292_v14 = vpack.c.bf16 %v3130_v36, %v3098_v2  ;;  %v3156_v48 = vld [vmem:[%s11538_s4 + $0x460] sm:$0xff]  ;;  %v3166_v2 = vld [vmem:[%s11538_s4 + $0x4b0] sm:$0xff] }
 0x388   :  { %7179 = vmatprep.subr.bf16.mxu1 %v7178_v24  ;;  %7259 = vmatprep.subr.bf16.mxu0 %v7258_v54  ;;  %v7214_v24 = vpack.c.bf16 %v3185_v10, %v3153_v9  ;;  %v7294_v54 = vpack.c.bf16 %v3195_v3, %v3163_v0  ;;  %v3188_v49 = vld [vmem:[%s11538_s4 + $0x560] sm:$0xff]  ;;  %v3198_v36 = vld [vmem:[%s11538_s4 + $0x5b0] sm:$0xff]  ;;  %v3221_v9 = vld [vmem:[%s11538_s4 + $0x668] sm:$0xff] }
 0x389   :  { %3480 = vmatprep.mubr.f32.mxu1 %v7732_v17  ;;  %3835 = vmatprep.mubr.f32.mxu0 %v7732_v17  ;;  %v3253_v10 = vld [vmem:[%s11538_s4 + $0x768] sm:$0xff]  ;;  %v3231_v0 = vld [vmem:[%s11538_s4 + $0x6b8] sm:$0xff] }
 0x38a   :  { %v3263_v3 = vld [vmem:[%s11538_s4 + $0x7b8] sm:$0xff] }
 0x38b   :  { %7181 = vmatpush1.bf16.msra.mxu1 %v7180_v55  ;;  %7261 = vmatpush1.bf16.msra.mxu0 %v7260_v58  ;;  %v7216_v55 = vpack.c.bf16 %v3184_v34, %v3152_v37  ;;  %v7296_v58 = vpack.c.bf16 %v3194_v59, %v3162_v32  ;;  %v3220_v37 = vld [vmem:[%s11538_s4 + $0x660] sm:$0xff]  ;;  %v3230_v32 = vld [vmem:[%s11538_s4 + $0x6b0] sm:$0xff] }
 0x38c   :  { %7183 = vmatprep.subr.bf16.mxu1 %v7182_v5  ;;  %7263 = vmatprep.subr.bf16.mxu0 %v7262_v8  ;;  %v7218_v5 = vpack.c.bf16 %v3249_v42, %v3217_v38  ;;  %v7298_v8 = vpack.c.bf16 %v3259_v53, %v3227_v52  ;;  %v3252_v34 = vld [vmem:[%s11538_s4 + $0x760] sm:$0xff]  ;;  %v3262_v59 = vld [vmem:[%s11538_s4 + $0x7b0] sm:$0xff]  ;;  %v3033_v38 = vld [vmem:[%s11538_s4 + $0x88] sm:$0xff] }
 0x38d   :  { %v3065_v42 = vld [vmem:[%s11538_s4 + $0x188] sm:$0xff]  ;;  %v3043_v52 = vld [vmem:[%s11538_s4 + $0xd8] sm:$0xff] }
 0x38e   :  { %v3075_v53 = vld [vmem:[%s11538_s4 + $0x1d8] sm:$0xff] }
 0x38f   :  { %7185 = vmatpush1.bf16.msra.mxu1 %v7184_v40  ;;  %7265 = vmatpush1.bf16.msra.mxu0 %v7264_v43  ;;  %v7220_v40 = vpack.c.bf16 %v3248_v60, %v3216_v4  ;;  %v7300_v43 = vpack.c.bf16 %v3258_v16, %v3226_v15  ;;  %v3032_v4 = vld [vmem:[%s11538_s4 + $0x80] sm:$0xff]  ;;  %v3042_v15 = vld [vmem:[%s11538_s4 + $0xd0] sm:$0xff] }
 0x390   :  { %7187 = vmatprep.subr.bf16.mxu1 %v7186_v61  ;;  %7267 = vmatprep.subr.bf16.mxu0 %v7266_v1  ;;  %v7238_v61 = vpack.c.bf16 %v3061_v28, %v3029_v27  ;;  %v7318_v1 = vpack.c.bf16 %v3071_v41, %v3039_v35  ;;  %v3064_v60 = vld [vmem:[%s11538_s4 + $0x180] sm:$0xff]  ;;  %v3074_v16 = vld [vmem:[%s11538_s4 + $0x1d0] sm:$0xff]  ;;  %v3097_v27 = vld [vmem:[%s11538_s4 + $0x288] sm:$0xff] }
 0x391   :  { %v3129_v28 = vld [vmem:[%s11538_s4 + $0x388] sm:$0xff]  ;;  %v3107_v35 = vld [vmem:[%s11538_s4 + $0x2d8] sm:$0xff] }
 0x392   :  { %v3139_v41 = vld [vmem:[%s11538_s4 + $0x3d8] sm:$0xff] }
 0x393   :  { %7189 = vmatpush1.bf16.msra.mxu1 %v7188_v57  ;;  %7269 = vmatpush1.bf16.msra.mxu0 %v7268_v46  ;;  %v7240_v57 = vpack.c.bf16 %v3060_v62, %v3028_v50  ;;  %v7320_v46 = vpack.c.bf16 %v3070_v23, %v3038_v7  ;;  %v3096_v50 = vld [vmem:[%s11538_s4 + $0x280] sm:$0xff]  ;;  %v3106_v7 = vld [vmem:[%s11538_s4 + $0x2d0] sm:$0xff] }
 0x394   :  { %7207 = vmatprep.subr.bf16.mxu1 %v7206_v20  ;;  %7287 = vmatprep.subr.bf16.mxu0 %v7286_v18  ;;  %v7242_v20 = vpack.c.bf16 %v3125_v30, %v3093_v26  ;;  %v7322_v18 = vpack.c.bf16 %v3135_v56, %v3103_v44  ;;  %v3128_v62 = vld [vmem:[%s11538_s4 + $0x380] sm:$0xff]  ;;  %v3138_v23 = vld [vmem:[%s11538_s4 + $0x3d0] sm:$0xff]  ;;  %v3161_v26 = vld [vmem:[%s11538_s4 + $0x488] sm:$0xff] }
 0x395   :  { %v3193_v30 = vld [vmem:[%s11538_s4 + $0x588] sm:$0xff]  ;;  %v3171_v44 = vld [vmem:[%s11538_s4 + $0x4d8] sm:$0xff] }
 0x396   :  { %5464 = vmatmul.mubr.msk.f32.vlgmr.msra.gmra.mrb[28].mxu1 %vm2708_vm0, %v10477_v22  ;;  %5469 = vmatmul.mubr.msk.f32.vlgmr.msra.gmra.mrb[30].mxu0 %vm2708_vm0, %v10477_v22  ;;  %v3203_v56 = vld [vmem:[%s11538_s4 + $0x5d8] sm:$0xff] }
 0x397   :  { %7209 = vmatpush1.bf16.msra.mxu1 %v7208_v12  ;;  %7289 = vmatpush1.bf16.msra.mxu0 %v7288_v51  ;;  %v7244_v12 = vpack.c.bf16 %v3124_v11, %v3092_v6  ;;  %v7324_v51 = vpack.c.bf16 %v3134_v21, %v3102_v19  ;;  %v3160_v6 = vld [vmem:[%s11538_s4 + $0x480] sm:$0xff]  ;;  %v3170_v19 = vld [vmem:[%s11538_s4 + $0x4d0] sm:$0xff] }
 0x398   :  { %7211 = vmatprep.subr.bf16.mxu1 %v7210_v25  ;;  %7291 = vmatprep.subr.bf16.mxu0 %v7290_v47  ;;  %v7246_v25 = vpack.c.bf16 %v3189_v33, %v3157_v63  ;;  %v7326_v47 = vpack.c.bf16 %v3199_v45, %v3167_v39  ;;  %v3192_v11 = vld [vmem:[%s11538_s4 + $0x580] sm:$0xff]  ;;  %v3202_v21 = vld [vmem:[%s11538_s4 + $0x5d0] sm:$0xff]  ;;  %v3225_v63 = vld [vmem:[%s11538_s4 + $0x688] sm:$0xff] }
 0x399   :  { %3622 = vmatprep.mubr.f32.mxu1 %v7732_v17  ;;  %3977 = vmatprep.mubr.f32.mxu0 %v7732_v17  ;;  %v3257_v33 = vld [vmem:[%s11538_s4 + $0x788] sm:$0xff]  ;;  %v3235_v39 = vld [vmem:[%s11538_s4 + $0x6d8] sm:$0xff] }
 0x39a   :  { %v3267_v45 = vld [vmem:[%s11538_s4 + $0x7d8] sm:$0xff] }
 0x39b   :  { %7213 = vmatpush1.bf16.msra.mxu1 %v7212_v31  ;;  %7293 = vmatpush1.bf16.msra.mxu0 %v7292_v14  ;;  %v7248_v31 = vpack.c.bf16 %v3188_v49, %v3156_v48  ;;  %v7328_v14 = vpack.c.bf16 %v3198_v36, %v3166_v2  ;;  %v3224_v48 = vld [vmem:[%s11538_s4 + $0x680] sm:$0xff]  ;;  %v3234_v2 = vld [vmem:[%s11538_s4 + $0x6d0] sm:$0xff] }
 0x39c   :  { %7215 = vmatprep.subr.bf16.mxu1 %v7214_v24  ;;  %7295 = vmatprep.subr.bf16.mxu0 %v7294_v54  ;;  %v7250_v24 = vpack.c.bf16 %v3253_v10, %v3221_v9  ;;  %v7330_v54 = vpack.c.bf16 %v3263_v3, %v3231_v0  ;;  %v3256_v49 = vld [vmem:[%s11538_s4 + $0x780] sm:$0xff]  ;;  %v3266_v36 = vld [vmem:[%s11538_s4 + $0x7d0] sm:$0xff]  ;;  %v3037_v9 = vld [vmem:[%s11538_s4 + $0xa8] sm:$0xff] }
 0x39d   :  { %v3069_v10 = vld [vmem:[%s11538_s4 + $0x1a8] sm:$0xff]  ;;  %v3047_v0 = vld [vmem:[%s11538_s4 + $0xf8] sm:$0xff] }
 0x39e   :  { %v3079_v3 = vld [vmem:[%s11538_s4 + $0x1f8] sm:$0xff] }
 0x39f   :  { %7217 = vmatpush1.bf16.msra.mxu1 %v7216_v55  ;;  %7297 = vmatpush1.bf16.msra.mxu0 %v7296_v58  ;;  %v7252_v55 = vpack.c.bf16 %v3252_v34, %v3220_v37  ;;  %v7332_v58 = vpack.c.bf16 %v3262_v59, %v3230_v32  ;;  %v3036_v37 = vld [vmem:[%s11538_s4 + $0xa0] sm:$0xff]  ;;  %v3046_v32 = vld [vmem:[%s11538_s4 + $0xf0] sm:$0xff] }
 0x3a0   :  { %7219 = vmatprep.subr.bf16.mxu1 %v7218_v5  ;;  %7299 = vmatprep.subr.bf16.mxu0 %v7298_v8  ;;  %v7270_v5 = vpack.c.bf16 %v3065_v42, %v3033_v38  ;;  %v7350_v8 = vpack.c.bf16 %v3075_v53, %v3043_v52  ;;  %v3068_v34 = vld [vmem:[%s11538_s4 + $0x1a0] sm:$0xff]  ;;  %v3078_v59 = vld [vmem:[%s11538_s4 + $0x1f0] sm:$0xff]  ;;  %v3101_v38 = vld [vmem:[%s11538_s4 + $0x2a8] sm:$0xff] }
 0x3a1   :  { %v3133_v42 = vld [vmem:[%s11538_s4 + $0x3a8] sm:$0xff]  ;;  %v3111_v52 = vld [vmem:[%s11538_s4 + $0x2f8] sm:$0xff] }
 0x3a2   :  { %v3143_v53 = vld [vmem:[%s11538_s4 + $0x3f8] sm:$0xff] }
 0x3a3   :  { %7221 = vmatpush1.bf16.msra.mxu1 %v7220_v40  ;;  %7301 = vmatpush1.bf16.msra.mxu0 %v7300_v43  ;;  %v7272_v40 = vpack.c.bf16 %v3064_v60, %v3032_v4  ;;  %v7352_v43 = vpack.c.bf16 %v3074_v16, %v3042_v15  ;;  %v3100_v4 = vld [vmem:[%s11538_s4 + $0x2a0] sm:$0xff]  ;;  %v3110_v15 = vld [vmem:[%s11538_s4 + $0x2f0] sm:$0xff] }
 0x3a4   :  { %7239 = vmatprep.subr.bf16.mxu1 %v7238_v61  ;;  %7319 = vmatprep.subr.bf16.mxu0 %v7318_v1  ;;  %v7274_v61 = vpack.c.bf16 %v3129_v28, %v3097_v27  ;;  %v7354_v1 = vpack.c.bf16 %v3139_v41, %v3107_v35  ;;  %v3132_v60 = vld [vmem:[%s11538_s4 + $0x3a0] sm:$0xff]  ;;  %v3142_v16 = vld [vmem:[%s11538_s4 + $0x3f0] sm:$0xff]  ;;  %v3165_v27 = vld [vmem:[%s11538_s4 + $0x4a8] sm:$0xff] }
 0x3a5   :  { %v3197_v28 = vld [vmem:[%s11538_s4 + $0x5a8] sm:$0xff]  ;;  %v3175_v35 = vld [vmem:[%s11538_s4 + $0x4f8] sm:$0xff] }
 0x3a6   :  { %5466 = vmatmul.mubr.msk.f32.vlgmr.msra.gmra.mrb[30].mxu1 %vm2708_vm0, %v10477_v22  ;;  %5471 = vmatmul.mubr.msk.f32.vlgmr.msra.gmra.mrb[32].mxu0 %vm2708_vm0, %v10477_v22  ;;  %v3207_v41 = vld [vmem:[%s11538_s4 + $0x5f8] sm:$0xff] }
 0x3a7   :  { %7241 = vmatpush1.bf16.msra.mxu1 %v7240_v57  ;;  %7321 = vmatpush1.bf16.msra.mxu0 %v7320_v46  ;;  %v7276_v57 = vpack.c.bf16 %v3128_v62, %v3096_v50  ;;  %v7356_v46 = vpack.c.bf16 %v3138_v23, %v3106_v7  ;;  %v3164_v50 = vld [vmem:[%s11538_s4 + $0x4a0] sm:$0xff]  ;;  %v3174_v7 = vld [vmem:[%s11538_s4 + $0x4f0] sm:$0xff] }
 0x3a8   :  { %7243 = vmatprep.subr.bf16.mxu1 %v7242_v20  ;;  %7323 = vmatprep.subr.bf16.mxu0 %v7322_v18  ;;  %v7278_v20 = vpack.c.bf16 %v3193_v30, %v3161_v26  ;;  %v7358_v18 = vpack.c.bf16 %v3203_v56, %v3171_v44  ;;  %v3196_v62 = vld [vmem:[%s11538_s4 + $0x5a0] sm:$0xff]  ;;  %v3206_v23 = vld [vmem:[%s11538_s4 + $0x5f0] sm:$0xff]  ;;  %v3229_v26 = vld [vmem:[%s11538_s4 + $0x6a8] sm:$0xff] }
 0x3a9   :  { %3764 = vmatprep.mubr.f32.mxu1 %v7732_v17  ;;  %4119 = vmatprep.mubr.f32.mxu0 %v7732_v17  ;;  %v3261_v30 = vld [vmem:[%s11538_s4 + $0x7a8] sm:$0xff]  ;;  %v3239_v44 = vld [vmem:[%s11538_s4 + $0x6f8] sm:$0xff] }
 0x3aa   :  { %v3271_v56 = vld [vmem:[%s11538_s4 + $0x7f8] sm:$0xff] }
 0x3ab   :  { %7245 = vmatpush1.bf16.msra.mxu1 %v7244_v12  ;;  %7325 = vmatpush1.bf16.msra.mxu0 %v7324_v51  ;;  %v7280_v12 = vpack.c.bf16 %v3192_v11, %v3160_v6  ;;  %v7360_v51 = vpack.c.bf16 %v3202_v21, %v3170_v19  ;;  %v3228_v6 = vld [vmem:[%s11538_s4 + $0x6a0] sm:$0xff]  ;;  %v3238_v19 = vld [vmem:[%s11538_s4 + $0x6f0] sm:$0xff] }
 0x3ac   :  { %7247 = vmatprep.subr.bf16.mxu1 %v7246_v25  ;;  %7327 = vmatprep.subr.bf16.mxu0 %v7326_v47  ;;  %v7282_v25 = vpack.c.bf16 %v3257_v33, %v3225_v63  ;;  %v7362_v47 = vpack.c.bf16 %v3267_v45, %v3235_v39  ;;  %v3260_v11 = vld [vmem:[%s11538_s4 + $0x7a0] sm:$0xff]  ;;  %v3270_v21 = vld [vmem:[%s11538_s4 + $0x7f0] sm:$0xff]  ;;  %v3041_v63 = vld [vmem:[%s11538_s4 + $0xc8] sm:$0xff] }
 0x3ad   :  { %v3073_v33 = vld [vmem:[%s11538_s4 + $0x1c8] sm:$0xff]  ;;  %v4605_v39 = vld [vmem:[%s11540_s6 + $0x18] sm:$0xff] }
 0x3ae   :  { %v4613_v45 = vld [vmem:[%s11540_s6 + $0x58] sm:$0xff] }
 0x3af   :  { %7249 = vmatpush1.bf16.msra.mxu1 %v7248_v31  ;;  %7329 = vmatpush1.bf16.msra.mxu0 %v7328_v14  ;;  %v7284_v31 = vpack.c.bf16 %v3256_v49, %v3224_v48  ;;  %v7364_v14 = vpack.c.bf16 %v3266_v36, %v3234_v2  ;;  %v3040_v48 = vld [vmem:[%s11538_s4 + $0xc0] sm:$0xff]  ;;  %v3105_v2 = vld [vmem:[%s11538_s4 + $0x2c8] sm:$0xff]  ;;  %v4604_v36 = vld [vmem:[%s11540_s6 + $0x10] sm:$0xff] }
 0x3b0   :  { %7251 = vmatprep.subr.bf16.mxu1 %v7250_v24  ;;  %7331 = vmatprep.subr.bf16.mxu0 %v7330_v54  ;;  %v7302_v24 = vpack.c.bf16 %v3069_v10, %v3037_v9  ;;  %v7382_v54 = vpack.c.bf16 %v3079_v3, %v3047_v0  ;;  %v3072_v49 = vld [vmem:[%s11538_s4 + $0x1c0] sm:$0xff]  ;;  %v4612_v9 = vld [vmem:[%s11540_s6 + $0x50] sm:$0xff]  ;;  %v3137_v10 = vld [vmem:[%s11538_s4 + $0x3c8] sm:$0xff] }
 0x3b1   :  { %v4621_v0 = vld [vmem:[%s11540_s6 + $0x98] sm:$0xff] }
 0x3b2   :  { %v4629_v3 = vld [vmem:[%s11540_s6 + $0xd8] sm:$0xff] }
 0x3b3   :  { %7253 = vmatpush1.bf16.msra.mxu1 %v7252_v55  ;;  %7333 = vmatpush1.bf16.msra.mxu0 %v7332_v58  ;;  %v7304_v55 = vpack.c.bf16 %v3068_v34, %v3036_v37  ;;  %v7384_v58 = vpack.c.bf16 %v3078_v59, %v3046_v32  ;;  %v3104_v37 = vld [vmem:[%s11538_s4 + $0x2c0] sm:$0xff]  ;;  %v3169_v32 = vld [vmem:[%s11538_s4 + $0x4c8] sm:$0xff]  ;;  %v4620_v59 = vld [vmem:[%s11540_s6 + $0x90] sm:$0xff] }
 0x3b4   :  { %7271 = vmatprep.subr.bf16.mxu1 %v7270_v5  ;;  %7351 = vmatprep.subr.bf16.mxu0 %v7350_v8  ;;  %v7306_v5 = vpack.c.bf16 %v3133_v42, %v3101_v38  ;;  %v7386_v8 = vpack.c.bf16 %v3143_v53, %v3111_v52  ;;  %v3136_v34 = vld [vmem:[%s11538_s4 + $0x3c0] sm:$0xff]  ;;  %v4628_v38 = vld [vmem:[%s11540_s6 + $0xd0] sm:$0xff]  ;;  %v3201_v42 = vld [vmem:[%s11538_s4 + $0x5c8] sm:$0xff] }
 0x3b5   :  { %v4637_v52 = vld [vmem:[%s11540_s6 + $0x118] sm:$0xff] }
 0x3b6   :  { %5468 = vmatmul.mubr.msk.f32.vlgmr.msra.gmra.mrb[32].mxu1 %vm2708_vm0, %v10477_v22  ;;  %5473 = vmatmul.mubr.msk.f32.vlgmr.msra.gmra.mrb[34].mxu0 %vm2708_vm0, %v10477_v22  ;;  %v4645_v53 = vld [vmem:[%s11540_s6 + $0x158] sm:$0xff] }
 0x3b7   :  { %7273 = vmatpush1.bf16.msra.mxu1 %v7272_v40  ;;  %7353 = vmatpush1.bf16.msra.mxu0 %v7352_v43  ;;  %v7308_v40 = vpack.c.bf16 %v3132_v60, %v3100_v4  ;;  %v7388_v43 = vpack.c.bf16 %v3142_v16, %v3110_v15  ;;  %v3168_v4 = vld [vmem:[%s11538_s4 + $0x4c0] sm:$0xff]  ;;  %v3233_v15 = vld [vmem:[%s11538_s4 + $0x6c8] sm:$0xff]  ;;  %v4636_v16 = vld [vmem:[%s11540_s6 + $0x110] sm:$0xff] }
 0x3b8   :  { %7275 = vmatprep.subr.bf16.mxu1 %v7274_v61  ;;  %7355 = vmatprep.subr.bf16.mxu0 %v7354_v1  ;;  %v7310_v61 = vpack.c.bf16 %v3197_v28, %v3165_v27  ;;  %v7390_v1 = vpack.c.bf16 %v3207_v41, %v3175_v35  ;;  %v3200_v60 = vld [vmem:[%s11538_s4 + $0x5c0] sm:$0xff]  ;;  %v4644_v27 = vld [vmem:[%s11540_s6 + $0x150] sm:$0xff]  ;;  %v3265_v28 = vld [vmem:[%s11538_s4 + $0x7c8] sm:$0xff] }
 0x3b9   :  { %3906 = vmatprep.mubr.f32.mxu1 %v7732_v17  ;;  %4261 = vmatprep.mubr.f32.mxu0 %v7732_v17  ;;  %v4653_v35 = vld [vmem:[%s11540_s6 + $0x198] sm:$0xff] }
 0x3ba   :  { %v4661_v41 = vld [vmem:[%s11540_s6 + $0x1d8] sm:$0xff] }
 0x3bb   :  { %7277 = vmatpush1.bf16.msra.mxu1 %v7276_v57  ;;  %7357 = vmatpush1.bf16.msra.mxu0 %v7356_v46  ;;  %v7312_v57 = vpack.c.bf16 %v3196_v62, %v3164_v50  ;;  %v7392_v46 = vpack.c.bf16 %v3206_v23, %v3174_v7  ;;  %v3232_v50 = vld [vmem:[%s11538_s4 + $0x6c0] sm:$0xff]  ;;  %v3045_v7 = vld [vmem:[%s11538_s4 + $0xe8] sm:$0xff]  ;;  %v4652_v23 = vld [vmem:[%s11540_s6 + $0x190] sm:$0xff] }
 0x3bc   :  { %7279 = vmatprep.subr.bf16.mxu1 %v7278_v20  ;;  %7359 = vmatprep.subr.bf16.mxu0 %v7358_v18  ;;  %v7314_v20 = vpack.c.bf16 %v3261_v30, %v3229_v26  ;;  %v7394_v18 = vpack.c.bf16 %v3271_v56, %v3239_v44  ;;  %v3264_v62 = vld [vmem:[%s11538_s4 + $0x7c0] sm:$0xff]  ;;  %v4660_v26 = vld [vmem:[%s11540_s6 + $0x1d0] sm:$0xff]  ;;  %v3077_v30 = vld [vmem:[%s11538_s4 + $0x1e8] sm:$0xff] }
 0x3bd   :  { %v4609_v44 = vld [vmem:[%s11540_s6 + $0x38] sm:$0xff] }
 0x3be   :  { %v4617_v56 = vld [vmem:[%s11540_s6 + $0x78] sm:$0xff] }
 0x3bf   :  { %7281 = vmatpush1.bf16.msra.mxu1 %v7280_v12  ;;  %7361 = vmatpush1.bf16.msra.mxu0 %v7360_v51  ;;  %v7316_v12 = vpack.c.bf16 %v3260_v11, %v3228_v6  ;;  %v7396_v51 = vpack.c.bf16 %v3270_v21, %v3238_v19  ;;  %v7366_v6 = vpack.c.bf16 %v3077_v30, %v3045_v7  ;;  %v3044_v11 = vld [vmem:[%s11538_s4 + $0xe0] sm:$0xff]  ;;  %v3109_v19 = vld [vmem:[%s11538_s4 + $0x2e8] sm:$0xff]  ;;  %v4664_v30 = vld [vmem:[%s11540_s6 + $0x1f0] sm:$0xff] }
 0x3c0   :  { %7283 = vmatprep.subr.bf16.mxu1 %v7282_v25  ;;  %7363 = vmatprep.subr.bf16.mxu0 %v7362_v47  ;;  %v7334_v25 = vpack.c.bf16 %v3073_v33, %v3041_v63  ;;  %v11064_v47 = vpack.c.bf16 %v4613_v45, %v4605_v39  ;;  %v3141_v21 = vld [vmem:[%s11538_s4 + $0x3e8] sm:$0xff]  ;;  %v4608_v39 = vld [vmem:[%s11540_s6 + $0x30] sm:$0xff]  ;;  %v3108_v45 = vld [vmem:[%s11538_s4 + $0x2e0] sm:$0xff] }
 0x3c1   :  { %v7370_v33 = vpack.c.bf16 %v3141_v21, %v3109_v19  ;;  %v4602_v7 = vld [vmem:[%s11540_s6] sm:$0xff]  ;;  %v4635_v21 = vld [vmem:[%s11540_s6 + $0x108] sm:$0xff] }
 0x3c2   :  { %v4626_v19 = vld [vmem:[%s11540_s6 + $0xc0] sm:$0xff] }
 0x3c3   :  { %7285 = vmatpush1.bf16.msra.mxu1 %v7284_v31  ;;  %7365 = vmatpush1.bf16.msra.mxu0 %v7364_v14  ;;  %v7336_v31 = vpack.c.bf16 %v3072_v49, %v3040_v48  ;;  %v11084_v14 = vpack.c.bf16 %v4612_v9, %v4604_v36  ;;  %v3173_v48 = vld [vmem:[%s11538_s4 + $0x4e8] sm:$0xff] }
 0x3c4   :  { %7303 = vmatprep.subr.bf16.mxu1 %v7302_v24  ;;  %7383 = vmatprep.subr.bf16.mxu0 %v7382_v54  ;;  %v7338_v24 = vpack.c.bf16 %v3137_v10, %v3105_v2  ;;  %v11093_v54 = vpack.c.bf16 %v4629_v3, %v4621_v0  ;;  %v3205_v49 = vld [vmem:[%s11538_s4 + $0x5e8] sm:$0xff]  ;;  %v4633_v2 = vld [vmem:[%s11540_s6 + $0xf8] sm:$0xff]  ;;  %v4624_v0 = vld [vmem:[%s11540_s6 + $0xb0] sm:$0xff] }
 0x3c5   :  { %v7374_v10 = vpack.c.bf16 %v3205_v49, %v3173_v48  ;;  %v3172_v3 = vld [vmem:[%s11538_s4 + $0x4e0] sm:$0xff] }
 0x3c6   :  { %5470 = vmatmul.mubr.msk.f32.vlgmr.msra.gmra.mrb[34].mxu1 %vm2708_vm0, %v10477_v22  ;;  %5475 = vmatmul.mubr.msk.f32.vlgmr.msra.gmra.mrb[36].mxu0 %vm2708_vm0, %v10477_v22  ;;  %v4650_v49 = vld [vmem:[%s11540_s6 + $0x180] sm:$0xff] }
 0x3c7   :  { %7305 = vmatpush1.bf16.msra.mxu1 %v7304_v55  ;;  %7385 = vmatpush1.bf16.msra.mxu0 %v7384_v58  ;;  %v7340_v55 = vpack.c.bf16 %v3136_v34, %v3104_v37  ;;  %v11118_v58 = vpack.c.bf16 %v4628_v38, %v4620_v59  ;;  %v4632_v34 = vld [vmem:[%s11540_s6 + $0xf0] sm:$0xff]  ;;  %v4641_v38 = vld [vmem:[%s11540_s6 + $0x138] sm:$0xff] }
 0x3c8   :  { %7307 = vmatprep.subr.bf16.mxu1 %v7306_v5  ;;  %7387 = vmatprep.subr.bf16.mxu0 %v7386_v8  ;;  %v7342_v5 = vpack.c.bf16 %v3201_v42, %v3169_v32  ;;  %v11127_v8 = vpack.c.bf16 %v4645_v53, %v4637_v52  ;;  %v3269_v32 = vld [vmem:[%s11538_s4 + $0x7e8] sm:$0xff]  ;;  %v4649_v42 = vld [vmem:[%s11540_s6 + $0x178] sm:$0xff]  ;;  %v11259_v53 = vpack.c.bf16 %v4632_v34, %v4624_v0  ;;  %v4614_v0 = vld [vmem:[%s11540_s6 + $0x60] sm:$0xff] }
 0x3c9   :  { %4048 = vmatprep.mubr.f32.mxu1 %v7732_v17  ;;  %4403 = vmatprep.mubr.f32.mxu0 %v7732_v17 }
 0x3cb   :  { %7309 = vmatpush1.bf16.msra.mxu1 %v7308_v40  ;;  %7389 = vmatpush1.bf16.msra.mxu0 %v7388_v43  ;;  %v7344_v40 = vpack.c.bf16 %v3200_v60, %v3168_v4  ;;  %v11150_v43 = vpack.c.bf16 %v4644_v27, %v4636_v16  ;;  %v4640_v4 = vld [vmem:[%s11540_s6 + $0x130] sm:$0xff]  ;;  %v3236_v60 = vld [vmem:[%s11538_s4 + $0x6e0] sm:$0xff]  ;;  %v4603_v27 = vld [vmem:[%s11540_s6 + $0x8] sm:$0xff] }
 0x3cc   :  { %7311 = vmatprep.subr.bf16.mxu1 %v7310_v61  ;;  %7391 = vmatprep.subr.bf16.mxu0 %v7390_v1  ;;  %v7346_v61 = vpack.c.bf16 %v3265_v28, %v3233_v15  ;;  %v11159_v1 = vpack.c.bf16 %v4661_v41, %v4653_v35  ;;  %v11271_v15 = vpack.c.bf16 %v4649_v42, %v4641_v38  ;;  %v4648_v16 = vld [vmem:[%s11540_s6 + $0x170] sm:$0xff]  ;;  %v4611_v28 = vld [vmem:[%s11540_s6 + $0x48] sm:$0xff]  ;;  %v4657_v35 = vld [vmem:[%s11540_s6 + $0x1b8] sm:$0xff] }
 0x3cd   :  { %v4665_v41 = vld [vmem:[%s11540_s6 + $0x1f8] sm:$0xff] }
 0x3cf   :  { %7313 = vmatpush1.bf16.msra.mxu1 %v7312_v57  ;;  %7393 = vmatpush1.bf16.msra.mxu0 %v7392_v46  ;;  %v7348_v57 = vpack.c.bf16 %v3264_v62, %v3232_v50  ;;  %v11180_v46 = vpack.c.bf16 %v4660_v26, %v4652_v23  ;;  %v11290_v50 = vpack.c.bf16 %v4648_v16, %v4640_v4  ;;  %v4610_v23 = vld [vmem:[%s11540_s6 + $0x40] sm:$0xff] }
 0x3d0   :  { %7315 = vmatprep.subr.bf16.mxu1 %v7314_v20  ;;  %7395 = vmatprep.subr.bf16.mxu0 %v7394_v18  ;;  %v3076_v20 = vld [vmem:[%s11538_s4 + $0x1e0] sm:$0xff]  ;;  %v11189_v18 = vpack.c.bf16 %v4617_v56, %v4609_v44  ;;  %v11292_v62 = vpack.c.bf16 %v4611_v28, %v4603_v27  ;;  %v11304_v26 = vpack.c.bf16 %v4665_v41, %v4657_v35  ;;  %v4619_v44 = vld [vmem:[%s11540_s6 + $0x88] sm:$0xff] }
 0x3d1   :  { %v7368_v63 = vpack.c.bf16 %v3076_v20, %v3044_v11  ;;  %v4627_v56 = vld [vmem:[%s11540_s6 + $0xc8] sm:$0xff]  ;;  %v4618_v20 = vld [vmem:[%s11540_s6 + $0x80] sm:$0xff] }
 0x3d2   :  { %v11321_v11 = vpack.c.bf16 %v4627_v56, %v4619_v44 }
 0x3d3   :  { %7317 = vmatpush1.bf16.msra.mxu1 %v7316_v12  ;;  %7397 = vmatpush1.bf16.msra.mxu0 %v7396_v51  ;;  %v3140_v12 = vld [vmem:[%s11538_s4 + $0x3e0] sm:$0xff]  ;;  %v4616_v51 = vld [vmem:[%s11540_s6 + $0x70] sm:$0xff] }
 0x3d4   :  { %7335 = vmatprep.subr.bf16.mxu1 %v7334_v25  ;;  %7415 = vmatprep.subr.bf16.mxu0 %v11064_v47  ;;  %v4625_v25 = vld [vmem:[%s11540_s6 + $0xb8] sm:$0xff]  ;;  %v7372_v36 = vpack.c.bf16 %v3140_v12, %v3108_v45  ;;  %v11226_v9 = vpack.c.bf16 %v4616_v51, %v4608_v39  ;;  %v4634_v45 = vld [vmem:[%s11540_s6 + $0x100] sm:$0xff]  ;;  %v4651_v12 = vld [vmem:[%s11540_s6 + $0x188] sm:$0xff] }
 0x3d5   :  { %v11237_v37 = vpack.c.bf16 %v4633_v2, %v4625_v25  ;;  %v4659_v51 = vld [vmem:[%s11540_s6 + $0x1c8] sm:$0xff]  ;;  %v4658_v25 = vld [vmem:[%s11540_s6 + $0x1c0] sm:$0xff] }
 0x3d6   :  { %5472 = vmatmul.mubr.msk.f32.vlgmr.msra.gmra.mrb[36].mxu1 %vm2708_vm0, %v10477_v22  ;;  %5477 = vmatmul.mubr.msk.f32.vlgmr.msra.gmra.mrb[38].mxu0 %vm2708_vm0, %v10477_v22  ;;  %v4607_v2 = vld [vmem:[%s11540_s6 + $0x28] sm:$0xff] }
 0x3d7   :  { %7337 = vmatpush1.bf16.msra.mxu1 %v7336_v31  ;;  %7417 = vmatpush1.bf16.msra.mxu0 %v11084_v14  ;;  %v3204_v31 = vld [vmem:[%s11538_s4 + $0x5e0] sm:$0xff] }
 0x3d8   :  { %7339 = vmatprep.subr.bf16.mxu1 %v7338_v24  ;;  %7419 = vmatprep.subr.bf16.mxu0 %v11093_v54  ;;  %v3237_v24 = vld [vmem:[%s11538_s4 + $0x6e8] sm:$0xff]  ;;  %v7376_v52 = vpack.c.bf16 %v3204_v31, %v3172_v3 }
 0x3d9   :  { %4190 = vmatprep.mubr.f32.mxu1 %v7732_v17  ;;  %4805 = vmatprep.mubr.f32.mxu0 %v7732_v17  ;;  %v4623_v3 = vld [vmem:[%s11540_s6 + $0xa8] sm:$0xff] }
 0x3db   :  { %7341 = vmatpush1.bf16.msra.mxu1 %v7340_v55  ;;  %7421 = vmatpush1.bf16.msra.mxu0 %v11118_v58  ;;  %v7378_v55 = vpack.c.bf16 %v3269_v32, %v3237_v24  ;;  %v4622_v24 = vld [vmem:[%s11540_s6 + $0xa0] sm:$0xff]  ;;  %v4639_v32 = vld [vmem:[%s11540_s6 + $0x128] sm:$0xff] }
 0x3dc   :  { %7343 = vmatprep.subr.bf16.mxu1 %v7342_v5  ;;  %7423 = vmatprep.subr.bf16.mxu0 %v11127_v8  ;;  %v3268_v5 = vld [vmem:[%s11538_s4 + $0x7e0] sm:$0xff] }
 0x3df   :  { %7345 = vmatpush1.bf16.msra.mxu1 %v7344_v40  ;;  %7425 = vmatpush1.bf16.msra.mxu0 %v11150_v43  ;;  %v7380_v40 = vpack.c.bf16 %v3268_v5, %v3236_v60  ;;  %v4662_v5 = vld [vmem:[%s11540_s6 + $0x1e0] sm:$0xff] }
 0x3e0   :  { %7347 = vmatprep.subr.bf16.mxu1 %v7346_v61  ;;  %7427 = vmatprep.subr.bf16.mxu0 %v11159_v1  ;;  %v4656_v61 = vld [vmem:[%s11540_s6 + $0x1b0] sm:$0xff] }
 0x3e3   :  { %7349 = vmatpush1.bf16.msra.mxu1 %v7348_v57  ;;  %7429 = vmatpush1.bf16.msra.mxu0 %v11180_v46  ;;  %v11315_v57 = vpack.c.bf16 %v4610_v23, %v4602_v7  ;;  %v7552_v23 = vld [vmem:[#allocation2] sm:$0xff] }
 0x3e4   :  { %7367 = vmatprep.subr.bf16.mxu1 %v7366_v6  ;;  %7447 = vmatprep.subr.bf16.mxu0 %v11189_v18  ;;  %v11319_v6 = vpack.c.bf16 %v4664_v30, %v4656_v61 }
 0x3e6   :  { %5474 = vmatmul.mubr.msk.f32.vlgmr.msra.gmra.mrb[38].mxu1 %vm2708_vm0, %v10477_v22 }
 0x3e7   :  { %7369 = vmatpush1.bf16.msra.mxu1 %v7368_v63  ;;  %4332 = vmatprep.mubr.f32.mxu1 %v7732_v17  ;;  %v4643_v63 = vld [vmem:[%s11540_s6 + $0x148] sm:$0xff] }
 0x3e8   :  { %7371 = vmatprep.subr.bf16.mxu1 %v7370_v33  ;;  %v11339_v33 = vpack.c.bf16 %v4626_v19, %v4618_v20  ;;  %v11344_v39 = vpack.c.bf16 %v4643_v63, %v4635_v21  ;;  %v7553_v21 = vld [vmem:[#allocation2 + $0x8] sm:$0xff] }
 0x3ea   :  { %v11248_v59 = vpop.permute.xlu0 %4666 }
 0x3eb   :  { %5479 = vmatmul.mubr.msk.f32.vlgmr.msra.gmra.mrb[40].mxu0 %vm2708_vm0, %v11248_v59  ;;  %7373 = vmatpush1.bf16.msra.mxu1 %v7372_v36  ;;  %v7412_v36 = vpack.c.bf16 %v4658_v25, %v4650_v49  ;;  %v7554_v25 = vld [vmem:[#allocation2 + $0x10] sm:$0xff] }
 0x3ec   :  { %7449 = vmatpush1.bf16.msra.mxu0 %v11226_v9  ;;  %7375 = vmatprep.subr.bf16.mxu1 %v7374_v10 }
 0x3ed   :  { %7451 = vmatprep.subr.bf16.mxu0 %v11237_v37  ;;  %4947 = vmatprep.mubr.f32.mxu0 %v7732_v17 }
 0x3ef   :  { %7377 = vmatpush1.bf16.msra.mxu1 %v7376_v52  ;;  %v4646_v52 = vld [vmem:[%s11540_s6 + $0x160] sm:$0xff] }
 0x3f0   :  { %7453 = vmatpush1.bf16.msra.mxu0 %v11259_v53  ;;  %7379 = vmatprep.subr.bf16.mxu1 %v7378_v55  ;;  %v4655_v55 = vld [vmem:[%s11540_s6 + $0x1a8] sm:$0xff] }
 0x3f1   :  { %7455 = vmatprep.subr.bf16.mxu0 %v11271_v15 }
 0x3f3   :  { %7381 = vmatpush1.bf16.msra.mxu1 %v7380_v40 }
 0x3f4   :  { %7457 = vmatpush1.bf16.msra.mxu0 %v11290_v50  ;;  %7399 = vmatprep.subr.bf16.mxu1 %v11292_v62 }
 0x3f5   :  { %7459 = vmatprep.subr.bf16.mxu0 %v11304_v26 }
 0x3f6   :  { %5476 = vmatmul.mubr.msk.f32.vlgmr.msra.gmra.mrb[40].mxu1 %vm2708_vm0, %v10477_v22  ;;  %v4642_v22 = vld [vmem:[%s11540_s6 + $0x140] sm:$0xff] }
 0x3f7   :  { %7401 = vmatpush1.bf16.msra.mxu1 %v11315_v57  ;;  %4734 = vmatprep.mubr.f32.mxu1 %v7732_v17  ;;  %v11362_v48 = vpack.c.bf16 %v4642_v22, %v4634_v45 }
 0x3f8   :  { %7461 = vmatpush1.bf16.msra.mxu0 %v11319_v6  ;;  %7403 = vmatprep.subr.bf16.mxu1 %v11321_v11 }
 0x3f9   :  { %7479 = vmatprep.subr.bf16.mxu0 %v11064_v47  ;;  %v11366_v47 = vpack.c.bf16 %v4659_v51, %v4651_v12 }
 0x3fb   :  { %5481 = vmatmul.mubr.msk.f32.vlgmr.msra.gmra.mrb[42].mxu0 %vm2708_vm0, %v11248_v59  ;;  %7405 = vmatpush1.bf16.msra.mxu1 %v11339_v33 }
 0x3fc   :  { %7481 = vmatpush1.bf16.msra.mxu0 %v11084_v14  ;;  %7407 = vmatprep.subr.bf16.mxu1 %v11344_v39  ;;  %v4615_v14 = vld [vmem:[%s11540_s6 + $0x68] sm:$0xff] }
 0x3fd   :  { %7483 = vmatprep.subr.bf16.mxu0 %v11093_v54  ;;  %5203 = vmatprep.mubr.f32.mxu0 %v7732_v17  ;;  %v7430_v10 = vpack.c.bf16 %v4615_v14, %v4607_v2  ;;  %v4606_v54 = vld [vmem:[%s11540_s6 + $0x20] sm:$0xff] }
 0x3fe   :  { %v7432_v31 = vpack.c.bf16 %v4614_v0, %v4606_v54 }
 0x3ff   :  { %7409 = vmatpush1.bf16.msra.mxu1 %v11362_v48 }
 0x400   :  { %7485 = vmatpush1.bf16.msra.mxu0 %v11118_v58  ;;  %7411 = vmatprep.subr.bf16.mxu1 %v11366_v47  ;;  %v4631_v58 = vld [vmem:[%s11540_s6 + $0xe8] sm:$0xff] }
 0x401   :  { %7487 = vmatprep.subr.bf16.mxu0 %v11127_v8  ;;  %v7434_v34 = vpack.c.bf16 %v4631_v58, %v4623_v3  ;;  %v4630_v8 = vld [vmem:[%s11540_s6 + $0xe0] sm:$0xff] }
 0x402   :  { %v7436_v38 = vpack.c.bf16 %v4630_v8, %v4622_v24  ;;  %v7555_v24 = vld [vmem:[#allocation2 + $0x18] sm:$0xff] }
 0x403   :  { %7413 = vmatpush1.bf16.msra.mxu1 %v7412_v36 }
 0x404   :  { %7489 = vmatpush1.bf16.msra.mxu0 %v11150_v43  ;;  %7431 = vmatprep.subr.bf16.mxu1 %v7430_v10  ;;  %v4647_v43 = vld [vmem:[%s11540_s6 + $0x168] sm:$0xff] }
 0x405   :  { %7491 = vmatprep.subr.bf16.mxu0 %v11159_v1  ;;  %v7438_v42 = vpack.c.bf16 %v4647_v43, %v4639_v32  ;;  %v4638_v1 = vld [vmem:[%s11540_s6 + $0x120] sm:$0xff] }
 0x406   :  { %5478 = vmatmul.mubr.msk.f32.vlgmr.msra.gmra.mrb[42].mxu1 %vm2708_vm0, %v11248_v59  ;;  %v7440_v4 = vpack.c.bf16 %v4646_v52, %v4638_v1 }
 0x407   :  { %7433 = vmatpush1.bf16.msra.mxu1 %v7432_v31  ;;  %4876 = vmatprep.mubr.f32.mxu1 %v7732_v17 }
 0x408   :  { %7493 = vmatpush1.bf16.msra.mxu0 %v11180_v46  ;;  %7435 = vmatprep.subr.bf16.mxu1 %v7434_v34  ;;  %v4663_v46 = vld [vmem:[%s11540_s6 + $0x1e8] sm:$0xff] }
 0x409   :  { %7511 = vmatprep.subr.bf16.mxu0 %v11189_v18  ;;  %v7442_v60 = vpack.c.bf16 %v4663_v46, %v4655_v55  ;;  %v4654_v18 = vld [vmem:[%s11540_s6 + $0x1a0] sm:$0xff]  ;;  %s7734_s6 = smov [#allocation12]  }
 0x40a   :  { %v7444_v16 = vpack.c.bf16 %v4662_v5, %v4654_v18  ;;  %s5436_s23 = sshll.u32 %s7734_s6, 4  ;;  %s5437_s23 = int_to_ptr.vmem [resolvable:$true] %s5436_s23 }
 0x40b   :  { %5483 = vmatmul.mubr.msk.f32.vlgmr.msra.gmra.mrb[44].mxu0 %vm2708_vm0, %v10490_v29  ;;  %7437 = vmatpush1.bf16.msra.mxu1 %v7436_v38  ;;  %s7630_s2 = scalar_lea.vmem %s5437_s23, 64  ;;  %p7635_p11 = scmp.lt.s32.totalorder %s5437_s23, %s5437_s23 }
 0x40c   :  { %7513 = vmatpush1.bf16.msra.mxu0 %v11226_v9  ;;  %7439 = vmatprep.subr.bf16.mxu1 %v7438_v42  ;;  %p7631_p10 = scmp.ne.s32.totalorder %s5437_s23, %s7630_s2  ;;  %p7636_p12 = scmp.lt.s32.totalorder %s7630_s2, %s7630_s2 }
 0x40d   :  { %7515 = vmatprep.subr.bf16.mxu0 %v11237_v37  ;;  %5345 = vmatprep.mubr.f32.mxu0 %v7732_v17 }
 0x40e   :  { %p7637_p13 = por %p7636_p12, %p7635_p11 }
 0x40f   :  { %7441 = vmatpush1.bf16.msra.mxu1 %v7440_v4 }
 0x410   :  { %7517 = vmatpush1.bf16.msra.mxu0 %v11259_v53  ;;  %7443 = vmatprep.subr.bf16.mxu1 %v7442_v60  ;;  %p7638_p0 = pnand %p7637_p13, %p7631_p10 }
 0x411   :  { %7519 = vmatprep.subr.bf16.mxu0 %v11271_v15 }
 0x413   :  { %7445 = vmatpush1.bf16.msra.mxu1 %v7444_v16 }
 0x414   :  { %7521 = vmatpush1.bf16.msra.mxu0 %v11290_v50  ;;  %7463 = vmatprep.subr.bf16.mxu1 %v11292_v62 }
 0x415   :  { %7523 = vmatprep.subr.bf16.mxu0 %v11304_v26 }
 0x416   :  { %5480 = vmatmul.mubr.msk.f32.vlgmr.msra.gmra.mrb[44].mxu1 %vm2708_vm0, %v11248_v59 }
 0x417   :  { %7465 = vmatpush1.bf16.msra.mxu1 %v11315_v57  ;;  %5132 = vmatprep.mubr.f32.mxu1 %v7732_v17 }
 0x418   :  { %7525 = vmatpush1.bf16.msra.mxu0 %v11319_v6  ;;  %7467 = vmatprep.subr.bf16.mxu1 %v11321_v11 }
 0x41b   :  { %5485 = vmatmul.mubr.msk.f32.vlgmr.msra.gmra.mrb[46].mxu0 %vm2708_vm0, %v10490_v29  ;;  %7469 = vmatpush1.bf16.msra.mxu1 %v11339_v33 }
 0x41c   :  { %7471 = vmatprep.subr.bf16.mxu1 %v11344_v39 }
 0x41f   :  { %7473 = vmatpush1.bf16.msra.mxu1 %v11362_v48 }
 0x420   :  { %7475 = vmatprep.subr.bf16.mxu1 %v11366_v47 }
 0x423   :  { %7477 = vmatpush1.bf16.msra.mxu1 %v7412_v36 }
 0x424   :  { %7495 = vmatprep.subr.bf16.mxu1 %v7430_v10 }
 0x426   :  { %5482 = vmatmul.mubr.msk.f32.vlgmr.msra.gmra.mrb[46].mxu1 %vm2708_vm0, %v10490_v29 }
 0x427   :  { %7497 = vmatpush1.bf16.msra.mxu1 %v7432_v31  ;;  %5274 = vmatprep.mubr.f32.mxu1 %v7732_v17 }
 0x428   :  { %7499 = vmatprep.subr.bf16.mxu1 %v7434_v34 }
 0x42b   :  { %7501 = vmatpush1.bf16.msra.mxu1 %v7436_v38 }
 0x42c   :  { %7503 = vmatprep.subr.bf16.mxu1 %v7438_v42 }
 0x42f   :  { %7505 = vmatpush1.bf16.msra.mxu1 %v7440_v4 }
 0x430   :  { %7507 = vmatprep.subr.bf16.mxu1 %v7442_v60 }
 0x433   :  { %7509 = vmatpush1.bf16.msra.mxu1 %v7444_v16 }
 0x436   :  { %5484 = vmatmul.mubr.msk.f32.vlgmr.msra.gmra.mrb[48].mxu1 %vm2708_vm0, %v10490_v29 }
 0x449   :  { %v3340_v9 = vpop.f32.mrb[24].mxu1  ;;  %v3553_v37 = vpop.f32.mrb[26].mxu0 }
 0x44a   :  { %v3342_v59 = vpop.f32.mrb[25].mxu1  ;;  %v3555_v53 = vpop.f32.mrb[27].mxu0 }
 0x44b   :  { %v4442_v15 = vcombine.low %v3340_v9, %v3342_v59  ;;  %v4460_v27 = vcombine.low %v3553_v37, %v3555_v53 }
 0x44d   :  { %v4450_v62 = vrot.slane %v4442_v15, %v8002_v13  ;;  %v4474_v11 = vrot.slane %v4460_v27, %v8002_v13 }
 0x459   :  { %v3411_v28 = vpop.f32.mrb[26].mxu1  ;;  %v3695_v35 = vpop.f32.mrb[28].mxu0 }
 0x45a   :  { %v3413_v41 = vpop.f32.mrb[27].mxu1  ;;  %v3697_v40 = vpop.f32.mrb[29].mxu0 }
 0x45b   :  { %v4443_v17 = vcombine.low %v3411_v28, %v3413_v41  ;;  %v4477_v50 = vcombine.low %v3695_v35, %v3697_v40 }
 0x45d   :  { %v4457_v61 = vrot.slane %v4443_v17, %v8002_v13  ;;  %v4491_v48 = vrot.slane %v4477_v50, %v8002_v13 }
 0x45f   :  { %v4458_v7 = vcombine.low %v4450_v62, %v4457_v61 }
 0x461   :  { %v4586_v26 = vmul.f32 %v7552_v23, %v4458_v7 }
 0x463   :  { %4594 = vst [vmem:[#allocation8] sm:$0xff] %v4586_v26 }
 0x469   :  { %v3482_v29 = vpop.f32.mrb[28].mxu1  ;;  %v3837_v30 = vpop.f32.mrb[30].mxu0 }
 0x46a   :  { %v3484_v44 = vpop.f32.mrb[29].mxu1  ;;  %v3839_v56 = vpop.f32.mrb[31].mxu0 }
 0x46b   :  { %v4459_v57 = vcombine.low %v3482_v29, %v3484_v44  ;;  %v4494_v6 = vcombine.low %v3837_v30, %v3839_v56 }
 0x46d   :  { %v4467_v20 = vrot.slane %v4459_v57, %v8002_v13  ;;  %v4508_v58 = vrot.slane %v4494_v6, %v8002_v13 }
 0x46f   :  { %v4475_v19 = vcombine.low %v4467_v20, %v4474_v11 }
 0x471   :  { %v4587_v63 = vmul.f32 %v7553_v21, %v4475_v19 }
 0x473   :  { %4595 = vst [vmem:[#allocation8 + $0x8] sm:$0xff] %v4587_v63 }
 0x479   :  { %v3624_v33 = vpop.f32.mrb[30].mxu1  ;;  %v3979_v39 = vpop.f32.mrb[32].mxu0 }
 0x47a   :  { %v3626_v45 = vpop.f32.mrb[31].mxu1  ;;  %v3981_v22 = vpop.f32.mrb[33].mxu0 }
 0x47b   :  { %v4476_v12 = vcombine.low %v3624_v33, %v3626_v45  ;;  %v4511_v51 = vcombine.low %v3979_v39, %v3981_v22 }
 0x47d   :  { %v4484_v47 = vrot.slane %v4476_v12, %v8002_v13 }
 0x47f   :  { %v4492_v49 = vcombine.low %v4484_v47, %v4491_v48 }
 0x481   :  { %v4588_v2 = vmul.f32 %v7554_v25, %v4492_v49 }
 0x483   :  { %4596 = vst [vmem:[#allocation8 + $0x10] sm:$0xff] %v4588_v2 }
 0x489   :  { %v3766_v14 = vpop.f32.mrb[32].mxu1  ;;  %v4121_v36 = vpop.f32.mrb[34].mxu0 }
 0x48a   :  { %v3768_v10 = vpop.f32.mrb[33].mxu1  ;;  %v4123_v54 = vpop.f32.mrb[35].mxu0 }
 0x48b   :  { %v4493_v0 = vcombine.low %v3766_v14, %v3768_v10  ;;  %v4528_v3 = vcombine.low %v4121_v36, %v4123_v54 }
 0x48d   :  { %v4501_v31 = vrot.slane %v4493_v0, %v8002_v13 }
 0x48f   :  { %v4509_v34 = vcombine.low %v4501_v31, %v4508_v58 }
 0x491   :  { %v4589_v8 = vmul.f32 %v7555_v24, %v4509_v34 }
 0x493   :  { %4597 = vst [vmem:[#allocation8 + $0x18] sm:$0xff] %v4589_v8 }
 0x499   :  { %v3908_v32 = vpop.f32.mrb[34].mxu1  ;;  %v4263_v43 = vpop.f32.mrb[36].mxu0 }
 0x49a   :  { %7641 = shalt.err (!%p7638_p0)
}
 0x49b   :  { %s7642_s25 = scalar_lea.hbm %s11548_s14, 64 }
 0x49c   :  { %p7643_p1 = scmp.ne.s32.totalorder %s11548_s14, %s7642_s25  ;;  %p7646_p2 = scmp.lt.u32.totalorder %s7642_s25, %s11548_s14 }
 0x49e   :  { %p7648_p3 = pnand %p7646_p2, %p7643_p1 }
 0x4a0   :  { %7651 = shalt.err (!%p7648_p3)
}
 0x4a1   :  { %5439 = dma.vmem_to_hbm [thread:$0]  %s5437_s23, 64, %s11548_s14, [#allocation13]   ;;  %v3910_v38 = vpop.f32.mrb[35].mxu1  ;;  %v4265_v42 = vpop.f32.mrb[37].mxu0  ;;  %v4525_v55 = vrot.slane %v4511_v51, %v8002_v13  ;;  %v7556_v60 = vld [vmem:[#allocation2 + $0x20] sm:$0xff]  ;;  %v4542_v15 = vrot.slane %v4528_v3, %v8002_v13  ;;  %v7557_v35 = vld [vmem:[#allocation2 + $0x28] sm:$0xff] }
 0x4a2   :  { %v4510_v1 = vcombine.low %v3908_v32, %v3910_v38  ;;  %v4545_v52 = vcombine.low %v4263_v43, %v4265_v42  ;;  %v7558_v30 = vld [vmem:[#allocation2 + $0x30] sm:$0xff]  ;;  %s7735_s14 = smov [#allocation8]   ;;  %v7559_v39 = vld [vmem:[#allocation2 + $0x38] sm:$0xff] }
 0x4a3   :  { %s5406_s4 = sshll.u32 %s7735_s14, 4  ;;  %s5407_s4 = int_to_ptr.vmem [resolvable:$true] %s5406_s4 }
 0x4a4   :  { %v4518_v46 = vrot.slane %v4510_v1, %v8002_v13  ;;  %v4559_v62 = vrot.slane %v4545_v52, %v8002_v13  ;;  %s7652_s9 = scalar_lea.vmem %s5407_s4, 1024  ;;  %p7657_p5 = scmp.lt.s32.totalorder %s5407_s4, %s5407_s4 }
 0x4a5   :  { %p7653_p4 = scmp.ne.s32.totalorder %s5407_s4, %s7652_s9  ;;  %p7658_p6 = scmp.lt.s32.totalorder %s7652_s9, %s7652_s9 }
 0x4a6   :  { %v4526_v4 = vcombine.low %v4518_v46, %v4525_v55 }
 0x4a7   :  { %p7659_p7 = por %p7658_p6, %p7657_p5 }
 0x4a8   :  { %v4590_v18 = vmul.f32 %v7556_v60, %v4526_v4 }
 0x4a9   :  { %v4050_v5 = vpop.f32.mrb[36].mxu1  ;;  %v4405_v16 = vpop.f32.mrb[38].mxu0  ;;  %p7660_p8 = pnand %p7659_p7, %p7653_p4 }
 0x4aa   :  { %4598 = vst [vmem:[#allocation8 + $0x20] sm:$0xff] %v4590_v18  ;;  %v4052_v9 = vpop.f32.mrb[37].mxu1  ;;  %v4407_v37 = vpop.f32.mrb[39].mxu0 }
 0x4ab   :  { %v4527_v59 = vcombine.low %v4050_v5, %v4052_v9  ;;  %v4562_v53 = vcombine.low %v4405_v16, %v4407_v37 }
 0x4ad   :  { %v4535_v27 = vrot.slane %v4527_v59, %v8002_v13  ;;  %v4576_v11 = vrot.slane %v4562_v53, %v8002_v13 }
 0x4af   :  { %v4543_v28 = vcombine.low %v4535_v27, %v4542_v15 }
 0x4b1   :  { %v4591_v41 = vmul.f32 %v7557_v35, %v4543_v28 }
 0x4b3   :  { %4599 = vst [vmem:[#allocation8 + $0x28] sm:$0xff] %v4591_v41 }
 0x4b9   :  { %v4192_v40 = vpop.f32.mrb[38].mxu1 }
 0x4ba   :  { %v4194_v17 = vpop.f32.mrb[39].mxu1 }
 0x4bb   :  { %v4544_v50 = vcombine.low %v4192_v40, %v4194_v17 }
 0x4bd   :  { %v4552_v61 = vrot.slane %v4544_v50, %v8002_v13 }
 0x4be   :  { %v4807_v7 = vpop.f32.mrb[40].mxu0 }
 0x4bf   :  { %v4560_v23 = vcombine.low %v4552_v61, %v4559_v62  ;;  %v4809_v26 = vpop.f32.mrb[41].mxu0 }
 0x4c0   :  { %v4963_v29 = vcombine.low %v4807_v7, %v4809_v26 }
 0x4c1   :  { %v4592_v44 = vmul.f32 %v7558_v30, %v4560_v23 }
 0x4c3   :  { %4600 = vst [vmem:[#allocation8 + $0x30] sm:$0xff] %v4592_v44 }
 0x4c9   :  { %v4334_v56 = vpop.f32.mrb[40].mxu1 }
 0x4ca   :  { %v4336_v57 = vpop.f32.mrb[41].mxu1 }
 0x4cb   :  { %v4561_v6 = vcombine.low %v4334_v56, %v4336_v57 }
 0x4cd   :  { %v4569_v20 = vrot.slane %v4561_v6, %v8002_v13 }
 0x4ce   :  { %v4949_v19 = vpop.f32.mrb[42].mxu0 }
 0x4cf   :  { %v4577_v21 = vcombine.low %v4569_v20, %v4576_v11  ;;  %v4951_v63 = vpop.f32.mrb[43].mxu0 }
 0x4d0   :  { %v4980_v33 = vcombine.low %v4949_v19, %v4951_v63 }
 0x4d1   :  { %v4593_v45 = vmul.f32 %v7559_v39, %v4577_v21 }
 0x4d3   :  { %4601 = vst [vmem:[#allocation8 + $0x38] sm:$0xff] %v4593_v45 }
 0x4d4   :  { %7663 = shalt.err (!%p7660_p8)
}
 0x4d5   :  { %s7664_s10 = scalar_lea.hbm %s11545_s11, 1024 }
 0x4d6   :  { %p7665_p9 = scmp.ne.s32.totalorder %s11545_s11, %s7664_s10  ;;  %p7668_p10 = scmp.lt.u32.totalorder %s7664_s10, %s11545_s11 }
 0x4d8   :  { %p7670_p11 = pnand %p7668_p10, %p7665_p9 }
 0x4da   :  { %7673 = shalt.err (!%p7670_p11)
}
 0x4db   :  { %5409 = dma.vmem_to_hbm [thread:$0]  %s5407_s4, 1024, %s11545_s11, [#allocation4]   ;;  %v4736_v22 = vpop.f32.mrb[42].mxu1  ;;  %v4977_v48 = vrot.slane %v4963_v29, %v8002_v13  ;;  %v7560_v36 = vld [vmem:[#allocation5] sm:$0xff]  ;;  %v4994_v58 = vrot.slane %v4980_v33, %v8002_v13  ;;  %v7561_v43 = vld [vmem:[#allocation5 + $0x8] sm:$0xff] }
 0x4dc   :  { %v4738_v12 = vpop.f32.mrb[43].mxu1  ;;  %s7736_s11 = smov [#allocation9]  }
 0x4dd   :  { %v4962_v51 = vcombine.low %v4736_v22, %v4738_v12  ;;  %s5416_s1 = sshll.u32 %s7736_s11, 4  ;;  %s5417_s1 = int_to_ptr.vmem [resolvable:$true] %s5416_s1 }
 0x4de   :  { %v5205_v49 = vpop.f32.mrb[44].mxu0  ;;  %s7674_s30 = scalar_lea.vmem %s5417_s1, 256  ;;  %p7679_p13 = scmp.lt.s32.totalorder %s5417_s1, %s5417_s1 }
 0x4df   :  { %v4970_v47 = vrot.slane %v4962_v51, %v8002_v13  ;;  %v5207_v2 = vpop.f32.mrb[45].mxu0  ;;  %p7675_p12 = scmp.ne.s32.totalorder %s5417_s1, %s7674_s30  ;;  %p7680_p0 = scmp.lt.s32.totalorder %s7674_s30, %s7674_s30 }
 0x4e0   :  { %v5361_v14 = vcombine.low %v5205_v49, %v5207_v2 }
 0x4e1   :  { %v4978_v25 = vcombine.low %v4970_v47, %v4977_v48  ;;  %p7681_p1 = por %p7680_p0, %p7679_p13 }
 0x4e3   :  { %v4998_v10 = vmul.f32 %v7560_v36, %v4978_v25  ;;  %p7682_p2 = pnand %p7681_p1, %p7675_p12 }
 0x4e5   :  { %5000 = vst [vmem:[#allocation9] sm:$0xff] %v4998_v10 }
 0x4e9   :  { %v4878_v54 = vpop.f32.mrb[44].mxu1 }
 0x4ea   :  { %v4880_v0 = vpop.f32.mrb[45].mxu1 }
 0x4eb   :  { %v4979_v3 = vcombine.low %v4878_v54, %v4880_v0 }
 0x4ed   :  { %v4987_v31 = vrot.slane %v4979_v3, %v8002_v13 }
 0x4ee   :  { %v5347_v34 = vpop.f32.mrb[46].mxu0 }
 0x4ef   :  { %v4995_v24 = vcombine.low %v4987_v31, %v4994_v58  ;;  %v5349_v8 = vpop.f32.mrb[47].mxu0 }
 0x4f0   :  { %v5378_v32 = vcombine.low %v5347_v34, %v5349_v8 }
 0x4f1   :  { %v4999_v38 = vmul.f32 %v7561_v43, %v4995_v24 }
 0x4f3   :  { %5001 = vst [vmem:[#allocation9 + $0x8] sm:$0xff] %v4999_v38 }
 0x4f4   :  { %7685 = shalt.err (!%p7682_p2)
}
 0x4f5   :  { %s7686_s6 = scalar_lea.hbm %s11546_s12, 256 }
 0x4f6   :  { %p7687_p3 = scmp.ne.s32.totalorder %s11546_s12, %s7686_s6  ;;  %p7690_p4 = scmp.lt.u32.totalorder %s7686_s6, %s11546_s12 }
 0x4f8   :  { %p7692_p5 = pnand %p7690_p4, %p7687_p3 }
 0x4fa   :  { %7695 = shalt.err (!%p7692_p5)
}
 0x4fb   :  { %5419 = dma.vmem_to_hbm [thread:$0]  %s5417_s1, 256, %s11546_s12, [#allocation10]   ;;  %v5134_v42 = vpop.f32.mrb[46].mxu1  ;;  %v5375_v55 = vrot.slane %v5361_v14, %v8002_v13  ;;  %v7562_v60 = vld [vmem:[#allocation7] sm:$0xff]  ;;  %v5392_v37 = vrot.slane %v5378_v32, %v8002_v13  ;;  %v7563_v15 = vld [vmem:[#allocation7 + $0x8] sm:$0xff] }
 0x4fc   :  { %v5136_v1 = vpop.f32.mrb[47].mxu1  ;;  %s7737_s5 = smov [#allocation11]  }
 0x4fd   :  { %v5360_v52 = vcombine.low %v5134_v42, %v5136_v1  ;;  %s5426_s12 = sshll.u32 %s7737_s5, 4  ;;  %s5427_s12 = int_to_ptr.vmem [resolvable:$true] %s5426_s12 }
 0x4fe   :  { %s7696_s27 = scalar_lea.vmem %s5427_s12, 256  ;;  %p7701_p7 = scmp.lt.s32.totalorder %s5427_s12, %s5427_s12 }
 0x4ff   :  { %v5368_v46 = vrot.slane %v5360_v52, %v8002_v13  ;;  %p7697_p6 = scmp.ne.s32.totalorder %s5427_s12, %s7696_s27  ;;  %p7702_p8 = scmp.lt.s32.totalorder %s7696_s27, %s7696_s27 }
 0x501   :  { %v5376_v4 = vcombine.low %v5368_v46, %v5375_v55  ;;  %p7703_p9 = por %p7702_p8, %p7701_p7 }
 0x503   :  { %v5396_v18 = vmul.f32 %v7562_v60, %v5376_v4  ;;  %p7704_p10 = pnand %p7703_p9, %p7697_p6 }
 0x505   :  { %5398 = vst [vmem:[#allocation11] sm:$0xff] %v5396_v18 }
 0x509   :  { %v5276_v5 = vpop.f32.mrb[48].mxu1 }
 0x50a   :  { %v5278_v16 = vpop.f32.mrb[49].mxu1 }
 0x50b   :  { %v5377_v9 = vcombine.low %v5276_v5, %v5278_v16 }
 0x50d   :  { %v5385_v59 = vrot.slane %v5377_v9, %v8002_v13 }
 0x50f   :  { %v5393_v53 = vcombine.low %v5385_v59, %v5392_v37 }
 0x511   :  { %v5397_v27 = vmul.f32 %v7563_v15, %v5393_v53 }
 0x513   :  { %5399 = vst [vmem:[#allocation11 + $0x8] sm:$0xff] %v5397_v27 }
 0x514   :  { %7707 = shalt.err (!%p7704_p10)
}
 0x515   :  { %s7708_s7 = scalar_lea.hbm %s11547_s13, 256 }
 0x516   :  { %p7709_p11 = scmp.ne.s32.totalorder %s11547_s13, %s7708_s7  ;;  %p7712_p12 = scmp.lt.u32.totalorder %s7708_s7, %s11547_s13 }
 0x518   :  { %p7714_p13 = pnand %p7712_p12, %p7709_p11 }
 0x51a   :  { %7717 = shalt.err (!%p7714_p13)
}
 0x51b   :  { %5429 = dma.vmem_to_hbm [thread:$0]  %s5427_s12, 256, %s11547_s13, [#allocation10]  }
 0x51c   :  { %7722 = dma.done.wait [#allocation4], 1024  }
 0x51d   :  { %7723 = vsyncadd [#allocation4], 4294966272 }
 0x51e   :  { %7724 = dma.done.wait [#allocation10], 512  }
 0x51f   :  { %7725 = vsyncadd [#allocation10], 4294966784 }
 0x520   :  { %7726 = dma.done.wait [#allocation13], 64  }
 0x521   :  { %7727 = vsyncadd [#allocation13], 4294967232 }
 0x522   :  { %5452 = vsyncpa [#allocation3], 1 }
 0x523   :  { %5453 = vsyncpa [#allocation6], 1 }
 0x524   :  { %5454 = vsyncpa [#allocation4], 1 }
 0x525   :  { %5455 = vsyncpa [#allocation10], 1 }
 0x526   :  { %5456 = vsyncpa [#allocation13], 1 }

// kernel: tpu_custom_call.1
= control target key start
LH: loop header
LB: loop body
LE: loop exit
PB: predicated region body
PF: predicated region fallthrough
CT: control target
= control target key end

     0   :  { %20 = vsyncpa [#allocation3], 0  ;;  %s11534_s0 = inlined_call_operand.hbm [shape: f32[2,4096], index: 0, kind: input, shape index: {}, may-alias: {0,11}]   ;;  %s11535_s1 = inlined_call_operand.hbm [shape: f32[2,1024], index: 1, kind: input, shape index: {}, may-alias: {1,12}]   ;;  %s11536_s2 = inlined_call_operand.hbm [shape: f32[2,1024], index: 2, kind: input, shape index: {}, may-alias: {2,13}]   ;;  %s11537_s3 = inlined_call_operand.vmem [shape: f32[4096,64], index: 3, kind: input, shape index: {}]   ;;  %s11538_s4 = inlined_call_operand.vmem [shape: f32[64,4096], index: 4, kind: input, shape index: {}]   ;;  %s11539_s5 = inlined_call_operand.vmem [shape: f32[1024,64], index: 5, kind: input, shape index: {}]   ;;  %s11540_s6 = inlined_call_operand.vmem [shape: f32[64,1024], index: 6, kind: input, shape index: {}]   ;;  %s11541_s7 = inlined_call_operand.vmem [shape: f32[192,192], index: 7, kind: input, shape index: {}]   ;;  %s11542_s8 = inlined_call_operand.vmem [shape: f32[1,192], index: 8, kind: input, shape index: {}]   ;;  %s11543_s9 = inlined_call_operand.vmem [shape: f32[1,192], index: 9, kind: input, shape index: {}]   ;;  %s11544_s10 = inlined_call_operand.vmem [shape: f32[1,192], index: 10, kind: input, shape index: {}]   ;;  %s11545_s11 = inlined_call_operand.hbm [shape: f32[2,4096], index: 11, kind: output, shape index: {0}, may-alias: {0,11}]   ;;  %s11546_s12 = inlined_call_operand.hbm [shape: f32[2,1024], index: 12, kind: output, shape index: {1}, may-alias: {1,12}]   ;;  %s11547_s13 = inlined_call_operand.hbm [shape: f32[2,1024], index: 13, kind: output, shape index: {2}, may-alias: {2,13}]   ;;  %s11548_s14 = inlined_call_operand.hbm [shape: f32[2,192], index: 14, kind: output, shape index: {3}]  }
   0x1   :  { %21 = vsyncpa [#allocation6], 0 }
   0x2   :  { %22 = vsyncpa [#allocation4], 0 }
   0x3   :  { %23 = vsyncpa [#allocation10], 0 }
   0x4   :  { %24 = vsyncpa [#allocation13], 0  ;;  %s7728_s29 = smov [#allocation5]   ;;  %s7729_s15 = smov [#allocation2]  }
   0x5   :  { %s41_s30 = sshll.u32 %s7728_s29, 4  ;;  %s31_s16 = sshll.u32 %s7729_s15, 4  ;;  %s42_s30 = int_to_ptr.vmem [resolvable:$true] %s41_s30  ;;  %s32_s16 = int_to_ptr.vmem [resolvable:$true] %s31_s16 }
   0x6   :  { %s7564_s19 = scalar_lea.hbm %s11535_s1, 256 }
   0x7   :  { %p7565_p0 = scmp.ne.s32.totalorder %s11535_s1, %s7564_s19  ;;  %p7568_p1 = scmp.lt.u32.totalorder %s7564_s19, %s11535_s1 }
   0x9   :  { %p7570_p2 = pnand %p7568_p1, %p7565_p0 }
   0xb   :  { %7573 = shalt.err (!%p7570_p2)
}
   0xc   :  { %s7574_s24 = scalar_lea.vmem %s42_s30, 256  ;;  %p7579_p4 = scmp.lt.s32.totalorder %s42_s30, %s42_s30 }
   0xd   :  { %p7575_p3 = scmp.ne.s32.totalorder %s42_s30, %s7574_s24  ;;  %p7580_p5 = scmp.lt.s32.totalorder %s7574_s24, %s7574_s24 }
   0xf   :  { %p7581_p6 = por %p7580_p5, %p7579_p4 }
  0x11   :  { %p7582_p7 = pnand %p7581_p6, %p7575_p3 }
  0x13   :  { %7585 = shalt.err (!%p7582_p7)
}
  0x14   :  { %44 = dma.hbm_to_vmem [thread:$0]  %s11535_s1, 256, %s42_s30, [#allocation6]  }
  0x15   :  { %s7586_s29 = scalar_lea.hbm %s11534_s0, 1024 }
  0x16   :  { %p7587_p8 = scmp.ne.s32.totalorder %s11534_s0, %s7586_s29  ;;  %p7590_p9 = scmp.lt.u32.totalorder %s7586_s29, %s11534_s0 }
  0x18   :  { %p7592_p10 = pnand %p7590_p9, %p7587_p8 }
  0x1a   :  { %7595 = shalt.err (!%p7592_p10)
}
  0x1b   :  { %s7596_s20 = scalar_lea.vmem %s32_s16, 1024  ;;  %p7601_p12 = scmp.lt.s32.totalorder %s32_s16, %s32_s16 }
  0x1c   :  { %p7597_p11 = scmp.ne.s32.totalorder %s32_s16, %s7596_s20  ;;  %p7602_p13 = scmp.lt.s32.totalorder %s7596_s20, %s7596_s20 }
  0x1e   :  { %p7603_p0 = por %p7602_p13, %p7601_p12 }
  0x20   :  { %p7604_p1 = pnand %p7603_p0, %p7597_p11 }
  0x22   :  { %7607 = shalt.err (!%p7604_p1)
}
  0x23   :  { %34 = dma.hbm_to_vmem [thread:$0]  %s11534_s0, 1024, %s32_s16, [#allocation3]  }
  0x24   :  { %s7730_s21 = smov [#allocation7]   ;;  %s7608_s25 = scalar_lea.hbm %s11536_s2, 256 }
  0x25   :  { %s51_s22 = sshll.u32 %s7730_s21, 4  ;;  %p7609_p2 = scmp.ne.s32.totalorder %s11536_s2, %s7608_s25  ;;  %s52_s22 = int_to_ptr.vmem [resolvable:$true] %s51_s22 }
  0x26   :  { %p7612_p3 = scmp.lt.u32.totalorder %s7608_s25, %s11536_s2 }
  0x28   :  { %p7614_p4 = pnand %p7612_p3, %p7609_p2 }
  0x2a   :  { %7617 = shalt.err (!%p7614_p4)
}
  0x2b   :  { %s7618_s15 = scalar_lea.vmem %s52_s22, 256  ;;  %p7623_p6 = scmp.lt.s32.totalorder %s52_s22, %s52_s22 }
  0x2c   :  { %p7619_p5 = scmp.ne.s32.totalorder %s52_s22, %s7618_s15  ;;  %p7624_p7 = scmp.lt.s32.totalorder %s7618_s15, %s7618_s15 }
  0x2e   :  { %p7625_p8 = por %p7624_p7, %p7623_p6 }
  0x30   :  { %p7626_p9 = pnand %p7625_p8, %p7619_p5 }
  0x32   :  { %7629 = shalt.err (!%p7626_p9)
}
  0x33   :  { %54 = dma.hbm_to_vmem [thread:$0]  %s11536_s2, 256, %s52_s22, [#allocation6]  }
  0x34   :  { %7718 = dma.done.wait [#allocation3], 1024  }
  0x35   :  { %7719 = vsyncadd [#allocation3], 4294966272 }
  0x36   :  { %7720 = dma.done.wait [#allocation6], 512  }
  0x37   :  { %7721 = vsyncadd [#allocation6], 4294966784  ;;  %v108_v0 = vld [vmem:[%s11537_s3 + $0x80] sm:$0xff]  ;;  %v109_v1 = vld [vmem:[%s11537_s3 + $0x88] sm:$0xff]  ;;  %v7731_v47 = vmov 1983009808   ;;  %v616_v49 = vlaneseq }
  0x38   :  { %v140_v2 = vld [vmem:[%s11537_s3 + $0x180] sm:$0xff]  ;;  %v6326_v3 = vpack.c.bf16 %v109_v1, %v108_v0  ;;  %v141_v4 = vld [vmem:[%s11537_s3 + $0x188] sm:$0xff]  ;;  %v110_v11 = vld [vmem:[%s11537_s3 + $0x90] sm:$0xff]  ;;  %v614_v48 = vunpack.c.l.s4 %v7731_v47  ;;  %vm2708_vm0 = vcmask 523264   ;;  %vm3012_vm3 = vcmask 1041408   ;;  %s7733_s30 = smov 64  }
  0x39   :  { %v92_v5 = vld [vmem:[%s11537_s3] sm:$0xff]  ;;  %v93_v6 = vld [vmem:[%s11537_s3 + $0x8] sm:$0xff]  ;;  %v6358_v7 = vpack.c.bf16 %v141_v4, %v140_v2  ;;  %v111_v13 = vld [vmem:[%s11537_s3 + $0x98] sm:$0xff]  ;;  %v7975_v0 = vshrl.u32 %v616_v49, 7  ;;  %vm3013_vm4 = vcmask 519170  }
  0x3a   :  { %v6328_v8 = vpack.c.bf16 %v93_v6, %v92_v5  ;;  %v124_v9 = vld [vmem:[%s11537_s3 + $0x100] sm:$0xff]  ;;  %v125_v10 = vld [vmem:[%s11537_s3 + $0x108] sm:$0xff]  ;;  %6327 = vmatprep.subr.bf16.mxu0 %v6326_v3  ;;  %v142_v14 = vld [vmem:[%s11537_s3 + $0x190] sm:$0xff]  ;;  %v6330_v16 = vpack.c.bf16 %v111_v13, %v110_v11  ;;  %v615_v63 = vunpack.c.0.s8 %v614_v48 }
  0x3b   :  { %v6360_v12 = vpack.c.bf16 %v125_v10, %v124_v9  ;;  %v143_v15 = vld [vmem:[%s11537_s3 + $0x198] sm:$0xff]  ;;  %6359 = vmatprep.subr.bf16.mxu1 %v6358_v7  ;;  %v94_v18 = vld [vmem:[%s11537_s3 + $0x10] sm:$0xff]  ;;  %v112_v23 = vld [vmem:[%s11537_s3 + $0xa0] sm:$0xff]  ;;  %11568 = vst [vmem:[#allocation19_spill] sm:$0xff] %v7975_v0 }
  0x3c   :  { %6329 = vmatpush3.bf16.msra.mxu0 %v6328_v8  ;;  %v6362_v17 = vpack.c.bf16 %v143_v15, %v142_v14  ;;  %v95_v19 = vld [vmem:[%s11537_s3 + $0x18] sm:$0xff]  ;;  %v126_v20 = vld [vmem:[%s11537_s3 + $0x110] sm:$0xff]  ;;  %v113_v24 = vld [vmem:[%s11537_s3 + $0xa8] sm:$0xff]  ;;  %v8002_v13 = vsub.s32 %v615_v63, %v7975_v0 }
  0x3d   :  { %6361 = vmatpush3.bf16.msra.mxu1 %v6360_v12  ;;  %v6332_v21 = vpack.c.bf16 %v95_v19, %v94_v18  ;;  %v127_v22 = vld [vmem:[%s11537_s3 + $0x118] sm:$0xff]  ;;  %6331 = vmatprep.subr.bf16.mxu0 %v6330_v16  ;;  %v6334_v26 = vpack.c.bf16 %v113_v24, %v112_v23  ;;  %v144_v27 = vld [vmem:[%s11537_s3 + $0x1a0] sm:$0xff]  ;;  %v145_v28 = vld [vmem:[%s11537_s3 + $0x1a8] sm:$0xff] }
  0x3e   :  { %6363 = vmatprep.subr.bf16.mxu1 %v6362_v17  ;;  %v6364_v25 = vpack.c.bf16 %v127_v22, %v126_v20  ;;  %v96_v29 = vld [vmem:[%s11537_s3 + $0x20] sm:$0xff]  ;;  %v6366_v30 = vpack.c.bf16 %v145_v28, %v144_v27  ;;  %v97_v31 = vld [vmem:[%s11537_s3 + $0x28] sm:$0xff]  ;;  %v114_v35 = vld [vmem:[%s11537_s3 + $0xb0] sm:$0xff] }
  0x3f   :  { %v128_v32 = vld [vmem:[%s11537_s3 + $0x120] sm:$0xff]  ;;  %v129_v33 = vld [vmem:[%s11537_s3 + $0x128] sm:$0xff]  ;;  %v6336_v34 = vpack.c.bf16 %v97_v31, %v96_v29  ;;  %v115_v36 = vld [vmem:[%s11537_s3 + $0xb8] sm:$0xff] }
  0x40   :  { %6333 = vmatpush3.bf16.msra.mxu0 %v6332_v21  ;;  %v146_v37 = vld [vmem:[%s11537_s3 + $0x1b0] sm:$0xff]  ;;  %v6368_v38 = vpack.c.bf16 %v129_v33, %v128_v32  ;;  %v6338_v39 = vpack.c.bf16 %v115_v36, %v114_v35  ;;  %v147_v40 = vld [vmem:[%s11537_s3 + $0x1b8] sm:$0xff]  ;;  %v116_v46 = vld [vmem:[%s11537_s3 + $0xc0] sm:$0xff] }
  0x41   :  { %6365 = vmatpush3.bf16.msra.mxu1 %v6364_v25  ;;  %6335 = vmatprep.subr.bf16.mxu0 %v6334_v26  ;;  %v98_v41 = vld [vmem:[%s11537_s3 + $0x30] sm:$0xff]  ;;  %v99_v42 = vld [vmem:[%s11537_s3 + $0x38] sm:$0xff]  ;;  %v6370_v43 = vpack.c.bf16 %v147_v40, %v146_v37  ;;  %v117_v50 = vld [vmem:[%s11537_s3 + $0xc8] sm:$0xff] }
  0x42   :  { %6367 = vmatprep.subr.bf16.mxu1 %v6366_v30  ;;  %v130_v44 = vld [vmem:[%s11537_s3 + $0x130] sm:$0xff]  ;;  %v131_v45 = vld [vmem:[%s11537_s3 + $0x138] sm:$0xff]  ;;  %v148_v51 = vld [vmem:[%s11537_s3 + $0x1c0] sm:$0xff]  ;;  %v6340_v53 = vpack.c.bf16 %v99_v42, %v98_v41  ;;  %v6342_v55 = vpack.c.bf16 %v117_v50, %v116_v46 }
  0x43   :  { %v149_v52 = vld [vmem:[%s11537_s3 + $0x1c8] sm:$0xff]  ;;  %v6372_v54 = vpack.c.bf16 %v131_v45, %v130_v44  ;;  %v100_v56 = vld [vmem:[%s11537_s3 + $0x40] sm:$0xff]  ;;  %v118_v61 = vld [vmem:[%s11537_s3 + $0xd0] sm:$0xff] }
  0x44   :  { %6337 = vmatpush3.bf16.msra.mxu0 %v6336_v34  ;;  %v101_v57 = vld [vmem:[%s11537_s3 + $0x48] sm:$0xff]  ;;  %v132_v58 = vld [vmem:[%s11537_s3 + $0x140] sm:$0xff]  ;;  %v6374_v59 = vpack.c.bf16 %v149_v52, %v148_v51  ;;  %v119_v62 = vld [vmem:[%s11537_s3 + $0xd8] sm:$0xff] }
  0x45   :  { %6369 = vmatpush3.bf16.msra.mxu1 %v6368_v38  ;;  %6339 = vmatprep.subr.bf16.mxu0 %v6338_v39  ;;  %v133_v60 = vld [vmem:[%s11537_s3 + $0x148] sm:$0xff]  ;;  %v150_v1 = vld [vmem:[%s11537_s3 + $0x1d0] sm:$0xff]  ;;  %v151_v2 = vld [vmem:[%s11537_s3 + $0x1d8] sm:$0xff]  ;;  %v6344_v3 = vpack.c.bf16 %v101_v57, %v100_v56  ;;  %v6346_v5 = vpack.c.bf16 %v119_v62, %v118_v61 }
  0x46   :  { %6371 = vmatprep.subr.bf16.mxu1 %v6370_v43  ;;  %v6376_v4 = vpack.c.bf16 %v133_v60, %v132_v58  ;;  %v102_v6 = vld [vmem:[%s11537_s3 + $0x50] sm:$0xff]  ;;  %v103_v7 = vld [vmem:[%s11537_s3 + $0x58] sm:$0xff]  ;;  %v6378_v9 = vpack.c.bf16 %v151_v2, %v150_v1  ;;  %v120_v11 = vld [vmem:[%s11537_s3 + $0xe0] sm:$0xff] }
  0x47   :  { %v134_v8 = vld [vmem:[%s11537_s3 + $0x150] sm:$0xff]  ;;  %v135_v10 = vld [vmem:[%s11537_s3 + $0x158] sm:$0xff]  ;;  %v121_v12 = vld [vmem:[%s11537_s3 + $0xe8] sm:$0xff]  ;;  %v6348_v16 = vpack.c.bf16 %v103_v7, %v102_v6 }
  0x48   :  { %6341 = vmatpush3.bf16.msra.mxu0 %v6340_v53  ;;  %v152_v14 = vld [vmem:[%s11537_s3 + $0x1e0] sm:$0xff]  ;;  %v153_v15 = vld [vmem:[%s11537_s3 + $0x1e8] sm:$0xff]  ;;  %v6380_v18 = vpack.c.bf16 %v135_v10, %v134_v8  ;;  %v6350_v19 = vpack.c.bf16 %v121_v12, %v120_v11  ;;  %v122_v25 = vld [vmem:[%s11537_s3 + $0xf0] sm:$0xff] }
  0x49   :  { %6373 = vmatpush3.bf16.msra.mxu1 %v6372_v54  ;;  %6343 = vmatprep.subr.bf16.mxu0 %v6342_v55  ;;  %v104_v17 = vld [vmem:[%s11537_s3 + $0x60] sm:$0xff]  ;;  %v105_v20 = vld [vmem:[%s11537_s3 + $0x68] sm:$0xff]  ;;  %v6382_v23 = vpack.c.bf16 %v153_v15, %v152_v14  ;;  %v123_v26 = vld [vmem:[%s11537_s3 + $0xf8] sm:$0xff] }
  0x4a   :  { %6375 = vmatprep.subr.bf16.mxu1 %v6374_v59  ;;  %v136_v21 = vld [vmem:[%s11537_s3 + $0x160] sm:$0xff]  ;;  %v137_v24 = vld [vmem:[%s11537_s3 + $0x168] sm:$0xff]  ;;  %v154_v29 = vld [vmem:[%s11537_s3 + $0x1f0] sm:$0xff]  ;;  %v6352_v31 = vpack.c.bf16 %v105_v20, %v104_v17  ;;  %v6354_v35 = vpack.c.bf16 %v123_v26, %v122_v25 }
  0x4b   :  { %v80_v22 = vld [vmem:[#allocation2] sm:$0xff]  ;;  %v155_v30 = vld [vmem:[%s11537_s3 + $0x1f8] sm:$0xff]  ;;  %v6384_v34 = vpack.c.bf16 %v137_v24, %v136_v21  ;;  %v106_v36 = vld [vmem:[%s11537_s3 + $0x70] sm:$0xff] }
  0x4c   :  { %6345 = vmatpush3.bf16.msra.mxu0 %v6344_v3  ;;  %v619_v27 = vrot.slane %v80_v22, %v8002_v13  ;;  %v612_v28 = vcombine.high %v80_v22, %v80_v22  ;;  %v107_v37 = vld [vmem:[%s11537_s3 + $0x78] sm:$0xff]  ;;  %v138_v38 = vld [vmem:[%s11537_s3 + $0x170] sm:$0xff]  ;;  %v6386_v39 = vpack.c.bf16 %v155_v30, %v154_v29  ;;  %v172_v42 = vld [vmem:[%s11537_s3 + $0x280] sm:$0xff] }
  0x4d   :  { %6377 = vmatpush3.bf16.msra.mxu1 %v6376_v4  ;;  %6347 = vmatprep.subr.bf16.mxu0 %v6346_v5  ;;  %v139_v40 = vld [vmem:[%s11537_s3 + $0x178] sm:$0xff]  ;;  %v173_v43 = vld [vmem:[%s11537_s3 + $0x288] sm:$0xff]  ;;  %v204_v44 = vld [vmem:[%s11537_s3 + $0x380] sm:$0xff]  ;;  %v6356_v46 = vpack.c.bf16 %v107_v37, %v106_v36 }
  0x4e   :  { %6379 = vmatprep.subr.bf16.mxu1 %v6378_v9  ;;  %v627_v32 = vcombine.high %v619_v27, %v619_v27  ;;  %v626_v33 = vrot.slane %v612_v28, %v8002_v13  ;;  %v205_v45 = vld [vmem:[%s11537_s3 + $0x388] sm:$0xff]  ;;  %v6388_v47 = vpack.c.bf16 %v139_v40, %v138_v38  ;;  %v6390_v48 = vpack.c.bf16 %v173_v43, %v172_v42  ;;  %v156_v49 = vld [vmem:[%s11537_s3 + $0x200] sm:$0xff]  ;;  %v174_v54 = vld [vmem:[%s11537_s3 + $0x290] sm:$0xff] }
  0x4f   :  { %v157_v50 = vld [vmem:[%s11537_s3 + $0x208] sm:$0xff]  ;;  %v188_v51 = vld [vmem:[%s11537_s3 + $0x300] sm:$0xff]  ;;  %v6422_v52 = vpack.c.bf16 %v205_v45, %v204_v44  ;;  %v175_v55 = vld [vmem:[%s11537_s3 + $0x298] sm:$0xff] }
  0x50   :  { %6349 = vmatpush3.bf16.msra.mxu0 %v6348_v16  ;;  %844 = vmatprep.mubr.f32.mxu0 %v627_v32  ;;  %v628_v41 = vcombine.high %v626_v33, %v626_v33  ;;  %v189_v53 = vld [vmem:[%s11537_s3 + $0x308] sm:$0xff]  ;;  %v206_v56 = vld [vmem:[%s11537_s3 + $0x390] sm:$0xff]  ;;  %v207_v57 = vld [vmem:[%s11537_s3 + $0x398] sm:$0xff]  ;;  %v6392_v58 = vpack.c.bf16 %v157_v50, %v156_v49  ;;  %v6394_v60 = vpack.c.bf16 %v175_v55, %v174_v54 }
  0x51   :  { %6381 = vmatpush3.bf16.msra.mxu1 %v6380_v18  ;;  %6351 = vmatprep.subr.bf16.mxu0 %v6350_v19  ;;  %v6424_v59 = vpack.c.bf16 %v189_v53, %v188_v51  ;;  %v158_v61 = vld [vmem:[%s11537_s3 + $0x210] sm:$0xff]  ;;  %v159_v62 = vld [vmem:[%s11537_s3 + $0x218] sm:$0xff]  ;;  %v6426_v1 = vpack.c.bf16 %v207_v57, %v206_v56  ;;  %v176_v3 = vld [vmem:[%s11537_s3 + $0x2a0] sm:$0xff] }
  0x52   :  { %6383 = vmatprep.subr.bf16.mxu1 %v6382_v23  ;;  %914 = vmatprep.mubr.f32.mxu1 %v628_v41  ;;  %v190_v63 = vld [vmem:[%s11537_s3 + $0x310] sm:$0xff]  ;;  %v191_v2 = vld [vmem:[%s11537_s3 + $0x318] sm:$0xff]  ;;  %v177_v4 = vld [vmem:[%s11537_s3 + $0x2a8] sm:$0xff]  ;;  %v6396_v7 = vpack.c.bf16 %v159_v62, %v158_v61 }
  0x53   :  { %v208_v5 = vld [vmem:[%s11537_s3 + $0x3a0] sm:$0xff]  ;;  %v209_v6 = vld [vmem:[%s11537_s3 + $0x3a8] sm:$0xff]  ;;  %v6428_v8 = vpack.c.bf16 %v191_v2, %v190_v63  ;;  %v6398_v9 = vpack.c.bf16 %v177_v4, %v176_v3  ;;  %v178_v16 = vld [vmem:[%s11537_s3 + $0x2b0] sm:$0xff] }
  0x54   :  { %6353 = vmatpush3.bf16.msra.mxu0 %v6352_v31  ;;  %v160_v10 = vld [vmem:[%s11537_s3 + $0x220] sm:$0xff]  ;;  %v161_v11 = vld [vmem:[%s11537_s3 + $0x228] sm:$0xff]  ;;  %v6430_v14 = vpack.c.bf16 %v209_v6, %v208_v5  ;;  %v179_v17 = vld [vmem:[%s11537_s3 + $0x2b8] sm:$0xff] }
  0x55   :  { %6385 = vmatpush3.bf16.msra.mxu1 %v6384_v34  ;;  %6355 = vmatprep.subr.bf16.mxu0 %v6354_v35  ;;  %v192_v12 = vld [vmem:[%s11537_s3 + $0x320] sm:$0xff]  ;;  %v193_v15 = vld [vmem:[%s11537_s3 + $0x328] sm:$0xff]  ;;  %v210_v18 = vld [vmem:[%s11537_s3 + $0x3b0] sm:$0xff]  ;;  %v6400_v20 = vpack.c.bf16 %v161_v11, %v160_v10  ;;  %v6402_v22 = vpack.c.bf16 %v179_v17, %v178_v16 }
  0x56   :  { %6387 = vmatprep.subr.bf16.mxu1 %v6386_v39  ;;  %v211_v19 = vld [vmem:[%s11537_s3 + $0x3b8] sm:$0xff]  ;;  %v6432_v21 = vpack.c.bf16 %v193_v15, %v192_v12  ;;  %v162_v23 = vld [vmem:[%s11537_s3 + $0x230] sm:$0xff]  ;;  %v180_v28 = vld [vmem:[%s11537_s3 + $0x2c0] sm:$0xff] }
  0x57   :  { %v163_v24 = vld [vmem:[%s11537_s3 + $0x238] sm:$0xff]  ;;  %v194_v25 = vld [vmem:[%s11537_s3 + $0x330] sm:$0xff]  ;;  %v6434_v26 = vpack.c.bf16 %v211_v19, %v210_v18  ;;  %v181_v29 = vld [vmem:[%s11537_s3 + $0x2c8] sm:$0xff] }
  0x58   :  { %6357 = vmatpush3.bf16.msra.mxu0 %v6356_v46  ;;  %v212_v30 = vld [vmem:[%s11537_s3 + $0x3c0] sm:$0xff]  ;;  %v213_v31 = vld [vmem:[%s11537_s3 + $0x3c8] sm:$0xff]  ;;  %v6406_v37 = vpack.c.bf16 %v181_v29, %v180_v28  ;;  %v182_v43 = vld [vmem:[%s11537_s3 + $0x2d0] sm:$0xff] }
  0x59   :  { %6389 = vmatpush3.bf16.msra.mxu1 %v6388_v47  ;;  %6391 = vmatprep.subr.bf16.mxu0 %v6390_v48  ;;  %v81_v32 = vld [vmem:[#allocation2 + $0x8] sm:$0xff]  ;;  %v164_v38 = vld [vmem:[%s11537_s3 + $0x240] sm:$0xff]  ;;  %v6438_v41 = vpack.c.bf16 %v213_v31, %v212_v30  ;;  %v183_v44 = vld [vmem:[%s11537_s3 + $0x2d8] sm:$0xff] }
  0x5a   :  { %6423 = vmatprep.subr.bf16.mxu1 %v6422_v52  ;;  %v8157_v34 = vrot.slane %v81_v32, %v8002_v13  ;;  %v629_v35 = vcombine.high %v81_v32, %v81_v32  ;;  %v165_v39 = vld [vmem:[%s11537_s3 + $0x248] sm:$0xff]  ;;  %v196_v40 = vld [vmem:[%s11537_s3 + $0x340] sm:$0xff]  ;;  %v214_v47 = vld [vmem:[%s11537_s3 + $0x3d0] sm:$0xff]  ;;  %v6410_v52 = vpack.c.bf16 %v183_v44, %v182_v43 }
  0x5b   :  { %845 = vmatmul.mubr.f32.vlgmr.msra.gmra.mrb[0].mxu0 %v619_v27  ;;  %v195_v27 = vld [vmem:[%s11537_s3 + $0x338] sm:$0xff]  ;;  %v197_v42 = vld [vmem:[%s11537_s3 + $0x348] sm:$0xff]  ;;  %v6408_v49 = vpack.c.bf16 %v165_v39, %v164_v38  ;;  %v166_v53 = vld [vmem:[%s11537_s3 + $0x250] sm:$0xff] }
  0x5c   :  { %915 = vmatmul.mubr.f32.vlgmr.msra.gmra.mrb[0].mxu1 %v626_v33  ;;  %6393 = vmatpush3.bf16.msra.mxu0 %v6392_v58  ;;  %v6404_v33 = vpack.c.bf16 %v163_v24, %v162_v23  ;;  %v6436_v36 = vpack.c.bf16 %v195_v27, %v194_v25  ;;  %v644_v45 = vcombine.high %v8157_v34, %v8157_v34  ;;  %v215_v48 = vld [vmem:[%s11537_s3 + $0x3d8] sm:$0xff]  ;;  %v198_v55 = vld [vmem:[%s11537_s3 + $0x350] sm:$0xff]  ;;  %v184_v58 = vld [vmem:[%s11537_s3 + $0x2e0] sm:$0xff] }
  0x5d   :  { %6425 = vmatpush3.bf16.msra.mxu1 %v6424_v59  ;;  %6395 = vmatprep.subr.bf16.mxu0 %v6394_v60  ;;  %v8180_v46 = vrot.slane %v629_v35, %v8002_v13  ;;  %v6440_v51 = vpack.c.bf16 %v197_v42, %v196_v40  ;;  %v167_v54 = vld [vmem:[%s11537_s3 + $0x258] sm:$0xff]  ;;  %v6442_v56 = vpack.c.bf16 %v215_v48, %v214_v47  ;;  %v185_v59 = vld [vmem:[%s11537_s3 + $0x2e8] sm:$0xff]  ;;  %v216_v60 = vld [vmem:[%s11537_s3 + $0x3e0] sm:$0xff] }
  0x5e   :  { %6427 = vmatprep.subr.bf16.mxu1 %v6426_v1  ;;  %984 = vmatprep.mubr.f32.mxu0 %v644_v45  ;;  %v199_v57 = vld [vmem:[%s11537_s3 + $0x358] sm:$0xff]  ;;  %v217_v61 = vld [vmem:[%s11537_s3 + $0x3e8] sm:$0xff]  ;;  %v6412_v62 = vpack.c.bf16 %v167_v54, %v166_v53  ;;  %v6414_v1 = vpack.c.bf16 %v185_v59, %v184_v58  ;;  %v168_v2 = vld [vmem:[%s11537_s3 + $0x260] sm:$0xff] }
  0x5f   :  { %v645_v50 = vcombine.high %v8180_v46, %v8180_v46  ;;  %v6444_v63 = vpack.c.bf16 %v199_v57, %v198_v55  ;;  %v169_v3 = vld [vmem:[%s11537_s3 + $0x268] sm:$0xff]  ;;  %v200_v4 = vld [vmem:[%s11537_s3 + $0x360] sm:$0xff]  ;;  %v6446_v5 = vpack.c.bf16 %v217_v61, %v216_v60  ;;  %v219_v10 = vld [vmem:[%s11537_s3 + $0x3f8] sm:$0xff] }
  0x60   :  { %6397 = vmatpush3.bf16.msra.mxu0 %v6396_v7  ;;  %v201_v6 = vld [vmem:[%s11537_s3 + $0x368] sm:$0xff]  ;;  %v186_v7 = vld [vmem:[%s11537_s3 + $0x2f0] sm:$0xff]  ;;  %v6416_v11 = vpack.c.bf16 %v169_v3, %v168_v2  ;;  %v171_v16 = vld [vmem:[%s11537_s3 + $0x278] sm:$0xff] }
  0x61   :  { %6429 = vmatpush3.bf16.msra.mxu1 %v6428_v8  ;;  %6399 = vmatprep.subr.bf16.mxu0 %v6398_v9  ;;  %v187_v8 = vld [vmem:[%s11537_s3 + $0x2f8] sm:$0xff]  ;;  %v218_v9 = vld [vmem:[%s11537_s3 + $0x3f0] sm:$0xff]  ;;  %v6448_v12 = vpack.c.bf16 %v201_v6, %v200_v4  ;;  %v269_v23 = vld [vmem:[%s11537_s3 + $0x588] sm:$0xff] }
  0x62   :  { %6431 = vmatprep.subr.bf16.mxu1 %v6430_v14  ;;  %1054 = vmatprep.mubr.f32.mxu1 %v645_v50  ;;  %v6418_v14 = vpack.c.bf16 %v187_v8, %v186_v7  ;;  %v170_v15 = vld [vmem:[%s11537_s3 + $0x270] sm:$0xff]  ;;  %v6450_v18 = vpack.c.bf16 %v219_v10, %v218_v9  ;;  %v203_v19 = vld [vmem:[%s11537_s3 + $0x378] sm:$0xff]  ;;  %v220_v25 = vld [vmem:[%s11537_s3 + $0x400] sm:$0xff] }
  0x63   :  { %v202_v17 = vld [vmem:[%s11537_s3 + $0x370] sm:$0xff]  ;;  %v6420_v24 = vpack.c.bf16 %v171_v16, %v170_v15  ;;  %v221_v28 = vld [vmem:[%s11537_s3 + $0x408] sm:$0xff]  ;;  %v252_v29 = vld [vmem:[%s11537_s3 + $0x500] sm:$0xff] }
  0x64   :  { %6401 = vmatpush3.bf16.msra.mxu0 %v6400_v20  ;;  %v236_v20 = vld [vmem:[%s11537_s3 + $0x480] sm:$0xff]  ;;  %v253_v30 = vld [vmem:[%s11537_s3 + $0x508] sm:$0xff]  ;;  %v238_v32 = vld [vmem:[%s11537_s3 + $0x490] sm:$0xff] }
  0x65   :  { %6433 = vmatpush3.bf16.msra.mxu1 %v6432_v21  ;;  %6403 = vmatprep.subr.bf16.mxu0 %v6402_v22  ;;  %v237_v21 = vld [vmem:[%s11537_s3 + $0x488] sm:$0xff]  ;;  %v268_v22 = vld [vmem:[%s11537_s3 + $0x580] sm:$0xff]  ;;  %v270_v35 = vld [vmem:[%s11537_s3 + $0x590] sm:$0xff]  ;;  %v6488_v38 = vpack.c.bf16 %v253_v30, %v252_v29 }
  0x66   :  { %6435 = vmatprep.subr.bf16.mxu1 %v6434_v26  ;;  %v6452_v26 = vpack.c.bf16 %v203_v19, %v202_v17  ;;  %v6454_v27 = vpack.c.bf16 %v237_v21, %v236_v20  ;;  %v6486_v31 = vpack.c.bf16 %v269_v23, %v268_v22  ;;  %v82_v39 = vld [vmem:[#allocation2 + $0x10] sm:$0xff]  ;;  %v223_v42 = vld [vmem:[%s11537_s3 + $0x418] sm:$0xff]  ;;  %v241_v50 = vld [vmem:[%s11537_s3 + $0x4a8] sm:$0xff] }
  0x67   :  { %v254_v43 = vld [vmem:[%s11537_s3 + $0x510] sm:$0xff]  ;;  %v8296_v44 = vrot.slane %v82_v39, %v8002_v13  ;;  %v646_v45 = vcombine.high %v82_v39, %v82_v39  ;;  %v255_v48 = vld [vmem:[%s11537_s3 + $0x518] sm:$0xff]  ;;  %v224_v57 = vld [vmem:[%s11537_s3 + $0x420] sm:$0xff] }
  0x68   :  { %6405 = vmatpush3.bf16.msra.mxu0 %v6404_v33  ;;  %v239_v33 = vld [vmem:[%s11537_s3 + $0x498] sm:$0xff]  ;;  %v225_v58 = vld [vmem:[%s11537_s3 + $0x428] sm:$0xff]  ;;  %v256_v59 = vld [vmem:[%s11537_s3 + $0x520] sm:$0xff] }
  0x69   :  { %6437 = vmatpush3.bf16.msra.mxu1 %v6436_v36  ;;  %6407 = vmatprep.subr.bf16.mxu0 %v6406_v37  ;;  %v271_v36 = vld [vmem:[%s11537_s3 + $0x598] sm:$0xff]  ;;  %v6456_v37 = vpack.c.bf16 %v221_v28, %v220_v25  ;;  %v6458_v40 = vpack.c.bf16 %v239_v33, %v238_v32  ;;  %v661_v53 = vcombine.high %v8296_v44, %v8296_v44  ;;  %v257_v61 = vld [vmem:[%s11537_s3 + $0x528] sm:$0xff]  ;;  %v226_v6 = vld [vmem:[%s11537_s3 + $0x430] sm:$0xff] }
  0x6a   :  { %6439 = vmatprep.subr.bf16.mxu1 %v6438_v41  ;;  %v222_v41 = vld [vmem:[%s11537_s3 + $0x410] sm:$0xff]  ;;  %v6490_v47 = vpack.c.bf16 %v271_v36, %v270_v35  ;;  %v8317_v54 = vrot.slane %v646_v45, %v8002_v13  ;;  %v275_v2 = vld [vmem:[%s11537_s3 + $0x5b8] sm:$0xff]  ;;  %v6464_v3 = vpack.c.bf16 %v225_v58, %v224_v57  ;;  %v6496_v4 = vpack.c.bf16 %v257_v61, %v256_v59  ;;  %v277_v15 = vld [vmem:[%s11537_s3 + $0x5c8] sm:$0xff] }
  0x6b   :  { %v6460_v55 = vpack.c.bf16 %v223_v42, %v222_v41  ;;  %v227_v7 = vld [vmem:[%s11537_s3 + $0x438] sm:$0xff]  ;;  %v258_v8 = vld [vmem:[%s11537_s3 + $0x530] sm:$0xff]  ;;  %v228_v19 = vld [vmem:[%s11537_s3 + $0x440] sm:$0xff] }
  0x6c   :  { %6409 = vmatpush3.bf16.msra.mxu0 %v6408_v49  ;;  %v240_v49 = vld [vmem:[%s11537_s3 + $0x4a0] sm:$0xff]  ;;  %v259_v10 = vld [vmem:[%s11537_s3 + $0x538] sm:$0xff]  ;;  %v6468_v16 = vpack.c.bf16 %v227_v7, %v226_v6  ;;  %v229_v20 = vld [vmem:[%s11537_s3 + $0x448] sm:$0xff] }
  0x6d   :  { %6441 = vmatpush3.bf16.msra.mxu1 %v6440_v51  ;;  %6411 = vmatprep.subr.bf16.mxu0 %v6410_v52  ;;  %v272_v51 = vld [vmem:[%s11537_s3 + $0x5a0] sm:$0xff]  ;;  %v273_v52 = vld [vmem:[%s11537_s3 + $0x5a8] sm:$0xff]  ;;  %v6500_v17 = vpack.c.bf16 %v259_v10, %v258_v8  ;;  %v247_v25 = vld [vmem:[%s11537_s3 + $0x4d8] sm:$0xff]  ;;  %v6472_v28 = vpack.c.bf16 %v229_v20, %v228_v19 }
  0x6e   :  { %6443 = vmatprep.subr.bf16.mxu1 %v6442_v56  ;;  %v6462_v56 = vpack.c.bf16 %v241_v50, %v240_v49  ;;  %v6494_v60 = vpack.c.bf16 %v273_v52, %v272_v51  ;;  %v260_v21 = vld [vmem:[%s11537_s3 + $0x540] sm:$0xff]  ;;  %v261_v23 = vld [vmem:[%s11537_s3 + $0x548] sm:$0xff]  ;;  %v231_v32 = vld [vmem:[%s11537_s3 + $0x458] sm:$0xff] }
  0x6f   :  { %v6504_v29 = vpack.c.bf16 %v261_v23, %v260_v21  ;;  %v262_v33 = vld [vmem:[%s11537_s3 + $0x550] sm:$0xff]  ;;  %v263_v36 = vld [vmem:[%s11537_s3 + $0x558] sm:$0xff]  ;;  %v280_v39 = vld [vmem:[%s11537_s3 + $0x5e0] sm:$0xff] }
  0x70   :  { %6413 = vmatpush3.bf16.msra.mxu0 %v6412_v62  ;;  %v242_v62 = vld [vmem:[%s11537_s3 + $0x4b0] sm:$0xff]  ;;  %v6508_v42 = vpack.c.bf16 %v263_v36, %v262_v33  ;;  %v232_v45 = vld [vmem:[%s11537_s3 + $0x460] sm:$0xff]  ;;  %v265_v50 = vld [vmem:[%s11537_s3 + $0x568] sm:$0xff] }
  0x71   :  { %6445 = vmatpush3.bf16.msra.mxu1 %v6444_v63  ;;  %6415 = vmatprep.subr.bf16.mxu0 %v6414_v1  ;;  %v243_v63 = vld [vmem:[%s11537_s3 + $0x4b8] sm:$0xff]  ;;  %v274_v1 = vld [vmem:[%s11537_s3 + $0x5b0] sm:$0xff]  ;;  %v284_v8 = vld [vmem:[%s11537_s3 + $0x600] sm:$0xff] }
  0x72   :  { %6447 = vmatprep.subr.bf16.mxu1 %v6446_v5  ;;  %v6466_v5 = vpack.c.bf16 %v243_v63, %v242_v62  ;;  %v6498_v9 = vpack.c.bf16 %v275_v2, %v274_v1  ;;  %v250_v51 = vld [vmem:[%s11537_s3 + $0x4f0] sm:$0xff]  ;;  %v251_v52 = vld [vmem:[%s11537_s3 + $0x4f8] sm:$0xff]  ;;  %v300_v63 = vld [vmem:[%s11537_s3 + $0x680] sm:$0xff] }
  0x73   :  { %v6482_v58 = vpack.c.bf16 %v251_v52, %v250_v51  ;;  %v234_v59 = vld [vmem:[%s11537_s3 + $0x470] sm:$0xff]  ;;  %v267_v62 = vld [vmem:[%s11537_s3 + $0x578] sm:$0xff]  ;;  %v301_v1 = vld [vmem:[%s11537_s3 + $0x688] sm:$0xff] }
  0x74   :  { %6417 = vmatpush3.bf16.msra.mxu0 %v6416_v11  ;;  %v244_v11 = vld [vmem:[%s11537_s3 + $0x4c0] sm:$0xff]  ;;  %v6518_v7 = vpack.c.bf16 %v301_v1, %v300_v63  ;;  %v286_v23 = vld [vmem:[%s11537_s3 + $0x610] sm:$0xff]  ;;  %v291_v51 = vld [vmem:[%s11537_s3 + $0x638] sm:$0xff] }
  0x75   :  { %6449 = vmatpush3.bf16.msra.mxu1 %v6448_v12  ;;  %6419 = vmatprep.subr.bf16.mxu0 %v6418_v14  ;;  %v245_v12 = vld [vmem:[%s11537_s3 + $0x4c8] sm:$0xff]  ;;  %v276_v14 = vld [vmem:[%s11537_s3 + $0x5c0] sm:$0xff]  ;;  %v322_v52 = vld [vmem:[%s11537_s3 + $0x730] sm:$0xff] }
  0x76   :  { %6451 = vmatprep.subr.bf16.mxu1 %v6450_v18  ;;  %v6470_v18 = vpack.c.bf16 %v245_v12, %v244_v11  ;;  %v6502_v22 = vpack.c.bf16 %v277_v15, %v276_v14  ;;  %v332_v2 = vld [vmem:[%s11537_s3 + $0x780] sm:$0xff]  ;;  %v317_v12 = vld [vmem:[%s11537_s3 + $0x708] sm:$0xff]  ;;  %v302_v14 = vld [vmem:[%s11537_s3 + $0x690] sm:$0xff] }
  0x77   :  { %v316_v10 = vld [vmem:[%s11537_s3 + $0x700] sm:$0xff]  ;;  %v303_v15 = vld [vmem:[%s11537_s3 + $0x698] sm:$0xff]  ;;  %vm3014_vm5 = vmor %vm3013_vm4, %vm3012_vm3 }
  0x78   :  { %6421 = vmatpush3.bf16.msra.mxu0 %v6420_v24  ;;  %v246_v24 = vld [vmem:[%s11537_s3 + $0x4d0] sm:$0xff]  ;;  %v6552_v21 = vpack.c.bf16 %v317_v12, %v316_v10  ;;  %v324_v63 = vld [vmem:[%s11537_s3 + $0x740] sm:$0xff] }
  0x79   :  { %6453 = vmatpush3.bf16.msra.mxu1 %v6452_v26  ;;  %6455 = vmatprep.subr.bf16.mxu0 %v6454_v27  ;;  %v278_v26 = vld [vmem:[%s11537_s3 + $0x5d0] sm:$0xff]  ;;  %v279_v27 = vld [vmem:[%s11537_s3 + $0x5d8] sm:$0xff]  ;;  %v6474_v30 = vpack.c.bf16 %v247_v25, %v246_v24 }
  0x7a   :  { %6487 = vmatprep.subr.bf16.mxu1 %v6486_v31  ;;  %v230_v31 = vld [vmem:[%s11537_s3 + $0x450] sm:$0xff]  ;;  %v6506_v35 = vpack.c.bf16 %v279_v27, %v278_v26  ;;  %v287_v24 = vld [vmem:[%s11537_s3 + $0x618] sm:$0xff] }
  0x7b   :  { %985 = vmatmul.mubr.f32.vlgmr.msra.gmra.mrb[2].mxu0 %v8157_v34  ;;  %v6492_v34 = vpack.c.bf16 %v255_v48, %v254_v43  ;;  %v6476_v41 = vpack.c.bf16 %v231_v32, %v230_v31  ;;  %v264_v48 = vld [vmem:[%s11537_s3 + $0x560] sm:$0xff]  ;;  %v318_v25 = vld [vmem:[%s11537_s3 + $0x710] sm:$0xff]  ;;  %v319_v27 = vld [vmem:[%s11537_s3 + $0x718] sm:$0xff] }
  0x7c   :  { %1055 = vmatmul.mubr.f32.vlgmr.msra.gmra.mrb[2].mxu1 %v8180_v46  ;;  %6457 = vmatpush3.bf16.msra.mxu0 %v6456_v37  ;;  %v662_v46 = vcombine.high %v8317_v54, %v8317_v54  ;;  %v248_v37 = vld [vmem:[%s11537_s3 + $0x4e0] sm:$0xff]  ;;  %v6512_v57 = vpack.c.bf16 %v265_v50, %v264_v48  ;;  %v337_v32 = vld [vmem:[%s11537_s3 + $0x7a8] sm:$0xff]  ;;  %v6556_v36 = vpack.c.bf16 %v319_v27, %v318_v25  ;;  %v290_v50 = vld [vmem:[%s11537_s3 + $0x630] sm:$0xff] }
  0x7d   :  { %6489 = vmatpush3.bf16.msra.mxu1 %v6488_v38  ;;  %6459 = vmatprep.subr.bf16.mxu0 %v6458_v40  ;;  %v249_v38 = vld [vmem:[%s11537_s3 + $0x4e8] sm:$0xff]  ;;  %v336_v31 = vld [vmem:[%s11537_s3 + $0x7a0] sm:$0xff]  ;;  %v294_v10 = vld [vmem:[%s11537_s3 + $0x650] sm:$0xff] }
  0x7e   :  { %6491 = vmatprep.subr.bf16.mxu1 %v6490_v47  ;;  %1124 = vmatprep.mubr.f32.mxu0 %v661_v53  ;;  %v281_v40 = vld [vmem:[%s11537_s3 + $0x5e8] sm:$0xff]  ;;  %v6478_v43 = vpack.c.bf16 %v249_v38, %v248_v37  ;;  %v282_v53 = vld [vmem:[%s11537_s3 + $0x5f0] sm:$0xff]  ;;  %v296_v25 = vld [vmem:[%s11537_s3 + $0x660] sm:$0xff] }
  0x7f   :  { %1194 = vmatprep.mubr.f32.mxu1 %v662_v46  ;;  %v233_v47 = vld [vmem:[%s11537_s3 + $0x468] sm:$0xff]  ;;  %v6510_v49 = vpack.c.bf16 %v281_v40, %v280_v39  ;;  %v235_v46 = vld [vmem:[%s11537_s3 + $0x478] sm:$0xff]  ;;  %v320_v39 = vld [vmem:[%s11537_s3 + $0x720] sm:$0xff] }
  0x80   :  { %6461 = vmatpush3.bf16.msra.mxu0 %v6460_v55  ;;  %v283_v55 = vld [vmem:[%s11537_s3 + $0x5f8] sm:$0xff]  ;;  %v289_v38 = vld [vmem:[%s11537_s3 + $0x628] sm:$0xff]  ;;  %v326_v12 = vld [vmem:[%s11537_s3 + $0x750] sm:$0xff] }
  0x81   :  { %6493 = vmatpush3.bf16.msra.mxu1 %v6492_v34  ;;  %6463 = vmatprep.subr.bf16.mxu0 %v6462_v56  ;;  %v6480_v34 = vpack.c.bf16 %v233_v47, %v232_v45  ;;  %v83_v56 = vld [vmem:[#allocation2 + $0x18] sm:$0xff]  ;;  %v6514_v61 = vpack.c.bf16 %v283_v55, %v282_v53  ;;  %v321_v40 = vld [vmem:[%s11537_s3 + $0x728] sm:$0xff]  ;;  %v328_v27 = vld [vmem:[%s11537_s3 + $0x760] sm:$0xff] }
  0x82   :  { %6495 = vmatprep.subr.bf16.mxu1 %v6494_v60  ;;  %v266_v60 = vld [vmem:[%s11537_s3 + $0x570] sm:$0xff]  ;;  %v339_v45 = vld [vmem:[%s11537_s3 + $0x7b8] sm:$0xff]  ;;  %v6560_v48 = vpack.c.bf16 %v321_v40, %v320_v39 }
  0x83   :  { %v6516_v6 = vpack.c.bf16 %v267_v62, %v266_v60  ;;  %v323_v55 = vld [vmem:[%s11537_s3 + $0x738] sm:$0xff]  ;;  %v293_v62 = vld [vmem:[%s11537_s3 + $0x648] sm:$0xff] }
  0x84   :  { %6465 = vmatpush3.bf16.msra.mxu0 %v6464_v3  ;;  %v333_v3 = vld [vmem:[%s11537_s3 + $0x788] sm:$0xff]  ;;  %v299_v39 = vld [vmem:[%s11537_s3 + $0x678] sm:$0xff] }
  0x85   :  { %6497 = vmatpush3.bf16.msra.mxu1 %v6496_v4  ;;  %6467 = vmatprep.subr.bf16.mxu0 %v6466_v5  ;;  %v663_v4 = vcombine.high %v83_v56, %v83_v56  ;;  %v6484_v5 = vpack.c.bf16 %v235_v46, %v234_v59  ;;  %v6550_v11 = vpack.c.bf16 %v333_v3, %v332_v2  ;;  %v325_v2 = vld [vmem:[%s11537_s3 + $0x748] sm:$0xff]  ;;  %v310_v3 = vld [vmem:[%s11537_s3 + $0x6d0] sm:$0xff] }
  0x86   :  { %6499 = vmatprep.subr.bf16.mxu1 %v6498_v9  ;;  %v285_v9 = vld [vmem:[%s11537_s3 + $0x608] sm:$0xff]  ;;  %v6532_v59 = vpack.c.bf16 %v291_v51, %v290_v50  ;;  %v6564_v46 = vpack.c.bf16 %v323_v55, %v322_v52  ;;  %v348_v52 = vld [vmem:[%s11537_s3 + $0x800] sm:$0xff] }
  0x87   :  { %v8494_v19 = vrot.slane %v663_v4, %v8002_v13  ;;  %v6520_v20 = vpack.c.bf16 %v285_v9, %v284_v8  ;;  %v311_v4 = vld [vmem:[%s11537_s3 + $0x6d8] sm:$0xff]  ;;  %v6568_v8 = vpack.c.bf16 %v325_v2, %v324_v63  ;;  %v380_v55 = vld [vmem:[%s11537_s3 + $0x900] sm:$0xff]  ;;  %v350_v2 = vld [vmem:[%s11537_s3 + $0x810] sm:$0xff] }
  0x88   :  { %6469 = vmatpush3.bf16.msra.mxu0 %v6468_v16  ;;  %v8485_v16 = vrot.slane %v83_v56, %v8002_v13  ;;  %v309_v56 = vld [vmem:[%s11537_s3 + $0x6c8] sm:$0xff]  ;;  %v6538_v9 = vpack.c.bf16 %v311_v4, %v310_v3  ;;  %v351_v3 = vld [vmem:[%s11537_s3 + $0x818] sm:$0xff]  ;;  %v382_v4 = vld [vmem:[%s11537_s3 + $0x910] sm:$0xff] }
  0x89   :  { %6501 = vmatpush3.bf16.msra.mxu1 %v6500_v17  ;;  %6471 = vmatprep.subr.bf16.mxu0 %v6470_v18  ;;  %v334_v17 = vld [vmem:[%s11537_s3 + $0x790] sm:$0xff]  ;;  %v335_v18 = vld [vmem:[%s11537_s3 + $0x798] sm:$0xff]  ;;  %v679_v33 = vcombine.high %v8494_v19, %v8494_v19 }
  0x8a   :  { %6503 = vmatprep.subr.bf16.mxu1 %v6502_v22  ;;  %v6522_v22 = vpack.c.bf16 %v303_v15, %v302_v14  ;;  %v6554_v26 = vpack.c.bf16 %v335_v18, %v334_v17  ;;  %v327_v15 = vld [vmem:[%s11537_s3 + $0x758] sm:$0xff]  ;;  %v312_v17 = vld [vmem:[%s11537_s3 + $0x6e0] sm:$0xff]  ;;  %v313_v18 = vld [vmem:[%s11537_s3 + $0x6e8] sm:$0xff] }
  0x8c   :  { %6473 = vmatpush3.bf16.msra.mxu0 %v6472_v28  ;;  %v304_v28 = vld [vmem:[%s11537_s3 + $0x6a0] sm:$0xff] }
  0x8d   :  { %6505 = vmatpush3.bf16.msra.mxu1 %v6504_v29  ;;  %6475 = vmatprep.subr.bf16.mxu0 %v6474_v30  ;;  %v305_v29 = vld [vmem:[%s11537_s3 + $0x6a8] sm:$0xff]  ;;  %v678_v30 = vcombine.high %v8485_v16, %v8485_v16 }
  0x8e   :  { %6507 = vmatprep.subr.bf16.mxu1 %v6506_v35  ;;  %v6524_v35 = vpack.c.bf16 %v287_v24, %v286_v23  ;;  %v6526_v37 = vpack.c.bf16 %v305_v29, %v304_v28  ;;  %v6572_v23 = vpack.c.bf16 %v327_v15, %v326_v12  ;;  %v6542_v24 = vpack.c.bf16 %v313_v18, %v312_v17  ;;  %v329_v29 = vld [vmem:[%s11537_s3 + $0x768] sm:$0xff] }
  0x8f   :  { %v353_v18 = vld [vmem:[%s11537_s3 + $0x828] sm:$0xff] }
  0x90   :  { %6477 = vmatpush3.bf16.msra.mxu0 %v6476_v41  ;;  %v306_v41 = vld [vmem:[%s11537_s3 + $0x6b0] sm:$0xff] }
  0x91   :  { %6509 = vmatpush3.bf16.msra.mxu1 %v6508_v42  ;;  %6479 = vmatprep.subr.bf16.mxu0 %v6478_v43  ;;  %v307_v42 = vld [vmem:[%s11537_s3 + $0x6b8] sm:$0xff]  ;;  %v338_v43 = vld [vmem:[%s11537_s3 + $0x7b0] sm:$0xff] }
  0x92   :  { %6511 = vmatprep.subr.bf16.mxu1 %v6510_v49  ;;  %v6530_v49 = vpack.c.bf16 %v307_v42, %v306_v41  ;;  %v6562_v53 = vpack.c.bf16 %v339_v45, %v338_v43  ;;  %v331_v41 = vld [vmem:[%s11537_s3 + $0x778] sm:$0xff]  ;;  %v364_v42 = vld [vmem:[%s11537_s3 + $0x880] sm:$0xff]  ;;  %v365_v43 = vld [vmem:[%s11537_s3 + $0x888] sm:$0xff] }
  0x93   :  { %v396_v45 = vld [vmem:[%s11537_s3 + $0x980] sm:$0xff]  ;;  %v6582_v51 = vpack.c.bf16 %v365_v43, %v364_v42 }
  0x94   :  { %6481 = vmatpush3.bf16.msra.mxu0 %v6480_v34  ;;  %v308_v34 = vld [vmem:[%s11537_s3 + $0x6c0] sm:$0xff] }
  0x95   :  { %6513 = vmatpush3.bf16.msra.mxu1 %v6512_v57  ;;  %6483 = vmatprep.subr.bf16.mxu0 %v6482_v58  ;;  %v340_v57 = vld [vmem:[%s11537_s3 + $0x7c0] sm:$0xff]  ;;  %v341_v58 = vld [vmem:[%s11537_s3 + $0x7c8] sm:$0xff]  ;;  %v6534_v60 = vpack.c.bf16 %v309_v56, %v308_v34 }
  0x96   :  { %6515 = vmatprep.subr.bf16.mxu1 %v6514_v61  ;;  %v292_v61 = vld [vmem:[%s11537_s3 + $0x640] sm:$0xff]  ;;  %v6566_v1 = vpack.c.bf16 %v341_v58, %v340_v57  ;;  %v381_v56 = vld [vmem:[%s11537_s3 + $0x908] sm:$0xff]  ;;  %v366_v57 = vld [vmem:[%s11537_s3 + $0x890] sm:$0xff] }
  0x97   :  { %v367_v58 = vld [vmem:[%s11537_s3 + $0x898] sm:$0xff]  ;;  %v6616_v63 = vpack.c.bf16 %v381_v56, %v380_v55  ;;  %v388_v42 = vld [vmem:[%s11537_s3 + $0x940] sm:$0xff]  ;;  %v358_v55 = vld [vmem:[%s11537_s3 + $0x850] sm:$0xff] }
  0x98   :  { %6485 = vmatpush3.bf16.msra.mxu0 %v6484_v5  ;;  %v342_v5 = vld [vmem:[%s11537_s3 + $0x7d0] sm:$0xff] }
  0x99   :  { %6517 = vmatpush3.bf16.msra.mxu1 %v6516_v6  ;;  %6519 = vmatprep.subr.bf16.mxu0 %v6518_v7  ;;  %v343_v6 = vld [vmem:[%s11537_s3 + $0x7d8] sm:$0xff]  ;;  %v6536_v7 = vpack.c.bf16 %v293_v62, %v292_v61  ;;  %v390_v56 = vld [vmem:[%s11537_s3 + $0x950] sm:$0xff] }
  0x9a   :  { %6551 = vmatprep.subr.bf16.mxu1 %v6550_v11  ;;  %v295_v11 = vld [vmem:[%s11537_s3 + $0x658] sm:$0xff]  ;;  %v6570_v14 = vpack.c.bf16 %v343_v6, %v342_v5 }
  0x9b   :  { %1125 = vmatmul.mubr.f32.vlgmr.msra.gmra.mrb[4].mxu0 %v8296_v44  ;;  %v288_v44 = vld [vmem:[%s11537_s3 + $0x620] sm:$0xff]  ;;  %v383_v6 = vld [vmem:[%s11537_s3 + $0x918] sm:$0xff] }
  0x9c   :  { %1195 = vmatmul.mubr.f32.vlgmr.msra.gmra.mrb[4].mxu1 %v8317_v54  ;;  %6521 = vmatpush3.bf16.msra.mxu0 %v6520_v20  ;;  %v6558_v54 = vpack.c.bf16 %v337_v32, %v336_v31  ;;  %v6528_v47 = vpack.c.bf16 %v289_v38, %v288_v44  ;;  %v344_v20 = vld [vmem:[%s11537_s3 + $0x7e0] sm:$0xff]  ;;  %v315_v31 = vld [vmem:[%s11537_s3 + $0x6f8] sm:$0xff]  ;;  %v346_v32 = vld [vmem:[%s11537_s3 + $0x7f0] sm:$0xff]  ;;  %v6620_v15 = vpack.c.bf16 %v383_v6, %v382_v4 }
  0x9d   :  { %6553 = vmatpush3.bf16.msra.mxu1 %v6552_v21  ;;  %6523 = vmatprep.subr.bf16.mxu0 %v6522_v22  ;;  %v345_v21 = vld [vmem:[%s11537_s3 + $0x7e8] sm:$0xff]  ;;  %v6540_v22 = vpack.c.bf16 %v295_v11, %v294_v10  ;;  %v298_v38 = vld [vmem:[%s11537_s3 + $0x670] sm:$0xff]  ;;  %v400_v10 = vld [vmem:[%s11537_s3 + $0x9a0] sm:$0xff] }
  0x9e   :  { %6555 = vmatprep.subr.bf16.mxu1 %v6554_v26  ;;  %1264 = vmatprep.mubr.f32.mxu0 %v678_v30  ;;  %v297_v26 = vld [vmem:[%s11537_s3 + $0x668] sm:$0xff]  ;;  %v6574_v28 = vpack.c.bf16 %v345_v21, %v344_v20  ;;  %v314_v30 = vld [vmem:[%s11537_s3 + $0x6f0] sm:$0xff]  ;;  %v384_v20 = vld [vmem:[%s11537_s3 + $0x920] sm:$0xff] }
  0x9f   :  { %1334 = vmatprep.mubr.f32.mxu1 %v679_v33  ;;  %v347_v33 = vld [vmem:[%s11537_s3 + $0x7f8] sm:$0xff]  ;;  %v6546_v44 = vpack.c.bf16 %v315_v31, %v314_v30  ;;  %v401_v11 = vld [vmem:[%s11537_s3 + $0x9a8] sm:$0xff]  ;;  %v386_v31 = vld [vmem:[%s11537_s3 + $0x930] sm:$0xff] }
  0xa0   :  { %6525 = vmatpush3.bf16.msra.mxu0 %v6524_v35  ;;  %v6544_v35 = vpack.c.bf16 %v297_v26, %v296_v25  ;;  %v6578_v40 = vpack.c.bf16 %v347_v33, %v346_v32  ;;  %v385_v21 = vld [vmem:[%s11537_s3 + $0x928] sm:$0xff]  ;;  %v403_v25 = vld [vmem:[%s11537_s3 + $0x9b8] sm:$0xff]  ;;  %v360_v4 = vld [vmem:[%s11537_s3 + $0x860] sm:$0xff] }
  0xa1   :  { %6557 = vmatpush3.bf16.msra.mxu1 %v6556_v36  ;;  %6527 = vmatprep.subr.bf16.mxu0 %v6526_v37  ;;  %v84_v36 = vld [vmem:[#allocation2 + $0x20] sm:$0xff]  ;;  %v6576_v37 = vpack.c.bf16 %v329_v29, %v328_v27  ;;  %v6624_v27 = vpack.c.bf16 %v385_v21, %v384_v20  ;;  %v354_v29 = vld [vmem:[%s11537_s3 + $0x830] sm:$0xff]  ;;  %v355_v30 = vld [vmem:[%s11537_s3 + $0x838] sm:$0xff] }
  0xa2   :  { %6559 = vmatprep.subr.bf16.mxu1 %v6558_v54  ;;  %v330_v54 = vld [vmem:[%s11537_s3 + $0x770] sm:$0xff]  ;;  %v387_v33 = vld [vmem:[%s11537_s3 + $0x938] sm:$0xff]  ;;  %v392_v6 = vld [vmem:[%s11537_s3 + $0x960] sm:$0xff] }
  0xa3   :  { %v6580_v50 = vpack.c.bf16 %v331_v41, %v330_v54  ;;  %v357_v41 = vld [vmem:[%s11537_s3 + $0x848] sm:$0xff]  ;;  %v363_v20 = vld [vmem:[%s11537_s3 + $0x878] sm:$0xff] }
  0xa4   :  { %6529 = vmatpush3.bf16.msra.mxu0 %v6528_v47  ;;  %v397_v47 = vld [vmem:[%s11537_s3 + $0x988] sm:$0xff] }
  0xa5   :  { %6561 = vmatpush3.bf16.msra.mxu1 %v6560_v48  ;;  %6531 = vmatprep.subr.bf16.mxu0 %v6530_v49  ;;  %v680_v48 = vcombine.high %v84_v36, %v84_v36  ;;  %v6548_v49 = vpack.c.bf16 %v299_v39, %v298_v38  ;;  %v6614_v34 = vpack.c.bf16 %v397_v47, %v396_v45  ;;  %v389_v45 = vld [vmem:[%s11537_s3 + $0x948] sm:$0xff]  ;;  %v374_v47 = vld [vmem:[%s11537_s3 + $0x8d0] sm:$0xff] }
  0xa6   :  { %6563 = vmatprep.subr.bf16.mxu1 %v6562_v53  ;;  %v349_v53 = vld [vmem:[%s11537_s3 + $0x808] sm:$0xff]  ;;  %v6596_v38 = vpack.c.bf16 %v355_v30, %v354_v29  ;;  %v6628_v39 = vpack.c.bf16 %v387_v33, %v386_v31  ;;  %v412_v31 = vld [vmem:[%s11537_s3 + $0xa00] sm:$0xff] }
  0xa7   :  { %v8698_v61 = vrot.slane %v680_v48, %v8002_v13  ;;  %v6584_v62 = vpack.c.bf16 %v349_v53, %v348_v52  ;;  %v375_v48 = vld [vmem:[%s11537_s3 + $0x8d8] sm:$0xff]  ;;  %v6632_v52 = vpack.c.bf16 %v389_v45, %v388_v42  ;;  %v444_v33 = vld [vmem:[%s11537_s3 + $0xb00] sm:$0xff]  ;;  %v414_v45 = vld [vmem:[%s11537_s3 + $0xa10] sm:$0xff] }
  0xa8   :  { %6533 = vmatpush3.bf16.msra.mxu0 %v6532_v59  ;;  %v8689_v59 = vrot.slane %v84_v36, %v8002_v13  ;;  %v373_v36 = vld [vmem:[%s11537_s3 + $0x8c8] sm:$0xff]  ;;  %v6602_v53 = vpack.c.bf16 %v375_v48, %v374_v47  ;;  %v415_v47 = vld [vmem:[%s11537_s3 + $0xa18] sm:$0xff]  ;;  %v446_v48 = vld [vmem:[%s11537_s3 + $0xb10] sm:$0xff] }
  0xa9   :  { %6565 = vmatpush3.bf16.msra.mxu1 %v6564_v46  ;;  %6535 = vmatprep.subr.bf16.mxu0 %v6534_v60  ;;  %v398_v46 = vld [vmem:[%s11537_s3 + $0x990] sm:$0xff]  ;;  %v399_v60 = vld [vmem:[%s11537_s3 + $0x998] sm:$0xff]  ;;  %v696_v12 = vcombine.high %v8698_v61, %v8698_v61 }
  0xaa   :  { %6567 = vmatprep.subr.bf16.mxu1 %v6566_v1  ;;  %v6586_v1 = vpack.c.bf16 %v367_v58, %v366_v57  ;;  %v6618_v5 = vpack.c.bf16 %v399_v60, %v398_v46  ;;  %v391_v58 = vld [vmem:[%s11537_s3 + $0x958] sm:$0xff]  ;;  %v376_v46 = vld [vmem:[%s11537_s3 + $0x8e0] sm:$0xff]  ;;  %v377_v60 = vld [vmem:[%s11537_s3 + $0x8e8] sm:$0xff] }
  0xac   :  { %6537 = vmatpush3.bf16.msra.mxu0 %v6536_v7  ;;  %v368_v7 = vld [vmem:[%s11537_s3 + $0x8a0] sm:$0xff] }
  0xad   :  { %6569 = vmatpush3.bf16.msra.mxu1 %v6568_v8  ;;  %6539 = vmatprep.subr.bf16.mxu0 %v6538_v9  ;;  %v369_v8 = vld [vmem:[%s11537_s3 + $0x8a8] sm:$0xff]  ;;  %v695_v9 = vcombine.high %v8689_v59, %v8689_v59 }
  0xae   :  { %6571 = vmatprep.subr.bf16.mxu1 %v6570_v14  ;;  %v6588_v14 = vpack.c.bf16 %v351_v3, %v350_v2  ;;  %v6590_v17 = vpack.c.bf16 %v369_v8, %v368_v7  ;;  %v6636_v2 = vpack.c.bf16 %v391_v58, %v390_v56  ;;  %v6606_v3 = vpack.c.bf16 %v377_v60, %v376_v46  ;;  %v393_v8 = vld [vmem:[%s11537_s3 + $0x968] sm:$0xff] }
  0xaf   :  { %v417_v60 = vld [vmem:[%s11537_s3 + $0xa28] sm:$0xff] }
  0xb0   :  { %6541 = vmatpush3.bf16.msra.mxu0 %v6540_v22  ;;  %v370_v22 = vld [vmem:[%s11537_s3 + $0x8b0] sm:$0xff] }
  0xb1   :  { %6573 = vmatpush3.bf16.msra.mxu1 %v6572_v23  ;;  %6543 = vmatprep.subr.bf16.mxu0 %v6542_v24  ;;  %v371_v23 = vld [vmem:[%s11537_s3 + $0x8b8] sm:$0xff]  ;;  %v402_v24 = vld [vmem:[%s11537_s3 + $0x9b0] sm:$0xff] }
  0xb2   :  { %6575 = vmatprep.subr.bf16.mxu1 %v6574_v28  ;;  %v6594_v28 = vpack.c.bf16 %v371_v23, %v370_v22  ;;  %v6626_v32 = vpack.c.bf16 %v403_v25, %v402_v24  ;;  %v395_v22 = vld [vmem:[%s11537_s3 + $0x978] sm:$0xff]  ;;  %v428_v23 = vld [vmem:[%s11537_s3 + $0xa80] sm:$0xff]  ;;  %v429_v24 = vld [vmem:[%s11537_s3 + $0xa88] sm:$0xff] }
  0xb3   :  { %v460_v25 = vld [vmem:[%s11537_s3 + $0xb80] sm:$0xff]  ;;  %v6646_v30 = vpack.c.bf16 %v429_v24, %v428_v23 }
  0xb4   :  { %6545 = vmatpush3.bf16.msra.mxu0 %v6544_v35  ;;  %v372_v35 = vld [vmem:[%s11537_s3 + $0x8c0] sm:$0xff] }
  0xb5   :  { %6577 = vmatpush3.bf16.msra.mxu1 %v6576_v37  ;;  %6547 = vmatprep.subr.bf16.mxu0 %v6546_v44  ;;  %v404_v37 = vld [vmem:[%s11537_s3 + $0x9c0] sm:$0xff]  ;;  %v405_v44 = vld [vmem:[%s11537_s3 + $0x9c8] sm:$0xff]  ;;  %v6598_v54 = vpack.c.bf16 %v373_v36, %v372_v35 }
  0xb6   :  { %6579 = vmatprep.subr.bf16.mxu1 %v6578_v40  ;;  %v356_v40 = vld [vmem:[%s11537_s3 + $0x840] sm:$0xff]  ;;  %v6630_v43 = vpack.c.bf16 %v405_v44, %v404_v37  ;;  %v445_v36 = vld [vmem:[%s11537_s3 + $0xb08] sm:$0xff]  ;;  %v430_v37 = vld [vmem:[%s11537_s3 + $0xa90] sm:$0xff] }
  0xb7   :  { %v431_v44 = vld [vmem:[%s11537_s3 + $0xa98] sm:$0xff]  ;;  %v6680_v42 = vpack.c.bf16 %v445_v36, %v444_v33  ;;  %v452_v23 = vld [vmem:[%s11537_s3 + $0xb40] sm:$0xff]  ;;  %v422_v33 = vld [vmem:[%s11537_s3 + $0xa50] sm:$0xff] }
  0xb8   :  { %6549 = vmatpush3.bf16.msra.mxu0 %v6548_v49  ;;  %v406_v49 = vld [vmem:[%s11537_s3 + $0x9d0] sm:$0xff] }
  0xb9   :  { %6581 = vmatpush3.bf16.msra.mxu1 %v6580_v50  ;;  %6583 = vmatprep.subr.bf16.mxu0 %v6582_v51  ;;  %v407_v50 = vld [vmem:[%s11537_s3 + $0x9d8] sm:$0xff]  ;;  %v6600_v51 = vpack.c.bf16 %v357_v41, %v356_v40  ;;  %v454_v36 = vld [vmem:[%s11537_s3 + $0xb50] sm:$0xff] }
  0xba   :  { %6615 = vmatprep.subr.bf16.mxu1 %v6614_v34  ;;  %v359_v34 = vld [vmem:[%s11537_s3 + $0x858] sm:$0xff]  ;;  %v6634_v57 = vpack.c.bf16 %v407_v50, %v406_v49 }
  0xbb   :  { %1265 = vmatmul.mubr.f32.vlgmr.msra.gmra.mrb[6].mxu0 %v8485_v16  ;;  %v352_v16 = vld [vmem:[%s11537_s3 + $0x820] sm:$0xff]  ;;  %v447_v50 = vld [vmem:[%s11537_s3 + $0xb18] sm:$0xff] }
  0xbc   :  { %1335 = vmatmul.mubr.f32.vlgmr.msra.gmra.mrb[6].mxu1 %v8494_v19  ;;  %6585 = vmatpush3.bf16.msra.mxu0 %v6584_v62  ;;  %v6622_v19 = vpack.c.bf16 %v401_v11, %v400_v10  ;;  %v6592_v26 = vpack.c.bf16 %v353_v18, %v352_v16  ;;  %v408_v62 = vld [vmem:[%s11537_s3 + $0x9e0] sm:$0xff]  ;;  %v379_v10 = vld [vmem:[%s11537_s3 + $0x8f8] sm:$0xff]  ;;  %v410_v11 = vld [vmem:[%s11537_s3 + $0x9f0] sm:$0xff]  ;;  %v6684_v58 = vpack.c.bf16 %v447_v50, %v446_v48 }
  0xbd   :  { %6617 = vmatpush3.bf16.msra.mxu1 %v6616_v63  ;;  %6587 = vmatprep.subr.bf16.mxu0 %v6586_v1  ;;  %v409_v63 = vld [vmem:[%s11537_s3 + $0x9e8] sm:$0xff]  ;;  %v6604_v1 = vpack.c.bf16 %v359_v34, %v358_v55  ;;  %v362_v18 = vld [vmem:[%s11537_s3 + $0x870] sm:$0xff]  ;;  %v464_v55 = vld [vmem:[%s11537_s3 + $0xba0] sm:$0xff] }
  0xbe   :  { %6619 = vmatprep.subr.bf16.mxu1 %v6618_v5  ;;  %1404 = vmatprep.mubr.f32.mxu0 %v695_v9  ;;  %v361_v5 = vld [vmem:[%s11537_s3 + $0x868] sm:$0xff]  ;;  %v6638_v7 = vpack.c.bf16 %v409_v63, %v408_v62  ;;  %v378_v9 = vld [vmem:[%s11537_s3 + $0x8f0] sm:$0xff]  ;;  %v448_v62 = vld [vmem:[%s11537_s3 + $0xb20] sm:$0xff] }
  0xbf   :  { %1474 = vmatprep.mubr.f32.mxu1 %v696_v12  ;;  %v411_v12 = vld [vmem:[%s11537_s3 + $0x9f8] sm:$0xff]  ;;  %v6610_v16 = vpack.c.bf16 %v379_v10, %v378_v9  ;;  %v465_v34 = vld [vmem:[%s11537_s3 + $0xba8] sm:$0xff]  ;;  %v450_v10 = vld [vmem:[%s11537_s3 + $0xb30] sm:$0xff] }
  0xc0   :  { %6589 = vmatpush3.bf16.msra.mxu0 %v6588_v14  ;;  %v6608_v14 = vpack.c.bf16 %v361_v5, %v360_v4  ;;  %v6642_v21 = vpack.c.bf16 %v411_v12, %v410_v11  ;;  %v449_v63 = vld [vmem:[%s11537_s3 + $0xb28] sm:$0xff]  ;;  %v467_v4 = vld [vmem:[%s11537_s3 + $0xbb8] sm:$0xff]  ;;  %v424_v48 = vld [vmem:[%s11537_s3 + $0xa60] sm:$0xff] }
  0xc1   :  { %6621 = vmatpush3.bf16.msra.mxu1 %v6620_v15  ;;  %6591 = vmatprep.subr.bf16.mxu0 %v6590_v17  ;;  %v85_v15 = vld [vmem:[#allocation2 + $0x28] sm:$0xff]  ;;  %v6640_v17 = vpack.c.bf16 %v393_v8, %v392_v6  ;;  %v6688_v6 = vpack.c.bf16 %v449_v63, %v448_v62  ;;  %v418_v8 = vld [vmem:[%s11537_s3 + $0xa30] sm:$0xff]  ;;  %v419_v9 = vld [vmem:[%s11537_s3 + $0xa38] sm:$0xff] }
  0xc2   :  { %6623 = vmatprep.subr.bf16.mxu1 %v6622_v19  ;;  %v394_v19 = vld [vmem:[%s11537_s3 + $0x970] sm:$0xff]  ;;  %v451_v12 = vld [vmem:[%s11537_s3 + $0xb38] sm:$0xff]  ;;  %v456_v50 = vld [vmem:[%s11537_s3 + $0xb60] sm:$0xff] }
  0xc3   :  { %v6644_v29 = vpack.c.bf16 %v395_v22, %v394_v19  ;;  %v421_v22 = vld [vmem:[%s11537_s3 + $0xa48] sm:$0xff]  ;;  %v427_v62 = vld [vmem:[%s11537_s3 + $0xa78] sm:$0xff] }
  0xc4   :  { %6593 = vmatpush3.bf16.msra.mxu0 %v6592_v26  ;;  %v461_v26 = vld [vmem:[%s11537_s3 + $0xb88] sm:$0xff] }
  0xc5   :  { %6625 = vmatpush3.bf16.msra.mxu1 %v6624_v27  ;;  %6595 = vmatprep.subr.bf16.mxu0 %v6594_v28  ;;  %v697_v27 = vcombine.high %v85_v15, %v85_v15  ;;  %v6612_v28 = vpack.c.bf16 %v363_v20, %v362_v18  ;;  %v6678_v35 = vpack.c.bf16 %v461_v26, %v460_v25  ;;  %v453_v25 = vld [vmem:[%s11537_s3 + $0xb48] sm:$0xff]  ;;  %v438_v26 = vld [vmem:[%s11537_s3 + $0xad0] sm:$0xff] }
  0xc6   :  { %6627 = vmatprep.subr.bf16.mxu1 %v6626_v32  ;;  %v413_v32 = vld [vmem:[%s11537_s3 + $0xa08] sm:$0xff]  ;;  %v6660_v18 = vpack.c.bf16 %v419_v9, %v418_v8  ;;  %v6692_v20 = vpack.c.bf16 %v451_v12, %v450_v10  ;;  %v476_v10 = vld [vmem:[%s11537_s3 + $0xc00] sm:$0xff] }
  0xc7   :  { %v8902_v40 = vrot.slane %v697_v27, %v8002_v13  ;;  %v6648_v41 = vpack.c.bf16 %v413_v32, %v412_v31  ;;  %v439_v27 = vld [vmem:[%s11537_s3 + $0xad8] sm:$0xff]  ;;  %v6696_v31 = vpack.c.bf16 %v453_v25, %v452_v23  ;;  %v508_v12 = vld [vmem:[%s11537_s3 + $0xd00] sm:$0xff]  ;;  %v478_v25 = vld [vmem:[%s11537_s3 + $0xc10] sm:$0xff] }
  0xc8   :  { %6597 = vmatpush3.bf16.msra.mxu0 %v6596_v38  ;;  %v8893_v38 = vrot.slane %v85_v15, %v8002_v13  ;;  %v437_v15 = vld [vmem:[%s11537_s3 + $0xac8] sm:$0xff]  ;;  %v6666_v32 = vpack.c.bf16 %v439_v27, %v438_v26  ;;  %v479_v26 = vld [vmem:[%s11537_s3 + $0xc18] sm:$0xff]  ;;  %v510_v27 = vld [vmem:[%s11537_s3 + $0xd10] sm:$0xff] }
  0xc9   :  { %6629 = vmatpush3.bf16.msra.mxu1 %v6628_v39  ;;  %6599 = vmatprep.subr.bf16.mxu0 %v6598_v54  ;;  %v462_v39 = vld [vmem:[%s11537_s3 + $0xb90] sm:$0xff]  ;;  %v463_v54 = vld [vmem:[%s11537_s3 + $0xb98] sm:$0xff]  ;;  %v713_v56 = vcombine.high %v8902_v40, %v8902_v40 }
  0xca   :  { %6631 = vmatprep.subr.bf16.mxu1 %v6630_v43  ;;  %v6650_v43 = vpack.c.bf16 %v431_v44, %v430_v37  ;;  %v6682_v49 = vpack.c.bf16 %v463_v54, %v462_v39  ;;  %v455_v44 = vld [vmem:[%s11537_s3 + $0xb58] sm:$0xff]  ;;  %v440_v39 = vld [vmem:[%s11537_s3 + $0xae0] sm:$0xff]  ;;  %v441_v54 = vld [vmem:[%s11537_s3 + $0xae8] sm:$0xff] }
  0xcc   :  { %6601 = vmatpush3.bf16.msra.mxu0 %v6600_v51  ;;  %v432_v51 = vld [vmem:[%s11537_s3 + $0xaa0] sm:$0xff] }
  0xcd   :  { %6633 = vmatpush3.bf16.msra.mxu1 %v6632_v52  ;;  %6603 = vmatprep.subr.bf16.mxu0 %v6602_v53  ;;  %v433_v52 = vld [vmem:[%s11537_s3 + $0xaa8] sm:$0xff]  ;;  %v712_v53 = vcombine.high %v8893_v38, %v8893_v38 }
  0xce   :  { %6635 = vmatprep.subr.bf16.mxu1 %v6634_v57  ;;  %v6652_v57 = vpack.c.bf16 %v415_v47, %v414_v45  ;;  %v6654_v46 = vpack.c.bf16 %v433_v52, %v432_v51  ;;  %v6700_v45 = vpack.c.bf16 %v455_v44, %v454_v36  ;;  %v6670_v47 = vpack.c.bf16 %v441_v54, %v440_v39  ;;  %v457_v52 = vld [vmem:[%s11537_s3 + $0xb68] sm:$0xff] }
  0xcf   :  { %v481_v54 = vld [vmem:[%s11537_s3 + $0xc28] sm:$0xff] }
  0xd0   :  { %6605 = vmatpush3.bf16.msra.mxu0 %v6604_v1  ;;  %v434_v1 = vld [vmem:[%s11537_s3 + $0xab0] sm:$0xff] }
  0xd1   :  { %6637 = vmatpush3.bf16.msra.mxu1 %v6636_v2  ;;  %6607 = vmatprep.subr.bf16.mxu0 %v6606_v3  ;;  %v435_v2 = vld [vmem:[%s11537_s3 + $0xab8] sm:$0xff]  ;;  %v466_v3 = vld [vmem:[%s11537_s3 + $0xbb0] sm:$0xff] }
  0xd2   :  { %6639 = vmatprep.subr.bf16.mxu1 %v6638_v7  ;;  %v6658_v7 = vpack.c.bf16 %v435_v2, %v434_v1  ;;  %v6690_v11 = vpack.c.bf16 %v467_v4, %v466_v3  ;;  %v459_v1 = vld [vmem:[%s11537_s3 + $0xb78] sm:$0xff]  ;;  %v492_v2 = vld [vmem:[%s11537_s3 + $0xc80] sm:$0xff]  ;;  %v493_v3 = vld [vmem:[%s11537_s3 + $0xc88] sm:$0xff] }
  0xd3   :  { %v524_v4 = vld [vmem:[%s11537_s3 + $0xd80] sm:$0xff]  ;;  %v6710_v9 = vpack.c.bf16 %v493_v3, %v492_v2 }
  0xd4   :  { %6609 = vmatpush3.bf16.msra.mxu0 %v6608_v14  ;;  %v436_v14 = vld [vmem:[%s11537_s3 + $0xac0] sm:$0xff] }
  0xd5   :  { %6641 = vmatpush3.bf16.msra.mxu1 %v6640_v17  ;;  %6611 = vmatprep.subr.bf16.mxu0 %v6610_v16  ;;  %v468_v17 = vld [vmem:[%s11537_s3 + $0xbc0] sm:$0xff]  ;;  %v469_v16 = vld [vmem:[%s11537_s3 + $0xbc8] sm:$0xff]  ;;  %v6662_v19 = vpack.c.bf16 %v437_v15, %v436_v14 }
  0xd6   :  { %6643 = vmatprep.subr.bf16.mxu1 %v6642_v21  ;;  %v420_v21 = vld [vmem:[%s11537_s3 + $0xa40] sm:$0xff]  ;;  %v6694_v24 = vpack.c.bf16 %v469_v16, %v468_v17  ;;  %v509_v15 = vld [vmem:[%s11537_s3 + $0xd08] sm:$0xff]  ;;  %v494_v17 = vld [vmem:[%s11537_s3 + $0xc90] sm:$0xff] }
  0xd7   :  { %v495_v16 = vld [vmem:[%s11537_s3 + $0xc98] sm:$0xff]  ;;  %v6744_v23 = vpack.c.bf16 %v509_v15, %v508_v12  ;;  %v516_v2 = vld [vmem:[%s11537_s3 + $0xd40] sm:$0xff]  ;;  %v486_v12 = vld [vmem:[%s11537_s3 + $0xc50] sm:$0xff] }
  0xd8   :  { %6613 = vmatpush3.bf16.msra.mxu0 %v6612_v28  ;;  %v470_v28 = vld [vmem:[%s11537_s3 + $0xbd0] sm:$0xff] }
  0xd9   :  { %6645 = vmatpush3.bf16.msra.mxu1 %v6644_v29  ;;  %6647 = vmatprep.subr.bf16.mxu0 %v6646_v30  ;;  %v471_v29 = vld [vmem:[%s11537_s3 + $0xbd8] sm:$0xff]  ;;  %v6664_v30 = vpack.c.bf16 %v421_v22, %v420_v21  ;;  %v518_v15 = vld [vmem:[%s11537_s3 + $0xd50] sm:$0xff] }
  0xda   :  { %6679 = vmatprep.subr.bf16.mxu1 %v6678_v35  ;;  %v423_v35 = vld [vmem:[%s11537_s3 + $0xa58] sm:$0xff]  ;;  %v6698_v37 = vpack.c.bf16 %v471_v29, %v470_v28 }
  0xdb   :  { %1405 = vmatmul.mubr.f32.vlgmr.msra.gmra.mrb[8].mxu0 %v8689_v59  ;;  %v416_v59 = vld [vmem:[%s11537_s3 + $0xa20] sm:$0xff]  ;;  %v511_v29 = vld [vmem:[%s11537_s3 + $0xd18] sm:$0xff] }
  0xdc   :  { %1475 = vmatmul.mubr.f32.vlgmr.msra.gmra.mrb[8].mxu1 %v8698_v61  ;;  %6649 = vmatpush3.bf16.msra.mxu0 %v6648_v41  ;;  %v6686_v61 = vpack.c.bf16 %v465_v34, %v464_v55  ;;  %v6656_v5 = vpack.c.bf16 %v417_v60, %v416_v59  ;;  %v472_v41 = vld [vmem:[%s11537_s3 + $0xbe0] sm:$0xff]  ;;  %v443_v55 = vld [vmem:[%s11537_s3 + $0xaf8] sm:$0xff]  ;;  %v474_v34 = vld [vmem:[%s11537_s3 + $0xbf0] sm:$0xff]  ;;  %v6748_v44 = vpack.c.bf16 %v511_v29, %v510_v27 }
  0xdd   :  { %6681 = vmatpush3.bf16.msra.mxu1 %v6680_v42  ;;  %6651 = vmatprep.subr.bf16.mxu0 %v6650_v43  ;;  %v473_v42 = vld [vmem:[%s11537_s3 + $0xbe8] sm:$0xff]  ;;  %v6668_v43 = vpack.c.bf16 %v423_v35, %v422_v33  ;;  %v426_v60 = vld [vmem:[%s11537_s3 + $0xa70] sm:$0xff]  ;;  %v528_v33 = vld [vmem:[%s11537_s3 + $0xda0] sm:$0xff] }
  0xde   :  { %6683 = vmatprep.subr.bf16.mxu1 %v6682_v49  ;;  %1544 = vmatprep.mubr.f32.mxu0 %v712_v53  ;;  %v425_v49 = vld [vmem:[%s11537_s3 + $0xa68] sm:$0xff]  ;;  %v6702_v51 = vpack.c.bf16 %v473_v42, %v472_v41  ;;  %v442_v53 = vld [vmem:[%s11537_s3 + $0xaf0] sm:$0xff]  ;;  %v512_v41 = vld [vmem:[%s11537_s3 + $0xd20] sm:$0xff] }
  0xdf   :  { %1614 = vmatprep.mubr.f32.mxu1 %v713_v56  ;;  %v475_v56 = vld [vmem:[%s11537_s3 + $0xbf8] sm:$0xff]  ;;  %v6674_v59 = vpack.c.bf16 %v443_v55, %v442_v53  ;;  %v529_v35 = vld [vmem:[%s11537_s3 + $0xda8] sm:$0xff]  ;;  %v514_v55 = vld [vmem:[%s11537_s3 + $0xd30] sm:$0xff] }
  0xe0   :  { %6653 = vmatpush3.bf16.msra.mxu0 %v6652_v57  ;;  %v6672_v57 = vpack.c.bf16 %v425_v49, %v424_v48  ;;  %v6706_v63 = vpack.c.bf16 %v475_v56, %v474_v34  ;;  %v513_v42 = vld [vmem:[%s11537_s3 + $0xd28] sm:$0xff]  ;;  %v531_v48 = vld [vmem:[%s11537_s3 + $0xdb8] sm:$0xff]  ;;  %v488_v27 = vld [vmem:[%s11537_s3 + $0xc60] sm:$0xff] }
  0xe1   :  { %6685 = vmatpush3.bf16.msra.mxu1 %v6684_v58  ;;  %6655 = vmatprep.subr.bf16.mxu0 %v6654_v46  ;;  %v86_v58 = vld [vmem:[#allocation2 + $0x30] sm:$0xff]  ;;  %v6704_v46 = vpack.c.bf16 %v457_v52, %v456_v50  ;;  %v6752_v50 = vpack.c.bf16 %v513_v42, %v512_v41  ;;  %v483_v53 = vld [vmem:[%s11537_s3 + $0xc38] sm:$0xff]  ;;  %v520_v29 = vld [vmem:[%s11537_s3 + $0xd60] sm:$0xff] }
  0xe2   :  { %6687 = vmatprep.subr.bf16.mxu1 %v6686_v61  ;;  %v458_v61 = vld [vmem:[%s11537_s3 + $0xb70] sm:$0xff]  ;;  %v515_v56 = vld [vmem:[%s11537_s3 + $0xd38] sm:$0xff] }
  0xe3   :  { %v6708_v8 = vpack.c.bf16 %v459_v1, %v458_v61  ;;  %v482_v52 = vld [vmem:[%s11537_s3 + $0xc30] sm:$0xff]  ;;  %v485_v1 = vld [vmem:[%s11537_s3 + $0xc48] sm:$0xff]  ;;  %v491_v41 = vld [vmem:[%s11537_s3 + $0xc78] sm:$0xff] }
  0xe4   :  { %6657 = vmatpush3.bf16.msra.mxu0 %v6656_v5  ;;  %v525_v5 = vld [vmem:[%s11537_s3 + $0xd88] sm:$0xff] }
  0xe5   :  { %6689 = vmatpush3.bf16.msra.mxu1 %v6688_v6  ;;  %6659 = vmatprep.subr.bf16.mxu0 %v6658_v7  ;;  %v714_v6 = vcombine.high %v86_v58, %v86_v58  ;;  %v6676_v7 = vpack.c.bf16 %v427_v62, %v426_v60  ;;  %v6742_v14 = vpack.c.bf16 %v525_v5, %v524_v4  ;;  %v517_v4 = vld [vmem:[%s11537_s3 + $0xd48] sm:$0xff]  ;;  %v502_v5 = vld [vmem:[%s11537_s3 + $0xcd0] sm:$0xff] }
  0xe6   :  { %6691 = vmatprep.subr.bf16.mxu1 %v6690_v11  ;;  %v477_v11 = vld [vmem:[%s11537_s3 + $0xc08] sm:$0xff]  ;;  %v6724_v60 = vpack.c.bf16 %v483_v53, %v482_v52  ;;  %v6756_v62 = vpack.c.bf16 %v515_v56, %v514_v55  ;;  %v540_v55 = vld [vmem:[%s11537_s3 + $0xe00] sm:$0xff] }
  0xe7   :  { %v9106_v21 = vrot.slane %v714_v6, %v8002_v13  ;;  %v6712_v22 = vpack.c.bf16 %v477_v11, %v476_v10  ;;  %v503_v6 = vld [vmem:[%s11537_s3 + $0xcd8] sm:$0xff]  ;;  %v6760_v10 = vpack.c.bf16 %v517_v4, %v516_v2  ;;  %v572_v56 = vld [vmem:[%s11537_s3 + $0xf00] sm:$0xff]  ;;  %v542_v4 = vld [vmem:[%s11537_s3 + $0xe10] sm:$0xff] }
  0xe8   :  { %6661 = vmatpush3.bf16.msra.mxu0 %v6660_v18  ;;  %v9097_v18 = vrot.slane %v86_v58, %v8002_v13  ;;  %v501_v58 = vld [vmem:[%s11537_s3 + $0xcc8] sm:$0xff]  ;;  %v6730_v11 = vpack.c.bf16 %v503_v6, %v502_v5  ;;  %v543_v5 = vld [vmem:[%s11537_s3 + $0xe18] sm:$0xff]  ;;  %v574_v6 = vld [vmem:[%s11537_s3 + $0xf10] sm:$0xff] }
  0xe9   :  { %6693 = vmatpush3.bf16.msra.mxu1 %v6692_v20  ;;  %6663 = vmatprep.subr.bf16.mxu0 %v6662_v19  ;;  %v526_v20 = vld [vmem:[%s11537_s3 + $0xd90] sm:$0xff]  ;;  %v527_v19 = vld [vmem:[%s11537_s3 + $0xd98] sm:$0xff]  ;;  %v730_v36 = vcombine.high %v9106_v21, %v9106_v21 }
  0xea   :  { %6695 = vmatprep.subr.bf16.mxu1 %v6694_v24  ;;  %v6714_v24 = vpack.c.bf16 %v495_v16, %v494_v17  ;;  %v6746_v28 = vpack.c.bf16 %v527_v19, %v526_v20  ;;  %v519_v16 = vld [vmem:[%s11537_s3 + $0xd58] sm:$0xff]  ;;  %v504_v20 = vld [vmem:[%s11537_s3 + $0xce0] sm:$0xff]  ;;  %v505_v19 = vld [vmem:[%s11537_s3 + $0xce8] sm:$0xff] }
  0xec   :  { %6665 = vmatpush3.bf16.msra.mxu0 %v6664_v30  ;;  %v496_v30 = vld [vmem:[%s11537_s3 + $0xca0] sm:$0xff] }
  0xed   :  { %6697 = vmatpush3.bf16.msra.mxu1 %v6696_v31  ;;  %6667 = vmatprep.subr.bf16.mxu0 %v6666_v32  ;;  %v497_v31 = vld [vmem:[%s11537_s3 + $0xca8] sm:$0xff]  ;;  %v729_v32 = vcombine.high %v9097_v18, %v9097_v18 }
  0xee   :  { %6699 = vmatprep.subr.bf16.mxu1 %v6698_v37  ;;  %v6716_v37 = vpack.c.bf16 %v479_v26, %v478_v25  ;;  %v6718_v39 = vpack.c.bf16 %v497_v31, %v496_v30  ;;  %v6764_v25 = vpack.c.bf16 %v519_v16, %v518_v15  ;;  %v6734_v26 = vpack.c.bf16 %v505_v19, %v504_v20  ;;  %v521_v31 = vld [vmem:[%s11537_s3 + $0xd68] sm:$0xff] }
  0xef   :  { %v545_v19 = vld [vmem:[%s11537_s3 + $0xe28] sm:$0xff] }
  0xf0   :  { %6669 = vmatpush3.bf16.msra.mxu0 %v6668_v43  ;;  %v498_v43 = vld [vmem:[%s11537_s3 + $0xcb0] sm:$0xff] }
  0xf1   :  { %6701 = vmatpush3.bf16.msra.mxu1 %v6700_v45  ;;  %6671 = vmatprep.subr.bf16.mxu0 %v6670_v47  ;;  %v499_v45 = vld [vmem:[%s11537_s3 + $0xcb8] sm:$0xff]  ;;  %v530_v47 = vld [vmem:[%s11537_s3 + $0xdb0] sm:$0xff] }
  0xf2   :  { %6703 = vmatprep.subr.bf16.mxu1 %v6702_v51  ;;  %v6722_v51 = vpack.c.bf16 %v499_v45, %v498_v43  ;;  %v6754_v34 = vpack.c.bf16 %v531_v48, %v530_v47  ;;  %v523_v43 = vld [vmem:[%s11537_s3 + $0xd78] sm:$0xff]  ;;  %v556_v45 = vld [vmem:[%s11537_s3 + $0xe80] sm:$0xff]  ;;  %v557_v47 = vld [vmem:[%s11537_s3 + $0xe88] sm:$0xff] }
  0xf3   :  { %v588_v48 = vld [vmem:[%s11537_s3 + $0xf80] sm:$0xff]  ;;  %v6774_v53 = vpack.c.bf16 %v557_v47, %v556_v45 }
  0xf4   :  { %6673 = vmatpush3.bf16.msra.mxu0 %v6672_v57  ;;  %v500_v57 = vld [vmem:[%s11537_s3 + $0xcc0] sm:$0xff] }
  0xf5   :  { %6705 = vmatpush3.bf16.msra.mxu1 %v6704_v46  ;;  %6675 = vmatprep.subr.bf16.mxu0 %v6674_v59  ;;  %v532_v46 = vld [vmem:[%s11537_s3 + $0xdc0] sm:$0xff]  ;;  %v533_v59 = vld [vmem:[%s11537_s3 + $0xdc8] sm:$0xff]  ;;  %v6726_v61 = vpack.c.bf16 %v501_v58, %v500_v57 }
  0xf6   :  { %6707 = vmatprep.subr.bf16.mxu1 %v6706_v63  ;;  %v484_v63 = vld [vmem:[%s11537_s3 + $0xc40] sm:$0xff]  ;;  %v6758_v3 = vpack.c.bf16 %v533_v59, %v532_v46  ;;  %v573_v58 = vld [vmem:[%s11537_s3 + $0xf08] sm:$0xff]  ;;  %v558_v46 = vld [vmem:[%s11537_s3 + $0xe90] sm:$0xff] }
  0xf7   :  { %v559_v59 = vld [vmem:[%s11537_s3 + $0xe98] sm:$0xff]  ;;  %v6808_v2 = vpack.c.bf16 %v573_v58, %v572_v56  ;;  %v580_v45 = vld [vmem:[%s11537_s3 + $0xf40] sm:$0xff]  ;;  %v550_v56 = vld [vmem:[%s11537_s3 + $0xe50] sm:$0xff] }
  0xf8   :  { %6677 = vmatpush3.bf16.msra.mxu0 %v6676_v7  ;;  %v534_v7 = vld [vmem:[%s11537_s3 + $0xdd0] sm:$0xff] }
  0xf9   :  { %6709 = vmatpush3.bf16.msra.mxu1 %v6708_v8  ;;  %6711 = vmatprep.subr.bf16.mxu0 %v6710_v9  ;;  %v535_v8 = vld [vmem:[%s11537_s3 + $0xdd8] sm:$0xff]  ;;  %v6728_v9 = vpack.c.bf16 %v485_v1, %v484_v63  ;;  %v582_v58 = vld [vmem:[%s11537_s3 + $0xf50] sm:$0xff] }
  0xfa   :  { %6743 = vmatprep.subr.bf16.mxu1 %v6742_v14  ;;  %v487_v14 = vld [vmem:[%s11537_s3 + $0xc58] sm:$0xff]  ;;  %v6762_v17 = vpack.c.bf16 %v535_v8, %v534_v7 }
  0xfb   :  { %1545 = vmatmul.mubr.f32.vlgmr.msra.gmra.mrb[10].mxu0 %v8893_v38  ;;  %v480_v38 = vld [vmem:[%s11537_s3 + $0xc20] sm:$0xff]  ;;  %v575_v8 = vld [vmem:[%s11537_s3 + $0xf18] sm:$0xff] }
  0xfc   :  { %1615 = vmatmul.mubr.f32.vlgmr.msra.gmra.mrb[10].mxu1 %v8902_v40  ;;  %6713 = vmatpush3.bf16.msra.mxu0 %v6712_v22  ;;  %v6750_v40 = vpack.c.bf16 %v529_v35, %v528_v33  ;;  %v6720_v49 = vpack.c.bf16 %v481_v54, %v480_v38  ;;  %v536_v22 = vld [vmem:[%s11537_s3 + $0xde0] sm:$0xff]  ;;  %v507_v33 = vld [vmem:[%s11537_s3 + $0xcf8] sm:$0xff]  ;;  %v538_v35 = vld [vmem:[%s11537_s3 + $0xdf0] sm:$0xff]  ;;  %v6812_v16 = vpack.c.bf16 %v575_v8, %v574_v6 }
  0xfd   :  { %6745 = vmatpush3.bf16.msra.mxu1 %v6744_v23  ;;  %6715 = vmatprep.subr.bf16.mxu0 %v6714_v24  ;;  %v537_v23 = vld [vmem:[%s11537_s3 + $0xde8] sm:$0xff]  ;;  %v6732_v24 = vpack.c.bf16 %v487_v14, %v486_v12  ;;  %v490_v54 = vld [vmem:[%s11537_s3 + $0xc70] sm:$0xff]  ;;  %v592_v12 = vld [vmem:[%s11537_s3 + $0xfa0] sm:$0xff] }
  0xfe   :  { %6747 = vmatprep.subr.bf16.mxu1 %v6746_v28  ;;  %1684 = vmatprep.mubr.f32.mxu0 %v729_v32  ;;  %v489_v28 = vld [vmem:[%s11537_s3 + $0xc68] sm:$0xff]  ;;  %v6766_v30 = vpack.c.bf16 %v537_v23, %v536_v22  ;;  %v506_v32 = vld [vmem:[%s11537_s3 + $0xcf0] sm:$0xff]  ;;  %v576_v22 = vld [vmem:[%s11537_s3 + $0xf20] sm:$0xff] }
  0xff   :  { %1754 = vmatprep.mubr.f32.mxu1 %v730_v36  ;;  %v539_v36 = vld [vmem:[%s11537_s3 + $0xdf8] sm:$0xff]  ;;  %v6738_v38 = vpack.c.bf16 %v507_v33, %v506_v32  ;;  %v593_v14 = vld [vmem:[%s11537_s3 + $0xfa8] sm:$0xff]  ;;  %v578_v33 = vld [vmem:[%s11537_s3 + $0xf30] sm:$0xff] }
 0x100   :  { %6717 = vmatpush3.bf16.msra.mxu0 %v6716_v37  ;;  %v6736_v37 = vpack.c.bf16 %v489_v28, %v488_v27  ;;  %v6770_v42 = vpack.c.bf16 %v539_v36, %v538_v35  ;;  %v577_v23 = vld [vmem:[%s11537_s3 + $0xf28] sm:$0xff]  ;;  %v595_v27 = vld [vmem:[%s11537_s3 + $0xfb8] sm:$0xff]  ;;  %v552_v6 = vld [vmem:[%s11537_s3 + $0xe60] sm:$0xff] }
 0x101   :  { %6749 = vmatpush3.bf16.msra.mxu1 %v6748_v44  ;;  %6719 = vmatprep.subr.bf16.mxu0 %v6718_v39  ;;  %v87_v44 = vld [vmem:[#allocation2 + $0x38] sm:$0xff]  ;;  %v6768_v39 = vpack.c.bf16 %v521_v31, %v520_v29  ;;  %v6816_v29 = vpack.c.bf16 %v577_v23, %v576_v22  ;;  %v546_v31 = vld [vmem:[%s11537_s3 + $0xe30] sm:$0xff]  ;;  %v584_v8 = vld [vmem:[%s11537_s3 + $0xf60] sm:$0xff] }
 0x102   :  { %6751 = vmatprep.subr.bf16.mxu1 %v6750_v40  ;;  %v522_v40 = vld [vmem:[%s11537_s3 + $0xd70] sm:$0xff]  ;;  %v547_v32 = vld [vmem:[%s11537_s3 + $0xe38] sm:$0xff] }
 0x103   :  { %v6772_v52 = vpack.c.bf16 %v523_v43, %v522_v40  ;;  %v579_v36 = vld [vmem:[%s11537_s3 + $0xf38] sm:$0xff]  ;;  %v549_v43 = vld [vmem:[%s11537_s3 + $0xe48] sm:$0xff] }
 0x104   :  { %6721 = vmatpush3.bf16.msra.mxu0 %v6720_v49  ;;  %v589_v49 = vld [vmem:[%s11537_s3 + $0xf88] sm:$0xff] }
 0x105   :  { %6753 = vmatpush3.bf16.msra.mxu1 %v6752_v50  ;;  %6723 = vmatprep.subr.bf16.mxu0 %v6722_v51  ;;  %v731_v50 = vcombine.high %v87_v44, %v87_v44  ;;  %v6740_v51 = vpack.c.bf16 %v491_v41, %v490_v54  ;;  %v6806_v57 = vpack.c.bf16 %v589_v49, %v588_v48  ;;  %v581_v48 = vld [vmem:[%s11537_s3 + $0xf48] sm:$0xff]  ;;  %v566_v49 = vld [vmem:[%s11537_s3 + $0xed0] sm:$0xff] }
 0x106   :  { %6755 = vmatprep.subr.bf16.mxu1 %v6754_v34  ;;  %v541_v34 = vld [vmem:[%s11537_s3 + $0xe08] sm:$0xff]  ;;  %v6788_v54 = vpack.c.bf16 %v547_v32, %v546_v31  ;;  %v6820_v41 = vpack.c.bf16 %v579_v36, %v578_v33  ;;  %v1916_v31 = vld [vmem:[%s11539_s5 + $0x80] sm:$0xff] }
 0x107   :  { %v9310_v63 = vrot.slane %v731_v50, %v8002_v13  ;;  %v6776_v1 = vpack.c.bf16 %v541_v34, %v540_v55  ;;  %v567_v50 = vld [vmem:[%s11537_s3 + $0xed8] sm:$0xff]  ;;  %v6824_v55 = vpack.c.bf16 %v581_v48, %v580_v45  ;;  %v1917_v32 = vld [vmem:[%s11539_s5 + $0x88] sm:$0xff]  ;;  %v1918_v45 = vld [vmem:[%s11539_s5 + $0x90] sm:$0xff] }
 0x108   :  { %6725 = vmatpush3.bf16.msra.mxu0 %v6724_v60  ;;  %v9301_v60 = vrot.slane %v87_v44, %v8002_v13  ;;  %v565_v44 = vld [vmem:[%s11537_s3 + $0xec8] sm:$0xff]  ;;  %v6794_v34 = vpack.c.bf16 %v567_v50, %v566_v49  ;;  %v1950_v49 = vld [vmem:[%s11539_s5 + $0x190] sm:$0xff]  ;;  %v1951_v50 = vld [vmem:[%s11539_s5 + $0x198] sm:$0xff] }
 0x109   :  { %6757 = vmatpush3.bf16.msra.mxu1 %v6756_v62  ;;  %6727 = vmatprep.subr.bf16.mxu0 %v6726_v61  ;;  %v590_v62 = vld [vmem:[%s11537_s3 + $0xf90] sm:$0xff]  ;;  %v591_v61 = vld [vmem:[%s11537_s3 + $0xf98] sm:$0xff]  ;;  %v747_v15 = vcombine.high %v9310_v63, %v9310_v63  ;;  %v1949_v36 = vld [vmem:[%s11539_s5 + $0x188] sm:$0xff] }
 0x10a   :  { %6759 = vmatprep.subr.bf16.mxu1 %v6758_v3  ;;  %v6778_v3 = vpack.c.bf16 %v559_v59, %v558_v46  ;;  %v6810_v7 = vpack.c.bf16 %v591_v61, %v590_v62  ;;  %v583_v59 = vld [vmem:[%s11537_s3 + $0xf58] sm:$0xff]  ;;  %v568_v62 = vld [vmem:[%s11537_s3 + $0xee0] sm:$0xff]  ;;  %v569_v61 = vld [vmem:[%s11537_s3 + $0xee8] sm:$0xff] }
 0x10c   :  { %6729 = vmatpush3.bf16.msra.mxu0 %v6728_v9  ;;  %v560_v9 = vld [vmem:[%s11537_s3 + $0xea0] sm:$0xff] }
 0x10d   :  { %6761 = vmatpush3.bf16.msra.mxu1 %v6760_v10  ;;  %6731 = vmatprep.subr.bf16.mxu0 %v6730_v11  ;;  %v561_v10 = vld [vmem:[%s11537_s3 + $0xea8] sm:$0xff]  ;;  %v746_v11 = vcombine.high %v9301_v60, %v9301_v60 }
 0x10e   :  { %6763 = vmatprep.subr.bf16.mxu1 %v6762_v17  ;;  %v6780_v17 = vpack.c.bf16 %v543_v5, %v542_v4  ;;  %v6782_v20 = vpack.c.bf16 %v561_v10, %v560_v9  ;;  %v6828_v4 = vpack.c.bf16 %v583_v59, %v582_v58  ;;  %v6798_v5 = vpack.c.bf16 %v569_v61, %v568_v62  ;;  %v1920_v59 = vld [vmem:[%s11539_s5 + $0xa0] sm:$0xff]  ;;  %v1921_v62 = vld [vmem:[%s11539_s5 + $0xa8] sm:$0xff] }
 0x10f   :  { %v9539_v58 = vpack.c.bf16 %v1951_v50, %v1950_v49  ;;  %v1942_v49 = vld [vmem:[%s11539_s5 + $0x150] sm:$0xff] }
 0x110   :  { %6733 = vmatpush3.bf16.msra.mxu0 %v6732_v24  ;;  %v562_v24 = vld [vmem:[%s11537_s3 + $0xeb0] sm:$0xff] }
 0x111   :  { %6765 = vmatpush3.bf16.msra.mxu1 %v6764_v25  ;;  %6735 = vmatprep.subr.bf16.mxu0 %v6734_v26  ;;  %v563_v25 = vld [vmem:[%s11537_s3 + $0xeb8] sm:$0xff]  ;;  %v594_v26 = vld [vmem:[%s11537_s3 + $0xfb0] sm:$0xff] }
 0x112   :  { %6767 = vmatprep.subr.bf16.mxu1 %v6766_v30  ;;  %v6786_v30 = vpack.c.bf16 %v563_v25, %v562_v24  ;;  %v6818_v35 = vpack.c.bf16 %v595_v27, %v594_v26  ;;  %v554_v26 = vld [vmem:[%s11537_s3 + $0xe70] sm:$0xff]  ;;  %v555_v27 = vld [vmem:[%s11537_s3 + $0xe78] sm:$0xff] }
 0x114   :  { %6737 = vmatpush3.bf16.msra.mxu0 %v6736_v37  ;;  %v564_v37 = vld [vmem:[%s11537_s3 + $0xec0] sm:$0xff] }
 0x115   :  { %6769 = vmatpush3.bf16.msra.mxu1 %v6768_v39  ;;  %6739 = vmatprep.subr.bf16.mxu0 %v6738_v38  ;;  %v596_v39 = vld [vmem:[%s11537_s3 + $0xfc0] sm:$0xff]  ;;  %v597_v38 = vld [vmem:[%s11537_s3 + $0xfc8] sm:$0xff]  ;;  %v6790_v40 = vpack.c.bf16 %v565_v44, %v564_v37  ;;  %v6804_v44 = vpack.c.bf16 %v555_v27, %v554_v26 }
 0x116   :  { %6771 = vmatprep.subr.bf16.mxu1 %v6770_v42  ;;  %v548_v42 = vld [vmem:[%s11537_s3 + $0xe40] sm:$0xff]  ;;  %v6822_v47 = vpack.c.bf16 %v597_v38, %v596_v39  ;;  %v9488_v38 = vpack.c.bf16 %v1917_v32, %v1916_v31  ;;  %v1957_v26 = vld [vmem:[%s11539_s5 + $0x1c8] sm:$0xff] }
 0x117   :  { %v1909_v31 = vld [vmem:[%s11539_s5 + $0x48] sm:$0xff]  ;;  %v1940_v32 = vld [vmem:[%s11539_s5 + $0x140] sm:$0xff] }
 0x118   :  { %6741 = vmatpush3.bf16.msra.mxu0 %v6740_v51  ;;  %v598_v51 = vld [vmem:[%s11537_s3 + $0xfd0] sm:$0xff] }
 0x119   :  { %6773 = vmatpush3.bf16.msra.mxu1 %v6772_v52  ;;  %6775 = vmatprep.subr.bf16.mxu0 %v6774_v53  ;;  %v599_v52 = vld [vmem:[%s11537_s3 + $0xfd8] sm:$0xff]  ;;  %v6792_v53 = vpack.c.bf16 %v549_v43, %v548_v42  ;;  %v1933_v43 = vld [vmem:[%s11539_s5 + $0x108] sm:$0xff] }
 0x11a   :  { %6807 = vmatprep.subr.bf16.mxu1 %v6806_v57  ;;  %v551_v57 = vld [vmem:[%s11537_s3 + $0xe58] sm:$0xff]  ;;  %v6826_v46 = vpack.c.bf16 %v599_v52, %v598_v51 }
 0x11b   :  { %1685 = vmatmul.mubr.f32.vlgmr.msra.gmra.mrb[12].mxu0 %v9097_v18  ;;  %v544_v18 = vld [vmem:[%s11537_s3 + $0xe20] sm:$0xff] }
 0x11c   :  { %1755 = vmatmul.mubr.f32.vlgmr.msra.gmra.mrb[12].mxu1 %v9106_v21  ;;  %6777 = vmatpush3.bf16.msra.mxu0 %v6776_v1  ;;  %v6814_v21 = vpack.c.bf16 %v593_v14, %v592_v12  ;;  %v6784_v28 = vpack.c.bf16 %v545_v19, %v544_v18  ;;  %v600_v1 = vld [vmem:[%s11537_s3 + $0xfe0] sm:$0xff]  ;;  %v570_v12 = vld [vmem:[%s11537_s3 + $0xef0] sm:$0xff]  ;;  %v571_v14 = vld [vmem:[%s11537_s3 + $0xef8] sm:$0xff] }
 0x11d   :  { %6809 = vmatpush3.bf16.msra.mxu1 %v6808_v2  ;;  %6779 = vmatprep.subr.bf16.mxu0 %v6778_v3  ;;  %v601_v2 = vld [vmem:[%s11537_s3 + $0xfe8] sm:$0xff]  ;;  %v6796_v3 = vpack.c.bf16 %v551_v57, %v550_v56  ;;  %v6802_v25 = vpack.c.bf16 %v571_v14, %v570_v12  ;;  %v1903_v56 = vld [vmem:[%s11539_s5 + $0x18] sm:$0xff]  ;;  %v1934_v57 = vld [vmem:[%s11539_s5 + $0x110] sm:$0xff] }
 0x11e   :  { %6811 = vmatprep.subr.bf16.mxu1 %v6810_v7  ;;  %1824 = vmatprep.mubr.f32.mxu0 %v746_v11  ;;  %v553_v7 = vld [vmem:[%s11537_s3 + $0xe68] sm:$0xff]  ;;  %v6830_v10 = vpack.c.bf16 %v601_v2, %v600_v1  ;;  %v1952_v1 = vld [vmem:[%s11539_s5 + $0x1a0] sm:$0xff]  ;;  %v1954_v12 = vld [vmem:[%s11539_s5 + $0x1b0] sm:$0xff] }
 0x11f   :  { %1894 = vmatprep.mubr.f32.mxu1 %v747_v15  ;;  %v585_v11 = vld [vmem:[%s11537_s3 + $0xf68] sm:$0xff]  ;;  %v6800_v22 = vpack.c.bf16 %v553_v7, %v552_v6  ;;  %v1904_v6 = vld [vmem:[%s11539_s5 + $0x20] sm:$0xff]  ;;  %v1955_v14 = vld [vmem:[%s11539_s5 + $0x1b8] sm:$0xff] }
 0x120   :  { %6781 = vmatpush3.bf16.msra.mxu0 %v6780_v17  ;;  %v6832_v24 = vpack.c.bf16 %v585_v11, %v584_v8  ;;  %v1953_v2 = vld [vmem:[%s11539_s5 + $0x1a8] sm:$0xff]  ;;  %v1936_v7 = vld [vmem:[%s11539_s5 + $0x120] sm:$0xff]  ;;  %v1923_v11 = vld [vmem:[%s11539_s5 + $0xb8] sm:$0xff] }
 0x121   :  { %6813 = vmatpush3.bf16.msra.mxu1 %v6812_v16  ;;  %6783 = vmatprep.subr.bf16.mxu0 %v6782_v20  ;;  %v602_v16 = vld [vmem:[%s11537_s3 + $0xff0] sm:$0xff]  ;;  %v603_v20 = vld [vmem:[%s11537_s3 + $0xff8] sm:$0xff]  ;;  %v9581_v8 = vpack.c.bf16 %v1953_v2, %v1952_v1  ;;  %v1912_v2 = vld [vmem:[%s11539_s5 + $0x60] sm:$0xff] }
 0x122   :  { %6815 = vmatprep.subr.bf16.mxu1 %v6814_v21  ;;  %v88_v21 = vld [vmem:[#allocation5] sm:$0xff] }
 0x123   :  { %v2030_v37 = vcombine.high %v88_v21, %v88_v21  ;;  %v9511_v48 = vrot.slane %v88_v21, %v8002_v13  ;;  %v1939_v21 = vld [vmem:[%s11539_s5 + $0x138] sm:$0xff] }
 0x124   :  { %6785 = vmatpush3.bf16.msra.mxu0 %v6784_v28  ;;  %v586_v28 = vld [vmem:[%s11537_s3 + $0xf70] sm:$0xff] }
 0x125   :  { %6817 = vmatpush3.bf16.msra.mxu1 %v6816_v29  ;;  %6787 = vmatprep.subr.bf16.mxu0 %v6786_v30  ;;  %v6834_v29 = vpack.c.bf16 %v603_v20, %v602_v16  ;;  %v587_v30 = vld [vmem:[%s11537_s3 + $0xf78] sm:$0xff]  ;;  %v9520_v51 = vrot.slane %v2030_v37, %v8002_v13  ;;  %v2045_v61 = vcombine.high %v9511_v48, %v9511_v48  ;;  %v1906_v20 = vld [vmem:[%s11539_s5 + $0x30] sm:$0xff] }
 0x126   :  { %6819 = vmatprep.subr.bf16.mxu1 %v6818_v35  ;;  %v1948_v35 = vld [vmem:[%s11539_s5 + $0x180] sm:$0xff]  ;;  %v6836_v39 = vpack.c.bf16 %v587_v30, %v586_v28  ;;  %v1926_v37 = vld [vmem:[%s11539_s5 + $0xd0] sm:$0xff] }
 0x127   :  { %v9499_v42 = vpack.c.bf16 %v1949_v36, %v1948_v35  ;;  %v1908_v30 = vld [vmem:[%s11539_s5 + $0x40] sm:$0xff]  ;;  %v1941_v36 = vld [vmem:[%s11539_s5 + $0x148] sm:$0xff] }
 0x128   :  { %6789 = vmatpush3.bf16.msra.mxu0 %v6788_v54  ;;  %v1900_v54 = vld [vmem:[%s11539_s5] sm:$0xff] }
 0x129   :  { %6821 = vmatpush3.bf16.msra.mxu1 %v6820_v41  ;;  %6791 = vmatprep.subr.bf16.mxu0 %v6790_v40  ;;  %v1901_v41 = vld [vmem:[%s11539_s5 + $0x8] sm:$0xff]  ;;  %v1932_v40 = vld [vmem:[%s11539_s5 + $0x100] sm:$0xff] }
 0x12a   :  { %6823 = vmatprep.subr.bf16.mxu1 %v6822_v47  ;;  %v1919_v47 = vld [vmem:[%s11539_s5 + $0x98] sm:$0xff]  ;;  %v9522_v52 = vpack.c.bf16 %v1901_v41, %v1900_v54  ;;  %v9671_v41 = vpack.c.bf16 %v1909_v31, %v1908_v30  ;;  %v1914_v31 = vld [vmem:[%s11539_s5 + $0x70] sm:$0xff] }
 0x12b   :  { %v1959_v54 = vld [vmem:[%s11539_s5 + $0x1d8] sm:$0xff] }
 0x12c   :  { %6793 = vmatpush3.bf16.msra.mxu0 %v6792_v53  ;;  %v9525_v53 = vpack.c.bf16 %v1933_v43, %v1932_v40  ;;  %v9675_v40 = vpack.c.bf16 %v1941_v36, %v1940_v32  ;;  %v1915_v32 = vld [vmem:[%s11539_s5 + $0x78] sm:$0xff]  ;;  %v1946_v36 = vld [vmem:[%s11539_s5 + $0x170] sm:$0xff] }
 0x12d   :  { %6825 = vmatpush3.bf16.msra.mxu1 %v6824_v55  ;;  %6795 = vmatprep.subr.bf16.mxu0 %v6794_v34  ;;  %v9527_v55 = vpack.c.bf16 %v1919_v47, %v1918_v45  ;;  %v1902_v34 = vld [vmem:[%s11539_s5 + $0x10] sm:$0xff]  ;;  %v1911_v47 = vld [vmem:[%s11539_s5 + $0x58] sm:$0xff] }
 0x12e   :  { %v5518_v9 = vpop.f32.mrb[0].mxu0  ;;  %6827 = vmatprep.subr.bf16.mxu1 %v6826_v46  ;;  %v1935_v46 = vld [vmem:[%s11539_s5 + $0x118] sm:$0xff]  ;;  %v1910_v45 = vld [vmem:[%s11539_s5 + $0x50] sm:$0xff] }
 0x12f   :  { %v5553_v15 = vpop.f32.mrb[0].mxu1  ;;  %v5519_v17 = vpop.f32.mrb[1].mxu0 }
 0x130   :  { %v5520_v18 = vadd.f32 %v5519_v17, %v5518_v9  ;;  %v5554_v19 = vpop.f32.mrb[1].mxu1  ;;  %6797 = vmatpush3.bf16.msra.mxu0 %v6796_v3  ;;  %v2046_v3 = vcombine.high %v9520_v51, %v9520_v51  ;;  %v1937_v9 = vld [vmem:[%s11539_s5 + $0x128] sm:$0xff] }
 0x131   :  { %v5555_v23 = vadd.f32 %v5554_v19, %v5553_v15  ;;  %6829 = vmatpush3.bf16.msra.mxu1 %v6828_v4  ;;  %6799 = vmatprep.subr.bf16.mxu0 %v6798_v5  ;;  %v9563_v4 = vpack.c.bf16 %v1903_v56, %v1902_v34  ;;  %v9569_v5 = vpack.c.bf16 %v1921_v62, %v1920_v59  ;;  %v1938_v19 = vld [vmem:[%s11539_s5 + $0x130] sm:$0xff]  ;;  %v1943_v34 = vld [vmem:[%s11539_s5 + $0x158] sm:$0xff]  ;;  %v1928_v56 = vld [vmem:[%s11539_s5 + $0xe0] sm:$0xff] }
 0x132   :  { %6831 = vmatprep.subr.bf16.mxu1 %v6830_v10  ;;  %v1922_v10 = vld [vmem:[%s11539_s5 + $0xb0] sm:$0xff]  ;;  %v9603_v17 = vpack.c.bf16 %v1937_v9, %v1936_v7  ;;  %v9639_v28 = vpack.c.bf16 %v1939_v21, %v1938_v19  ;;  %v1961_v59 = vld [vmem:[%s11539_s5 + $0x1e8] sm:$0xff]  ;;  %v9707_v62 = vpack.c.bf16 %v1911_v47, %v1910_v45 }
 0x133   :  { %v9480_v33 = vadd.f32 %v5555_v23, %v5520_v18  ;;  %v9605_v16 = vpack.c.bf16 %v1923_v11, %v1922_v10  ;;  %v1907_v18 = vld [vmem:[%s11539_s5 + $0x38] sm:$0xff]  ;;  %v1924_v23 = vld [vmem:[%s11539_s5 + $0xc0] sm:$0xff]  ;;  %v1945_v9 = vld [vmem:[%s11539_s5 + $0x168] sm:$0xff] }
 0x134   :  { %6801 = vmatpush3.bf16.msra.mxu0 %v6800_v22  ;;  %v9617_v22 = vpack.c.bf16 %v1955_v14, %v1954_v12  ;;  %v9635_v27 = vpack.c.bf16 %v1907_v18, %v1906_v20  ;;  %v1930_v10 = vld [vmem:[%s11539_s5 + $0xf0] sm:$0xff]  ;;  %v1931_v11 = vld [vmem:[%s11539_s5 + $0xf8] sm:$0xff]  ;;  %v1981_v45 = vld [vmem:[%s11539_s5 + $0x288] sm:$0xff] }
 0x135   :  { %6833 = vmatpush3.bf16.msra.mxu1 %v6832_v24  ;;  %6803 = vmatprep.subr.bf16.mxu0 %v6802_v25  ;;  %v1925_v24 = vld [vmem:[%s11539_s5 + $0xc8] sm:$0xff]  ;;  %v1956_v25 = vld [vmem:[%s11539_s5 + $0x1c0] sm:$0xff]  ;;  %v1962_v20 = vld [vmem:[%s11539_s5 + $0x1f0] sm:$0xff]  ;;  %v9749_v30 = vpack.c.bf16 %v1931_v11, %v1930_v10 }
 0x136   :  { %6835 = vmatprep.subr.bf16.mxu1 %v6834_v29  ;;  %v9641_v29 = vpack.c.bf16 %v1925_v24, %v1924_v23  ;;  %v9653_v35 = vpack.c.bf16 %v1957_v26, %v1956_v25  ;;  %v1963_v18 = vld [vmem:[%s11539_s5 + $0x1f8] sm:$0xff]  ;;  %v89_v24 = vld [vmem:[#allocation5 + $0x8] sm:$0xff] }
 0x137   :  { %v2013_v47 = vld [vmem:[%s11539_s5 + $0x388] sm:$0xff]  ;;  %v1983_v10 = vld [vmem:[%s11539_s5 + $0x298] sm:$0xff]  ;;  %v9812_v11 = vrot.slane %v89_v24, %v8002_v13 }
 0x138   :  { %6805 = vmatpush3.bf16.msra.mxu0 %v6804_v44  ;;  %v1927_v44 = vld [vmem:[%s11539_s5 + $0xd8] sm:$0xff] }
 0x139   :  { %6837 = vmatpush3.bf16.msra.mxu1 %v6836_v39  ;;  %6839 = vmatprep.subr.bf16.mxu0 %v9488_v38  ;;  %v1958_v39 = vld [vmem:[%s11539_s5 + $0x1d0] sm:$0xff]  ;;  %v9677_v43 = vpack.c.bf16 %v1927_v44, %v1926_v37  ;;  %v9762_v44 = vpack.c.bf16 %v1963_v18, %v1962_v20 }
 0x13a   :  { %6871 = vmatprep.subr.bf16.mxu1 %v9499_v42  ;;  %v9689_v50 = vpack.c.bf16 %v1959_v54, %v1958_v39  ;;  %v1947_v39 = vld [vmem:[%s11539_s5 + $0x178] sm:$0xff]  ;;  %v1980_v54 = vld [vmem:[%s11539_s5 + $0x280] sm:$0xff] }
 0x13b   :  { %1825 = vmatmul.mubr.f32.vlgmr.msra.gmra.mrb[14].mxu0 %v9301_v60  ;;  %v9567_v60 = vpack.c.bf16 %v1935_v46, %v1934_v57  ;;  %v1929_v57 = vld [vmem:[%s11539_s5 + $0xe8] sm:$0xff]  ;;  %v1960_v46 = vld [vmem:[%s11539_s5 + $0x1e0] sm:$0xff] }
 0x13c   :  { %1895 = vmatmul.mubr.f32.vlgmr.msra.gmra.mrb[14].mxu1 %v9310_v63  ;;  %6841 = vmatpush3.bf16.msra.mxu0 %v9522_v52  ;;  %v1905_v63 = vld [vmem:[%s11539_s5 + $0x28] sm:$0xff]  ;;  %v9713_v1 = vpack.c.bf16 %v1929_v57, %v1928_v56  ;;  %v9725_v7 = vpack.c.bf16 %v1961_v59, %v1960_v46  ;;  %v9782_v56 = vpack.c.bf16 %v1915_v32, %v1914_v31  ;;  %v1964_v59 = vld [vmem:[%s11539_s5 + $0x200] sm:$0xff]  ;;  %v1998_v31 = vld [vmem:[%s11539_s5 + $0x310] sm:$0xff] }
 0x13d   :  { %6873 = vmatpush3.bf16.msra.mxu1 %v9525_v53  ;;  %6843 = vmatprep.subr.bf16.mxu0 %v9527_v55  ;;  %v9599_v15 = vpack.c.bf16 %v1905_v63, %v1904_v6  ;;  %v1944_v6 = vld [vmem:[%s11539_s5 + $0x160] sm:$0xff]  ;;  %v9786_v57 = vpack.c.bf16 %v1947_v39, %v1946_v36  ;;  %v9788_v46 = vpack.c.bf16 %v1981_v45, %v1980_v54  ;;  %v1999_v36 = vld [vmem:[%s11539_s5 + $0x318] sm:$0xff]  ;;  %v1985_v39 = vld [vmem:[%s11539_s5 + $0x2a8] sm:$0xff] }
 0x13e   :  { %6875 = vmatprep.subr.bf16.mxu1 %v9539_v58  ;;  %2136 = vmatprep.mubr.f32.mxu0 %v2045_v61  ;;  %v9711_v61 = vpack.c.bf16 %v1943_v34, %v1942_v49  ;;  %v9747_v26 = vpack.c.bf16 %v1945_v9, %v1944_v6  ;;  %v2047_v49 = vcombine.high %v89_v24, %v89_v24  ;;  %v1982_v9 = vld [vmem:[%s11539_s5 + $0x290] sm:$0xff]  ;;  %v2016_v45 = vld [vmem:[%s11539_s5 + $0x3a0] sm:$0xff] }
 0x13f   :  { %2206 = vmatprep.mubr.f32.mxu1 %v2046_v3  ;;  %v1913_v3 = vld [vmem:[%s11539_s5 + $0x68] sm:$0xff]  ;;  %v1966_v24 = vld [vmem:[%s11539_s5 + $0x210] sm:$0xff]  ;;  %v2062_v54 = vcombine.high %v9812_v11, %v9812_v11 }
 0x140   :  { %6845 = vmatpush3.bf16.msra.mxu0 %v9563_v4  ;;  %v9743_v23 = vpack.c.bf16 %v1913_v3, %v1912_v2  ;;  %v1965_v2 = vld [vmem:[%s11539_s5 + $0x208] sm:$0xff]  ;;  %v1996_v3 = vld [vmem:[%s11539_s5 + $0x300] sm:$0xff]  ;;  %v9821_v20 = vrot.slane %v2047_v49, %v8002_v13 }
 0x141   :  { %6877 = vmatpush3.bf16.msra.mxu1 %v9567_v60  ;;  %6847 = vmatprep.subr.bf16.mxu0 %v9569_v5  ;;  %v9824_v18 = vpack.c.bf16 %v1965_v2, %v1964_v59  ;;  %v1968_v2 = vld [vmem:[%s11539_s5 + $0x220] sm:$0xff] }
 0x142   :  { %6879 = vmatprep.subr.bf16.mxu1 %v9581_v8 }
 0x144   :  { %6849 = vmatpush3.bf16.msra.mxu0 %v9599_v15 }
 0x145   :  { %6881 = vmatpush3.bf16.msra.mxu1 %v9603_v17  ;;  %6851 = vmatprep.subr.bf16.mxu0 %v9605_v16 }
 0x146   :  { %6883 = vmatprep.subr.bf16.mxu1 %v9617_v22 }
 0x148   :  { %6853 = vmatpush3.bf16.msra.mxu0 %v9635_v27 }
 0x149   :  { %6885 = vmatpush3.bf16.msra.mxu1 %v9639_v28  ;;  %6855 = vmatprep.subr.bf16.mxu0 %v9641_v29 }
 0x14a   :  { %6887 = vmatprep.subr.bf16.mxu1 %v9653_v35 }
 0x14c   :  { %6857 = vmatpush3.bf16.msra.mxu0 %v9671_v41 }
 0x14d   :  { %6889 = vmatpush3.bf16.msra.mxu1 %v9675_v40  ;;  %6859 = vmatprep.subr.bf16.mxu0 %v9677_v43 }
 0x14e   :  { %v5588_v63 = vpop.f32.mrb[2].mxu0  ;;  %6891 = vmatprep.subr.bf16.mxu1 %v9689_v50 }
 0x14f   :  { %v5589_v12 = vpop.f32.mrb[3].mxu0  ;;  %v5623_v14 = vpop.f32.mrb[2].mxu1 }
 0x150   :  { %v5590_v19 = vadd.f32 %v5589_v12, %v5588_v63  ;;  %6861 = vmatpush3.bf16.msra.mxu0 %v9707_v62  ;;  %v5624_v21 = vpop.f32.mrb[3].mxu1  ;;  %v1997_v63 = vld [vmem:[%s11539_s5 + $0x308] sm:$0xff]  ;;  %v2014_v12 = vld [vmem:[%s11539_s5 + $0x390] sm:$0xff] }
 0x151   :  { %6893 = vmatpush3.bf16.msra.mxu1 %v9711_v61  ;;  %v5625_v25 = vadd.f32 %v5624_v21, %v5623_v14  ;;  %6863 = vmatprep.subr.bf16.mxu0 %v9713_v1  ;;  %v2015_v14 = vld [vmem:[%s11539_s5 + $0x398] sm:$0xff]  ;;  %v9830_v21 = vpack.c.bf16 %v1983_v10, %v1982_v9  ;;  %v2001_v9 = vld [vmem:[%s11539_s5 + $0x328] sm:$0xff]  ;;  %v1986_v10 = vld [vmem:[%s11539_s5 + $0x2b0] sm:$0xff] }
 0x152   :  { %v987_v37 = vadd.f32 %v5590_v19, %v9480_v33  ;;  %6895 = vmatprep.subr.bf16.mxu1 %v9725_v7  ;;  %v2012_v33 = vld [vmem:[%s11539_s5 + $0x380] sm:$0xff]  ;;  %v9828_v19 = vpack.c.bf16 %v1997_v63, %v1996_v3  ;;  %v9842_v32 = vpack.c.bf16 %v2015_v14, %v2014_v12  ;;  %v1987_v12 = vld [vmem:[%s11539_s5 + $0x2b8] sm:$0xff]  ;;  %v2018_v14 = vld [vmem:[%s11539_s5 + $0x3b0] sm:$0xff] }
 0x153   :  { %v9800_v6 = vpack.c.bf16 %v2013_v47, %v2012_v33  ;;  %v2017_v33 = vld [vmem:[%s11539_s5 + $0x3a8] sm:$0xff]  ;;  %v2063_v47 = vcombine.high %v9821_v20, %v9821_v20  ;;  %v2000_v3 = vld [vmem:[%s11539_s5 + $0x320] sm:$0xff] }
 0x154   :  { %v9779_v34 = vadd.f32 %v5625_v25, %v987_v37  ;;  %6865 = vmatpush3.bf16.msra.mxu0 %v9743_v23  ;;  %v1967_v25 = vld [vmem:[%s11539_s5 + $0x218] sm:$0xff]  ;;  %11569 = vst [vmem:[#allocation20_spill] sm:$0xff] %v9842_v32  ;;  %v1984_v37 = vld [vmem:[%s11539_s5 + $0x2a0] sm:$0xff]  ;;  %v9884_v63 = vpack.c.bf16 %v2017_v33, %v2016_v45 }
 0x155   :  { %6897 = vmatpush3.bf16.msra.mxu1 %v9747_v26  ;;  %6867 = vmatprep.subr.bf16.mxu0 %v9749_v30  ;;  %v9866_v49 = vpack.c.bf16 %v1967_v25, %v1966_v24  ;;  %v9872_v59 = vpack.c.bf16 %v1985_v39, %v1984_v37  ;;  %v2019_v24 = vld [vmem:[%s11539_s5 + $0x3b8] sm:$0xff]  ;;  %v1970_v37 = vld [vmem:[%s11539_s5 + $0x230] sm:$0xff] }
 0x156   :  { %6899 = vmatprep.subr.bf16.mxu1 %v9762_v44  ;;  %11573 = vst [vmem:[#allocation24_spill] sm:$0xff] %v9884_v63  ;;  %v1971_v39 = vld [vmem:[%s11539_s5 + $0x238] sm:$0xff]  ;;  %v9920_v45 = vpack.c.bf16 %v2019_v24, %v2018_v14  ;;  %v1972_v14 = vld [vmem:[%s11539_s5 + $0x240] sm:$0xff]  ;;  %v1973_v24 = vld [vmem:[%s11539_s5 + $0x248] sm:$0xff] }
 0x157   :  { %11570 = vst [vmem:[#allocation21_spill] sm:$0xff] %v9866_v49  ;;  %11572 = vst [vmem:[#allocation23_spill] sm:$0xff] %v9872_v59  ;;  %v2003_v33 = vld [vmem:[%s11539_s5 + $0x338] sm:$0xff] }
 0x158   :  { %6869 = vmatpush3.bf16.msra.mxu0 %v9782_v56  ;;  %11577 = vst [vmem:[#allocation28_spill] sm:$0xff] %v9920_v45 }
 0x159   :  { %6901 = vmatpush3.bf16.msra.mxu1 %v9786_v57  ;;  %6903 = vmatprep.subr.bf16.mxu0 %v9788_v46 }
 0x15a   :  { %6935 = vmatprep.subr.bf16.mxu1 %v9800_v6 }
 0x15b   :  { %2137 = vmatmul.mubr.f32.vlgmr.msra.gmra.mrb[16].mxu0 %v9511_v48  ;;  %v9870_v48 = vpack.c.bf16 %v1999_v36, %v1998_v31  ;;  %v9906_v31 = vpack.c.bf16 %v2001_v9, %v2000_v3  ;;  %v9908_v36 = vpack.c.bf16 %v1987_v12, %v1986_v10  ;;  %v2021_v3 = vld [vmem:[%s11539_s5 + $0x3c8] sm:$0xff]  ;;  %v9938_v9 = vpack.c.bf16 %v1971_v39, %v1970_v37  ;;  %v2004_v37 = vld [vmem:[%s11539_s5 + $0x340] sm:$0xff] }
 0x15c   :  { %2207 = vmatmul.mubr.f32.vlgmr.msra.gmra.mrb[16].mxu1 %v9520_v51  ;;  %6905 = vmatpush3.bf16.msra.mxu0 %v9824_v18  ;;  %v1969_v51 = vld [vmem:[%s11539_s5 + $0x228] sm:$0xff] }
 0x15d   :  { %6937 = vmatpush3.bf16.msra.mxu1 %v9828_v19  ;;  %6907 = vmatprep.subr.bf16.mxu0 %v9830_v21  ;;  %11571 = vst [vmem:[#allocation22_spill] sm:$0xff] %v9870_v48  ;;  %v9902_v25 = vpack.c.bf16 %v1969_v51, %v1968_v2  ;;  %11575 = vst [vmem:[#allocation26_spill] sm:$0xff] %v9906_v31  ;;  %v1989_v2 = vld [vmem:[%s11539_s5 + $0x2c8] sm:$0xff]  ;;  %v2020_v51 = vld [vmem:[%s11539_s5 + $0x3c0] sm:$0xff] }
 0x15e   :  { %6939 = vmatprep.subr.bf16.mxu1 %v9842_v32  ;;  %2276 = vmatprep.mubr.f32.mxu0 %v2062_v54  ;;  %11576 = vst [vmem:[#allocation27_spill] sm:$0xff] %v9908_v36  ;;  %v2002_v54 = vld [vmem:[%s11539_s5 + $0x330] sm:$0xff]  ;;  %11578 = vst [vmem:[#allocation29_spill] sm:$0xff] %v9938_v9  ;;  %v9956_v39 = vpack.c.bf16 %v2021_v3, %v2020_v51  ;;  %v2023_v51 = vld [vmem:[%s11539_s5 + $0x3d8] sm:$0xff]  ;;  %v9974_v3 = vpack.c.bf16 %v1973_v24, %v1972_v14 }
 0x15f   :  { %2346 = vmatprep.mubr.f32.mxu1 %v2063_v47  ;;  %11574 = vst [vmem:[#allocation25_spill] sm:$0xff] %v9902_v25  ;;  %v1988_v47 = vld [vmem:[%s11539_s5 + $0x2c0] sm:$0xff]  ;;  %v9942_v10 = vpack.c.bf16 %v2003_v33, %v2002_v54  ;;  %v2005_v54 = vld [vmem:[%s11539_s5 + $0x348] sm:$0xff]  ;;  %v1990_v33 = vld [vmem:[%s11539_s5 + $0x2d0] sm:$0xff] }
 0x160   :  { %6909 = vmatpush3.bf16.msra.mxu0 %v9866_v49  ;;  %v9944_v12 = vpack.c.bf16 %v1989_v2, %v1988_v47  ;;  %11581 = vst [vmem:[#allocation32_spill] sm:$0xff] %v9956_v39  ;;  %v1991_v47 = vld [vmem:[%s11539_s5 + $0x2d8] sm:$0xff]  ;;  %v2022_v2 = vld [vmem:[%s11539_s5 + $0x3d0] sm:$0xff]  ;;  %11582 = vst [vmem:[#allocation33_spill] sm:$0xff] %v9974_v3  ;;  %v9978_v0 = vpack.c.bf16 %v2005_v54, %v2004_v37 }
 0x161   :  { %6941 = vmatpush3.bf16.msra.mxu1 %v9870_v48  ;;  %6911 = vmatprep.subr.bf16.mxu0 %v9872_v59  ;;  %11579 = vst [vmem:[#allocation30_spill] sm:$0xff] %v9942_v10  ;;  %v2006_v14 = vld [vmem:[%s11539_s5 + $0x350] sm:$0xff]  ;;  %v9992_v24 = vpack.c.bf16 %v2023_v51, %v2022_v2  ;;  %v2007_v37 = vld [vmem:[%s11539_s5 + $0x358] sm:$0xff]  ;;  %v1992_v54 = vld [vmem:[%s11539_s5 + $0x2e0] sm:$0xff] }
 0x162   :  { %6943 = vmatprep.subr.bf16.mxu1 %v9884_v63  ;;  %11580 = vst [vmem:[#allocation31_spill] sm:$0xff] %v9944_v12  ;;  %11583 = vst [vmem:[#allocation34_spill] sm:$0xff] %v9978_v0  ;;  %v2025_v2 = vld [vmem:[%s11539_s5 + $0x3e8] sm:$0xff]  ;;  %v90_v63 = vld [vmem:[#allocation7] sm:$0xff] }
 0x163   :  { %11585 = vst [vmem:[#allocation36_spill] sm:$0xff] %v9992_v24  ;;  %v1978_v32 = vld [vmem:[%s11539_s5 + $0x270] sm:$0xff] }
 0x164   :  { %6913 = vmatpush3.bf16.msra.mxu0 %v9902_v25 }
 0x165   :  { %6945 = vmatpush3.bf16.msra.mxu1 %v9906_v31  ;;  %6915 = vmatprep.subr.bf16.mxu0 %v9908_v36  ;;  %v1974_v36 = vld [vmem:[%s11539_s5 + $0x250] sm:$0xff]  ;;  %v1975_v31 = vld [vmem:[%s11539_s5 + $0x258] sm:$0xff] }
 0x166   :  { %6947 = vmatprep.subr.bf16.mxu1 %v9920_v45  ;;  %v9980_v45 = vpack.c.bf16 %v1991_v47, %v1990_v33  ;;  %v1993_v33 = vld [vmem:[%s11539_s5 + $0x2e8] sm:$0xff]  ;;  %v2024_v47 = vld [vmem:[%s11539_s5 + $0x3e0] sm:$0xff]  ;;  %v10010_v51 = vpack.c.bf16 %v1975_v31, %v1974_v36 }
 0x167   :  { %v2008_v31 = vld [vmem:[%s11539_s5 + $0x360] sm:$0xff] }
 0x168   :  { %6917 = vmatpush3.bf16.msra.mxu0 %v9938_v9  ;;  %11584 = vst [vmem:[#allocation35_spill] sm:$0xff] %v9980_v45  ;;  %v1977_v9 = vld [vmem:[%s11539_s5 + $0x268] sm:$0xff] }
 0x169   :  { %6949 = vmatpush3.bf16.msra.mxu1 %v9942_v10  ;;  %6919 = vmatprep.subr.bf16.mxu0 %v9944_v12  ;;  %v10016_v12 = vpack.c.bf16 %v1993_v33, %v1992_v54  ;;  %v1976_v10 = vld [vmem:[%s11539_s5 + $0x260] sm:$0xff]  ;;  %v1995_v54 = vld [vmem:[%s11539_s5 + $0x2f8] sm:$0xff] }
 0x16a   :  { %6951 = vmatprep.subr.bf16.mxu1 %v9956_v39  ;;  %v10014_v39 = vpack.c.bf16 %v2007_v37, %v2006_v14  ;;  %v2009_v14 = vld [vmem:[%s11539_s5 + $0x368] sm:$0xff]  ;;  %v1994_v37 = vld [vmem:[%s11539_s5 + $0x2f0] sm:$0xff]  ;;  %v10046_v25 = vpack.c.bf16 %v1977_v9, %v1976_v10 }
 0x16b   :  { %v10050_v48 = vpack.c.bf16 %v2009_v14, %v2008_v31  ;;  %v10052_v49 = vpack.c.bf16 %v1995_v54, %v1994_v37  ;;  %v2354_v31 = vcombine.high %v90_v63, %v90_v63 }
 0x16c   :  { %6921 = vmatpush3.bf16.msra.mxu0 %v9974_v3 }
 0x16d   :  { %6953 = vmatpush3.bf16.msra.mxu1 %v9978_v0  ;;  %6923 = vmatprep.subr.bf16.mxu0 %v9980_v45  ;;  %v10028_v45 = vpack.c.bf16 %v2025_v2, %v2024_v47  ;;  %v2027_v47 = vld [vmem:[%s11539_s5 + $0x3f8] sm:$0xff]  ;;  %v2368_v54 = vrot.slane %v2354_v31, %v8002_v13  ;;  %v2702_v31 = vld [vmem:[%s11541_s7 + $0xd0] sm:$0xff] }
 0x16e   :  { %v5658_v36 = vpop.f32.mrb[4].mxu0  ;;  %6955 = vmatprep.subr.bf16.mxu1 %v9992_v24  ;;  %v2026_v24 = vld [vmem:[%s11539_s5 + $0x3f0] sm:$0xff] }
 0x16f   :  { %v5659_v33 = vpop.f32.mrb[5].mxu0  ;;  %v5693_v0 = vpop.f32.mrb[4].mxu1  ;;  %v10062_v10 = vpack.c.bf16 %v2027_v47, %v2026_v24  ;;  %v2361_v24 = vrot.slane %v90_v63, %v8002_v13  ;;  %v2695_v63 = vld [vmem:[%s11541_s7 + $0x98] sm:$0xff]  ;;  %v2696_v47 = vld [vmem:[%s11541_s7 + $0xa0] sm:$0xff] }
 0x170   :  { %v5660_v2 = vadd.f32 %v5659_v33, %v5658_v36  ;;  %6925 = vmatpush3.bf16.msra.mxu0 %v10010_v51  ;;  %v5694_v3 = vpop.f32.mrb[5].mxu1  ;;  %v1979_v36 = vld [vmem:[%s11539_s5 + $0x278] sm:$0xff] }
 0x171   :  { %6957 = vmatpush3.bf16.msra.mxu1 %v10014_v39  ;;  %v5695_v59 = vadd.f32 %v5694_v3, %v5693_v0  ;;  %6927 = vmatprep.subr.bf16.mxu0 %v10016_v12  ;;  %v2010_v0 = vld [vmem:[%s11539_s5 + $0x370] sm:$0xff]  ;;  %v2011_v3 = vld [vmem:[%s11539_s5 + $0x378] sm:$0xff]  ;;  %v10071_v37 = vpack.c.bf16 %v1979_v36, %v1978_v32  ;;  %v2369_v32 = vcombine.high %v2361_v24, %v2361_v24  ;;  %v2701_v36 = vld [vmem:[%s11541_s7 + $0xc8] sm:$0xff] }
 0x172   :  { %v1127_v9 = vadd.f32 %v5660_v2, %v9779_v34  ;;  %6959 = vmatprep.subr.bf16.mxu1 %v10028_v45  ;;  %v10075_v34 = vpack.c.bf16 %v2011_v3, %v2010_v0  ;;  %v2698_v2 = vld [vmem:[%s11541_s7 + $0xb0] sm:$0xff]  ;;  %v2700_v3 = vld [vmem:[%s11541_s7 + $0xc0] sm:$0xff] }
 0x174   :  { %v1197_v14 = vadd.f32 %v5695_v59, %v1127_v9  ;;  %6929 = vmatpush3.bf16.msra.mxu0 %v10046_v25  ;;  %v2370_v59 = vcombine.high %v2368_v54, %v2368_v54  ;;  %v2703_v9 = vld [vmem:[%s11541_s7 + $0xd8] sm:$0xff] }
 0x175   :  { %6961 = vmatpush3.bf16.msra.mxu1 %v10050_v48  ;;  %6931 = vmatprep.subr.bf16.mxu0 %v10052_v49  ;;  %v7102_v0 = vpack.c.bf16 %v2703_v9, %v2701_v36  ;;  %v2683_v36 = vld [vmem:[%s11541_s7 + $0x38] sm:$0xff] }
 0x176   :  { %6963 = vmatprep.subr.bf16.mxu1 %v10062_v10 }
 0x178   :  { %6933 = vmatpush3.bf16.msra.mxu0 %v10071_v37 }
 0x179   :  { %6965 = vmatpush3.bf16.msra.mxu1 %v10075_v34  ;;  %6967 = vmatprep.subr.bf16.mxu0 %v9488_v38 }
 0x17a   :  { %6999 = vmatprep.subr.bf16.mxu1 %v9499_v42 }
 0x17b   :  { %2277 = vmatmul.mubr.f32.vlgmr.msra.gmra.mrb[18].mxu0 %v9812_v11 }
 0x17c   :  { %2347 = vmatmul.mubr.f32.vlgmr.msra.gmra.mrb[18].mxu1 %v9821_v20  ;;  %6969 = vmatpush3.bf16.msra.mxu0 %v9522_v52 }
 0x17d   :  { %7001 = vmatpush3.bf16.msra.mxu1 %v9525_v53  ;;  %6971 = vmatprep.subr.bf16.mxu0 %v9527_v55 }
 0x17e   :  { %7003 = vmatprep.subr.bf16.mxu1 %v9539_v58  ;;  %2460 = vmatprep.mubr.f32.mxu0 %v2369_v32  ;;  %v91_v58 = vld [vmem:[#allocation7 + $0x8] sm:$0xff] }
 0x17f   :  { %2530 = vmatprep.mubr.f32.mxu1 %v2370_v59  ;;  %v2707_v32 = vld [vmem:[%s11541_s7 + $0xf8] sm:$0xff] }
 0x180   :  { %6973 = vmatpush3.bf16.msra.mxu0 %v9563_v4 }
 0x181   :  { %7005 = vmatpush3.bf16.msra.mxu1 %v9567_v60  ;;  %6975 = vmatprep.subr.bf16.mxu0 %v9569_v5  ;;  %v2371_v5 = vcombine.high %v91_v58, %v91_v58 }
 0x182   :  { %7007 = vmatprep.subr.bf16.mxu1 %v9581_v8 }
 0x184   :  { %6977 = vmatpush3.bf16.msra.mxu0 %v9599_v15  ;;  %v10115_v15 = vrot.slane %v91_v58, %v8002_v13 }
 0x185   :  { %7009 = vmatpush3.bf16.msra.mxu1 %v9603_v17  ;;  %6979 = vmatprep.subr.bf16.mxu0 %v9605_v16  ;;  %v10118_v17 = vrot.slane %v2371_v5, %v8002_v13  ;;  %v2679_v5 = vld [vmem:[%s11541_s7 + $0x18] sm:$0xff] }
 0x186   :  { %7011 = vmatprep.subr.bf16.mxu1 %v9617_v22  ;;  %v2386_v16 = vcombine.high %v10115_v15, %v10115_v15 }
 0x187   :  { %v2387_v22 = vcombine.high %v10118_v17, %v10118_v17 }
 0x188   :  { %6981 = vmatpush3.bf16.msra.mxu0 %v9635_v27  ;;  %v11586_v27 = vld [vmem:[#allocation20_spill] sm:$0xff] }
 0x189   :  { %7013 = vmatpush3.bf16.msra.mxu1 %v9639_v28  ;;  %6983 = vmatprep.subr.bf16.mxu0 %v9641_v29  ;;  %v11587_v28 = vld [vmem:[#allocation21_spill] sm:$0xff]  ;;  %v11588_v29 = vld [vmem:[#allocation22_spill] sm:$0xff] }
 0x18a   :  { %7015 = vmatprep.subr.bf16.mxu1 %v9653_v35  ;;  %v11589_v35 = vld [vmem:[#allocation23_spill] sm:$0xff] }
 0x18c   :  { %6985 = vmatpush3.bf16.msra.mxu0 %v9671_v41  ;;  %v11590_v41 = vld [vmem:[#allocation24_spill] sm:$0xff] }
 0x18d   :  { %7017 = vmatpush3.bf16.msra.mxu1 %v9675_v40  ;;  %6987 = vmatprep.subr.bf16.mxu0 %v9677_v43  ;;  %v11591_v40 = vld [vmem:[#allocation25_spill] sm:$0xff]  ;;  %v11592_v43 = vld [vmem:[#allocation26_spill] sm:$0xff] }
 0x18e   :  { %v5728_v38 = vpop.f32.mrb[6].mxu0  ;;  %7019 = vmatprep.subr.bf16.mxu1 %v9689_v50  ;;  %v11593_v50 = vld [vmem:[#allocation27_spill] sm:$0xff] }
 0x18f   :  { %v5729_v42 = vpop.f32.mrb[7].mxu0  ;;  %v5763_v52 = vpop.f32.mrb[6].mxu1 }
 0x190   :  { %v5730_v53 = vadd.f32 %v5729_v42, %v5728_v38  ;;  %6989 = vmatpush3.bf16.msra.mxu0 %v9707_v62  ;;  %v5764_v55 = vpop.f32.mrb[7].mxu1  ;;  %v11594_v62 = vld [vmem:[#allocation28_spill] sm:$0xff] }
 0x191   :  { %7021 = vmatpush3.bf16.msra.mxu1 %v9711_v61  ;;  %v5765_v4 = vadd.f32 %v5764_v55, %v5763_v52  ;;  %6991 = vmatprep.subr.bf16.mxu0 %v9713_v1  ;;  %v11595_v61 = vld [vmem:[#allocation29_spill] sm:$0xff]  ;;  %v11596_v1 = vld [vmem:[#allocation30_spill] sm:$0xff] }
 0x192   :  { %v1267_v60 = vadd.f32 %v5730_v53, %v1197_v14  ;;  %7023 = vmatprep.subr.bf16.mxu1 %v9725_v7  ;;  %v11597_v7 = vld [vmem:[#allocation31_spill] sm:$0xff]  ;;  %v7104_v14 = vpack.c.bf16 %v2702_v31, %v2700_v3  ;;  %v2706_v53 = vld [vmem:[%s11541_s7 + $0xf0] sm:$0xff] }
 0x193   :  { %v2704_v52 = vld [vmem:[%s11541_s7 + $0xe0] sm:$0xff] }
 0x194   :  { %v1337_v8 = vadd.f32 %v5765_v4, %v1267_v60  ;;  %6993 = vmatpush3.bf16.msra.mxu0 %v9743_v23  ;;  %v11598_v23 = vld [vmem:[#allocation32_spill] sm:$0xff]  ;;  %v7108_v58 = vpack.c.bf16 %v2706_v53, %v2704_v52  ;;  %v2680_v31 = vld [vmem:[%s11541_s7 + $0x20] sm:$0xff] }
 0x195   :  { %7025 = vmatpush3.bf16.msra.mxu1 %v9747_v26  ;;  %6995 = vmatprep.subr.bf16.mxu0 %v9749_v30  ;;  %v11599_v26 = vld [vmem:[#allocation33_spill] sm:$0xff]  ;;  %v11600_v30 = vld [vmem:[#allocation34_spill] sm:$0xff]  ;;  %v2677_v60 = vld [vmem:[%s11541_s7 + $0x8] sm:$0xff] }
 0x196   :  { %7027 = vmatprep.subr.bf16.mxu1 %v9762_v44  ;;  %v11601_v44 = vld [vmem:[#allocation35_spill] sm:$0xff] }
 0x198   :  { %6997 = vmatpush3.bf16.msra.mxu0 %v9782_v56 }
 0x199   :  { %7029 = vmatpush3.bf16.msra.mxu1 %v9786_v57  ;;  %7031 = vmatprep.subr.bf16.mxu0 %v9788_v46  ;;  %v11602_v57 = vld [vmem:[#allocation36_spill] sm:$0xff] }
 0x19a   :  { %7063 = vmatprep.subr.bf16.mxu1 %v9800_v6 }
 0x19b   :  { %2461 = vmatmul.mubr.f32.vlgmr.msra.gmra.mrb[20].mxu0 %v2361_v24 }
 0x19c   :  { %2531 = vmatmul.mubr.f32.vlgmr.msra.gmra.mrb[20].mxu1 %v2368_v54  ;;  %7033 = vmatpush3.bf16.msra.mxu0 %v9824_v18  ;;  %v2705_v54 = vld [vmem:[%s11541_s7 + $0xe8] sm:$0xff] }
 0x19d   :  { %7065 = vmatpush3.bf16.msra.mxu1 %v9828_v19  ;;  %7035 = vmatprep.subr.bf16.mxu0 %v9830_v21  ;;  %v2693_v21 = vld [vmem:[%s11541_s7 + $0x88] sm:$0xff]  ;;  %v7106_v42 = vpack.c.bf16 %v2707_v32, %v2705_v54  ;;  %v2684_v32 = vld [vmem:[%s11541_s7 + $0x40] sm:$0xff] }
 0x19e   :  { %7067 = vmatprep.subr.bf16.mxu1 %v11586_v27  ;;  %2600 = vmatprep.mubr.f32.mxu0 %v2386_v16 }
 0x19f   :  { %2670 = vmatprep.mubr.f32.mxu1 %v2387_v22 }
 0x1a0   :  { %7037 = vmatpush3.bf16.msra.mxu0 %v11587_v28 }
 0x1a1   :  { %7069 = vmatpush3.bf16.msra.mxu1 %v11588_v29  ;;  %7039 = vmatprep.subr.bf16.mxu0 %v11589_v35 }
 0x1a2   :  { %7071 = vmatprep.subr.bf16.mxu1 %v11590_v41 }
 0x1a4   :  { %7041 = vmatpush3.bf16.msra.mxu0 %v11591_v40 }
 0x1a5   :  { %7073 = vmatpush3.bf16.msra.mxu1 %v11592_v43  ;;  %7043 = vmatprep.subr.bf16.mxu0 %v11593_v50 }
 0x1a6   :  { %7075 = vmatprep.subr.bf16.mxu1 %v11594_v62 }
 0x1a8   :  { %7045 = vmatpush3.bf16.msra.mxu0 %v11595_v61 }
 0x1a9   :  { %7077 = vmatpush3.bf16.msra.mxu1 %v11596_v1  ;;  %7047 = vmatprep.subr.bf16.mxu0 %v11597_v7 }
 0x1aa   :  { %7079 = vmatprep.subr.bf16.mxu1 %v11598_v23 }
 0x1ac   :  { %7049 = vmatpush3.bf16.msra.mxu0 %v11599_v26 }
 0x1ad   :  { %7081 = vmatpush3.bf16.msra.mxu1 %v11600_v30  ;;  %7051 = vmatprep.subr.bf16.mxu0 %v11601_v44  ;;  %v3017_v30 = vld [vmem:[%s11538_s4 + $0x8] sm:$0xff] }
 0x1ae   :  { %v5798_v56 = vpop.f32.mrb[8].mxu0  ;;  %7083 = vmatprep.subr.bf16.mxu1 %v11602_v57  ;;  %v3049_v44 = vld [vmem:[%s11538_s4 + $0x108] sm:$0xff]  ;;  %v3016_v57 = vld [vmem:[%s11538_s4] sm:$0xff] }
 0x1af   :  { %v5799_v46 = vpop.f32.mrb[9].mxu0  ;;  %v5833_v6 = vpop.f32.mrb[8].mxu1 }
 0x1b0   :  { %v5800_v11 = vadd.f32 %v5799_v46, %v5798_v56  ;;  %7053 = vmatpush3.bf16.msra.mxu0 %v10010_v51  ;;  %v5834_v20 = vpop.f32.mrb[9].mxu1  ;;  %v2697_v51 = vld [vmem:[%s11541_s7 + $0xa8] sm:$0xff]  ;;  %v7142_v56 = vpack.c.bf16 %v3049_v44, %v3017_v30  ;;  %v3048_v46 = vld [vmem:[%s11538_s4 + $0x100] sm:$0xff] }
 0x1b1   :  { %v5835_v18 = vadd.f32 %v5834_v20, %v5833_v6  ;;  %7085 = vmatpush3.bf16.msra.mxu1 %v10014_v39  ;;  %7055 = vmatprep.subr.bf16.mxu0 %v10016_v12  ;;  %v7094_v39 = vpack.c.bf16 %v2695_v63, %v2693_v21  ;;  %v2694_v12 = vld [vmem:[%s11541_s7 + $0x90] sm:$0xff]  ;;  %v7144_v6 = vpack.c.bf16 %v3048_v46, %v3016_v57  ;;  %v2869_v44 = vld [vmem:[%s11541_s7 + $0x160] sm:$0xff]  ;;  %v3023_v57 = vld [vmem:[%s11538_s4 + $0x38] sm:$0xff] }
 0x1b2   :  { %v1407_v19 = vadd.f32 %v5800_v11, %v1337_v8  ;;  %7087 = vmatprep.subr.bf16.mxu1 %v10028_v45  ;;  %v2692_v45 = vld [vmem:[%s11541_s7 + $0x80] sm:$0xff]  ;;  %v3055_v46 = vld [vmem:[%s11538_s4 + $0x138] sm:$0xff] }
 0x1b4   :  { %v1477_v33 = vadd.f32 %v5835_v18, %v1407_v19  ;;  %7057 = vmatpush3.bf16.msra.mxu0 %v10046_v25 }
 0x1b5   :  { %7089 = vmatpush3.bf16.msra.mxu1 %v10050_v48  ;;  %7059 = vmatprep.subr.bf16.mxu0 %v10052_v49  ;;  %v2699_v48 = vld [vmem:[%s11541_s7 + $0xb8] sm:$0xff]  ;;  %v7096_v49 = vpack.c.bf16 %v2694_v12, %v2692_v45 }
 0x1b6   :  { %7091 = vmatprep.subr.bf16.mxu1 %v10062_v10  ;;  %v7098_v25 = vpack.c.bf16 %v2699_v48, %v2697_v51  ;;  %v7100_v10 = vpack.c.bf16 %v2698_v2, %v2696_v47  ;;  %v2681_v2 = vld [vmem:[%s11541_s7 + $0x28] sm:$0xff] }
 0x1b7   :  { %v7114_v3 = vpack.c.bf16 %v2683_v36, %v2681_v2 }
 0x1b8   :  { %7061 = vmatpush3.bf16.msra.mxu0 %v10071_v37 }
 0x1b9   :  { %7093 = vmatpush3.bf16.msra.mxu1 %v10075_v34  ;;  %7095 = vmatprep.subr.bf16.mxu0 %v7094_v39 }
 0x1ba   :  { %7143 = vmatprep.subr.bf16.mxu1 %v7142_v56  ;;  %v2871_v56 = vld [vmem:[%s11541_s7 + $0x170] sm:$0xff] }
 0x1bb   :  { %2601 = vmatmul.mubr.f32.vlgmr.msra.gmra.mrb[22].mxu0 %v10115_v15  ;;  %v7110_v15 = vpack.c.bf16 %v2679_v5, %v2677_v60  ;;  %v2860_v60 = vld [vmem:[%s11541_s7 + $0x118] sm:$0xff] }
 0x1bc   :  { %2671 = vmatmul.mubr.f32.vlgmr.msra.gmra.mrb[22].mxu1 %v10118_v17  ;;  %7097 = vmatpush1.bf16.msra.mxu0 %v7096_v49  ;;  %v7732_v17 = vmov 0.0   ;;  %v2676_v49 = vld [vmem:[%s11541_s7] sm:$0xff] }
 0x1bd   :  { %7099 = vmatprep.subr.bf16.mxu0 %v7098_v25  ;;  %2776 = vmatprep.mubr.f32.mxu0 %v7732_v17  ;;  %v2678_v25 = vld [vmem:[%s11541_s7 + $0x10] sm:$0xff] }
 0x1be   :  { %3338 = vmatprep.mubr.f32.mxu1 %v7732_v17  ;;  %7145 = vmatpush1.bf16.msra.mxu1 %v7144_v6 }
 0x1c0   :  { %7101 = vmatpush1.bf16.msra.mxu0 %v7100_v10  ;;  %v7112_v10 = vpack.c.bf16 %v2678_v25, %v2676_v49  ;;  %v3022_v25 = vld [vmem:[%s11538_s4 + $0x30] sm:$0xff] }
 0x1c1   :  { %7103 = vmatprep.subr.bf16.mxu0 %v7102_v0 }
 0x1c4   :  { %7105 = vmatpush1.bf16.msra.mxu0 %v7104_v14  ;;  %v2682_v14 = vld [vmem:[%s11541_s7 + $0x30] sm:$0xff] }
 0x1c5   :  { %7107 = vmatprep.subr.bf16.mxu0 %v7106_v42  ;;  %v2691_v42 = vld [vmem:[%s11541_s7 + $0x78] sm:$0xff] }
 0x1c8   :  { %7109 = vmatpush1.bf16.msra.mxu0 %v7108_v58  ;;  %v2690_v58 = vld [vmem:[%s11541_s7 + $0x70] sm:$0xff] }
 0x1c9   :  { %7111 = vmatprep.subr.bf16.mxu0 %v7110_v15  ;;  %v2857_v15 = vld [vmem:[%s11541_s7 + $0x100] sm:$0xff] }
 0x1ce   :  { %v5868_v37 = vpop.f32.mrb[10].mxu0 }
 0x1cf   :  { %v5869_v34 = vpop.f32.mrb[11].mxu0  ;;  %v5903_v24 = vpop.f32.mrb[10].mxu1 }
 0x1d0   :  { %v5870_v59 = vadd.f32 %v5869_v34, %v5868_v37  ;;  %v5904_v38 = vpop.f32.mrb[11].mxu1  ;;  %v2685_v37 = vld [vmem:[%s11541_s7 + $0x48] sm:$0xff]  ;;  %v2687_v34 = vld [vmem:[%s11541_s7 + $0x58] sm:$0xff] }
 0x1d1   :  { %v5905_v55 = vadd.f32 %v5904_v38, %v5903_v24  ;;  %v7116_v24 = vpack.c.bf16 %v2682_v14, %v2680_v31  ;;  %v7118_v54 = vpack.c.bf16 %v2687_v34, %v2685_v37  ;;  %v2689_v38 = vld [vmem:[%s11541_s7 + $0x68] sm:$0xff]  ;;  %v3087_v31 = vld [vmem:[%s11538_s4 + $0x238] sm:$0xff]  ;;  %v3080_v34 = vld [vmem:[%s11538_s4 + $0x200] sm:$0xff] }
 0x1d2   :  { %v1547_v4 = vadd.f32 %v5870_v59, %v1477_v33  ;;  %v2686_v59 = vld [vmem:[%s11541_s7 + $0x50] sm:$0xff]  ;;  %v7122_v53 = vpack.c.bf16 %v2691_v42, %v2689_v38  ;;  %v3119_v37 = vld [vmem:[%s11538_s4 + $0x338] sm:$0xff] }
 0x1d3   :  { %v7120_v52 = vpack.c.bf16 %v2686_v59, %v2684_v32  ;;  %v3086_v32 = vld [vmem:[%s11538_s4 + $0x230] sm:$0xff] }
 0x1d4   :  { %v1617_v8 = vadd.f32 %v5905_v55, %v1547_v4  ;;  %v2688_v55 = vld [vmem:[%s11541_s7 + $0x60] sm:$0xff]  ;;  %v2858_v4 = vld [vmem:[%s11541_s7 + $0x108] sm:$0xff]  ;;  %v3118_v59 = vld [vmem:[%s11538_s4 + $0x330] sm:$0xff] }
 0x1d5   :  { %v7124_v5 = vpack.c.bf16 %v2690_v58, %v2688_v55  ;;  %v7196_v42 = vpack.c.bf16 %v3118_v59, %v3086_v32  ;;  %v3151_v55 = vld [vmem:[%s11538_s4 + $0x438] sm:$0xff] }
 0x1d6   :  { %v3091_v32 = vld [vmem:[%s11538_s4 + $0x258] sm:$0xff] }
 0x1d7   :  { %v3123_v59 = vld [vmem:[%s11538_s4 + $0x358] sm:$0xff] }
 0x1ee   :  { %v5938_v16 = vpop.f32.mrb[12].mxu0 }
 0x1ef   :  { %v5939_v22 = vpop.f32.mrb[13].mxu0  ;;  %v5973_v27 = vpop.f32.mrb[12].mxu1 }
 0x1f0   :  { %v5940_v28 = vadd.f32 %v5939_v22, %v5938_v16  ;;  %v5974_v29 = vpop.f32.mrb[13].mxu1  ;;  %v2859_v16 = vld [vmem:[%s11541_s7 + $0x110] sm:$0xff]  ;;  %v2862_v22 = vld [vmem:[%s11541_s7 + $0x128] sm:$0xff] }
 0x1f1   :  { %v5975_v35 = vadd.f32 %v5974_v29, %v5973_v27  ;;  %v2864_v27 = vld [vmem:[%s11541_s7 + $0x138] sm:$0xff] }
 0x1f2   :  { %v1687_v41 = vadd.f32 %v5940_v28, %v1617_v8  ;;  %v7126_v8 = vpack.c.bf16 %v2860_v60, %v2858_v4  ;;  %v7128_v28 = vpack.c.bf16 %v2859_v16, %v2857_v15  ;;  %v7130_v29 = vpack.c.bf16 %v2864_v27, %v2862_v22  ;;  %v3183_v4 = vld [vmem:[%s11538_s4 + $0x538] sm:$0xff]  ;;  %v3144_v60 = vld [vmem:[%s11538_s4 + $0x400] sm:$0xff]  ;;  %v3150_v16 = vld [vmem:[%s11538_s4 + $0x430] sm:$0xff] }
 0x1f3   :  { %v3182_v22 = vld [vmem:[%s11538_s4 + $0x530] sm:$0xff] }
 0x1f4   :  { %v1757_v40 = vadd.f32 %v5975_v35, %v1687_v41  ;;  %v2861_v35 = vld [vmem:[%s11541_s7 + $0x120] sm:$0xff]  ;;  %v2863_v41 = vld [vmem:[%s11541_s7 + $0x130] sm:$0xff]  ;;  %v7200_v27 = vpack.c.bf16 %v3182_v22, %v3150_v16  ;;  %v3179_v16 = vld [vmem:[%s11538_s4 + $0x518] sm:$0xff] }
 0x20e   :  { %v6008_v43 = vpop.f32.mrb[14].mxu0 }
 0x20f   :  { %v6009_v50 = vpop.f32.mrb[15].mxu0  ;;  %v6043_v62 = vpop.f32.mrb[14].mxu1 }
 0x210   :  { %v6010_v61 = vadd.f32 %v6009_v50, %v6008_v43  ;;  %v6044_v1 = vpop.f32.mrb[15].mxu1  ;;  %v2868_v43 = vld [vmem:[%s11541_s7 + $0x158] sm:$0xff]  ;;  %v7132_v50 = vpack.c.bf16 %v2863_v41, %v2861_v35 }
 0x211   :  { %v6045_v7 = vadd.f32 %v6044_v1, %v6043_v62  ;;  %v2867_v1 = vld [vmem:[%s11541_s7 + $0x150] sm:$0xff]  ;;  %v3215_v35 = vld [vmem:[%s11538_s4 + $0x638] sm:$0xff] }
 0x212   :  { %v1827_v23 = vadd.f32 %v6010_v61, %v1757_v40  ;;  %v2866_v40 = vld [vmem:[%s11541_s7 + $0x148] sm:$0xff]  ;;  %v2865_v61 = vld [vmem:[%s11541_s7 + $0x140] sm:$0xff] }
 0x213   :  { %v7134_v62 = vpack.c.bf16 %v2868_v43, %v2866_v40  ;;  %v3247_v40 = vld [vmem:[%s11538_s4 + $0x738] sm:$0xff]  ;;  %v3208_v43 = vld [vmem:[%s11538_s4 + $0x600] sm:$0xff] }
 0x214   :  { %v10216_v26 = vadd.f32 %v6045_v7, %v1827_v23  ;;  %v2870_v7 = vld [vmem:[%s11541_s7 + $0x168] sm:$0xff]  ;;  %v2872_v23 = vld [vmem:[%s11541_s7 + $0x178] sm:$0xff] }
 0x215   :  { %v7138_v30 = vpack.c.bf16 %v2872_v23, %v2870_v7 }
 0x22e   :  { %v6078_v11 = vpop.f32.mrb[16].mxu0 }
 0x22f   :  { %v6113_v20 = vpop.f32.mrb[16].mxu1  ;;  %v6079_v18 = vpop.f32.mrb[17].mxu0 }
 0x230   :  { %v6080_v19 = vadd.f32 %v6079_v18, %v6078_v11  ;;  %v6114_v21 = vpop.f32.mrb[17].mxu1  ;;  %v7140_v18 = vpack.c.bf16 %v2871_v56, %v2869_v44  ;;  %v3027_v44 = vld [vmem:[%s11538_s4 + $0x58] sm:$0xff] }
 0x231   :  { %v6115_v63 = vadd.f32 %v6114_v21, %v6113_v20 }
 0x233   :  { %v2209_v33 = vadd.f32 %v6115_v63, %v6080_v19  ;;  %v7190_v63 = vpack.c.bf16 %v3055_v46, %v3023_v57  ;;  %v3059_v57 = vld [vmem:[%s11538_s4 + $0x158] sm:$0xff] }
 0x234   :  { %v7222_v46 = vpack.c.bf16 %v3059_v57, %v3027_v44  ;;  %v3251_v44 = vld [vmem:[%s11538_s4 + $0x758] sm:$0xff] }
 0x24e   :  { %v6148_v39 = vpop.f32.mrb[18].mxu0 }
 0x24f   :  { %v6149_v45 = vpop.f32.mrb[19].mxu0  ;;  %v6183_v12 = vpop.f32.mrb[18].mxu1 }
 0x250   :  { %v6150_v51 = vadd.f32 %v6149_v45, %v6148_v39  ;;  %v6184_v48 = vpop.f32.mrb[19].mxu1 }
 0x251   :  { %v6185_v47 = vadd.f32 %v6184_v48, %v6183_v12 }
 0x252   :  { %v2279_v9 = vadd.f32 %v6150_v51, %v2209_v33 }
 0x254   :  { %v2349_v0 = vadd.f32 %v6185_v47, %v2279_v9  ;;  %v3054_v47 = vld [vmem:[%s11538_s4 + $0x130] sm:$0xff] }
 0x255   :  { %v7192_v9 = vpack.c.bf16 %v3054_v47, %v3022_v25 }
 0x256   :  { %5457 = vmatmul.mubr.msk.f32.vlgmr.msra.gmra.mrb[24].mxu0 %vm2708_vm0, %v2349_v0  ;;  %v3081_v0 = vld [vmem:[%s11538_s4 + $0x208] sm:$0xff] }
 0x257   :  { %7113 = vmatpush1.bf16.msra.mxu0 %v7112_v10  ;;  %2850 = vmatprep.mubr.f32.mxu0 %v7732_v17 }
 0x258   :  { %7115 = vmatprep.subr.bf16.mxu0 %v7114_v3  ;;  %v3113_v3 = vld [vmem:[%s11538_s4 + $0x308] sm:$0xff] }
 0x259   :  { %v7146_v14 = vpack.c.bf16 %v3113_v3, %v3081_v0  ;;  %v3018_v0 = vld [vmem:[%s11538_s4 + $0x10] sm:$0xff] }
 0x25a   :  { %v3050_v3 = vld [vmem:[%s11538_s4 + $0x110] sm:$0xff] }
 0x25b   :  { %7117 = vmatpush1.bf16.msra.mxu0 %v7116_v24  ;;  %v7194_v24 = vpack.c.bf16 %v3119_v37, %v3087_v31  ;;  %7147 = vmatprep.subr.bf16.mxu1 %v7146_v14  ;;  %v3026_v14 = vld [vmem:[%s11538_s4 + $0x50] sm:$0xff] }
 0x25c   :  { %7119 = vmatprep.subr.bf16.mxu0 %v7118_v54  ;;  %v3112_v54 = vld [vmem:[%s11538_s4 + $0x300] sm:$0xff]  ;;  %v3058_v37 = vld [vmem:[%s11538_s4 + $0x150] sm:$0xff] }
 0x25d   :  { %v7148_v38 = vpack.c.bf16 %v3112_v54, %v3080_v34  ;;  %v3083_v34 = vld [vmem:[%s11538_s4 + $0x218] sm:$0xff] }
 0x25e   :  { %v3115_v54 = vld [vmem:[%s11538_s4 + $0x318] sm:$0xff] }
 0x25f   :  { %7121 = vmatpush1.bf16.msra.mxu0 %v7120_v52  ;;  %v3145_v52 = vld [vmem:[%s11538_s4 + $0x408] sm:$0xff]  ;;  %7149 = vmatpush1.bf16.msra.mxu1 %v7148_v38 }
 0x260   :  { %7123 = vmatprep.subr.bf16.mxu0 %v7122_v53  ;;  %v3177_v53 = vld [vmem:[%s11538_s4 + $0x508] sm:$0xff] }
 0x261   :  { %v7150_v58 = vpack.c.bf16 %v3177_v53, %v3145_v52  ;;  %v7160_v52 = vpack.c.bf16 %v3050_v3, %v3018_v0  ;;  %v7224_v53 = vpack.c.bf16 %v3058_v37, %v3026_v14  ;;  %v3095_v0 = vld [vmem:[%s11538_s4 + $0x278] sm:$0xff]  ;;  %v3084_v37 = vld [vmem:[%s11538_s4 + $0x220] sm:$0xff] }
 0x262   :  { %v3127_v3 = vld [vmem:[%s11538_s4 + $0x378] sm:$0xff] }
 0x263   :  { %7125 = vmatpush1.bf16.msra.mxu0 %v7124_v5  ;;  %v3176_v5 = vld [vmem:[%s11538_s4 + $0x500] sm:$0xff]  ;;  %7151 = vmatprep.subr.bf16.mxu1 %v7150_v58  ;;  %v3114_v58 = vld [vmem:[%s11538_s4 + $0x310] sm:$0xff] }
 0x264   :  { %7127 = vmatprep.subr.bf16.mxu0 %v7126_v8  ;;  %v7198_v8 = vpack.c.bf16 %v3183_v4, %v3151_v55  ;;  %v7152_v15 = vpack.c.bf16 %v3176_v5, %v3144_v60  ;;  %v3082_v55 = vld [vmem:[%s11538_s4 + $0x210] sm:$0xff]  ;;  %v7162_v60 = vpack.c.bf16 %v3115_v54, %v3083_v34  ;;  %v7226_v5 = vpack.c.bf16 %v3123_v59, %v3091_v32  ;;  %v3116_v34 = vld [vmem:[%s11538_s4 + $0x320] sm:$0xff] }
 0x265   :  { %v3090_v4 = vld [vmem:[%s11538_s4 + $0x250] sm:$0xff]  ;;  %v7258_v54 = vpack.c.bf16 %v3127_v3, %v3095_v0  ;;  %v3163_v0 = vld [vmem:[%s11538_s4 + $0x498] sm:$0xff] }
 0x266   :  { %5458 = vmatmul.mubr.msk.f32.vlgmr.msra.gmra.mrb[24].mxu0 %vm2708_vm0, %v10216_v26  ;;  %v7136_v26 = vpack.c.bf16 %v2867_v1, %v2865_v61  ;;  %7153 = vmatpush1.bf16.msra.mxu1 %v7152_v15  ;;  %v3214_v61 = vld [vmem:[%s11538_s4 + $0x630] sm:$0xff]  ;;  %v3147_v15 = vld [vmem:[%s11538_s4 + $0x418] sm:$0xff] }
 0x267   :  { %7129 = vmatpush1.bf16.msra.mxu0 %v7128_v28  ;;  %2940 = vmatprep.mubr.f32.mxu0 %v7732_v17  ;;  %v3209_v28 = vld [vmem:[%s11538_s4 + $0x608] sm:$0xff]  ;;  %v3246_v1 = vld [vmem:[%s11538_s4 + $0x730] sm:$0xff]  ;;  %v3195_v3 = vld [vmem:[%s11538_s4 + $0x598] sm:$0xff] }
 0x268   :  { %7131 = vmatprep.subr.bf16.mxu0 %v7130_v29  ;;  %v3241_v29 = vld [vmem:[%s11538_s4 + $0x708] sm:$0xff]  ;;  %v7204_v23 = vpack.c.bf16 %v3246_v1, %v3214_v61  ;;  %v7166_v61 = vpack.c.bf16 %v3179_v16, %v3147_v15  ;;  %v3094_v32 = vld [vmem:[%s11538_s4 + $0x270] sm:$0xff] }
 0x269   :  { %v7154_v41 = vpack.c.bf16 %v3241_v29, %v3209_v28  ;;  %v3187_v28 = vld [vmem:[%s11538_s4 + $0x558] sm:$0xff]  ;;  %v3126_v59 = vld [vmem:[%s11538_s4 + $0x370] sm:$0xff] }
 0x26a   :  { %v3158_v15 = vld [vmem:[%s11538_s4 + $0x470] sm:$0xff] }
 0x26b   :  { %7133 = vmatpush1.bf16.msra.mxu0 %v7132_v50  ;;  %v7202_v50 = vpack.c.bf16 %v3247_v40, %v3215_v35  ;;  %7155 = vmatprep.subr.bf16.mxu1 %v7154_v41  ;;  %v7164_v35 = vpack.c.bf16 %v3114_v58, %v3082_v55  ;;  %v3146_v40 = vld [vmem:[%s11538_s4 + $0x410] sm:$0xff]  ;;  %v7180_v55 = vpack.c.bf16 %v3116_v34, %v3084_v37  ;;  %v3152_v37 = vld [vmem:[%s11538_s4 + $0x440] sm:$0xff] }
 0x26c   :  { %7135 = vmatprep.subr.bf16.mxu0 %v7134_v62  ;;  %v3240_v62 = vld [vmem:[%s11538_s4 + $0x700] sm:$0xff]  ;;  %v7260_v58 = vpack.c.bf16 %v3126_v59, %v3094_v32  ;;  %v3190_v16 = vld [vmem:[%s11538_s4 + $0x570] sm:$0xff] }
 0x26d   :  { %v7156_v7 = vpack.c.bf16 %v3240_v62, %v3208_v43  ;;  %v3178_v43 = vld [vmem:[%s11538_s4 + $0x510] sm:$0xff]  ;;  %v3184_v34 = vld [vmem:[%s11538_s4 + $0x540] sm:$0xff] }
 0x26e   :  { %v6218_v6 = vpop.f32.mrb[20].mxu0  ;;  %v7168_v57 = vpack.c.bf16 %v3178_v43, %v3146_v40  ;;  %v7264_v43 = vpack.c.bf16 %v3190_v16, %v3158_v15  ;;  %v3162_v32 = vld [vmem:[%s11538_s4 + $0x490] sm:$0xff] }
 0x26f   :  { %v6253_v11 = vpop.f32.mrb[20].mxu1  ;;  %v6219_v20 = vpop.f32.mrb[21].mxu0  ;;  %7137 = vmatpush1.bf16.msra.mxu0 %v7136_v26  ;;  %v3019_v26 = vld [vmem:[%s11538_s4 + $0x18] sm:$0xff]  ;;  %7157 = vmatpush1.bf16.msra.mxu1 %v7156_v7  ;;  %v3186_v7 = vld [vmem:[%s11538_s4 + $0x550] sm:$0xff] }
 0x270   :  { %v6220_v19 = vadd.f32 %v6219_v20, %v6218_v6  ;;  %v6254_v21 = vpop.f32.mrb[21].mxu1  ;;  %7139 = vmatprep.subr.bf16.mxu0 %v7138_v30  ;;  %v3051_v30 = vld [vmem:[%s11538_s4 + $0x118] sm:$0xff]  ;;  %v11603_v6 = vld [vmem:[#allocation19_spill] sm:$0xff]  ;;  %v2949_v20 = vld [vmem:[%s11542_s8] sm:$0x3] }
 0x271   :  { %v6255_v33 = vadd.f32 %v6254_v21, %v6253_v11  ;;  %v7158_v56 = vpack.c.bf16 %v3051_v30, %v3019_v26  ;;  %v2953_v11 = vsub.s32 0, %v11603_v6  ;;  %v3243_v26 = vld [vmem:[%s11538_s4 + $0x718] sm:$0xff]  ;;  %v3194_v59 = vld [vmem:[%s11538_s4 + $0x590] sm:$0xff] }
 0x272   :  { %v3219_v30 = vld [vmem:[%s11538_s4 + $0x658] sm:$0xff]  ;;  %v3226_v15 = vld [vmem:[%s11538_s4 + $0x690] sm:$0xff] }
 0x273   :  { %v2533_v39 = vadd.f32 %v6255_v33, %v6220_v19  ;;  %7141 = vmatpush1.bf16.msra.mxu0 %v7140_v18  ;;  %7159 = vmatprep.subr.bf16.mxu1 %v7158_v56  ;;  %v2957_v18 = vsub.s32 1, %v11603_v6  ;;  %v2954_v19 = vrot.slane %v2949_v20, %v2953_v11  ;;  %v2967_v33 = vld [vmem:[%s11543_s9] sm:$0x3]  ;;  %v3210_v6 = vld [vmem:[%s11538_s4 + $0x610] sm:$0xff] }
 0x274   :  { %7191 = vmatprep.subr.bf16.mxu0 %v7190_v63  ;;  %v3258_v16 = vld [vmem:[%s11538_s4 + $0x790] sm:$0xff] }
 0x275   :  { %v2958_v21 = vrot.slane %v2949_v20, %v2957_v18  ;;  %v2976_v47 = vrot.slane %v2967_v33, %v2957_v18 }
 0x28e   :  { %v6288_v45 = vpop.f32.mrb[22].mxu0 }
 0x28f   :  { %v6289_v12 = vpop.f32.mrb[23].mxu0  ;;  %v6323_v51 = vpop.f32.mrb[22].mxu1 }
 0x290   :  { %v6290_v48 = vadd.f32 %v6289_v12, %v6288_v45  ;;  %v6324_v49 = vpop.f32.mrb[23].mxu1  ;;  %v2981_v12 = vld [vmem:[%s11544_s10] sm:$0x3] }
 0x291   :  { %v6325_v2 = vadd.f32 %v6324_v49, %v6323_v51  ;;  %v2972_v49 = vrot.slane %v2967_v33, %v2953_v11  ;;  %v3053_v33 = vld [vmem:[%s11538_s4 + $0x128] sm:$0xff] }
 0x292   :  { %v2603_v36 = vadd.f32 %v6290_v48, %v2533_v39 }
 0x294   :  { %v2673_v10 = vadd.f32 %v6325_v2, %v2603_v36  ;;  %v2986_v36 = vrot.slane %v2981_v12, %v2953_v11  ;;  %v3242_v11 = vld [vmem:[%s11538_s4 + $0x710] sm:$0xff] }
 0x296   :  { %5459 = vmatmul.mubr.msk.f32.vlgmr.msra.gmra.mrb[24].mxu0 %vm2708_vm0, %v2673_v10  ;;  %v2990_v10 = vrot.slane %v2981_v12, %v2957_v18  ;;  %v7234_v18 = vpack.c.bf16 %v3251_v44, %v3219_v30  ;;  %v7172_v12 = vpack.c.bf16 %v3242_v11, %v3210_v6  ;;  %v3057_v30 = vld [vmem:[%s11538_s4 + $0x148] sm:$0xff]  ;;  %v3035_v44 = vld [vmem:[%s11538_s4 + $0x98] sm:$0xff]  ;;  %v3024_v6 = vld [vmem:[%s11538_s4 + $0x40] sm:$0xff] }
 0x297   :  { %7193 = vmatpush1.bf16.msra.mxu0 %v7192_v9  ;;  %3551 = vmatprep.mubr.f32.mxu0 %v7732_v17  ;;  %v3056_v11 = vld [vmem:[%s11538_s4 + $0x140] sm:$0xff] }
 0x298   :  { %7195 = vmatprep.subr.bf16.mxu0 %v7194_v24 }
 0x29b   :  { %7197 = vmatpush1.bf16.msra.mxu0 %v7196_v42 }
 0x29c   :  { %7199 = vmatprep.subr.bf16.mxu0 %v7198_v8  ;;  %v3122_v8 = vld [vmem:[%s11538_s4 + $0x350] sm:$0xff] }
 0x29d   :  { %v7228_v41 = vpack.c.bf16 %v3122_v8, %v3090_v4  ;;  %v3148_v4 = vld [vmem:[%s11538_s4 + $0x420] sm:$0xff] }
 0x29f   :  { %7201 = vmatpush1.bf16.msra.mxu0 %v7200_v27  ;;  %v3155_v27 = vld [vmem:[%s11538_s4 + $0x458] sm:$0xff] }
 0x2a0   :  { %7203 = vmatprep.subr.bf16.mxu0 %v7202_v50  ;;  %v3154_v50 = vld [vmem:[%s11538_s4 + $0x450] sm:$0xff]  ;;  %v7230_v1 = vpack.c.bf16 %v3187_v28, %v3155_v27  ;;  %v3213_v27 = vld [vmem:[%s11538_s4 + $0x628] sm:$0xff] }
 0x2a1   :  { %v3245_v28 = vld [vmem:[%s11538_s4 + $0x728] sm:$0xff] }
 0x2a3   :  { %7205 = vmatpush1.bf16.msra.mxu0 %v7204_v23  ;;  %v3211_v23 = vld [vmem:[%s11538_s4 + $0x618] sm:$0xff] }
 0x2a4   :  { %7223 = vmatprep.subr.bf16.mxu0 %v7222_v46  ;;  %v7232_v46 = vpack.c.bf16 %v3186_v7, %v3154_v50  ;;  %v7170_v20 = vpack.c.bf16 %v3243_v26, %v3211_v23  ;;  %v3212_v50 = vld [vmem:[%s11538_s4 + $0x620] sm:$0xff]  ;;  %v3222_v7 = vld [vmem:[%s11538_s4 + $0x670] sm:$0xff]  ;;  %v3025_v26 = vld [vmem:[%s11538_s4 + $0x48] sm:$0xff] }
 0x2a5   :  { %v3254_v23 = vld [vmem:[%s11538_s4 + $0x770] sm:$0xff] }
 0x369   :  { %v2942_v63 = vpop.f32.mrb[24].mxu0 }
 0x36a   :  { %v2961_v39 = vadd.f32 %v2954_v19, %v2942_v63  ;;  %v2944_v45 = vpop.f32.mrb[25].mxu0  ;;  %v3218_v19 = vld [vmem:[%s11538_s4 + $0x650] sm:$0xff]  ;;  %v3021_v63 = vld [vmem:[%s11538_s4 + $0x28] sm:$0xff] }
 0x36b   :  { %v2962_v51 = vadd.f32 %v2958_v21, %v2944_v45  ;;  %v3250_v21 = vld [vmem:[%s11538_s4 + $0x750] sm:$0xff]  ;;  %v3063_v45 = vld [vmem:[%s11538_s4 + $0x178] sm:$0xff] }
 0x36c   :  { %v2963_v48 = vmax.f32 %v2961_v39, 0.0  ;;  %v3031_v39 = vld [vmem:[%s11538_s4 + $0x78] sm:$0xff] }
 0x36d   :  { %v2964_v25 = vmax.f32 %v2962_v51, 0.0  ;;  %v7236_v51 = vpack.c.bf16 %v3250_v21, %v3218_v19  ;;  %v3034_v19 = vld [vmem:[%s11538_s4 + $0x90] sm:$0xff] }
 0x36e   :  { %v2965_v2 = vmin.f32 %v2963_v48, 6.0  ;;  %v3020_v48 = vld [vmem:[%s11538_s4 + $0x20] sm:$0xff]  ;;  %v3066_v21 = vld [vmem:[%s11538_s4 + $0x190] sm:$0xff] }
 0x36f   :  { %v2966_v9 = vmin.f32 %v2964_v25, 6.0  ;;  %v7174_v25 = vpack.c.bf16 %v3053_v33, %v3021_v63  ;;  %v3089_v63 = vld [vmem:[%s11538_s4 + $0x248] sm:$0xff] }
 0x370   :  { %v2979_v31 = vmul.f32 %v2972_v49, %v2965_v2  ;;  %v3052_v49 = vld [vmem:[%s11538_s4 + $0x120] sm:$0xff]  ;;  %v3030_v2 = vld [vmem:[%s11538_s4 + $0x70] sm:$0xff]  ;;  %v3121_v33 = vld [vmem:[%s11538_s4 + $0x348] sm:$0xff] }
 0x371   :  { %v2980_v24 = vmul.f32 %v2976_v47, %v2966_v9  ;;  %v7254_v47 = vpack.c.bf16 %v3063_v45, %v3031_v39  ;;  %v3085_v9 = vld [vmem:[%s11538_s4 + $0x228] sm:$0xff]  ;;  %v3099_v39 = vld [vmem:[%s11538_s4 + $0x298] sm:$0xff] }
 0x372   :  { %v2993_v38 = vadd.f32 %v2986_v36, %v2979_v31  ;;  %v3062_v36 = vld [vmem:[%s11538_s4 + $0x170] sm:$0xff]  ;;  %v7176_v31 = vpack.c.bf16 %v3052_v49, %v3020_v48  ;;  %v3131_v45 = vld [vmem:[%s11538_s4 + $0x398] sm:$0xff]  ;;  %v3088_v48 = vld [vmem:[%s11538_s4 + $0x240] sm:$0xff] }
 0x373   :  { %v2994_v42 = vadd.f32 %v2990_v10, %v2980_v24  ;;  %v3117_v10 = vld [vmem:[%s11538_s4 + $0x328] sm:$0xff]  ;;  %v7256_v14 = vpack.c.bf16 %v3062_v36, %v3030_v2  ;;  %v3120_v49 = vld [vmem:[%s11538_s4 + $0x340] sm:$0xff]  ;;  %v3098_v2 = vld [vmem:[%s11538_s4 + $0x290] sm:$0xff] }
 0x374   :  { %vm2995_vm1 = vcmp.gt.f32.partialorder %v2993_v38, 0.0  ;;  %v7178_v24 = vpack.c.bf16 %v3117_v10, %v3085_v9  ;;  %v3149_v38 = vld [vmem:[%s11538_s4 + $0x428] sm:$0xff]  ;;  %v3130_v36 = vld [vmem:[%s11538_s4 + $0x390] sm:$0xff] }
 0x375   :  { %v10477_v22 = vsel %vm2995_vm1, 1.0, %v7732_v17  ;;  %vm2996_vm2 = vcmp.gt.f32.partialorder %v2994_v42, 0.0  ;;  %v3181_v42 = vld [vmem:[%s11538_s4 + $0x528] sm:$0xff] }
 0x376   :  { %5462 = vmatmul.mubr.msk.f32.vlgmr.msra.gmra.mrb[24].mxu1 %vm2708_vm0, %v10477_v22  ;;  %5465 = vmatmul.mubr.msk.f32.vlgmr.msra.gmra.mrb[26].mxu0 %vm2708_vm0, %v10477_v22  ;;  %v10490_v29 = vsel %vm2996_vm2, 1.0, %v7732_v17  ;;  %v3153_v9 = vld [vmem:[%s11538_s4 + $0x448] sm:$0xff] }
 0x377   :  { %7161 = vmatpush1.bf16.msra.mxu1 %v7160_v52  ;;  %7225 = vmatpush1.bf16.msra.mxu0 %v7224_v53  ;;  %v3003_v62 = vcombine.low %v10477_v22, %v10490_v29  ;;  %v3159_v52 = vld [vmem:[%s11538_s4 + $0x478] sm:$0xff]  ;;  %v3185_v10 = vld [vmem:[%s11538_s4 + $0x548] sm:$0xff] }
 0x378   :  { %4666 = vrot.lane.b32.xlu0 %v10477_v22, %s7733_s30  ;;  %7163 = vmatprep.subr.bf16.mxu1 %v7162_v60  ;;  %v3191_v53 = vld [vmem:[%s11538_s4 + $0x578] sm:$0xff]  ;;  %v3180_v60 = vld [vmem:[%s11538_s4 + $0x520] sm:$0xff] }
 0x379   :  { %7227 = vmatprep.subr.bf16.mxu0 %v7226_v5  ;;  %3409 = vmatprep.mubr.f32.mxu1 %v7732_v17  ;;  %v3010_v56 = vrot.slane %v3003_v62, %v8002_v13  ;;  %v7182_v5 = vpack.c.bf16 %v3181_v42, %v3149_v38  ;;  %v7262_v8 = vpack.c.bf16 %v3191_v53, %v3159_v52  ;;  %v3244_v62 = vld [vmem:[%s11538_s4 + $0x720] sm:$0xff]  ;;  %v3217_v38 = vld [vmem:[%s11538_s4 + $0x648] sm:$0xff]  ;;  %v3227_v52 = vld [vmem:[%s11538_s4 + $0x698] sm:$0xff] }
 0x37a   :  { %3693 = vmatprep.mubr.f32.mxu0 %v7732_v17  ;;  %v7184_v40 = vpack.c.bf16 %v3180_v60, %v3148_v4  ;;  %v3249_v42 = vld [vmem:[%s11538_s4 + $0x748] sm:$0xff]  ;;  %v3259_v53 = vld [vmem:[%s11538_s4 + $0x798] sm:$0xff]  ;;  %v3216_v4 = vld [vmem:[%s11538_s4 + $0x640] sm:$0xff] }
 0x37b   :  { %7165 = vmatpush1.bf16.msra.mxu1 %v7164_v35  ;;  %7229 = vmatpush1.bf16.msra.mxu0 %v7228_v41  ;;  %3015 = vst.msk [vmem:[#allocation12] sm:$0xf] %vm3014_vm5, %v3010_v56  ;;  %v3223_v35 = vld [vmem:[%s11538_s4 + $0x678] sm:$0xff]  ;;  %v3248_v60 = vld [vmem:[%s11538_s4 + $0x740] sm:$0xff] }
 0x37c   :  { %7167 = vmatprep.subr.bf16.mxu1 %v7166_v61  ;;  %7231 = vmatprep.subr.bf16.mxu0 %v7230_v1  ;;  %v3255_v41 = vld [vmem:[%s11538_s4 + $0x778] sm:$0xff]  ;;  %v7186_v61 = vpack.c.bf16 %v3245_v28, %v3213_v27  ;;  %v3029_v27 = vld [vmem:[%s11538_s4 + $0x68] sm:$0xff] }
 0x37d   :  { %v7266_v1 = vpack.c.bf16 %v3255_v41, %v3223_v35  ;;  %v3067_v56 = vld [vmem:[%s11538_s4 + $0x198] sm:$0xff]  ;;  %v3061_v28 = vld [vmem:[%s11538_s4 + $0x168] sm:$0xff] }
 0x37e   :  { %v3039_v35 = vld [vmem:[%s11538_s4 + $0xb8] sm:$0xff] }
 0x37f   :  { %7169 = vmatpush1.bf16.msra.mxu1 %v7168_v57  ;;  %7233 = vmatpush1.bf16.msra.mxu0 %v7232_v46  ;;  %v7188_v57 = vpack.c.bf16 %v3244_v62, %v3212_v50  ;;  %v7268_v46 = vpack.c.bf16 %v3254_v23, %v3222_v7  ;;  %v3071_v41 = vld [vmem:[%s11538_s4 + $0x1b8] sm:$0xff]  ;;  %v3028_v50 = vld [vmem:[%s11538_s4 + $0x60] sm:$0xff]  ;;  %v3038_v7 = vld [vmem:[%s11538_s4 + $0xb0] sm:$0xff] }
 0x380   :  { %7171 = vmatprep.subr.bf16.mxu1 %v7170_v20  ;;  %7235 = vmatprep.subr.bf16.mxu0 %v7234_v18  ;;  %v7206_v20 = vpack.c.bf16 %v3057_v30, %v3025_v26  ;;  %v7286_v18 = vpack.c.bf16 %v3067_v56, %v3035_v44  ;;  %v3060_v62 = vld [vmem:[%s11538_s4 + $0x160] sm:$0xff]  ;;  %v3070_v23 = vld [vmem:[%s11538_s4 + $0x1b0] sm:$0xff]  ;;  %v3093_v26 = vld [vmem:[%s11538_s4 + $0x268] sm:$0xff] }
 0x381   :  { %v3125_v30 = vld [vmem:[%s11538_s4 + $0x368] sm:$0xff]  ;;  %v3103_v44 = vld [vmem:[%s11538_s4 + $0x2b8] sm:$0xff] }
 0x382   :  { %v3135_v56 = vld [vmem:[%s11538_s4 + $0x3b8] sm:$0xff] }
 0x383   :  { %7173 = vmatpush1.bf16.msra.mxu1 %v7172_v12  ;;  %7237 = vmatpush1.bf16.msra.mxu0 %v7236_v51  ;;  %v7208_v12 = vpack.c.bf16 %v3056_v11, %v3024_v6  ;;  %v7288_v51 = vpack.c.bf16 %v3066_v21, %v3034_v19  ;;  %v3092_v6 = vld [vmem:[%s11538_s4 + $0x260] sm:$0xff]  ;;  %v3102_v19 = vld [vmem:[%s11538_s4 + $0x2b0] sm:$0xff] }
 0x384   :  { %7175 = vmatprep.subr.bf16.mxu1 %v7174_v25  ;;  %7255 = vmatprep.subr.bf16.mxu0 %v7254_v47  ;;  %v7210_v25 = vpack.c.bf16 %v3121_v33, %v3089_v63  ;;  %v7290_v47 = vpack.c.bf16 %v3131_v45, %v3099_v39  ;;  %v3124_v11 = vld [vmem:[%s11538_s4 + $0x360] sm:$0xff]  ;;  %v3134_v21 = vld [vmem:[%s11538_s4 + $0x3b0] sm:$0xff]  ;;  %v3157_v63 = vld [vmem:[%s11538_s4 + $0x468] sm:$0xff] }
 0x385   :  { %v3189_v33 = vld [vmem:[%s11538_s4 + $0x568] sm:$0xff]  ;;  %v3167_v39 = vld [vmem:[%s11538_s4 + $0x4b8] sm:$0xff] }
 0x386   :  { %5463 = vmatmul.mubr.msk.f32.vlgmr.msra.gmra.mrb[26].mxu1 %vm2708_vm0, %v10477_v22  ;;  %5467 = vmatmul.mubr.msk.f32.vlgmr.msra.gmra.mrb[28].mxu0 %vm2708_vm0, %v10477_v22  ;;  %v3199_v45 = vld [vmem:[%s11538_s4 + $0x5b8] sm:$0xff] }
 0x387   :  { %7177 = vmatpush1.bf16.msra.mxu1 %v7176_v31  ;;  %7257 = vmatpush1.bf16.msra.mxu0 %v7256_v14  ;;  %v7212_v31 = vpack.c.bf16 %v3120_v49, %v3088_v48  ;;  %v7292_v14 = vpack.c.bf16 %v3130_v36, %v3098_v2  ;;  %v3156_v48 = vld [vmem:[%s11538_s4 + $0x460] sm:$0xff]  ;;  %v3166_v2 = vld [vmem:[%s11538_s4 + $0x4b0] sm:$0xff] }
 0x388   :  { %7179 = vmatprep.subr.bf16.mxu1 %v7178_v24  ;;  %7259 = vmatprep.subr.bf16.mxu0 %v7258_v54  ;;  %v7214_v24 = vpack.c.bf16 %v3185_v10, %v3153_v9  ;;  %v7294_v54 = vpack.c.bf16 %v3195_v3, %v3163_v0  ;;  %v3188_v49 = vld [vmem:[%s11538_s4 + $0x560] sm:$0xff]  ;;  %v3198_v36 = vld [vmem:[%s11538_s4 + $0x5b0] sm:$0xff]  ;;  %v3221_v9 = vld [vmem:[%s11538_s4 + $0x668] sm:$0xff] }
 0x389   :  { %3480 = vmatprep.mubr.f32.mxu1 %v7732_v17  ;;  %3835 = vmatprep.mubr.f32.mxu0 %v7732_v17  ;;  %v3253_v10 = vld [vmem:[%s11538_s4 + $0x768] sm:$0xff]  ;;  %v3231_v0 = vld [vmem:[%s11538_s4 + $0x6b8] sm:$0xff] }
 0x38a   :  { %v3263_v3 = vld [vmem:[%s11538_s4 + $0x7b8] sm:$0xff] }
 0x38b   :  { %7181 = vmatpush1.bf16.msra.mxu1 %v7180_v55  ;;  %7261 = vmatpush1.bf16.msra.mxu0 %v7260_v58  ;;  %v7216_v55 = vpack.c.bf16 %v3184_v34, %v3152_v37  ;;  %v7296_v58 = vpack.c.bf16 %v3194_v59, %v3162_v32  ;;  %v3220_v37 = vld [vmem:[%s11538_s4 + $0x660] sm:$0xff]  ;;  %v3230_v32 = vld [vmem:[%s11538_s4 + $0x6b0] sm:$0xff] }
 0x38c   :  { %7183 = vmatprep.subr.bf16.mxu1 %v7182_v5  ;;  %7263 = vmatprep.subr.bf16.mxu0 %v7262_v8  ;;  %v7218_v5 = vpack.c.bf16 %v3249_v42, %v3217_v38  ;;  %v7298_v8 = vpack.c.bf16 %v3259_v53, %v3227_v52  ;;  %v3252_v34 = vld [vmem:[%s11538_s4 + $0x760] sm:$0xff]  ;;  %v3262_v59 = vld [vmem:[%s11538_s4 + $0x7b0] sm:$0xff]  ;;  %v3033_v38 = vld [vmem:[%s11538_s4 + $0x88] sm:$0xff] }
 0x38d   :  { %v3065_v42 = vld [vmem:[%s11538_s4 + $0x188] sm:$0xff]  ;;  %v3043_v52 = vld [vmem:[%s11538_s4 + $0xd8] sm:$0xff] }
 0x38e   :  { %v3075_v53 = vld [vmem:[%s11538_s4 + $0x1d8] sm:$0xff] }
 0x38f   :  { %7185 = vmatpush1.bf16.msra.mxu1 %v7184_v40  ;;  %7265 = vmatpush1.bf16.msra.mxu0 %v7264_v43  ;;  %v7220_v40 = vpack.c.bf16 %v3248_v60, %v3216_v4  ;;  %v7300_v43 = vpack.c.bf16 %v3258_v16, %v3226_v15  ;;  %v3032_v4 = vld [vmem:[%s11538_s4 + $0x80] sm:$0xff]  ;;  %v3042_v15 = vld [vmem:[%s11538_s4 + $0xd0] sm:$0xff] }
 0x390   :  { %7187 = vmatprep.subr.bf16.mxu1 %v7186_v61  ;;  %7267 = vmatprep.subr.bf16.mxu0 %v7266_v1  ;;  %v7238_v61 = vpack.c.bf16 %v3061_v28, %v3029_v27  ;;  %v7318_v1 = vpack.c.bf16 %v3071_v41, %v3039_v35  ;;  %v3064_v60 = vld [vmem:[%s11538_s4 + $0x180] sm:$0xff]  ;;  %v3074_v16 = vld [vmem:[%s11538_s4 + $0x1d0] sm:$0xff]  ;;  %v3097_v27 = vld [vmem:[%s11538_s4 + $0x288] sm:$0xff] }
 0x391   :  { %v3129_v28 = vld [vmem:[%s11538_s4 + $0x388] sm:$0xff]  ;;  %v3107_v35 = vld [vmem:[%s11538_s4 + $0x2d8] sm:$0xff] }
 0x392   :  { %v3139_v41 = vld [vmem:[%s11538_s4 + $0x3d8] sm:$0xff] }
 0x393   :  { %7189 = vmatpush1.bf16.msra.mxu1 %v7188_v57  ;;  %7269 = vmatpush1.bf16.msra.mxu0 %v7268_v46  ;;  %v7240_v57 = vpack.c.bf16 %v3060_v62, %v3028_v50  ;;  %v7320_v46 = vpack.c.bf16 %v3070_v23, %v3038_v7  ;;  %v3096_v50 = vld [vmem:[%s11538_s4 + $0x280] sm:$0xff]  ;;  %v3106_v7 = vld [vmem:[%s11538_s4 + $0x2d0] sm:$0xff] }
 0x394   :  { %7207 = vmatprep.subr.bf16.mxu1 %v7206_v20  ;;  %7287 = vmatprep.subr.bf16.mxu0 %v7286_v18  ;;  %v7242_v20 = vpack.c.bf16 %v3125_v30, %v3093_v26  ;;  %v7322_v18 = vpack.c.bf16 %v3135_v56, %v3103_v44  ;;  %v3128_v62 = vld [vmem:[%s11538_s4 + $0x380] sm:$0xff]  ;;  %v3138_v23 = vld [vmem:[%s11538_s4 + $0x3d0] sm:$0xff]  ;;  %v3161_v26 = vld [vmem:[%s11538_s4 + $0x488] sm:$0xff] }
 0x395   :  { %v3193_v30 = vld [vmem:[%s11538_s4 + $0x588] sm:$0xff]  ;;  %v3171_v44 = vld [vmem:[%s11538_s4 + $0x4d8] sm:$0xff] }
 0x396   :  { %5464 = vmatmul.mubr.msk.f32.vlgmr.msra.gmra.mrb[28].mxu1 %vm2708_vm0, %v10477_v22  ;;  %5469 = vmatmul.mubr.msk.f32.vlgmr.msra.gmra.mrb[30].mxu0 %vm2708_vm0, %v10477_v22  ;;  %v3203_v56 = vld [vmem:[%s11538_s4 + $0x5d8] sm:$0xff] }
 0x397   :  { %7209 = vmatpush1.bf16.msra.mxu1 %v7208_v12  ;;  %7289 = vmatpush1.bf16.msra.mxu0 %v7288_v51  ;;  %v7244_v12 = vpack.c.bf16 %v3124_v11, %v3092_v6  ;;  %v7324_v51 = vpack.c.bf16 %v3134_v21, %v3102_v19  ;;  %v3160_v6 = vld [vmem:[%s11538_s4 + $0x480] sm:$0xff]  ;;  %v3170_v19 = vld [vmem:[%s11538_s4 + $0x4d0] sm:$0xff] }
 0x398   :  { %7211 = vmatprep.subr.bf16.mxu1 %v7210_v25  ;;  %7291 = vmatprep.subr.bf16.mxu0 %v7290_v47  ;;  %v7246_v25 = vpack.c.bf16 %v3189_v33, %v3157_v63  ;;  %v7326_v47 = vpack.c.bf16 %v3199_v45, %v3167_v39  ;;  %v3192_v11 = vld [vmem:[%s11538_s4 + $0x580] sm:$0xff]  ;;  %v3202_v21 = vld [vmem:[%s11538_s4 + $0x5d0] sm:$0xff]  ;;  %v3225_v63 = vld [vmem:[%s11538_s4 + $0x688] sm:$0xff] }
 0x399   :  { %3622 = vmatprep.mubr.f32.mxu1 %v7732_v17  ;;  %3977 = vmatprep.mubr.f32.mxu0 %v7732_v17  ;;  %v3257_v33 = vld [vmem:[%s11538_s4 + $0x788] sm:$0xff]  ;;  %v3235_v39 = vld [vmem:[%s11538_s4 + $0x6d8] sm:$0xff] }
 0x39a   :  { %v3267_v45 = vld [vmem:[%s11538_s4 + $0x7d8] sm:$0xff] }
 0x39b   :  { %7213 = vmatpush1.bf16.msra.mxu1 %v7212_v31  ;;  %7293 = vmatpush1.bf16.msra.mxu0 %v7292_v14  ;;  %v7248_v31 = vpack.c.bf16 %v3188_v49, %v3156_v48  ;;  %v7328_v14 = vpack.c.bf16 %v3198_v36, %v3166_v2  ;;  %v3224_v48 = vld [vmem:[%s11538_s4 + $0x680] sm:$0xff]  ;;  %v3234_v2 = vld [vmem:[%s11538_s4 + $0x6d0] sm:$0xff] }
 0x39c   :  { %7215 = vmatprep.subr.bf16.mxu1 %v7214_v24  ;;  %7295 = vmatprep.subr.bf16.mxu0 %v7294_v54  ;;  %v7250_v24 = vpack.c.bf16 %v3253_v10, %v3221_v9  ;;  %v7330_v54 = vpack.c.bf16 %v3263_v3, %v3231_v0  ;;  %v3256_v49 = vld [vmem:[%s11538_s4 + $0x780] sm:$0xff]  ;;  %v3266_v36 = vld [vmem:[%s11538_s4 + $0x7d0] sm:$0xff]  ;;  %v3037_v9 = vld [vmem:[%s11538_s4 + $0xa8] sm:$0xff] }
 0x39d   :  { %v3069_v10 = vld [vmem:[%s11538_s4 + $0x1a8] sm:$0xff]  ;;  %v3047_v0 = vld [vmem:[%s11538_s4 + $0xf8] sm:$0xff] }
 0x39e   :  { %v3079_v3 = vld [vmem:[%s11538_s4 + $0x1f8] sm:$0xff] }
 0x39f   :  { %7217 = vmatpush1.bf16.msra.mxu1 %v7216_v55  ;;  %7297 = vmatpush1.bf16.msra.mxu0 %v7296_v58  ;;  %v7252_v55 = vpack.c.bf16 %v3252_v34, %v3220_v37  ;;  %v7332_v58 = vpack.c.bf16 %v3262_v59, %v3230_v32  ;;  %v3036_v37 = vld [vmem:[%s11538_s4 + $0xa0] sm:$0xff]  ;;  %v3046_v32 = vld [vmem:[%s11538_s4 + $0xf0] sm:$0xff] }
 0x3a0   :  { %7219 = vmatprep.subr.bf16.mxu1 %v7218_v5  ;;  %7299 = vmatprep.subr.bf16.mxu0 %v7298_v8  ;;  %v7270_v5 = vpack.c.bf16 %v3065_v42, %v3033_v38  ;;  %v7350_v8 = vpack.c.bf16 %v3075_v53, %v3043_v52  ;;  %v3068_v34 = vld [vmem:[%s11538_s4 + $0x1a0] sm:$0xff]  ;;  %v3078_v59 = vld [vmem:[%s11538_s4 + $0x1f0] sm:$0xff]  ;;  %v3101_v38 = vld [vmem:[%s11538_s4 + $0x2a8] sm:$0xff] }
 0x3a1   :  { %v3133_v42 = vld [vmem:[%s11538_s4 + $0x3a8] sm:$0xff]  ;;  %v3111_v52 = vld [vmem:[%s11538_s4 + $0x2f8] sm:$0xff] }
 0x3a2   :  { %v3143_v53 = vld [vmem:[%s11538_s4 + $0x3f8] sm:$0xff] }
 0x3a3   :  { %7221 = vmatpush1.bf16.msra.mxu1 %v7220_v40  ;;  %7301 = vmatpush1.bf16.msra.mxu0 %v7300_v43  ;;  %v7272_v40 = vpack.c.bf16 %v3064_v60, %v3032_v4  ;;  %v7352_v43 = vpack.c.bf16 %v3074_v16, %v3042_v15  ;;  %v3100_v4 = vld [vmem:[%s11538_s4 + $0x2a0] sm:$0xff]  ;;  %v3110_v15 = vld [vmem:[%s11538_s4 + $0x2f0] sm:$0xff] }
 0x3a4   :  { %7239 = vmatprep.subr.bf16.mxu1 %v7238_v61  ;;  %7319 = vmatprep.subr.bf16.mxu0 %v7318_v1  ;;  %v7274_v61 = vpack.c.bf16 %v3129_v28, %v3097_v27  ;;  %v7354_v1 = vpack.c.bf16 %v3139_v41, %v3107_v35  ;;  %v3132_v60 = vld [vmem:[%s11538_s4 + $0x3a0] sm:$0xff]  ;;  %v3142_v16 = vld [vmem:[%s11538_s4 + $0x3f0] sm:$0xff]  ;;  %v3165_v27 = vld [vmem:[%s11538_s4 + $0x4a8] sm:$0xff] }
 0x3a5   :  { %v3197_v28 = vld [vmem:[%s11538_s4 + $0x5a8] sm:$0xff]  ;;  %v3175_v35 = vld [vmem:[%s11538_s4 + $0x4f8] sm:$0xff] }
 0x3a6   :  { %5466 = vmatmul.mubr.msk.f32.vlgmr.msra.gmra.mrb[30].mxu1 %vm2708_vm0, %v10477_v22  ;;  %5471 = vmatmul.mubr.msk.f32.vlgmr.msra.gmra.mrb[32].mxu0 %vm2708_vm0, %v10477_v22  ;;  %v3207_v41 = vld [vmem:[%s11538_s4 + $0x5f8] sm:$0xff] }
 0x3a7   :  { %7241 = vmatpush1.bf16.msra.mxu1 %v7240_v57  ;;  %7321 = vmatpush1.bf16.msra.mxu0 %v7320_v46  ;;  %v7276_v57 = vpack.c.bf16 %v3128_v62, %v3096_v50  ;;  %v7356_v46 = vpack.c.bf16 %v3138_v23, %v3106_v7  ;;  %v3164_v50 = vld [vmem:[%s11538_s4 + $0x4a0] sm:$0xff]  ;;  %v3174_v7 = vld [vmem:[%s11538_s4 + $0x4f0] sm:$0xff] }
 0x3a8   :  { %7243 = vmatprep.subr.bf16.mxu1 %v7242_v20  ;;  %7323 = vmatprep.subr.bf16.mxu0 %v7322_v18  ;;  %v7278_v20 = vpack.c.bf16 %v3193_v30, %v3161_v26  ;;  %v7358_v18 = vpack.c.bf16 %v3203_v56, %v3171_v44  ;;  %v3196_v62 = vld [vmem:[%s11538_s4 + $0x5a0] sm:$0xff]  ;;  %v3206_v23 = vld [vmem:[%s11538_s4 + $0x5f0] sm:$0xff]  ;;  %v3229_v26 = vld [vmem:[%s11538_s4 + $0x6a8] sm:$0xff] }
 0x3a9   :  { %3764 = vmatprep.mubr.f32.mxu1 %v7732_v17  ;;  %4119 = vmatprep.mubr.f32.mxu0 %v7732_v17  ;;  %v3261_v30 = vld [vmem:[%s11538_s4 + $0x7a8] sm:$0xff]  ;;  %v3239_v44 = vld [vmem:[%s11538_s4 + $0x6f8] sm:$0xff] }
 0x3aa   :  { %v3271_v56 = vld [vmem:[%s11538_s4 + $0x7f8] sm:$0xff] }
 0x3ab   :  { %7245 = vmatpush1.bf16.msra.mxu1 %v7244_v12  ;;  %7325 = vmatpush1.bf16.msra.mxu0 %v7324_v51  ;;  %v7280_v12 = vpack.c.bf16 %v3192_v11, %v3160_v6  ;;  %v7360_v51 = vpack.c.bf16 %v3202_v21, %v3170_v19  ;;  %v3228_v6 = vld [vmem:[%s11538_s4 + $0x6a0] sm:$0xff]  ;;  %v3238_v19 = vld [vmem:[%s11538_s4 + $0x6f0] sm:$0xff] }
 0x3ac   :  { %7247 = vmatprep.subr.bf16.mxu1 %v7246_v25  ;;  %7327 = vmatprep.subr.bf16.mxu0 %v7326_v47  ;;  %v7282_v25 = vpack.c.bf16 %v3257_v33, %v3225_v63  ;;  %v7362_v47 = vpack.c.bf16 %v3267_v45, %v3235_v39  ;;  %v3260_v11 = vld [vmem:[%s11538_s4 + $0x7a0] sm:$0xff]  ;;  %v3270_v21 = vld [vmem:[%s11538_s4 + $0x7f0] sm:$0xff]  ;;  %v3041_v63 = vld [vmem:[%s11538_s4 + $0xc8] sm:$0xff] }
 0x3ad   :  { %v3073_v33 = vld [vmem:[%s11538_s4 + $0x1c8] sm:$0xff]  ;;  %v4605_v39 = vld [vmem:[%s11540_s6 + $0x18] sm:$0xff] }
 0x3ae   :  { %v4613_v45 = vld [vmem:[%s11540_s6 + $0x58] sm:$0xff] }
 0x3af   :  { %7249 = vmatpush1.bf16.msra.mxu1 %v7248_v31  ;;  %7329 = vmatpush1.bf16.msra.mxu0 %v7328_v14  ;;  %v7284_v31 = vpack.c.bf16 %v3256_v49, %v3224_v48  ;;  %v7364_v14 = vpack.c.bf16 %v3266_v36, %v3234_v2  ;;  %v3040_v48 = vld [vmem:[%s11538_s4 + $0xc0] sm:$0xff]  ;;  %v3105_v2 = vld [vmem:[%s11538_s4 + $0x2c8] sm:$0xff]  ;;  %v4604_v36 = vld [vmem:[%s11540_s6 + $0x10] sm:$0xff] }
 0x3b0   :  { %7251 = vmatprep.subr.bf16.mxu1 %v7250_v24  ;;  %7331 = vmatprep.subr.bf16.mxu0 %v7330_v54  ;;  %v7302_v24 = vpack.c.bf16 %v3069_v10, %v3037_v9  ;;  %v7382_v54 = vpack.c.bf16 %v3079_v3, %v3047_v0  ;;  %v3072_v49 = vld [vmem:[%s11538_s4 + $0x1c0] sm:$0xff]  ;;  %v4612_v9 = vld [vmem:[%s11540_s6 + $0x50] sm:$0xff]  ;;  %v3137_v10 = vld [vmem:[%s11538_s4 + $0x3c8] sm:$0xff] }
 0x3b1   :  { %v4621_v0 = vld [vmem:[%s11540_s6 + $0x98] sm:$0xff] }
 0x3b2   :  { %v4629_v3 = vld [vmem:[%s11540_s6 + $0xd8] sm:$0xff] }
 0x3b3   :  { %7253 = vmatpush1.bf16.msra.mxu1 %v7252_v55  ;;  %7333 = vmatpush1.bf16.msra.mxu0 %v7332_v58  ;;  %v7304_v55 = vpack.c.bf16 %v3068_v34, %v3036_v37  ;;  %v7384_v58 = vpack.c.bf16 %v3078_v59, %v3046_v32  ;;  %v3104_v37 = vld [vmem:[%s11538_s4 + $0x2c0] sm:$0xff]  ;;  %v3169_v32 = vld [vmem:[%s11538_s4 + $0x4c8] sm:$0xff]  ;;  %v4620_v59 = vld [vmem:[%s11540_s6 + $0x90] sm:$0xff] }
 0x3b4   :  { %7271 = vmatprep.subr.bf16.mxu1 %v7270_v5  ;;  %7351 = vmatprep.subr.bf16.mxu0 %v7350_v8  ;;  %v7306_v5 = vpack.c.bf16 %v3133_v42, %v3101_v38  ;;  %v7386_v8 = vpack.c.bf16 %v3143_v53, %v3111_v52  ;;  %v3136_v34 = vld [vmem:[%s11538_s4 + $0x3c0] sm:$0xff]  ;;  %v4628_v38 = vld [vmem:[%s11540_s6 + $0xd0] sm:$0xff]  ;;  %v3201_v42 = vld [vmem:[%s11538_s4 + $0x5c8] sm:$0xff] }
 0x3b5   :  { %v4637_v52 = vld [vmem:[%s11540_s6 + $0x118] sm:$0xff] }
 0x3b6   :  { %5468 = vmatmul.mubr.msk.f32.vlgmr.msra.gmra.mrb[32].mxu1 %vm2708_vm0, %v10477_v22  ;;  %5473 = vmatmul.mubr.msk.f32.vlgmr.msra.gmra.mrb[34].mxu0 %vm2708_vm0, %v10477_v22  ;;  %v4645_v53 = vld [vmem:[%s11540_s6 + $0x158] sm:$0xff] }
 0x3b7   :  { %7273 = vmatpush1.bf16.msra.mxu1 %v7272_v40  ;;  %7353 = vmatpush1.bf16.msra.mxu0 %v7352_v43  ;;  %v7308_v40 = vpack.c.bf16 %v3132_v60, %v3100_v4  ;;  %v7388_v43 = vpack.c.bf16 %v3142_v16, %v3110_v15  ;;  %v3168_v4 = vld [vmem:[%s11538_s4 + $0x4c0] sm:$0xff]  ;;  %v3233_v15 = vld [vmem:[%s11538_s4 + $0x6c8] sm:$0xff]  ;;  %v4636_v16 = vld [vmem:[%s11540_s6 + $0x110] sm:$0xff] }
 0x3b8   :  { %7275 = vmatprep.subr.bf16.mxu1 %v7274_v61  ;;  %7355 = vmatprep.subr.bf16.mxu0 %v7354_v1  ;;  %v7310_v61 = vpack.c.bf16 %v3197_v28, %v3165_v27  ;;  %v7390_v1 = vpack.c.bf16 %v3207_v41, %v3175_v35  ;;  %v3200_v60 = vld [vmem:[%s11538_s4 + $0x5c0] sm:$0xff]  ;;  %v4644_v27 = vld [vmem:[%s11540_s6 + $0x150] sm:$0xff]  ;;  %v3265_v28 = vld [vmem:[%s11538_s4 + $0x7c8] sm:$0xff] }
 0x3b9   :  { %3906 = vmatprep.mubr.f32.mxu1 %v7732_v17  ;;  %4261 = vmatprep.mubr.f32.mxu0 %v7732_v17  ;;  %v4653_v35 = vld [vmem:[%s11540_s6 + $0x198] sm:$0xff] }
 0x3ba   :  { %v4661_v41 = vld [vmem:[%s11540_s6 + $0x1d8] sm:$0xff] }
 0x3bb   :  { %7277 = vmatpush1.bf16.msra.mxu1 %v7276_v57  ;;  %7357 = vmatpush1.bf16.msra.mxu0 %v7356_v46  ;;  %v7312_v57 = vpack.c.bf16 %v3196_v62, %v3164_v50  ;;  %v7392_v46 = vpack.c.bf16 %v3206_v23, %v3174_v7  ;;  %v3232_v50 = vld [vmem:[%s11538_s4 + $0x6c0] sm:$0xff]  ;;  %v3045_v7 = vld [vmem:[%s11538_s4 + $0xe8] sm:$0xff]  ;;  %v4652_v23 = vld [vmem:[%s11540_s6 + $0x190] sm:$0xff] }
 0x3bc   :  { %7279 = vmatprep.subr.bf16.mxu1 %v7278_v20  ;;  %7359 = vmatprep.subr.bf16.mxu0 %v7358_v18  ;;  %v7314_v20 = vpack.c.bf16 %v3261_v30, %v3229_v26  ;;  %v7394_v18 = vpack.c.bf16 %v3271_v56, %v3239_v44  ;;  %v3264_v62 = vld [vmem:[%s11538_s4 + $0x7c0] sm:$0xff]  ;;  %v4660_v26 = vld [vmem:[%s11540_s6 + $0x1d0] sm:$0xff]  ;;  %v3077_v30 = vld [vmem:[%s11538_s4 + $0x1e8] sm:$0xff] }
 0x3bd   :  { %v4609_v44 = vld [vmem:[%s11540_s6 + $0x38] sm:$0xff] }
 0x3be   :  { %v4617_v56 = vld [vmem:[%s11540_s6 + $0x78] sm:$0xff] }
 0x3bf   :  { %7281 = vmatpush1.bf16.msra.mxu1 %v7280_v12  ;;  %7361 = vmatpush1.bf16.msra.mxu0 %v7360_v51  ;;  %v7316_v12 = vpack.c.bf16 %v3260_v11, %v3228_v6  ;;  %v7396_v51 = vpack.c.bf16 %v3270_v21, %v3238_v19  ;;  %v7366_v6 = vpack.c.bf16 %v3077_v30, %v3045_v7  ;;  %v3044_v11 = vld [vmem:[%s11538_s4 + $0xe0] sm:$0xff]  ;;  %v3109_v19 = vld [vmem:[%s11538_s4 + $0x2e8] sm:$0xff]  ;;  %v4664_v30 = vld [vmem:[%s11540_s6 + $0x1f0] sm:$0xff] }
 0x3c0   :  { %7283 = vmatprep.subr.bf16.mxu1 %v7282_v25  ;;  %7363 = vmatprep.subr.bf16.mxu0 %v7362_v47  ;;  %v7334_v25 = vpack.c.bf16 %v3073_v33, %v3041_v63  ;;  %v11064_v47 = vpack.c.bf16 %v4613_v45, %v4605_v39  ;;  %v3141_v21 = vld [vmem:[%s11538_s4 + $0x3e8] sm:$0xff]  ;;  %v4608_v39 = vld [vmem:[%s11540_s6 + $0x30] sm:$0xff]  ;;  %v3108_v45 = vld [vmem:[%s11538_s4 + $0x2e0] sm:$0xff] }
 0x3c1   :  { %v7370_v33 = vpack.c.bf16 %v3141_v21, %v3109_v19  ;;  %v4602_v7 = vld [vmem:[%s11540_s6] sm:$0xff]  ;;  %v4635_v21 = vld [vmem:[%s11540_s6 + $0x108] sm:$0xff] }
 0x3c2   :  { %v4626_v19 = vld [vmem:[%s11540_s6 + $0xc0] sm:$0xff] }
 0x3c3   :  { %7285 = vmatpush1.bf16.msra.mxu1 %v7284_v31  ;;  %7365 = vmatpush1.bf16.msra.mxu0 %v7364_v14  ;;  %v7336_v31 = vpack.c.bf16 %v3072_v49, %v3040_v48  ;;  %v11084_v14 = vpack.c.bf16 %v4612_v9, %v4604_v36  ;;  %v3173_v48 = vld [vmem:[%s11538_s4 + $0x4e8] sm:$0xff] }
 0x3c4   :  { %7303 = vmatprep.subr.bf16.mxu1 %v7302_v24  ;;  %7383 = vmatprep.subr.bf16.mxu0 %v7382_v54  ;;  %v7338_v24 = vpack.c.bf16 %v3137_v10, %v3105_v2  ;;  %v11093_v54 = vpack.c.bf16 %v4629_v3, %v4621_v0  ;;  %v3205_v49 = vld [vmem:[%s11538_s4 + $0x5e8] sm:$0xff]  ;;  %v4633_v2 = vld [vmem:[%s11540_s6 + $0xf8] sm:$0xff]  ;;  %v4624_v0 = vld [vmem:[%s11540_s6 + $0xb0] sm:$0xff] }
 0x3c5   :  { %v7374_v10 = vpack.c.bf16 %v3205_v49, %v3173_v48  ;;  %v3172_v3 = vld [vmem:[%s11538_s4 + $0x4e0] sm:$0xff] }
 0x3c6   :  { %5470 = vmatmul.mubr.msk.f32.vlgmr.msra.gmra.mrb[34].mxu1 %vm2708_vm0, %v10477_v22  ;;  %5475 = vmatmul.mubr.msk.f32.vlgmr.msra.gmra.mrb[36].mxu0 %vm2708_vm0, %v10477_v22  ;;  %v4650_v49 = vld [vmem:[%s11540_s6 + $0x180] sm:$0xff] }
 0x3c7   :  { %7305 = vmatpush1.bf16.msra.mxu1 %v7304_v55  ;;  %7385 = vmatpush1.bf16.msra.mxu0 %v7384_v58  ;;  %v7340_v55 = vpack.c.bf16 %v3136_v34, %v3104_v37  ;;  %v11118_v58 = vpack.c.bf16 %v4628_v38, %v4620_v59  ;;  %v4632_v34 = vld [vmem:[%s11540_s6 + $0xf0] sm:$0xff]  ;;  %v4641_v38 = vld [vmem:[%s11540_s6 + $0x138] sm:$0xff] }
 0x3c8   :  { %7307 = vmatprep.subr.bf16.mxu1 %v7306_v5  ;;  %7387 = vmatprep.subr.bf16.mxu0 %v7386_v8  ;;  %v7342_v5 = vpack.c.bf16 %v3201_v42, %v3169_v32  ;;  %v11127_v8 = vpack.c.bf16 %v4645_v53, %v4637_v52  ;;  %v3269_v32 = vld [vmem:[%s11538_s4 + $0x7e8] sm:$0xff]  ;;  %v4649_v42 = vld [vmem:[%s11540_s6 + $0x178] sm:$0xff]  ;;  %v11259_v53 = vpack.c.bf16 %v4632_v34, %v4624_v0  ;;  %v4614_v0 = vld [vmem:[%s11540_s6 + $0x60] sm:$0xff] }
 0x3c9   :  { %4048 = vmatprep.mubr.f32.mxu1 %v7732_v17  ;;  %4403 = vmatprep.mubr.f32.mxu0 %v7732_v17 }
 0x3cb   :  { %7309 = vmatpush1.bf16.msra.mxu1 %v7308_v40  ;;  %7389 = vmatpush1.bf16.msra.mxu0 %v7388_v43  ;;  %v7344_v40 = vpack.c.bf16 %v3200_v60, %v3168_v4  ;;  %v11150_v43 = vpack.c.bf16 %v4644_v27, %v4636_v16  ;;  %v4640_v4 = vld [vmem:[%s11540_s6 + $0x130] sm:$0xff]  ;;  %v3236_v60 = vld [vmem:[%s11538_s4 + $0x6e0] sm:$0xff]  ;;  %v4603_v27 = vld [vmem:[%s11540_s6 + $0x8] sm:$0xff] }
 0x3cc   :  { %7311 = vmatprep.subr.bf16.mxu1 %v7310_v61  ;;  %7391 = vmatprep.subr.bf16.mxu0 %v7390_v1  ;;  %v7346_v61 = vpack.c.bf16 %v3265_v28, %v3233_v15  ;;  %v11159_v1 = vpack.c.bf16 %v4661_v41, %v4653_v35  ;;  %v11271_v15 = vpack.c.bf16 %v4649_v42, %v4641_v38  ;;  %v4648_v16 = vld [vmem:[%s11540_s6 + $0x170] sm:$0xff]  ;;  %v4611_v28 = vld [vmem:[%s11540_s6 + $0x48] sm:$0xff]  ;;  %v4657_v35 = vld [vmem:[%s11540_s6 + $0x1b8] sm:$0xff] }
 0x3cd   :  { %v4665_v41 = vld [vmem:[%s11540_s6 + $0x1f8] sm:$0xff] }
 0x3cf   :  { %7313 = vmatpush1.bf16.msra.mxu1 %v7312_v57  ;;  %7393 = vmatpush1.bf16.msra.mxu0 %v7392_v46  ;;  %v7348_v57 = vpack.c.bf16 %v3264_v62, %v3232_v50  ;;  %v11180_v46 = vpack.c.bf16 %v4660_v26, %v4652_v23  ;;  %v11290_v50 = vpack.c.bf16 %v4648_v16, %v4640_v4  ;;  %v4610_v23 = vld [vmem:[%s11540_s6 + $0x40] sm:$0xff] }
 0x3d0   :  { %7315 = vmatprep.subr.bf16.mxu1 %v7314_v20  ;;  %7395 = vmatprep.subr.bf16.mxu0 %v7394_v18  ;;  %v3076_v20 = vld [vmem:[%s11538_s4 + $0x1e0] sm:$0xff]  ;;  %v11189_v18 = vpack.c.bf16 %v4617_v56, %v4609_v44  ;;  %v11292_v62 = vpack.c.bf16 %v4611_v28, %v4603_v27  ;;  %v11304_v26 = vpack.c.bf16 %v4665_v41, %v4657_v35  ;;  %v4619_v44 = vld [vmem:[%s11540_s6 + $0x88] sm:$0xff] }
 0x3d1   :  { %v7368_v63 = vpack.c.bf16 %v3076_v20, %v3044_v11  ;;  %v4627_v56 = vld [vmem:[%s11540_s6 + $0xc8] sm:$0xff]  ;;  %v4618_v20 = vld [vmem:[%s11540_s6 + $0x80] sm:$0xff] }
 0x3d2   :  { %v11321_v11 = vpack.c.bf16 %v4627_v56, %v4619_v44 }
 0x3d3   :  { %7317 = vmatpush1.bf16.msra.mxu1 %v7316_v12  ;;  %7397 = vmatpush1.bf16.msra.mxu0 %v7396_v51  ;;  %v3140_v12 = vld [vmem:[%s11538_s4 + $0x3e0] sm:$0xff]  ;;  %v4616_v51 = vld [vmem:[%s11540_s6 + $0x70] sm:$0xff] }
 0x3d4   :  { %7335 = vmatprep.subr.bf16.mxu1 %v7334_v25  ;;  %7415 = vmatprep.subr.bf16.mxu0 %v11064_v47  ;;  %v4625_v25 = vld [vmem:[%s11540_s6 + $0xb8] sm:$0xff]  ;;  %v7372_v36 = vpack.c.bf16 %v3140_v12, %v3108_v45  ;;  %v11226_v9 = vpack.c.bf16 %v4616_v51, %v4608_v39  ;;  %v4634_v45 = vld [vmem:[%s11540_s6 + $0x100] sm:$0xff]  ;;  %v4651_v12 = vld [vmem:[%s11540_s6 + $0x188] sm:$0xff] }
 0x3d5   :  { %v11237_v37 = vpack.c.bf16 %v4633_v2, %v4625_v25  ;;  %v4659_v51 = vld [vmem:[%s11540_s6 + $0x1c8] sm:$0xff]  ;;  %v4658_v25 = vld [vmem:[%s11540_s6 + $0x1c0] sm:$0xff] }
 0x3d6   :  { %5472 = vmatmul.mubr.msk.f32.vlgmr.msra.gmra.mrb[36].mxu1 %vm2708_vm0, %v10477_v22  ;;  %5477 = vmatmul.mubr.msk.f32.vlgmr.msra.gmra.mrb[38].mxu0 %vm2708_vm0, %v10477_v22  ;;  %v4607_v2 = vld [vmem:[%s11540_s6 + $0x28] sm:$0xff] }
 0x3d7   :  { %7337 = vmatpush1.bf16.msra.mxu1 %v7336_v31  ;;  %7417 = vmatpush1.bf16.msra.mxu0 %v11084_v14  ;;  %v3204_v31 = vld [vmem:[%s11538_s4 + $0x5e0] sm:$0xff] }
 0x3d8   :  { %7339 = vmatprep.subr.bf16.mxu1 %v7338_v24  ;;  %7419 = vmatprep.subr.bf16.mxu0 %v11093_v54  ;;  %v3237_v24 = vld [vmem:[%s11538_s4 + $0x6e8] sm:$0xff]  ;;  %v7376_v52 = vpack.c.bf16 %v3204_v31, %v3172_v3 }
 0x3d9   :  { %4190 = vmatprep.mubr.f32.mxu1 %v7732_v17  ;;  %4805 = vmatprep.mubr.f32.mxu0 %v7732_v17  ;;  %v4623_v3 = vld [vmem:[%s11540_s6 + $0xa8] sm:$0xff] }
 0x3db   :  { %7341 = vmatpush1.bf16.msra.mxu1 %v7340_v55  ;;  %7421 = vmatpush1.bf16.msra.mxu0 %v11118_v58  ;;  %v7378_v55 = vpack.c.bf16 %v3269_v32, %v3237_v24  ;;  %v4622_v24 = vld [vmem:[%s11540_s6 + $0xa0] sm:$0xff]  ;;  %v4639_v32 = vld [vmem:[%s11540_s6 + $0x128] sm:$0xff] }
 0x3dc   :  { %7343 = vmatprep.subr.bf16.mxu1 %v7342_v5  ;;  %7423 = vmatprep.subr.bf16.mxu0 %v11127_v8  ;;  %v3268_v5 = vld [vmem:[%s11538_s4 + $0x7e0] sm:$0xff] }
 0x3df   :  { %7345 = vmatpush1.bf16.msra.mxu1 %v7344_v40  ;;  %7425 = vmatpush1.bf16.msra.mxu0 %v11150_v43  ;;  %v7380_v40 = vpack.c.bf16 %v3268_v5, %v3236_v60  ;;  %v4662_v5 = vld [vmem:[%s11540_s6 + $0x1e0] sm:$0xff] }
 0x3e0   :  { %7347 = vmatprep.subr.bf16.mxu1 %v7346_v61  ;;  %7427 = vmatprep.subr.bf16.mxu0 %v11159_v1  ;;  %v4656_v61 = vld [vmem:[%s11540_s6 + $0x1b0] sm:$0xff] }
 0x3e3   :  { %7349 = vmatpush1.bf16.msra.mxu1 %v7348_v57  ;;  %7429 = vmatpush1.bf16.msra.mxu0 %v11180_v46  ;;  %v11315_v57 = vpack.c.bf16 %v4610_v23, %v4602_v7  ;;  %v7552_v23 = vld [vmem:[#allocation2] sm:$0xff] }
 0x3e4   :  { %7367 = vmatprep.subr.bf16.mxu1 %v7366_v6  ;;  %7447 = vmatprep.subr.bf16.mxu0 %v11189_v18  ;;  %v11319_v6 = vpack.c.bf16 %v4664_v30, %v4656_v61 }
 0x3e6   :  { %5474 = vmatmul.mubr.msk.f32.vlgmr.msra.gmra.mrb[38].mxu1 %vm2708_vm0, %v10477_v22 }
 0x3e7   :  { %7369 = vmatpush1.bf16.msra.mxu1 %v7368_v63  ;;  %4332 = vmatprep.mubr.f32.mxu1 %v7732_v17  ;;  %v4643_v63 = vld [vmem:[%s11540_s6 + $0x148] sm:$0xff] }
 0x3e8   :  { %7371 = vmatprep.subr.bf16.mxu1 %v7370_v33  ;;  %v11339_v33 = vpack.c.bf16 %v4626_v19, %v4618_v20  ;;  %v11344_v39 = vpack.c.bf16 %v4643_v63, %v4635_v21  ;;  %v7553_v21 = vld [vmem:[#allocation2 + $0x8] sm:$0xff] }
 0x3ea   :  { %v11248_v59 = vpop.permute.xlu0 %4666 }
 0x3eb   :  { %5479 = vmatmul.mubr.msk.f32.vlgmr.msra.gmra.mrb[40].mxu0 %vm2708_vm0, %v11248_v59  ;;  %7373 = vmatpush1.bf16.msra.mxu1 %v7372_v36  ;;  %v7412_v36 = vpack.c.bf16 %v4658_v25, %v4650_v49  ;;  %v7554_v25 = vld [vmem:[#allocation2 + $0x10] sm:$0xff] }
 0x3ec   :  { %7449 = vmatpush1.bf16.msra.mxu0 %v11226_v9  ;;  %7375 = vmatprep.subr.bf16.mxu1 %v7374_v10 }
 0x3ed   :  { %7451 = vmatprep.subr.bf16.mxu0 %v11237_v37  ;;  %4947 = vmatprep.mubr.f32.mxu0 %v7732_v17 }
 0x3ef   :  { %7377 = vmatpush1.bf16.msra.mxu1 %v7376_v52  ;;  %v4646_v52 = vld [vmem:[%s11540_s6 + $0x160] sm:$0xff] }
 0x3f0   :  { %7453 = vmatpush1.bf16.msra.mxu0 %v11259_v53  ;;  %7379 = vmatprep.subr.bf16.mxu1 %v7378_v55  ;;  %v4655_v55 = vld [vmem:[%s11540_s6 + $0x1a8] sm:$0xff] }
 0x3f1   :  { %7455 = vmatprep.subr.bf16.mxu0 %v11271_v15 }
 0x3f3   :  { %7381 = vmatpush1.bf16.msra.mxu1 %v7380_v40 }
 0x3f4   :  { %7457 = vmatpush1.bf16.msra.mxu0 %v11290_v50  ;;  %7399 = vmatprep.subr.bf16.mxu1 %v11292_v62 }
 0x3f5   :  { %7459 = vmatprep.subr.bf16.mxu0 %v11304_v26 }
 0x3f6   :  { %5476 = vmatmul.mubr.msk.f32.vlgmr.msra.gmra.mrb[40].mxu1 %vm2708_vm0, %v10477_v22  ;;  %v4642_v22 = vld [vmem:[%s11540_s6 + $0x140] sm:$0xff] }
 0x3f7   :  { %7401 = vmatpush1.bf16.msra.mxu1 %v11315_v57  ;;  %4734 = vmatprep.mubr.f32.mxu1 %v7732_v17  ;;  %v11362_v48 = vpack.c.bf16 %v4642_v22, %v4634_v45 }
 0x3f8   :  { %7461 = vmatpush1.bf16.msra.mxu0 %v11319_v6  ;;  %7403 = vmatprep.subr.bf16.mxu1 %v11321_v11 }
 0x3f9   :  { %7479 = vmatprep.subr.bf16.mxu0 %v11064_v47  ;;  %v11366_v47 = vpack.c.bf16 %v4659_v51, %v4651_v12 }
 0x3fb   :  { %5481 = vmatmul.mubr.msk.f32.vlgmr.msra.gmra.mrb[42].mxu0 %vm2708_vm0, %v11248_v59  ;;  %7405 = vmatpush1.bf16.msra.mxu1 %v11339_v33 }
 0x3fc   :  { %7481 = vmatpush1.bf16.msra.mxu0 %v11084_v14  ;;  %7407 = vmatprep.subr.bf16.mxu1 %v11344_v39  ;;  %v4615_v14 = vld [vmem:[%s11540_s6 + $0x68] sm:$0xff] }
 0x3fd   :  { %7483 = vmatprep.subr.bf16.mxu0 %v11093_v54  ;;  %5203 = vmatprep.mubr.f32.mxu0 %v7732_v17  ;;  %v7430_v10 = vpack.c.bf16 %v4615_v14, %v4607_v2  ;;  %v4606_v54 = vld [vmem:[%s11540_s6 + $0x20] sm:$0xff] }
 0x3fe   :  { %v7432_v31 = vpack.c.bf16 %v4614_v0, %v4606_v54 }
 0x3ff   :  { %7409 = vmatpush1.bf16.msra.mxu1 %v11362_v48 }
 0x400   :  { %7485 = vmatpush1.bf16.msra.mxu0 %v11118_v58  ;;  %7411 = vmatprep.subr.bf16.mxu1 %v11366_v47  ;;  %v4631_v58 = vld [vmem:[%s11540_s6 + $0xe8] sm:$0xff] }
 0x401   :  { %7487 = vmatprep.subr.bf16.mxu0 %v11127_v8  ;;  %v7434_v34 = vpack.c.bf16 %v4631_v58, %v4623_v3  ;;  %v4630_v8 = vld [vmem:[%s11540_s6 + $0xe0] sm:$0xff] }
 0x402   :  { %v7436_v38 = vpack.c.bf16 %v4630_v8, %v4622_v24  ;;  %v7555_v24 = vld [vmem:[#allocation2 + $0x18] sm:$0xff] }
 0x403   :  { %7413 = vmatpush1.bf16.msra.mxu1 %v7412_v36 }
 0x404   :  { %7489 = vmatpush1.bf16.msra.mxu0 %v11150_v43  ;;  %7431 = vmatprep.subr.bf16.mxu1 %v7430_v10  ;;  %v4647_v43 = vld [vmem:[%s11540_s6 + $0x168] sm:$0xff] }
 0x405   :  { %7491 = vmatprep.subr.bf16.mxu0 %v11159_v1  ;;  %v7438_v42 = vpack.c.bf16 %v4647_v43, %v4639_v32  ;;  %v4638_v1 = vld [vmem:[%s11540_s6 + $0x120] sm:$0xff] }
 0x406   :  { %5478 = vmatmul.mubr.msk.f32.vlgmr.msra.gmra.mrb[42].mxu1 %vm2708_vm0, %v11248_v59  ;;  %v7440_v4 = vpack.c.bf16 %v4646_v52, %v4638_v1 }
 0x407   :  { %7433 = vmatpush1.bf16.msra.mxu1 %v7432_v31  ;;  %4876 = vmatprep.mubr.f32.mxu1 %v7732_v17 }
 0x408   :  { %7493 = vmatpush1.bf16.msra.mxu0 %v11180_v46  ;;  %7435 = vmatprep.subr.bf16.mxu1 %v7434_v34  ;;  %v4663_v46 = vld [vmem:[%s11540_s6 + $0x1e8] sm:$0xff] }
 0x409   :  { %7511 = vmatprep.subr.bf16.mxu0 %v11189_v18  ;;  %v7442_v60 = vpack.c.bf16 %v4663_v46, %v4655_v55  ;;  %v4654_v18 = vld [vmem:[%s11540_s6 + $0x1a0] sm:$0xff]  ;;  %s7734_s6 = smov [#allocation12]  }
 0x40a   :  { %v7444_v16 = vpack.c.bf16 %v4662_v5, %v4654_v18  ;;  %s5436_s23 = sshll.u32 %s7734_s6, 4  ;;  %s5437_s23 = int_to_ptr.vmem [resolvable:$true] %s5436_s23 }
 0x40b   :  { %5483 = vmatmul.mubr.msk.f32.vlgmr.msra.gmra.mrb[44].mxu0 %vm2708_vm0, %v10490_v29  ;;  %7437 = vmatpush1.bf16.msra.mxu1 %v7436_v38  ;;  %s7630_s2 = scalar_lea.vmem %s5437_s23, 64  ;;  %p7635_p11 = scmp.lt.s32.totalorder %s5437_s23, %s5437_s23 }
 0x40c   :  { %7513 = vmatpush1.bf16.msra.mxu0 %v11226_v9  ;;  %7439 = vmatprep.subr.bf16.mxu1 %v7438_v42  ;;  %p7631_p10 = scmp.ne.s32.totalorder %s5437_s23, %s7630_s2  ;;  %p7636_p12 = scmp.lt.s32.totalorder %s7630_s2, %s7630_s2 }
 0x40d   :  { %7515 = vmatprep.subr.bf16.mxu0 %v11237_v37  ;;  %5345 = vmatprep.mubr.f32.mxu0 %v7732_v17 }
 0x40e   :  { %p7637_p13 = por %p7636_p12, %p7635_p11 }
 0x40f   :  { %7441 = vmatpush1.bf16.msra.mxu1 %v7440_v4 }
 0x410   :  { %7517 = vmatpush1.bf16.msra.mxu0 %v11259_v53  ;;  %7443 = vmatprep.subr.bf16.mxu1 %v7442_v60  ;;  %p7638_p0 = pnand %p7637_p13, %p7631_p10 }
 0x411   :  { %7519 = vmatprep.subr.bf16.mxu0 %v11271_v15 }
 0x413   :  { %7445 = vmatpush1.bf16.msra.mxu1 %v7444_v16 }
 0x414   :  { %7521 = vmatpush1.bf16.msra.mxu0 %v11290_v50  ;;  %7463 = vmatprep.subr.bf16.mxu1 %v11292_v62 }
 0x415   :  { %7523 = vmatprep.subr.bf16.mxu0 %v11304_v26 }
 0x416   :  { %5480 = vmatmul.mubr.msk.f32.vlgmr.msra.gmra.mrb[44].mxu1 %vm2708_vm0, %v11248_v59 }
 0x417   :  { %7465 = vmatpush1.bf16.msra.mxu1 %v11315_v57  ;;  %5132 = vmatprep.mubr.f32.mxu1 %v7732_v17 }
 0x418   :  { %7525 = vmatpush1.bf16.msra.mxu0 %v11319_v6  ;;  %7467 = vmatprep.subr.bf16.mxu1 %v11321_v11 }
 0x41b   :  { %5485 = vmatmul.mubr.msk.f32.vlgmr.msra.gmra.mrb[46].mxu0 %vm2708_vm0, %v10490_v29  ;;  %7469 = vmatpush1.bf16.msra.mxu1 %v11339_v33 }
 0x41c   :  { %7471 = vmatprep.subr.bf16.mxu1 %v11344_v39 }
 0x41f   :  { %7473 = vmatpush1.bf16.msra.mxu1 %v11362_v48 }
 0x420   :  { %7475 = vmatprep.subr.bf16.mxu1 %v11366_v47 }
 0x423   :  { %7477 = vmatpush1.bf16.msra.mxu1 %v7412_v36 }
 0x424   :  { %7495 = vmatprep.subr.bf16.mxu1 %v7430_v10 }
 0x426   :  { %5482 = vmatmul.mubr.msk.f32.vlgmr.msra.gmra.mrb[46].mxu1 %vm2708_vm0, %v10490_v29 }
 0x427   :  { %7497 = vmatpush1.bf16.msra.mxu1 %v7432_v31  ;;  %5274 = vmatprep.mubr.f32.mxu1 %v7732_v17 }
 0x428   :  { %7499 = vmatprep.subr.bf16.mxu1 %v7434_v34 }
 0x42b   :  { %7501 = vmatpush1.bf16.msra.mxu1 %v7436_v38 }
 0x42c   :  { %7503 = vmatprep.subr.bf16.mxu1 %v7438_v42 }
 0x42f   :  { %7505 = vmatpush1.bf16.msra.mxu1 %v7440_v4 }
 0x430   :  { %7507 = vmatprep.subr.bf16.mxu1 %v7442_v60 }
 0x433   :  { %7509 = vmatpush1.bf16.msra.mxu1 %v7444_v16 }
 0x436   :  { %5484 = vmatmul.mubr.msk.f32.vlgmr.msra.gmra.mrb[48].mxu1 %vm2708_vm0, %v10490_v29 }
 0x449   :  { %v3340_v9 = vpop.f32.mrb[24].mxu1  ;;  %v3553_v37 = vpop.f32.mrb[26].mxu0 }
 0x44a   :  { %v3342_v59 = vpop.f32.mrb[25].mxu1  ;;  %v3555_v53 = vpop.f32.mrb[27].mxu0 }
 0x44b   :  { %v4442_v15 = vcombine.low %v3340_v9, %v3342_v59  ;;  %v4460_v27 = vcombine.low %v3553_v37, %v3555_v53 }
 0x44d   :  { %v4450_v62 = vrot.slane %v4442_v15, %v8002_v13  ;;  %v4474_v11 = vrot.slane %v4460_v27, %v8002_v13 }
 0x459   :  { %v3411_v28 = vpop.f32.mrb[26].mxu1  ;;  %v3695_v35 = vpop.f32.mrb[28].mxu0 }
 0x45a   :  { %v3413_v41 = vpop.f32.mrb[27].mxu1  ;;  %v3697_v40 = vpop.f32.mrb[29].mxu0 }
 0x45b   :  { %v4443_v17 = vcombine.low %v3411_v28, %v3413_v41  ;;  %v4477_v50 = vcombine.low %v3695_v35, %v3697_v40 }
 0x45d   :  { %v4457_v61 = vrot.slane %v4443_v17, %v8002_v13  ;;  %v4491_v48 = vrot.slane %v4477_v50, %v8002_v13 }
 0x45f   :  { %v4458_v7 = vcombine.low %v4450_v62, %v4457_v61 }
 0x461   :  { %v4586_v26 = vmul.f32 %v7552_v23, %v4458_v7 }
 0x463   :  { %4594 = vst [vmem:[#allocation8] sm:$0xff] %v4586_v26 }
 0x469   :  { %v3482_v29 = vpop.f32.mrb[28].mxu1  ;;  %v3837_v30 = vpop.f32.mrb[30].mxu0 }
 0x46a   :  { %v3484_v44 = vpop.f32.mrb[29].mxu1  ;;  %v3839_v56 = vpop.f32.mrb[31].mxu0 }
 0x46b   :  { %v4459_v57 = vcombine.low %v3482_v29, %v3484_v44  ;;  %v4494_v6 = vcombine.low %v3837_v30, %v3839_v56 }
 0x46d   :  { %v4467_v20 = vrot.slane %v4459_v57, %v8002_v13  ;;  %v4508_v58 = vrot.slane %v4494_v6, %v8002_v13 }
 0x46f   :  { %v4475_v19 = vcombine.low %v4467_v20, %v4474_v11 }
 0x471   :  { %v4587_v63 = vmul.f32 %v7553_v21, %v4475_v19 }
 0x473   :  { %4595 = vst [vmem:[#allocation8 + $0x8] sm:$0xff] %v4587_v63 }
 0x479   :  { %v3624_v33 = vpop.f32.mrb[30].mxu1  ;;  %v3979_v39 = vpop.f32.mrb[32].mxu0 }
 0x47a   :  { %v3626_v45 = vpop.f32.mrb[31].mxu1  ;;  %v3981_v22 = vpop.f32.mrb[33].mxu0 }
 0x47b   :  { %v4476_v12 = vcombine.low %v3624_v33, %v3626_v45  ;;  %v4511_v51 = vcombine.low %v3979_v39, %v3981_v22 }
 0x47d   :  { %v4484_v47 = vrot.slane %v4476_v12, %v8002_v13 }
 0x47f   :  { %v4492_v49 = vcombine.low %v4484_v47, %v4491_v48 }
 0x481   :  { %v4588_v2 = vmul.f32 %v7554_v25, %v4492_v49 }
 0x483   :  { %4596 = vst [vmem:[#allocation8 + $0x10] sm:$0xff] %v4588_v2 }
 0x489   :  { %v3766_v14 = vpop.f32.mrb[32].mxu1  ;;  %v4121_v36 = vpop.f32.mrb[34].mxu0 }
 0x48a   :  { %v3768_v10 = vpop.f32.mrb[33].mxu1  ;;  %v4123_v54 = vpop.f32.mrb[35].mxu0 }
 0x48b   :  { %v4493_v0 = vcombine.low %v3766_v14, %v3768_v10  ;;  %v4528_v3 = vcombine.low %v4121_v36, %v4123_v54 }
 0x48d   :  { %v4501_v31 = vrot.slane %v4493_v0, %v8002_v13 }
 0x48f   :  { %v4509_v34 = vcombine.low %v4501_v31, %v4508_v58 }
 0x491   :  { %v4589_v8 = vmul.f32 %v7555_v24, %v4509_v34 }
 0x493   :  { %4597 = vst [vmem:[#allocation8 + $0x18] sm:$0xff] %v4589_v8 }
 0x499   :  { %v3908_v32 = vpop.f32.mrb[34].mxu1  ;;  %v4263_v43 = vpop.f32.mrb[36].mxu0 }
 0x49a   :  { %7641 = shalt.err (!%p7638_p0)
}
 0x49b   :  { %s7642_s25 = scalar_lea.hbm %s11548_s14, 64 }
 0x49c   :  { %p7643_p1 = scmp.ne.s32.totalorder %s11548_s14, %s7642_s25  ;;  %p7646_p2 = scmp.lt.u32.totalorder %s7642_s25, %s11548_s14 }
 0x49e   :  { %p7648_p3 = pnand %p7646_p2, %p7643_p1 }
 0x4a0   :  { %7651 = shalt.err (!%p7648_p3)
}
 0x4a1   :  { %5439 = dma.vmem_to_hbm [thread:$0]  %s5437_s23, 64, %s11548_s14, [#allocation13]   ;;  %v3910_v38 = vpop.f32.mrb[35].mxu1  ;;  %v4265_v42 = vpop.f32.mrb[37].mxu0  ;;  %v4525_v55 = vrot.slane %v4511_v51, %v8002_v13  ;;  %v7556_v60 = vld [vmem:[#allocation2 + $0x20] sm:$0xff]  ;;  %v4542_v15 = vrot.slane %v4528_v3, %v8002_v13  ;;  %v7557_v35 = vld [vmem:[#allocation2 + $0x28] sm:$0xff] }
 0x4a2   :  { %v4510_v1 = vcombine.low %v3908_v32, %v3910_v38  ;;  %v4545_v52 = vcombine.low %v4263_v43, %v4265_v42  ;;  %v7558_v30 = vld [vmem:[#allocation2 + $0x30] sm:$0xff]  ;;  %s7735_s14 = smov [#allocation8]   ;;  %v7559_v39 = vld [vmem:[#allocation2 + $0x38] sm:$0xff] }
 0x4a3   :  { %s5406_s4 = sshll.u32 %s7735_s14, 4  ;;  %s5407_s4 = int_to_ptr.vmem [resolvable:$true] %s5406_s4 }
 0x4a4   :  { %v4518_v46 = vrot.slane %v4510_v1, %v8002_v13  ;;  %v4559_v62 = vrot.slane %v4545_v52, %v8002_v13  ;;  %s7652_s9 = scalar_lea.vmem %s5407_s4, 1024  ;;  %p7657_p5 = scmp.lt.s32.totalorder %s5407_s4, %s5407_s4 }
 0x4a5   :  { %p7653_p4 = scmp.ne.s32.totalorder %s5407_s4, %s7652_s9  ;;  %p7658_p6 = scmp.lt.s32.totalorder %s7652_s9, %s7652_s9 }
 0x4a6   :  { %v4526_v4 = vcombine.low %v4518_v46, %v4525_v55 }
 0x4a7   :  { %p7659_p7 = por %p7658_p6, %p7657_p5 }
 0x4a8   :  { %v4590_v18 = vmul.f32 %v7556_v60, %v4526_v4 }
 0x4a9   :  { %v4050_v5 = vpop.f32.mrb[36].mxu1  ;;  %v4405_v16 = vpop.f32.mrb[38].mxu0  ;;  %p7660_p8 = pnand %p7659_p7, %p7653_p4 }
 0x4aa   :  { %4598 = vst [vmem:[#allocation8 + $0x20] sm:$0xff] %v4590_v18  ;;  %v4052_v9 = vpop.f32.mrb[37].mxu1  ;;  %v4407_v37 = vpop.f32.mrb[39].mxu0 }
 0x4ab   :  { %v4527_v59 = vcombine.low %v4050_v5, %v4052_v9  ;;  %v4562_v53 = vcombine.low %v4405_v16, %v4407_v37 }
 0x4ad   :  { %v4535_v27 = vrot.slane %v4527_v59, %v8002_v13  ;;  %v4576_v11 = vrot.slane %v4562_v53, %v8002_v13 }
 0x4af   :  { %v4543_v28 = vcombine.low %v4535_v27, %v4542_v15 }
 0x4b1   :  { %v4591_v41 = vmul.f32 %v7557_v35, %v4543_v28 }
 0x4b3   :  { %4599 = vst [vmem:[#allocation8 + $0x28] sm:$0xff] %v4591_v41 }
 0x4b9   :  { %v4192_v40 = vpop.f32.mrb[38].mxu1 }
 0x4ba   :  { %v4194_v17 = vpop.f32.mrb[39].mxu1 }
 0x4bb   :  { %v4544_v50 = vcombine.low %v4192_v40, %v4194_v17 }
 0x4bd   :  { %v4552_v61 = vrot.slane %v4544_v50, %v8002_v13 }
 0x4be   :  { %v4807_v7 = vpop.f32.mrb[40].mxu0 }
 0x4bf   :  { %v4560_v23 = vcombine.low %v4552_v61, %v4559_v62  ;;  %v4809_v26 = vpop.f32.mrb[41].mxu0 }
 0x4c0   :  { %v4963_v29 = vcombine.low %v4807_v7, %v4809_v26 }
 0x4c1   :  { %v4592_v44 = vmul.f32 %v7558_v30, %v4560_v23 }
 0x4c3   :  { %4600 = vst [vmem:[#allocation8 + $0x30] sm:$0xff] %v4592_v44 }
 0x4c9   :  { %v4334_v56 = vpop.f32.mrb[40].mxu1 }
 0x4ca   :  { %v4336_v57 = vpop.f32.mrb[41].mxu1 }
 0x4cb   :  { %v4561_v6 = vcombine.low %v4334_v56, %v4336_v57 }
 0x4cd   :  { %v4569_v20 = vrot.slane %v4561_v6, %v8002_v13 }
 0x4ce   :  { %v4949_v19 = vpop.f32.mrb[42].mxu0 }
 0x4cf   :  { %v4577_v21 = vcombine.low %v4569_v20, %v4576_v11  ;;  %v4951_v63 = vpop.f32.mrb[43].mxu0 }
 0x4d0   :  { %v4980_v33 = vcombine.low %v4949_v19, %v4951_v63 }
 0x4d1   :  { %v4593_v45 = vmul.f32 %v7559_v39, %v4577_v21 }
 0x4d3   :  { %4601 = vst [vmem:[#allocation8 + $0x38] sm:$0xff] %v4593_v45 }
 0x4d4   :  { %7663 = shalt.err (!%p7660_p8)
}
 0x4d5   :  { %s7664_s10 = scalar_lea.hbm %s11545_s11, 1024 }
 0x4d6   :  { %p7665_p9 = scmp.ne.s32.totalorder %s11545_s11, %s7664_s10  ;;  %p7668_p10 = scmp.lt.u32.totalorder %s7664_s10, %s11545_s11 }
 0x4d8   :  { %p7670_p11 = pnand %p7668_p10, %p7665_p9 }
 0x4da   :  { %7673 = shalt.err (!%p7670_p11)
}
 0x4db   :  { %5409 = dma.vmem_to_hbm [thread:$0]  %s5407_s4, 1024, %s11545_s11, [#allocation4]   ;;  %v4736_v22 = vpop.f32.mrb[42].mxu1  ;;  %v4977_v48 = vrot.slane %v4963_v29, %v8002_v13  ;;  %v7560_v36 = vld [vmem:[#allocation5] sm:$0xff]  ;;  %v4994_v58 = vrot.slane %v4980_v33, %v8002_v13  ;;  %v7561_v43 = vld [vmem:[#allocation5 + $0x8] sm:$0xff] }
 0x4dc   :  { %v4738_v12 = vpop.f32.mrb[43].mxu1  ;;  %s7736_s11 = smov [#allocation9]  }
 0x4dd   :  { %v4962_v51 = vcombine.low %v4736_v22, %v4738_v12  ;;  %s5416_s1 = sshll.u32 %s7736_s11, 4  ;;  %s5417_s1 = int_to_ptr.vmem [resolvable:$true] %s5416_s1 }
 0x4de   :  { %v5205_v49 = vpop.f32.mrb[44].mxu0  ;;  %s7674_s30 = scalar_lea.vmem %s5417_s1, 256  ;;  %p7679_p13 = scmp.lt.s32.totalorder %s5417_s1, %s5417_s1 }
 0x4df   :  { %v4970_v47 = vrot.slane %v4962_v51, %v8002_v13  ;;  %v5207_v2 = vpop.f32.mrb[45].mxu0  ;;  %p7675_p12 = scmp.ne.s32.totalorder %s5417_s1, %s7674_s30  ;;  %p7680_p0 = scmp.lt.s32.totalorder %s7674_s30, %s7674_s30 }
 0x4e0   :  { %v5361_v14 = vcombine.low %v5205_v49, %v5207_v2 }
 0x4e1   :  { %v4978_v25 = vcombine.low %v4970_v47, %v4977_v48  ;;  %p7681_p1 = por %p7680_p0, %p7679_p13 }
 0x4e3   :  { %v4998_v10 = vmul.f32 %v7560_v36, %v4978_v25  ;;  %p7682_p2 = pnand %p7681_p1, %p7675_p12 }
 0x4e5   :  { %5000 = vst [vmem:[#allocation9] sm:$0xff] %v4998_v10 }
 0x4e9   :  { %v4878_v54 = vpop.f32.mrb[44].mxu1 }
 0x4ea   :  { %v4880_v0 = vpop.f32.mrb[45].mxu1 }
 0x4eb   :  { %v4979_v3 = vcombine.low %v4878_v54, %v4880_v0 }
 0x4ed   :  { %v4987_v31 = vrot.slane %v4979_v3, %v8002_v13 }
 0x4ee   :  { %v5347_v34 = vpop.f32.mrb[46].mxu0 }
 0x4ef   :  { %v4995_v24 = vcombine.low %v4987_v31, %v4994_v58  ;;  %v5349_v8 = vpop.f32.mrb[47].mxu0 }
 0x4f0   :  { %v5378_v32 = vcombine.low %v5347_v34, %v5349_v8 }
 0x4f1   :  { %v4999_v38 = vmul.f32 %v7561_v43, %v4995_v24 }
 0x4f3   :  { %5001 = vst [vmem:[#allocation9 + $0x8] sm:$0xff] %v4999_v38 }
 0x4f4   :  { %7685 = shalt.err (!%p7682_p2)
}
 0x4f5   :  { %s7686_s6 = scalar_lea.hbm %s11546_s12, 256 }
 0x4f6   :  { %p7687_p3 = scmp.ne.s32.totalorder %s11546_s12, %s7686_s6  ;;  %p7690_p4 = scmp.lt.u32.totalorder %s7686_s6, %s11546_s12 }
 0x4f8   :  { %p7692_p5 = pnand %p7690_p4, %p7687_p3 }
 0x4fa   :  { %7695 = shalt.err (!%p7692_p5)
}
 0x4fb   :  { %5419 = dma.vmem_to_hbm [thread:$0]  %s5417_s1, 256, %s11546_s12, [#allocation10]   ;;  %v5134_v42 = vpop.f32.mrb[46].mxu1  ;;  %v5375_v55 = vrot.slane %v5361_v14, %v8002_v13  ;;  %v7562_v60 = vld [vmem:[#allocation7] sm:$0xff]  ;;  %v5392_v37 = vrot.slane %v5378_v32, %v8002_v13  ;;  %v7563_v15 = vld [vmem:[#allocation7 + $0x8] sm:$0xff] }
 0x4fc   :  { %v5136_v1 = vpop.f32.mrb[47].mxu1  ;;  %s7737_s5 = smov [#allocation11]  }
 0x4fd   :  { %v5360_v52 = vcombine.low %v5134_v42, %v5136_v1  ;;  %s5426_s12 = sshll.u32 %s7737_s5, 4  ;;  %s5427_s12 = int_to_ptr.vmem [resolvable:$true] %s5426_s12 }
 0x4fe   :  { %s7696_s27 = scalar_lea.vmem %s5427_s12, 256  ;;  %p7701_p7 = scmp.lt.s32.totalorder %s5427_s12, %s5427_s12 }
 0x4ff   :  { %v5368_v46 = vrot.slane %v5360_v52, %v8002_v13  ;;  %p7697_p6 = scmp.ne.s32.totalorder %s5427_s12, %s7696_s27  ;;  %p7702_p8 = scmp.lt.s32.totalorder %s7696_s27, %s7696_s27 }
 0x501   :  { %v5376_v4 = vcombine.low %v5368_v46, %v5375_v55  ;;  %p7703_p9 = por %p7702_p8, %p7701_p7 }
 0x503   :  { %v5396_v18 = vmul.f32 %v7562_v60, %v5376_v4  ;;  %p7704_p10 = pnand %p7703_p9, %p7697_p6 }
 0x505   :  { %5398 = vst [vmem:[#allocation11] sm:$0xff] %v5396_v18 }
 0x509   :  { %v5276_v5 = vpop.f32.mrb[48].mxu1 }
 0x50a   :  { %v5278_v16 = vpop.f32.mrb[49].mxu1 }
 0x50b   :  { %v5377_v9 = vcombine.low %v5276_v5, %v5278_v16 }
 0x50d   :  { %v5385_v59 = vrot.slane %v5377_v9, %v8002_v13 }
 0x50f   :  { %v5393_v53 = vcombine.low %v5385_v59, %v5392_v37 }
 0x511   :  { %v5397_v27 = vmul.f32 %v7563_v15, %v5393_v53 }
 0x513   :  { %5399 = vst [vmem:[#allocation11 + $0x8] sm:$0xff] %v5397_v27 }
 0x514   :  { %7707 = shalt.err (!%p7704_p10)
}
 0x515   :  { %s7708_s7 = scalar_lea.hbm %s11547_s13, 256 }
 0x516   :  { %p7709_p11 = scmp.ne.s32.totalorder %s11547_s13, %s7708_s7  ;;  %p7712_p12 = scmp.lt.u32.totalorder %s7708_s7, %s11547_s13 }
 0x518   :  { %p7714_p13 = pnand %p7712_p12, %p7709_p11 }
 0x51a   :  { %7717 = shalt.err (!%p7714_p13)
}
 0x51b   :  { %5429 = dma.vmem_to_hbm [thread:$0]  %s5427_s12, 256, %s11547_s13, [#allocation10]  }
 0x51c   :  { %7722 = dma.done.wait [#allocation4], 1024  }
 0x51d   :  { %7723 = vsyncadd [#allocation4], 4294966272 }
 0x51e   :  { %7724 = dma.done.wait [#allocation10], 512  }
 0x51f   :  { %7725 = vsyncadd [#allocation10], 4294966784 }
 0x520   :  { %7726 = dma.done.wait [#allocation13], 64  }
 0x521   :  { %7727 = vsyncadd [#allocation13], 4294967232 }
 0x522   :  { %5452 = vsyncpa [#allocation3], 1 }
 0x523   :  { %5453 = vsyncpa [#allocation6], 1 }
 0x524   :  { %5454 = vsyncpa [#allocation4], 1 }
 0x525   :  { %5455 = vsyncpa [#allocation10], 1 }
 0x526   :  { %5456 = vsyncpa [#allocation13], 1 }

</bundles_post_ra>
